<compile_context>
chip_gen: v7x
topology: tpu7x:2x2x1
jax: 0.10.0
libtpu: 0.0.40
codegen_flags: <defaults>
</compile_context>

<pallas_src>
import jax
import jax.numpy as jnp
from jax.experimental import pallas as pl
from jax.experimental.pallas import tpu as pltpu

EPS = 1e-5

CONV_LAYERS = ((1, 5, 1), (2, 5, 2), (3, 5, 2))   # (layer idx, kernel size, stride)


# ----------------------------------------------------------------------------
# Kernel 1: conv-as-matmul (BN scale pre-folded into bf16 weights) + shift + ReLU
#           Batch is merged into M; whole problem is one grid-free block.
# ----------------------------------------------------------------------------
def conv_bn_relu_kernel(p_ref, w_ref, shift_ref, o_ref):
    acc = jnp.dot(p_ref[...], w_ref[...], preferred_element_type=jnp.float32)
    o_ref[...] = jnp.maximum(acc + shift_ref[...], 0.0).astype(o_ref.dtype)


def conv_bn_relu(patches, w_mat, shift):
    """patches: (M, K) bf16, w_mat: (K, O) bf16, shift: (1, O) f32 -> (M, O) bf16."""
    M, K = patches.shape
    O = w_mat.shape[1]
    cost = pl.CostEstimate(
        flops=2 * M * K * O,
        transcendentals=0,
        bytes_accessed=M * K * 2 + K * O * 2 + O * 4 + M * O * 2,
    )
    return pl.pallas_call(
        conv_bn_relu_kernel,
        out_shape=jax.ShapeDtypeStruct((M, O), jnp.bfloat16),
        cost_estimate=cost,
    )(patches, w_mat, shift)


# ----------------------------------------------------------------------------
# Kernel 2: conv3 (matmul + shift + ReLU) fused with Linear + softmax.
#           One image per grid step, marked "parallel" (2 TCs on v7x).
#           FC is done as A broadcast-mul + full reductions on the (81, 32)
#           VMEM-resident ReLU tile (fc weights pre-permuted to (A, 81, 32)).
# ----------------------------------------------------------------------------
def conv3_fc_softmax_kernel(p_ref, w_ref, shift_ref, fcw_ref, fcb_ref, o_ref):
    acc = jnp.dot(p_ref[...], w_ref[...], preferred_element_type=jnp.float32)
    act = jnp.maximum(acc + shift_ref[...], 0.0)                # (81, 32) f32

    A = fcw_ref.shape[0]
    col = jax.lax.broadcasted_iota(jnp.int32, (1, A), 1)
    logits = fcb_ref[...]                                       # (1, A) f32
    for a in range(A):                                          # static unroll (A=3)
        pa = jnp.sum(act * fcw_ref[a], axis=1, keepdims=True)   # (81, 1)
        la = jnp.sum(pa, axis=0, keepdims=True)                 # (1, 1)
        logits = logits + jnp.where(col == a, la, 0.0)

    m = jnp.max(logits, axis=1, keepdims=True)
    e = jnp.exp(logits - m)
    denom = jnp.sum(e, axis=1, keepdims=True)
    o_ref[...] = e * pl.reciprocal(denom, approx=True)


def conv3_fc_softmax(patches3, w3, shift3, fc_w, fc_b):
    """patches3: (B, 81, 800) bf16, w3: (800, 32) bf16, fc_w: (A, 81, 32) f32."""
    B, M, K = patches3.shape
    O = w3.shape[1]
    A = fc_w.shape[0]
    cost = pl.CostEstimate(
        flops=B * (2 * M * K * O + 2 * M * O * A),
        transcendentals=B * A,
        bytes_accessed=(B * M * K * 2 + K * O * 2 + O * 4
                        + A * M * O * 4 + A * 4 + B * A * 4),
    )
    out = pl.pallas_call(
        conv3_fc_softmax_kernel,
        out_shape=jax.ShapeDtypeStruct((B, 1, A), jnp.float32),
        grid=(B,),
        in_specs=[
            pl.BlockSpec((None, M, K), lambda b: (b, 0, 0)),    # one image per step
            pl.BlockSpec((K, O), lambda b: (0, 0)),             # weights stay resident
            pl.BlockSpec((1, O), lambda b: (0, 0)),
            pl.BlockSpec((A, M, O), lambda b: (0, 0, 0)),
            pl.BlockSpec((1, A), lambda b: (0, 0)),
        ],
        out_specs=pl.BlockSpec((None, 1, A), lambda b: (b, 0, 0)),
        compiler_params=pltpu.CompilerParams(dimension_semantics=("parallel",)),
        cost_estimate=cost,
    )(patches3, w3, shift3, fc_w, fc_b)
    return out.reshape(B, A)


# ----------------------------------------------------------------------------
# Glue: im2col (NHWC), one-time parameter preparation, forward pass
# ----------------------------------------------------------------------------
def im2col(x_nhwc, k, stride):
    """x: (B, H, W, C) -> (B, Ho*Wo, k*k*C); patch feature order = (kh, kw, c)."""
    B, H, W, C = x_nhwc.shape
    Ho = (H - k) // stride + 1
    Wo = (W - k) // stride + 1
    cols = []
    for dh in range(k):
        for dw in range(k):
            cols.append(
                x_nhwc[:, dh:dh + stride * (Ho - 1) + 1:stride,
                       dw:dw + stride * (Wo - 1) + 1:stride, :])
    p = jnp.stack(cols, axis=3)                     # (B, Ho, Wo, k*k, C)
    return p.reshape(B, Ho * Wo, k * k * C), Ho, Wo


def prepare_params(params):
    """One-time prep: fold BN into bf16 weights / f32 shift, permute FC weight."""
    prep = {}
    for idx, k, _ in CONV_LAYERS:
        w = params[f"conv{idx}_w"]                  # (O, C, k, k) PyTorch layout
        b = params[f"conv{idx}_b"]
        gamma = params[f"bn{idx}_gamma"]
        beta = params[f"bn{idx}_beta"]
        mean = params[f"bn{idx}_mean"]
        var = params[f"bn{idx}_var"]
        O, C, kk, _ = w.shape
        scale = gamma / jnp.sqrt(var + EPS)
        w_mat = jnp.transpose(w, (2, 3, 1, 0)).reshape(kk * kk * C, O)  # (kh,kw,c) x O
        prep[f"w{idx}"] = (w_mat * scale[None, :]).astype(jnp.bfloat16)
        prep[f"shift{idx}"] = (scale * (b - mean) + beta)[None, :].astype(jnp.float32)
    # PyTorch flattens conv3 output as (o, ho, wo); the kernel's ReLU tile is
    # (ho*wo, o) -> permute the FC weight ONCE to (A, ho*wo, o).
    fc_w = params["fc_w"]                           # (A, 32*9*9)
    A = fc_w.shape[0]
    fc_w = fc_w.reshape(A, 32, 9, 9)                # (A, o, ho, wo)
    fc_w = jnp.transpose(fc_w, (0, 2, 3, 1)).reshape(A, 9 * 9, 32)
    prep["fc_w"] = fc_w.astype(jnp.float32)         # FC stays f32 (VPU work)
    prep["fc_b"] = params["fc_b"][None, :].astype(jnp.float32)
    return prep


def policy_forward(image_nchw, prep):
    B = image_nchw.shape[0]
    x = jnp.transpose(image_nchw, (0, 2, 3, 1)).astype(jnp.bfloat16)   # NHWC bf16
    # conv1 and conv2: batch merged into M, single grid-free pallas_call each.
    for idx, k, stride in CONV_LAYERS[:2]:
        w = prep[f"w{idx}"]
        shift = prep[f"shift{idx}"]
        O = w.shape[1]
        patches, Ho, Wo = im2col(x, k, stride)      # (B, M, K) bf16
        M, K = patches.shape[1], patches.shape[2]
        out = conv_bn_relu(patches.reshape(B * M, K), w, shift)        # (B*M, O) bf16
        x = out.reshape(B, Ho, Wo, O)
    # conv3 + FC + softmax fused; one image per "parallel" grid step.
    patches3, _, _ = im2col(x, 5, 2)                # (B, 81, 800) bf16
    return conv3_fc_softmax(patches3, prep["w3"], prep["shift3"],
                            prep["fc_w"], prep["fc_b"])


# ----------------------------------------------------------------------------
# Parameter init (deterministic) and pure-JAX f32 reference for correctness
# ----------------------------------------------------------------------------
def init_params(key, input_image_channels=2, actions=3):
    ks = jax.random.split(key, 20)

    def nrm(k, shape, s):
        return (jax.random.normal(k, shape, jnp.float32) * s).astype(jnp.float32)

    def bn(k0, k1, k2, k3, c):
        return {
            "gamma": 1.0 + 0.1 * jax.random.normal(k0, (c,), jnp.float32),
            "beta": 0.1 * jax.random.normal(k1, (c,), jnp.float32),
            "mean": 0.1 * jax.random.normal(k2, (c,), jnp.float32),
            "var": 0.5 + jnp.abs(jax.random.normal(k3, (c,), jnp.float32)) * 0.1,
        }

    p = {
        "conv1_w": nrm(ks[0], (16, input_image_channels, 5, 5), 0.1),
        "conv1_b": nrm(ks[1], (16,), 0.1),
        "conv2_w": nrm(ks[2], (32, 16, 5, 5), 0.05),
        "conv2_b": nrm(ks[3], (32,), 0.1),
        "conv3_w": nrm(ks[4], (32, 32, 5, 5), 0.05),
        "conv3_b": nrm(ks[5], (32,), 0.1),
        "fc_w": nrm(ks[6], (actions, 32 * 9 * 9), 0.02),
        "fc_b": nrm(ks[7], (actions,), 0.1),
    }
    for i, base in ((1, 8), (2, 12), (3, 16)):
        c = 16 if i == 1 else 32
        stats = bn(ks[base], ks[base + 1], ks[base + 2], ks[base + 3], c)
        p[f"bn{i}_gamma"] = stats["gamma"]
        p[f"bn{i}_beta"] = stats["beta"]
        p[f"bn{i}_mean"] = stats["mean"]
        p[f"bn{i}_var"] = stats["var"]
    return p


def reference_forward(image, params):
    x = image.astype(jnp.float32)
    for idx, stride in ((1, 1), (2, 2), (3, 2)):
        w = params[f"conv{idx}_w"]
        b = params[f"conv{idx}_b"]
        y = jax.lax.conv_general_dilated(
            x, w, (stride, stride), "VALID",
            dimension_numbers=("NCHW", "OIHW", "NCHW"))
        y = y + b[None, :, None, None]
        g = params[f"bn{idx}_gamma"][None, :, None, None]
        bt = params[f"bn{idx}_beta"][None, :, None, None]
        m = params[f"bn{idx}_mean"][None, :, None, None]
        v = params[f"bn{idx}_var"][None, :, None, None]
        y = g * (y - m) / jnp.sqrt(v + EPS) + bt
        x = jnp.maximum(y, 0.0)
    feat = x.reshape(x.shape[0], -1)
    logits = feat @ params["fc_w"].T + params["fc_b"]
    return jax.nn.softmax(logits, axis=1)


if __name__ == "__main__":
    key = jax.random.PRNGKey(0)
    k_param, k_img = jax.random.split(key)
    params = init_params(k_param)
    prep = prepare_params(params)          # one-time weight prep (outside the hot path)
    # FC expects 32*9*9 features -> input spatial must be 49x49 (NCHW), batch=2
    image = jax.random.normal(k_img, (2, 2, 49, 49), jnp.float32)

    forward = jax.jit(policy_forward)
    probs = jax.block_until_ready(forward(image, prep))
    ref = jax.block_until_ready(reference_forward(image, params))

    assert probs.shape == (2, 3), probs.shape
    # approx reciprocal + bf16 matmuls -> loosened tolerances vs f32 reference
    assert jnp.allclose(jnp.sum(probs, axis=1), 1.0, atol=5e-3)
    assert jnp.allclose(probs, ref, atol=3e-2, rtol=3e-2), (probs, ref)
    print("KERNEL_OK")
</pallas_src>

<mosaic_0001>
module attributes {stable_mosaic.version = 11 : i64} {
  func.func @conv_bn_relu_kernel(%arg0: memref<4050x50xbf16, #tpu.memory_space<vmem>>, %arg1: memref<50x16xbf16, #tpu.memory_space<vmem>>, %arg2: memref<1x16xf32, #tpu.memory_space<vmem>>, %arg3: memref<4050x16xbf16, #tpu.memory_space<vmem>>) attributes {dimension_semantics = [], scalar_prefetch = 0 : i64, scratch_operands = 0 : i64, tpu.core_type = #tpu.core_type<tc>} {
    %c0 = arith.constant 0 : index
    %c0_0 = arith.constant 0 : index
    %0 = vector.load %arg0[%c0, %c0_0] : memref<4050x50xbf16, #tpu.memory_space<vmem>>, vector<4050x50xbf16>
    %c0_1 = arith.constant 0 : index
    %c0_2 = arith.constant 0 : index
    %1 = vector.load %arg1[%c0_1, %c0_2] : memref<50x16xbf16, #tpu.memory_space<vmem>>, vector<50x16xbf16>
    %cst = arith.constant dense<0.000000e+00> : vector<4050x16xf32>
    %2 = tpu.matmul %0, %1, %cst {dimension_numbers = #tpu.dot_dimension_numbers<[1], [0], [0], [1], [0, 0, 1, 1], [], []>} : vector<4050x50xbf16>, vector<50x16xbf16>, vector<4050x16xf32> -> vector<4050x16xf32>
    %c0_3 = arith.constant 0 : index
    %c0_4 = arith.constant 0 : index
    %3 = vector.load %arg2[%c0_3, %c0_4] : memref<1x16xf32, #tpu.memory_space<vmem>>, vector<1x16xf32>
    %4 = vector.broadcast %3 : vector<1x16xf32> to vector<4050x16xf32>
    %5 = arith.addf %2, %4 : vector<4050x16xf32>
    %cst_5 = arith.constant 0.000000e+00 : f32
    %6 = vector.broadcast %cst_5 : f32 to vector<4050x16xf32>
    %7 = arith.maximumf %5, %6 : vector<4050x16xf32>
    %8 = arith.truncf %7 : vector<4050x16xf32> to vector<4050x16xbf16>
    %c0_6 = arith.constant 0 : index
    %c0_7 = arith.constant 0 : index
    %9 = vector.load %arg3[%c0_6, %c0_7] : memref<4050x16xbf16, #tpu.memory_space<vmem>>, vector<4050x16xbf16>
    tpu.vector_store %arg3[%c0_6, %c0_7], %8 {strides = array<i32>} : memref<4050x16xbf16, #tpu.memory_space<vmem>>, vector<4050x16xbf16>,
    return
  }
}

module attributes {stable_mosaic.version = 11 : i64} {
  func.func @conv_bn_relu_kernel(%arg0: memref<882x400xbf16, #tpu.memory_space<vmem>>, %arg1: memref<400x32xbf16, #tpu.memory_space<vmem>>, %arg2: memref<1x32xf32, #tpu.memory_space<vmem>>, %arg3: memref<882x32xbf16, #tpu.memory_space<vmem>>) attributes {dimension_semantics = [], scalar_prefetch = 0 : i64, scratch_operands = 0 : i64, tpu.core_type = #tpu.core_type<tc>} {
    %c0 = arith.constant 0 : index
    %c0_0 = arith.constant 0 : index
    %0 = vector.load %arg0[%c0, %c0_0] : memref<882x400xbf16, #tpu.memory_space<vmem>>, vector<882x400xbf16>
    %c0_1 = arith.constant 0 : index
    %c0_2 = arith.constant 0 : index
    %1 = vector.load %arg1[%c0_1, %c0_2] : memref<400x32xbf16, #tpu.memory_space<vmem>>, vector<400x32xbf16>
    %cst = arith.constant dense<0.000000e+00> : vector<882x32xf32>
    %2 = tpu.matmul %0, %1, %cst {dimension_numbers = #tpu.dot_dimension_numbers<[1], [0], [0], [1], [0, 0, 1, 1], [], []>} : vector<882x400xbf16>, vector<400x32xbf16>, vector<882x32xf32> -> vector<882x32xf32>
    %c0_3 = arith.constant 0 : index
    %c0_4 = arith.constant 0 : index
    %3 = vector.load %arg2[%c0_3, %c0_4] : memref<1x32xf32, #tpu.memory_space<vmem>>, vector<1x32xf32>
    %4 = vector.broadcast %3 : vector<1x32xf32> to vector<882x32xf32>
    %5 = arith.addf %2, %4 : vector<882x32xf32>
    %cst_5 = arith.constant 0.000000e+00 : f32
    %6 = vector.broadcast %cst_5 : f32 to vector<882x32xf32>
    %7 = arith.maximumf %5, %6 : vector<882x32xf32>
    %8 = arith.truncf %7 : vector<882x32xf32> to vector<882x32xbf16>
    %c0_6 = arith.constant 0 : index
    %c0_7 = arith.constant 0 : index
    %9 = vector.load %arg3[%c0_6, %c0_7] : memref<882x32xbf16, #tpu.memory_space<vmem>>, vector<882x32xbf16>
    tpu.vector_store %arg3[%c0_6, %c0_7], %8 {strides = array<i32>} : memref<882x32xbf16, #tpu.memory_space<vmem>>, vector<882x32xbf16>,
    return
  }
}

module attributes {stable_mosaic.version = 11 : i64} {
  func.func @conv3_fc_softmax_kernel(%arg0: i32, %arg1: memref<1x81x800xbf16, #tpu.memory_space<vmem>>, %arg2: memref<800x32xbf16, #tpu.memory_space<vmem>>, %arg3: memref<1x32xf32, #tpu.memory_space<vmem>>, %arg4: memref<3x81x32xf32, #tpu.memory_space<vmem>>, %arg5: memref<1x3xf32, #tpu.memory_space<vmem>>, %arg6: memref<1x1x3xf32, #tpu.memory_space<vmem>>) attributes {dimension_semantics = [#tpu.dimension_semantics<parallel>], iteration_bounds = array<i64: 2>, scalar_prefetch = 0 : i64, scratch_operands = 0 : i64, tpu.core_type = #tpu.core_type<tc>, window_params = [{transform_indices = @transform_0, window_bounds = array<i64: 1, 81, 800>}, {pipeline_mode = #tpu.pipeline_mode<synchronous>, transform_indices = @transform_1, window_bounds = array<i64: 800, 32>}, {pipeline_mode = #tpu.pipeline_mode<synchronous>, transform_indices = @transform_2, window_bounds = array<i64: 1, 32>}, {pipeline_mode = #tpu.pipeline_mode<synchronous>, transform_indices = @transform_3, window_bounds = array<i64: 3, 81, 32>}, {pipeline_mode = #tpu.pipeline_mode<synchronous>, transform_indices = @transform_4, window_bounds = array<i64: 1, 3>}, {transform_indices = @transform_5, window_bounds = array<i64: 1, 1, 3>}]} {
    %c0 = arith.constant 0 : index
    %c0_0 = arith.constant 0 : index
    %c0_1 = arith.constant 0 : index
    %0 = vector.load %arg1[%c0, %c0_0, %c0_1] : memref<1x81x800xbf16, #tpu.memory_space<vmem>>, vector<1x81x800xbf16>
    %1 = vector.shape_cast %0 : vector<1x81x800xbf16> to vector<81x800xbf16>
    %c0_2 = arith.constant 0 : index
    %c0_3 = arith.constant 0 : index
    %2 = vector.load %arg2[%c0_2, %c0_3] : memref<800x32xbf16, #tpu.memory_space<vmem>>, vector<800x32xbf16>
    %cst = arith.constant dense<0.000000e+00> : vector<81x32xf32>
    %3 = tpu.matmul %1, %2, %cst {dimension_numbers = #tpu.dot_dimension_numbers<[1], [0], [0], [1], [0, 0, 1, 1], [], []>} : vector<81x800xbf16>, vector<800x32xbf16>, vector<81x32xf32> -> vector<81x32xf32>
    %c0_4 = arith.constant 0 : index
    %c0_5 = arith.constant 0 : index
    %4 = vector.load %arg3[%c0_4, %c0_5] : memref<1x32xf32, #tpu.memory_space<vmem>>, vector<1x32xf32>
    %5 = vector.broadcast %4 : vector<1x32xf32> to vector<81x32xf32>
    %6 = arith.addf %3, %5 : vector<81x32xf32>
    %cst_6 = arith.constant 0.000000e+00 : f32
    %7 = vector.broadcast %cst_6 : f32 to vector<81x32xf32>
    %8 = arith.maximumf %6, %7 : vector<81x32xf32>
    %9 = tpu.iota {dimensions = array<i32: 1>} : vector<1x3xi32>
    %c0_7 = arith.constant 0 : index
    %c0_8 = arith.constant 0 : index
    %10 = vector.load %arg5[%c0_7, %c0_8] : memref<1x3xf32, #tpu.memory_space<vmem>>, vector<1x3xf32>
    %c0_9 = arith.constant 0 : index
    %c0_10 = arith.constant 0 : index
    %c0_11 = arith.constant 0 : index
    %11 = vector.load %arg4[%c0_9, %c0_10, %c0_11] : memref<3x81x32xf32, #tpu.memory_space<vmem>>, vector<1x81x32xf32>
    %12 = vector.shape_cast %11 : vector<1x81x32xf32> to vector<81x32xf32>
    %13 = arith.mulf %8, %12 : vector<81x32xf32>
    %cst_12 = arith.constant dense<0.000000e+00> : vector<81xf32>
    %14 = vector.multi_reduction <add>, %13, %cst_12 [1] : vector<81x32xf32> to vector<81xf32>
    %15 = vector.shape_cast %14 : vector<81xf32> to vector<81x1xf32>
    %cst_13 = arith.constant dense<0.000000e+00> : vector<1xf32>
    %16 = vector.multi_reduction <add>, %15, %cst_13 [0] : vector<81x1xf32> to vector<1xf32>
    %17 = vector.shape_cast %16 : vector<1xf32> to vector<1x1xf32>
    %c0_i32 = arith.constant 0 : i32
    %18 = vector.broadcast %c0_i32 : i32 to vector<1x3xi32>
    %19 = arith.cmpi eq, %9, %18 : vector<1x3xi32>
    %cst_14 = arith.constant 0.000000e+00 : f32
    %20 = vector.shape_cast %17 : vector<1x1xf32> to vector<1x1xf32>
    %21 = vector.broadcast %20 : vector<1x1xf32> to vector<1x3xf32>
    %22 = vector.broadcast %cst_14 : f32 to vector<1x3xf32>
    %23 = arith.select %19, %21, %22 : vector<1x3xi1>, vector<1x3xf32>
    %24 = arith.addf %10, %23 : vector<1x3xf32>
    %c1 = arith.constant 1 : index
    %c0_15 = arith.constant 0 : index
    %c0_16 = arith.constant 0 : index
    %25 = vector.load %arg4[%c1, %c0_15, %c0_16] : memref<3x81x32xf32, #tpu.memory_space<vmem>>, vector<1x81x32xf32>
    %26 = vector.shape_cast %25 : vector<1x81x32xf32> to vector<81x32xf32>
    %27 = arith.mulf %8, %26 : vector<81x32xf32>
    %cst_17 = arith.constant dense<0.000000e+00> : vector<81xf32>
    %28 = vector.multi_reduction <add>, %27, %cst_17 [1] : vector<81x32xf32> to vector<81xf32>
    %29 = vector.shape_cast %28 : vector<81xf32> to vector<81x1xf32>
    %cst_18 = arith.constant dense<0.000000e+00> : vector<1xf32>
    %30 = vector.multi_reduction <add>, %29, %cst_18 [0] : vector<81x1xf32> to vector<1xf32>
    %31 = vector.shape_cast %30 : vector<1xf32> to vector<1x1xf32>
    %c1_i32 = arith.constant 1 : i32
    %32 = vector.broadcast %c1_i32 : i32 to vector<1x3xi32>
    %33 = arith.cmpi eq, %9, %32 : vector<1x3xi32>
    %cst_19 = arith.constant 0.000000e+00 : f32
    %34 = vector.shape_cast %31 : vector<1x1xf32> to vector<1x1xf32>
    %35 = vector.broadcast %34 : vector<1x1xf32> to vector<1x3xf32>
    %36 = vector.broadcast %cst_19 : f32 to vector<1x3xf32>
    %37 = arith.select %33, %35, %36 : vector<1x3xi1>, vector<1x3xf32>
    %38 = arith.addf %24, %37 : vector<1x3xf32>
    %c2 = arith.constant 2 : index
    %c0_20 = arith.constant 0 : index
    %c0_21 = arith.constant 0 : index
    %39 = vector.load %arg4[%c2, %c0_20, %c0_21] : memref<3x81x32xf32, #tpu.memory_space<vmem>>, vector<1x81x32xf32>
    %40 = vector.shape_cast %39 : vector<1x81x32xf32> to vector<81x32xf32>
    %41 = arith.mulf %8, %40 : vector<81x32xf32>
    %cst_22 = arith.constant dense<0.000000e+00> : vector<81xf32>
    %42 = vector.multi_reduction <add>, %41, %cst_22 [1] : vector<81x32xf32> to vector<81xf32>
    %43 = vector.shape_cast %42 : vector<81xf32> to vector<81x1xf32>
    %cst_23 = arith.constant dense<0.000000e+00> : vector<1xf32>
    %44 = vector.multi_reduction <add>, %43, %cst_23 [0] : vector<81x1xf32> to vector<1xf32>
    %45 = vector.shape_cast %44 : vector<1xf32> to vector<1x1xf32>
    %c2_i32 = arith.constant 2 : i32
    %46 = vector.broadcast %c2_i32 : i32 to vector<1x3xi32>
    %47 = arith.cmpi eq, %9, %46 : vector<1x3xi32>
    %cst_24 = arith.constant 0.000000e+00 : f32
    %48 = vector.shape_cast %45 : vector<1x1xf32> to vector<1x1xf32>
    %49 = vector.broadcast %48 : vector<1x1xf32> to vector<1x3xf32>
    %50 = vector.broadcast %cst_24 : f32 to vector<1x3xf32>
    %51 = arith.select %47, %49, %50 : vector<1x3xi1>, vector<1x3xf32>
    %52 = arith.addf %38, %51 : vector<1x3xf32>
    %cst_25 = arith.constant dense<0xFF800000> : vector<1xf32>
    %53 = vector.multi_reduction <maximumf>, %52, %cst_25 [1] : vector<1x3xf32> to vector<1xf32>
    %54 = vector.shape_cast %53 : vector<1xf32> to vector<1x1xf32>
    %55 = vector.broadcast %54 : vector<1x1xf32> to vector<1x3xf32>
    %56 = arith.subf %52, %55 : vector<1x3xf32>
    %57 = math.exp %56 : vector<1x3xf32>
    %cst_26 = arith.constant dense<0.000000e+00> : vector<1xf32>
    %58 = vector.multi_reduction <add>, %57, %cst_26 [1] : vector<1x3xf32> to vector<1xf32>
    %59 = vector.shape_cast %58 : vector<1xf32> to vector<1x1xf32>
    %60 = tpu.reciprocal %59 {approx = true} : vector<1x1xf32> -> vector<1x1xf32>
    %61 = vector.broadcast %60 : vector<1x1xf32> to vector<1x3xf32>
    %62 = arith.mulf %57, %61 : vector<1x3xf32>
    %c0_27 = arith.constant 0 : index
    %c0_28 = arith.constant 0 : index
    %c0_29 = arith.constant 0 : index
    %63 = vector.load %arg6[%c0_27, %c0_28, %c0_29] : memref<1x1x3xf32, #tpu.memory_space<vmem>>, vector<1x1x3xf32>
    %64 = vector.shape_cast %63 : vector<1x1x3xf32> to vector<1x3xf32>
    %65 = vector.shape_cast %62 : vector<1x3xf32> to vector<1x1x3xf32>
    tpu.vector_store %arg6[%c0_27, %c0_28, %c0_29], %65 {strides = array<i32>} : memref<1x1x3xf32, #tpu.memory_space<vmem>>, vector<1x1x3xf32>,
    return
  }
  func.func @transform_0(%arg0: i32) -> (i32, i32, i32) {
    %c0_i32 = arith.constant 0 : i32
    %c0_i32_0 = arith.constant 0 : i32
    %c0_i32_1 = arith.constant 0 : i32
    return %arg0, %c0_i32, %c0_i32_0 : i32, i32, i32
  }
  func.func @transform_1(%arg0: i32) -> (i32, i32) {
    %c0_i32 = arith.constant 0 : i32
    %c0_i32_0 = arith.constant 0 : i32
    %c0_i32_1 = arith.constant 0 : i32
    return %c0_i32, %c0_i32_0 : i32, i32
  }
  func.func @transform_2(%arg0: i32) -> (i32, i32) {
    %c0_i32 = arith.constant 0 : i32
    %c0_i32_0 = arith.constant 0 : i32
    %c0_i32_1 = arith.constant 0 : i32
    return %c0_i32, %c0_i32_0 : i32, i32
  }
  func.func @transform_3(%arg0: i32) -> (i32, i32, i32) {
    %c0_i32 = arith.constant 0 : i32
    %c0_i32_0 = arith.constant 0 : i32
    %c0_i32_1 = arith.constant 0 : i32
    %c0_i32_2 = arith.constant 0 : i32
    return %c0_i32, %c0_i32_0, %c0_i32_1 : i32, i32, i32
  }
  func.func @transform_4(%arg0: i32) -> (i32, i32) {
    %c0_i32 = arith.constant 0 : i32
    %c0_i32_0 = arith.constant 0 : i32
    %c0_i32_1 = arith.constant 0 : i32
    return %c0_i32, %c0_i32_0 : i32, i32
  }
  func.func @transform_5(%arg0: i32) -> (i32, i32, i32) {
    %c0_i32 = arith.constant 0 : i32
    %c0_i32_0 = arith.constant 0 : i32
    %c0_i32_1 = arith.constant 0 : i32
    return %arg0, %c0_i32, %c0_i32_0 : i32, i32, i32
  }
}

</mosaic_0001>

<bundles_post_ra>
// kernel: policy_forward.3
= control target key start
LH: loop header
LB: loop body
LE: loop exit
PB: predicated region body
PF: predicated region fallthrough
CT: control target
= control target key end

     0   :  { %vm1825_vm0 = vcmask 408576   ;;  %vm2588_vm1 = vcmask 1040384   ;;  %vm7192_vm2 = vcmask 125952   ;;  %vm7699_vm3 = vcmask 122880   ;;  %s13891_s1 = inlined_call_operand.vmem [shape: bf16[50,16], index: 1, kind: input, shape index: {}]   ;;  %s13892_s0 = inlined_call_operand.vmem [shape: bf16[4050,50], index: 0, kind: input, shape index: {}]   ;;  %s13893_s2 = inlined_call_operand.vmem [shape: f32[1,16], index: 2, kind: input, shape index: {}]   ;;  %s13894_s3 = inlined_call_operand.vmem [shape: bf16[4050,16], index: 3, kind: output, shape index: {}]  }
   0x1   :  { %v10016_v0 = vld [vmem:[%s13891_s1] sm:$0xff]   ;;  %v10017_v1 = vld [vmem:[%s13891_s1 + $0x8] sm:$0xff]   ;;  %v10018_v2 = vld [vmem:[%s13891_s1 + $0x10] sm:$0xff]  }
   0x2   :  { %9490 = vmatprep.subr.bf16.mxu0 %v10016_v0  ;;  %10006 = vmatprep.subr.bf16.mxu1 %v10016_v0  ;;  %v10020_v3 = vld [vmem:[%s13892_s0] sm:$0xff]   ;;  %v10019_v4 = vld [vmem:[%s13891_s1 + $0x18] ss:$0 sps:$4 sm:$0x11]   ;;  %v10021_v7 = vld [vmem:[%s13892_s0 + $0x8] sm:$0xff]  }
   0x3   :  { %9491 = vmatpush3.bf16.msra.mxu0 %v10016_v0  ;;  %10010 = vmatpush3.bf16.msra.mxu1 %v10016_v0  ;;  %v10022_v5 = vld [vmem:[%s13892_s0 + $0x400] sm:$0xff]   ;;  %v2590_v6 = vsel %vm2588_vm1, %v10019_v4, 0  ;;  %v10023_v8 = vld [vmem:[%s13892_s0 + $0x408] sm:$0xff]   ;;  %v10024_v9 = vld [vmem:[%s13892_s0 + $0x10] sm:$0xff]  }
   0x4   :  { %9492 = vmatprep.subr.bf16.mxu0 %v10017_v1  ;;  %10007 = vmatprep.subr.bf16.mxu1 %v10017_v1  ;;  %v10026_v10 = vld [vmem:[%s13892_s0 + $0x410] sm:$0xff]   ;;  %v10025_v11 = vld [vmem:[%s13892_s0 + $0x18] sm:$0xff]   ;;  %v10028_v13 = vld [vmem:[%s13892_s0 + $0x20] sm:$0xff]  }
   0x5   :  { %9498 = vmatprep.mubr.msk.bf16.mxu0 %vm1825_vm0, %v10020_v3  ;;  %9754 = vmatprep.mubr.msk.bf16.mxu1 %vm1825_vm0, %v10022_v5  ;;  %v10027_v12 = vld [vmem:[%s13892_s0 + $0x418] sm:$0xff]   ;;  %v10030_v14 = vld [vmem:[%s13892_s0 + $0x420] sm:$0xff]   ;;  %v10029_v15 = vld [vmem:[%s13892_s0 + $0x28] sm:$0xff]  }
   0x6   :  { %v10031_v16 = vld [vmem:[%s13892_s0 + $0x428] sm:$0xff]   ;;  %v10032_v17 = vld [vmem:[%s13892_s0 + $0x30] sm:$0xff]   ;;  %v10033_v19 = vld [vmem:[%s13892_s0 + $0x38] sm:$0xff]  }
   0x7   :  { %9493 = vmatpush3.bf16.msra.mxu0 %v10017_v1  ;;  %10011 = vmatpush3.bf16.msra.mxu1 %v10017_v1  ;;  %v10034_v18 = vld [vmem:[%s13892_s0 + $0x430] sm:$0xff]   ;;  %v10035_v20 = vld [vmem:[%s13892_s0 + $0x438] sm:$0xff]   ;;  %v10036_v21 = vld [vmem:[%s13892_s0 + $0x40] sm:$0xff]  }
   0x8   :  { %9494 = vmatprep.subr.bf16.mxu0 %v10018_v2  ;;  %10008 = vmatprep.subr.bf16.mxu1 %v10018_v2  ;;  %v10038_v22 = vld [vmem:[%s13892_s0 + $0x440] sm:$0xff]   ;;  %v10037_v23 = vld [vmem:[%s13892_s0 + $0x48] sm:$0xff]   ;;  %v10040_v25 = vld [vmem:[%s13892_s0 + $0x50] sm:$0xff]  }
   0x9   :  { %v10039_v24 = vld [vmem:[%s13892_s0 + $0x448] sm:$0xff]   ;;  %v10042_v26 = vld [vmem:[%s13892_s0 + $0x450] sm:$0xff]   ;;  %v10041_v27 = vld [vmem:[%s13892_s0 + $0x58] sm:$0xff]  }
   0xa   :  { %v10043_v28 = vld [vmem:[%s13892_s0 + $0x458] sm:$0xff]   ;;  %v10044_v29 = vld [vmem:[%s13892_s0 + $0x60] sm:$0xff]   ;;  %v10045_v31 = vld [vmem:[%s13892_s0 + $0x68] sm:$0xff]  }
   0xb   :  { %9495 = vmatpush3.bf16.msra.mxu0 %v10018_v2  ;;  %10012 = vmatpush3.bf16.msra.mxu1 %v10018_v2  ;;  %v10046_v30 = vld [vmem:[%s13892_s0 + $0x460] sm:$0xff]   ;;  %v10047_v32 = vld [vmem:[%s13892_s0 + $0x468] sm:$0xff]   ;;  %v10048_v33 = vld [vmem:[%s13892_s0 + $0x70] sm:$0xff]  }
   0xc   :  { %10014 = vmatprep.subr.msk.bf16.mxu0 %vm2588_vm1, %v10019_v4  ;;  %10015 = vmatprep.subr.msk.bf16.mxu1 %vm2588_vm1, %v10019_v4  ;;  %v10050_v34 = vld [vmem:[%s13892_s0 + $0x470] sm:$0xff]   ;;  %v10049_v35 = vld [vmem:[%s13892_s0 + $0x78] sm:$0xff]   ;;  %v10052_v37 = vld [vmem:[%s13892_s0 + $0x80] sm:$0xff]  }
   0xd   :  { %v10051_v36 = vld [vmem:[%s13892_s0 + $0x478] sm:$0xff]   ;;  %v10054_v38 = vld [vmem:[%s13892_s0 + $0x480] sm:$0xff]   ;;  %v10053_v39 = vld [vmem:[%s13892_s0 + $0x88] sm:$0xff]  }
   0xe   :  { %v10055_v40 = vld [vmem:[%s13892_s0 + $0x488] sm:$0xff]   ;;  %v10056_v41 = vld [vmem:[%s13892_s0 + $0x90] sm:$0xff]   ;;  %v10057_v43 = vld [vmem:[%s13892_s0 + $0x98] sm:$0xff]  }
   0xf   :  { %9497 = vmatpush3.bf16.msra.mxu0 %v2590_v6  ;;  %10013 = vmatpush3.bf16.msra.mxu1 %v2590_v6  ;;  %v10058_v42 = vld [vmem:[%s13892_s0 + $0x490] sm:$0xff]   ;;  %v10059_v44 = vld [vmem:[%s13892_s0 + $0x498] sm:$0xff]   ;;  %v10060_v45 = vld [vmem:[%s13892_s0 + $0xa0] sm:$0xff]  }
  0x10   :  { %v10062_v46 = vld [vmem:[%s13892_s0 + $0x4a0] sm:$0xff]   ;;  %v10061_v47 = vld [vmem:[%s13892_s0 + $0xa8] sm:$0xff]   ;;  %v10064_v49 = vld [vmem:[%s13892_s0 + $0xb0] sm:$0xff]  }
  0x11   :  { %v10063_v48 = vld [vmem:[%s13892_s0 + $0x4a8] sm:$0xff]   ;;  %v10066_v50 = vld [vmem:[%s13892_s0 + $0x4b0] sm:$0xff]   ;;  %v10065_v51 = vld [vmem:[%s13892_s0 + $0xb8] sm:$0xff]  }
  0x12   :  { %9499 = vmatmul.mubr.msk.bf16.vlgmr.msra.gmra.mrb[0].mxu0 %vm1825_vm0, %v10021_v7  ;;  %9755 = vmatmul.mubr.msk.bf16.vlgmr.msra.gmra.mrb[0].mxu1 %vm1825_vm0, %v10023_v8  ;;  %v10067_v52 = vld [vmem:[%s13892_s0 + $0x4b8] sm:$0xff]   ;;  %v10068_v53 = vld [vmem:[%s13892_s0 + $0xc0] sm:$0xff]   ;;  %v10069_v55 = vld [vmem:[%s13892_s0 + $0xc8] sm:$0xff]  }
  0x13   :  { %9502 = vmatprep.mubr.msk.bf16.mxu0 %vm1825_vm0, %v10024_v9  ;;  %9758 = vmatprep.mubr.msk.bf16.mxu1 %vm1825_vm0, %v10026_v10  ;;  %v10070_v54 = vld [vmem:[%s13892_s0 + $0x4c0] sm:$0xff]   ;;  %v10071_v56 = vld [vmem:[%s13892_s0 + $0x4c8] sm:$0xff]   ;;  %v10072_v57 = vld [vmem:[%s13892_s0 + $0xd0] sm:$0xff]  }
  0x14   :  { %v10074_v58 = vld [vmem:[%s13892_s0 + $0x4d0] sm:$0xff]   ;;  %v10073_v59 = vld [vmem:[%s13892_s0 + $0xd8] sm:$0xff]   ;;  %v10076_v61 = vld [vmem:[%s13892_s0 + $0xe0] sm:$0xff]  }
  0x15   :  { %v10075_v60 = vld [vmem:[%s13892_s0 + $0x4d8] sm:$0xff]   ;;  %v10078_v62 = vld [vmem:[%s13892_s0 + $0x4e0] sm:$0xff]   ;;  %v10077_v63 = vld [vmem:[%s13892_s0 + $0xe8] sm:$0xff]  }
  0x16   :  { %v10079_v0 = vld [vmem:[%s13892_s0 + $0x4e8] sm:$0xff]   ;;  %v10080_v1 = vld [vmem:[%s13892_s0 + $0xf0] sm:$0xff]   ;;  %v10081_v3 = vld [vmem:[%s13892_s0 + $0xf8] sm:$0xff]  }
  0x17   :  { %v10082_v2 = vld [vmem:[%s13892_s0 + $0x4f0] sm:$0xff]   ;;  %v10083_v4 = vld [vmem:[%s13892_s0 + $0x4f8] sm:$0xff]   ;;  %v10084_v5 = vld [vmem:[%s13892_s0 + $0x100] sm:$0xff]  }
  0x18   :  { %v10086_v6 = vld [vmem:[%s13892_s0 + $0x500] sm:$0xff]   ;;  %v10085_v7 = vld [vmem:[%s13892_s0 + $0x108] sm:$0xff]   ;;  %v10088_v9 = vld [vmem:[%s13892_s0 + $0x110] sm:$0xff]  }
  0x19   :  { %v10087_v8 = vld [vmem:[%s13892_s0 + $0x508] sm:$0xff]   ;;  %v10090_v10 = vld [vmem:[%s13892_s0 + $0x510] sm:$0xff]  }
  0x1a   :  { %9503 = vmatmul.mubr.msk.bf16.gmra.mrb[4].mxu0 %vm1825_vm0, %v10025_v11  ;;  %9759 = vmatmul.mubr.msk.bf16.gmra.mrb[4].mxu1 %vm1825_vm0, %v10027_v12  ;;  %v10089_v11 = vld [vmem:[%s13892_s0 + $0x118] sm:$0xff]  }
  0x1b   :  { %9506 = vmatprep.mubr.msk.bf16.mxu0 %vm1825_vm0, %v10028_v13  ;;  %9762 = vmatprep.mubr.msk.bf16.mxu1 %vm1825_vm0, %v10030_v14  ;;  %v10091_v12 = vld [vmem:[%s13892_s0 + $0x518] sm:$0xff]   ;;  %v10092_v13 = vld [vmem:[%s13892_s0 + $0x120] sm:$0xff]  }
  0x1c   :  { %v10094_v14 = vld [vmem:[%s13892_s0 + $0x520] sm:$0xff]  }
  0x22   :  { %9507 = vmatmul.mubr.msk.bf16.gmra.mrb[8].mxu0 %vm1825_vm0, %v10029_v15  ;;  %9763 = vmatmul.mubr.msk.bf16.gmra.mrb[8].mxu1 %vm1825_vm0, %v10031_v16  ;;  %v10093_v15 = vld [vmem:[%s13892_s0 + $0x128] sm:$0xff]  }
  0x23   :  { %9510 = vmatprep.mubr.msk.bf16.mxu0 %vm1825_vm0, %v10032_v17  ;;  %9766 = vmatprep.mubr.msk.bf16.mxu1 %vm1825_vm0, %v10034_v18  ;;  %v10095_v16 = vld [vmem:[%s13892_s0 + $0x528] sm:$0xff]   ;;  %v10096_v17 = vld [vmem:[%s13892_s0 + $0x130] sm:$0xff]  }
  0x24   :  { %v10098_v18 = vld [vmem:[%s13892_s0 + $0x530] sm:$0xff]  }
  0x2a   :  { %9511 = vmatmul.mubr.msk.bf16.gmra.mrb[12].mxu0 %vm1825_vm0, %v10033_v19  ;;  %9767 = vmatmul.mubr.msk.bf16.gmra.mrb[12].mxu1 %vm1825_vm0, %v10035_v20  ;;  %v10097_v19 = vld [vmem:[%s13892_s0 + $0x138] sm:$0xff]  }
  0x2b   :  { %9514 = vmatprep.mubr.msk.bf16.mxu0 %vm1825_vm0, %v10036_v21  ;;  %9770 = vmatprep.mubr.msk.bf16.mxu1 %vm1825_vm0, %v10038_v22  ;;  %v10099_v20 = vld [vmem:[%s13892_s0 + $0x538] sm:$0xff]   ;;  %v10100_v21 = vld [vmem:[%s13892_s0 + $0x140] sm:$0xff]  }
  0x2c   :  { %v10102_v22 = vld [vmem:[%s13892_s0 + $0x540] sm:$0xff]  }
  0x32   :  { %9515 = vmatmul.mubr.msk.bf16.gmra.mrb[16].mxu0 %vm1825_vm0, %v10037_v23  ;;  %9771 = vmatmul.mubr.msk.bf16.gmra.mrb[16].mxu1 %vm1825_vm0, %v10039_v24  ;;  %v10101_v23 = vld [vmem:[%s13892_s0 + $0x148] sm:$0xff]  }
  0x33   :  { %9518 = vmatprep.mubr.msk.bf16.mxu0 %vm1825_vm0, %v10040_v25  ;;  %9774 = vmatprep.mubr.msk.bf16.mxu1 %vm1825_vm0, %v10042_v26  ;;  %v10103_v24 = vld [vmem:[%s13892_s0 + $0x548] sm:$0xff]   ;;  %v10104_v25 = vld [vmem:[%s13892_s0 + $0x150] sm:$0xff]  }
  0x34   :  { %v10106_v26 = vld [vmem:[%s13892_s0 + $0x550] sm:$0xff]  }
  0x3a   :  { %9519 = vmatmul.mubr.msk.bf16.gmra.mrb[20].mxu0 %vm1825_vm0, %v10041_v27  ;;  %9775 = vmatmul.mubr.msk.bf16.gmra.mrb[20].mxu1 %vm1825_vm0, %v10043_v28  ;;  %v10105_v27 = vld [vmem:[%s13892_s0 + $0x158] sm:$0xff]  }
  0x3b   :  { %9522 = vmatprep.mubr.msk.bf16.mxu0 %vm1825_vm0, %v10044_v29  ;;  %9778 = vmatprep.mubr.msk.bf16.mxu1 %vm1825_vm0, %v10046_v30  ;;  %v10107_v28 = vld [vmem:[%s13892_s0 + $0x558] sm:$0xff]   ;;  %v10108_v29 = vld [vmem:[%s13892_s0 + $0x160] sm:$0xff]  }
  0x3c   :  { %v10110_v30 = vld [vmem:[%s13892_s0 + $0x560] sm:$0xff]  }
  0x42   :  { %9523 = vmatmul.mubr.msk.bf16.gmra.mrb[24].mxu0 %vm1825_vm0, %v10045_v31  ;;  %9779 = vmatmul.mubr.msk.bf16.gmra.mrb[24].mxu1 %vm1825_vm0, %v10047_v32  ;;  %v10109_v31 = vld [vmem:[%s13892_s0 + $0x168] sm:$0xff]  }
  0x43   :  { %9526 = vmatprep.mubr.msk.bf16.mxu0 %vm1825_vm0, %v10048_v33  ;;  %9782 = vmatprep.mubr.msk.bf16.mxu1 %vm1825_vm0, %v10050_v34  ;;  %v10111_v32 = vld [vmem:[%s13892_s0 + $0x568] sm:$0xff]   ;;  %v10112_v33 = vld [vmem:[%s13892_s0 + $0x170] sm:$0xff]  }
  0x44   :  { %v10114_v34 = vld [vmem:[%s13892_s0 + $0x570] sm:$0xff]  }
  0x4a   :  { %9527 = vmatmul.mubr.msk.bf16.gmra.mrb[28].mxu0 %vm1825_vm0, %v10049_v35  ;;  %9783 = vmatmul.mubr.msk.bf16.gmra.mrb[28].mxu1 %vm1825_vm0, %v10051_v36  ;;  %v10113_v35 = vld [vmem:[%s13892_s0 + $0x178] sm:$0xff]  }
  0x4b   :  { %9530 = vmatprep.mubr.msk.bf16.mxu0 %vm1825_vm0, %v10052_v37  ;;  %9786 = vmatprep.mubr.msk.bf16.mxu1 %vm1825_vm0, %v10054_v38  ;;  %v10115_v36 = vld [vmem:[%s13892_s0 + $0x578] sm:$0xff]   ;;  %v10116_v37 = vld [vmem:[%s13892_s0 + $0x180] sm:$0xff]  }
  0x4c   :  { %v10118_v38 = vld [vmem:[%s13892_s0 + $0x580] sm:$0xff]  }
  0x52   :  { %9531 = vmatmul.mubr.msk.bf16.gmra.mrb[32].mxu0 %vm1825_vm0, %v10053_v39  ;;  %9787 = vmatmul.mubr.msk.bf16.gmra.mrb[32].mxu1 %vm1825_vm0, %v10055_v40  ;;  %v10117_v39 = vld [vmem:[%s13892_s0 + $0x188] sm:$0xff]  }
  0x53   :  { %9534 = vmatprep.mubr.msk.bf16.mxu0 %vm1825_vm0, %v10056_v41  ;;  %9790 = vmatprep.mubr.msk.bf16.mxu1 %vm1825_vm0, %v10058_v42  ;;  %v10119_v40 = vld [vmem:[%s13892_s0 + $0x588] sm:$0xff]   ;;  %v10120_v41 = vld [vmem:[%s13892_s0 + $0x190] sm:$0xff]  }
  0x54   :  { %v10122_v42 = vld [vmem:[%s13892_s0 + $0x590] sm:$0xff]  }
  0x5a   :  { %9535 = vmatmul.mubr.msk.bf16.gmra.mrb[36].mxu0 %vm1825_vm0, %v10057_v43  ;;  %9791 = vmatmul.mubr.msk.bf16.gmra.mrb[36].mxu1 %vm1825_vm0, %v10059_v44  ;;  %v10121_v43 = vld [vmem:[%s13892_s0 + $0x198] sm:$0xff]  }
  0x5b   :  { %9538 = vmatprep.mubr.msk.bf16.mxu0 %vm1825_vm0, %v10060_v45  ;;  %9794 = vmatprep.mubr.msk.bf16.mxu1 %vm1825_vm0, %v10062_v46  ;;  %v10123_v44 = vld [vmem:[%s13892_s0 + $0x598] sm:$0xff]   ;;  %v10124_v45 = vld [vmem:[%s13892_s0 + $0x1a0] sm:$0xff]  }
  0x5c   :  { %v10126_v46 = vld [vmem:[%s13892_s0 + $0x5a0] sm:$0xff]  }
  0x62   :  { %9539 = vmatmul.mubr.msk.bf16.gmra.mrb[40].mxu0 %vm1825_vm0, %v10061_v47  ;;  %9795 = vmatmul.mubr.msk.bf16.gmra.mrb[40].mxu1 %vm1825_vm0, %v10063_v48  ;;  %v10125_v47 = vld [vmem:[%s13892_s0 + $0x1a8] sm:$0xff]  }
  0x63   :  { %9542 = vmatprep.mubr.msk.bf16.mxu0 %vm1825_vm0, %v10064_v49  ;;  %9798 = vmatprep.mubr.msk.bf16.mxu1 %vm1825_vm0, %v10066_v50  ;;  %v10127_v48 = vld [vmem:[%s13892_s0 + $0x5a8] sm:$0xff]   ;;  %v10128_v49 = vld [vmem:[%s13892_s0 + $0x1b0] sm:$0xff]  }
  0x64   :  { %v10130_v50 = vld [vmem:[%s13892_s0 + $0x5b0] sm:$0xff]  }
  0x6a   :  { %9543 = vmatmul.mubr.msk.bf16.gmra.mrb[44].mxu0 %vm1825_vm0, %v10065_v51  ;;  %9799 = vmatmul.mubr.msk.bf16.gmra.mrb[44].mxu1 %vm1825_vm0, %v10067_v52  ;;  %v10750_v51 = vld [vmem:[%s13893_s2] ss:$0 sm:$0xff] }
  0x6b   :  { %9546 = vmatprep.mubr.msk.bf16.mxu0 %vm1825_vm0, %v10068_v53  ;;  %9802 = vmatprep.mubr.msk.bf16.mxu1 %vm1825_vm0, %v10070_v54  ;;  %v10129_v53 = vld [vmem:[%s13892_s0 + $0x1b8] sm:$0xff]  }
  0x72   :  { %9547 = vmatmul.mubr.msk.bf16.gmra.mrb[48].mxu0 %vm1825_vm0, %v10069_v55  ;;  %9803 = vmatmul.mubr.msk.bf16.gmra.mrb[48].mxu1 %vm1825_vm0, %v10071_v56  ;;  %v10131_v55 = vld [vmem:[%s13892_s0 + $0x5b8] sm:$0xff]  }
  0x73   :  { %9550 = vmatprep.mubr.msk.bf16.mxu0 %vm1825_vm0, %v10072_v57  ;;  %9806 = vmatprep.mubr.msk.bf16.mxu1 %vm1825_vm0, %v10074_v58 }
  0x7a   :  { %9551 = vmatmul.mubr.msk.bf16.gmra.mrb[52].mxu0 %vm1825_vm0, %v10073_v59  ;;  %9807 = vmatmul.mubr.msk.bf16.gmra.mrb[52].mxu1 %vm1825_vm0, %v10075_v60 }
  0x7b   :  { %9554 = vmatprep.mubr.msk.bf16.mxu0 %vm1825_vm0, %v10076_v61  ;;  %9810 = vmatprep.mubr.msk.bf16.mxu1 %vm1825_vm0, %v10078_v62 }
  0x82   :  { %9555 = vmatmul.mubr.msk.bf16.gmra.mrb[56].mxu0 %vm1825_vm0, %v10077_v63  ;;  %9811 = vmatmul.mubr.msk.bf16.gmra.mrb[56].mxu1 %vm1825_vm0, %v10079_v0  ;;  %v10132_v0 = vld [vmem:[%s13892_s0 + $0x1c0] sm:$0xff]  }
  0x83   :  { %9558 = vmatprep.mubr.msk.bf16.mxu0 %vm1825_vm0, %v10080_v1  ;;  %9814 = vmatprep.mubr.msk.bf16.mxu1 %vm1825_vm0, %v10082_v2  ;;  %v10134_v1 = vld [vmem:[%s13892_s0 + $0x5c0] sm:$0xff]  }
  0x8a   :  { %9559 = vmatmul.mubr.msk.bf16.gmra.mrb[60].mxu0 %vm1825_vm0, %v10081_v3  ;;  %9815 = vmatmul.mubr.msk.bf16.gmra.mrb[60].mxu1 %vm1825_vm0, %v10083_v4 }
  0x8b   :  { %9562 = vmatprep.mubr.msk.bf16.mxu0 %vm1825_vm0, %v10084_v5  ;;  %9818 = vmatprep.mubr.msk.bf16.mxu1 %vm1825_vm0, %v10086_v6 }
  0x92   :  { %9563 = vmatmul.mubr.msk.bf16.gmra.mrb[64].mxu0 %vm1825_vm0, %v10085_v7  ;;  %9819 = vmatmul.mubr.msk.bf16.gmra.mrb[64].mxu1 %vm1825_vm0, %v10087_v8 }
  0x93   :  { %9566 = vmatprep.mubr.msk.bf16.mxu0 %vm1825_vm0, %v10088_v9  ;;  %9822 = vmatprep.mubr.msk.bf16.mxu1 %vm1825_vm0, %v10090_v10 }
  0x9a   :  { %9567 = vmatmul.mubr.msk.bf16.gmra.mrb[68].mxu0 %vm1825_vm0, %v10089_v11  ;;  %9823 = vmatmul.mubr.msk.bf16.gmra.mrb[68].mxu1 %vm1825_vm0, %v10091_v12 }
  0x9b   :  { %9570 = vmatprep.mubr.msk.bf16.mxu0 %vm1825_vm0, %v10092_v13  ;;  %9826 = vmatprep.mubr.msk.bf16.mxu1 %vm1825_vm0, %v10094_v14 }
  0xa2   :  { %9571 = vmatmul.mubr.msk.bf16.gmra.mrb[72].mxu0 %vm1825_vm0, %v10093_v15  ;;  %9827 = vmatmul.mubr.msk.bf16.gmra.mrb[72].mxu1 %vm1825_vm0, %v10095_v16 }
  0xa3   :  { %9574 = vmatprep.mubr.msk.bf16.mxu0 %vm1825_vm0, %v10096_v17  ;;  %9830 = vmatprep.mubr.msk.bf16.mxu1 %vm1825_vm0, %v10098_v18 }
  0xaa   :  { %9575 = vmatmul.mubr.msk.bf16.gmra.mrb[76].mxu0 %vm1825_vm0, %v10097_v19  ;;  %9831 = vmatmul.mubr.msk.bf16.gmra.mrb[76].mxu1 %vm1825_vm0, %v10099_v20 }
  0xab   :  { %9578 = vmatprep.mubr.msk.bf16.mxu0 %vm1825_vm0, %v10100_v21  ;;  %9834 = vmatprep.mubr.msk.bf16.mxu1 %vm1825_vm0, %v10102_v22 }
  0xb2   :  { %9579 = vmatmul.mubr.msk.bf16.gmra.mrb[80].mxu0 %vm1825_vm0, %v10101_v23  ;;  %9835 = vmatmul.mubr.msk.bf16.gmra.mrb[80].mxu1 %vm1825_vm0, %v10103_v24 }
  0xb3   :  { %9582 = vmatprep.mubr.msk.bf16.mxu0 %vm1825_vm0, %v10104_v25  ;;  %9838 = vmatprep.mubr.msk.bf16.mxu1 %vm1825_vm0, %v10106_v26 }
  0xba   :  { %9583 = vmatmul.mubr.msk.bf16.gmra.mrb[84].mxu0 %vm1825_vm0, %v10105_v27  ;;  %9839 = vmatmul.mubr.msk.bf16.gmra.mrb[84].mxu1 %vm1825_vm0, %v10107_v28  ;;  %v10133_v28 = vld [vmem:[%s13892_s0 + $0x1c8] sm:$0xff]  }
  0xbb   :  { %9586 = vmatprep.mubr.msk.bf16.mxu0 %vm1825_vm0, %v10108_v29  ;;  %9842 = vmatprep.mubr.msk.bf16.mxu1 %vm1825_vm0, %v10110_v30 }
  0xc2   :  { %9587 = vmatmul.mubr.msk.bf16.gmra.mrb[88].mxu0 %vm1825_vm0, %v10109_v31  ;;  %9843 = vmatmul.mubr.msk.bf16.gmra.mrb[88].mxu1 %vm1825_vm0, %v10111_v32  ;;  %v10135_v31 = vld [vmem:[%s13892_s0 + $0x5c8] sm:$0xff]  }
  0xc3   :  { %9590 = vmatprep.mubr.msk.bf16.mxu0 %vm1825_vm0, %v10112_v33  ;;  %9846 = vmatprep.mubr.msk.bf16.mxu1 %vm1825_vm0, %v10114_v34 }
  0xca   :  { %9591 = vmatmul.mubr.msk.bf16.gmra.mrb[92].mxu0 %vm1825_vm0, %v10113_v35  ;;  %9847 = vmatmul.mubr.msk.bf16.gmra.mrb[92].mxu1 %vm1825_vm0, %v10115_v36  ;;  %v10136_v36 = vld [vmem:[%s13892_s0 + $0x1d0] sm:$0xff]  }
  0xcb   :  { %9594 = vmatprep.mubr.msk.bf16.mxu0 %vm1825_vm0, %v10116_v37  ;;  %9850 = vmatprep.mubr.msk.bf16.mxu1 %vm1825_vm0, %v10118_v38  ;;  %v10138_v37 = vld [vmem:[%s13892_s0 + $0x5d0] sm:$0xff]  }
  0xd2   :  { %9595 = vmatmul.mubr.msk.bf16.gmra.mrb[96].mxu0 %vm1825_vm0, %v10117_v39  ;;  %9851 = vmatmul.mubr.msk.bf16.gmra.mrb[96].mxu1 %vm1825_vm0, %v10119_v40 }
  0xd3   :  { %9598 = vmatprep.mubr.msk.bf16.mxu0 %vm1825_vm0, %v10120_v41  ;;  %9854 = vmatprep.mubr.msk.bf16.mxu1 %vm1825_vm0, %v10122_v42 }
  0xda   :  { %9599 = vmatmul.mubr.msk.bf16.gmra.mrb[100].mxu0 %vm1825_vm0, %v10121_v43  ;;  %9855 = vmatmul.mubr.msk.bf16.gmra.mrb[100].mxu1 %vm1825_vm0, %v10123_v44 }
  0xdb   :  { %9602 = vmatprep.mubr.msk.bf16.mxu0 %vm1825_vm0, %v10124_v45  ;;  %9858 = vmatprep.mubr.msk.bf16.mxu1 %vm1825_vm0, %v10126_v46 }
  0xe2   :  { %9603 = vmatmul.mubr.msk.bf16.gmra.mrb[104].mxu0 %vm1825_vm0, %v10125_v47  ;;  %9859 = vmatmul.mubr.msk.bf16.gmra.mrb[104].mxu1 %vm1825_vm0, %v10127_v48 }
  0xe3   :  { %9606 = vmatprep.mubr.msk.bf16.mxu0 %vm1825_vm0, %v10128_v49  ;;  %9862 = vmatprep.mubr.msk.bf16.mxu1 %vm1825_vm0, %v10130_v50 }
  0xe5   :  { %v9500_v52 = vpop.f32.mrb[0].mxu0  ;;  %v9756_v54 = vpop.f32.mrb[0].mxu1 }
  0xe6   :  { %v2635_v56 = vadd.f32 %v9500_v52, %v10750_v51  ;;  %v2626_v57 = vpop.f32.mrb[1].mxu0  ;;  %v3659_v58 = vadd.f32 %v9756_v54, %v10750_v51  ;;  %v3650_v59 = vpop.f32.mrb[1].mxu1 }
  0xe7   :  { %v2627_v60 = vadd.f32 %v10750_v51, %v2626_v57  ;;  %v9501_v61 = vpop.f32.mrb[2].mxu0  ;;  %v3651_v62 = vadd.f32 %v10750_v51, %v3650_v59  ;;  %v9757_v63 = vpop.f32.mrb[2].mxu1 }
  0xe8   :  { %v4658_v2 = vmax.f32 %v2635_v56, 0.0  ;;  %v2638_v3 = vadd.f32 %v9501_v61, %v10750_v51  ;;  %v2629_v4 = vpop.f32.mrb[3].mxu0  ;;  %v4914_v5 = vmax.f32 %v3659_v58, 0.0  ;;  %v3662_v6 = vadd.f32 %v9757_v63, %v10750_v51  ;;  %v3653_v7 = vpop.f32.mrb[3].mxu1 }
  0xe9   :  { %v4656_v8 = vmax.f32 %v2627_v60, 0.0  ;;  %v2630_v9 = vadd.f32 %v10750_v51, %v2629_v4  ;;  %v4912_v10 = vmax.f32 %v3651_v62, 0.0  ;;  %v3654_v11 = vadd.f32 %v10750_v51, %v3653_v7  ;;  %v10139_v4 = vld [vmem:[%s13892_s0 + $0x5d8] sm:$0xff]  }
  0xea   :  { %v8727_v12 = vpack.c.bf16 %v4658_v2, %v4658_v2  ;;  %v4659_v13 = vmax.f32 %v2638_v3, 0.0  ;;  %9607 = vmatmul.mubr.msk.bf16.gmra.mrb[108].mxu0 %vm1825_vm0, %v10129_v53  ;;  %v8983_v14 = vpack.c.bf16 %v4914_v5, %v4914_v5  ;;  %v4915_v15 = vmax.f32 %v3662_v6, 0.0  ;;  %9863 = vmatmul.mubr.msk.bf16.gmra.mrb[108].mxu1 %vm1825_vm0, %v10131_v55 }
  0xeb   :  { %v8725_v16 = vpack.c.bf16 %v4656_v8, %v4656_v8  ;;  %v4657_v17 = vmax.f32 %v2630_v9, 0.0  ;;  %v8981_v18 = vpack.c.bf16 %v4912_v10, %v4912_v10  ;;  %v4913_v19 = vmax.f32 %v3654_v11, 0.0  ;;  %9610 = vmatprep.mubr.msk.bf16.mxu0 %vm1825_vm0, %v10132_v0  ;;  %9866 = vmatprep.mubr.msk.bf16.mxu1 %vm1825_vm0, %v10134_v1  ;;  %v10137_v1 = vld [vmem:[%s13892_s0 + $0x1d8] sm:$0xff]   ;;  %v10140_v9 = vld [vmem:[%s13892_s0 + $0x1e0] sm:$0xff]  }
  0xec   :  { %7195 = vst.msk [vmem:[%s13894_s3 + $0x8] sm:$0xf] %vm7192_vm2, %v8727_v12  ;;  %v8728_v20 = vpack.c.bf16 %v4659_v13, %v4659_v13  ;;  %7451 = vst.msk [vmem:[%s13894_s3 + $0x408] sm:$0xf] %vm7192_vm2, %v8983_v14  ;;  %v8984_v21 = vpack.c.bf16 %v4915_v15, %v4915_v15  ;;  %v10142_v10 = vld [vmem:[%s13892_s0 + $0x5e0] sm:$0xff]  }
  0xed   :  { %7193 = vst.msk [vmem:[%s13894_s3] sm:$0xf] %vm7192_vm2, %v8725_v16  ;;  %v8726_v22 = vpack.c.bf16 %v4657_v17, %v4657_v17  ;;  %7449 = vst.msk [vmem:[%s13894_s3 + $0x400] sm:$0xf] %vm7192_vm2, %v8981_v18  ;;  %v9504_v23 = vpop.f32.mrb[4].mxu0  ;;  %v8982_v24 = vpack.c.bf16 %v4913_v19, %v4913_v19  ;;  %v9760_v25 = vpop.f32.mrb[4].mxu1 }
  0xee   :  { %7196 = vst.msk [vmem:[%s13894_s3 + $0xc] sm:$0xf] %vm7192_vm2, %v8728_v20  ;;  %7452 = vst.msk [vmem:[%s13894_s3 + $0x40c] sm:$0xf] %vm7192_vm2, %v8984_v21  ;;  %v2651_v26 = vadd.f32 %v9504_v23, %v10750_v51  ;;  %v2642_v27 = vpop.f32.mrb[5].mxu0  ;;  %v3675_v29 = vadd.f32 %v9760_v25, %v10750_v51  ;;  %v3666_v30 = vpop.f32.mrb[5].mxu1 }
  0xef   :  { %7194 = vst.msk [vmem:[%s13894_s3 + $0x4] sm:$0xf] %vm7192_vm2, %v8726_v22  ;;  %7450 = vst.msk [vmem:[%s13894_s3 + $0x404] sm:$0xf] %vm7192_vm2, %v8982_v24  ;;  %v2643_v32 = vadd.f32 %v10750_v51, %v2642_v27  ;;  %v9505_v33 = vpop.f32.mrb[6].mxu0  ;;  %v3667_v34 = vadd.f32 %v10750_v51, %v3666_v30  ;;  %v9761_v35 = vpop.f32.mrb[6].mxu1 }
  0xf0   :  { %v4662_v38 = vmax.f32 %v2651_v26, 0.0  ;;  %v2654_v39 = vadd.f32 %v9505_v33, %v10750_v51  ;;  %v2645_v40 = vpop.f32.mrb[7].mxu0  ;;  %v4918_v41 = vmax.f32 %v3675_v29, 0.0  ;;  %v3678_v42 = vadd.f32 %v9761_v35, %v10750_v51  ;;  %v3669_v43 = vpop.f32.mrb[7].mxu1 }
  0xf1   :  { %v4660_v44 = vmax.f32 %v2643_v32, 0.0  ;;  %v2646_v45 = vadd.f32 %v10750_v51, %v2645_v40  ;;  %v4916_v46 = vmax.f32 %v3667_v34, 0.0  ;;  %v3670_v47 = vadd.f32 %v10750_v51, %v3669_v43  ;;  %v10143_v40 = vld [vmem:[%s13892_s0 + $0x5e8] sm:$0xff]  }
  0xf2   :  { %v8731_v48 = vpack.c.bf16 %v4662_v38, %v4662_v38  ;;  %v4663_v49 = vmax.f32 %v2654_v39, 0.0  ;;  %9611 = vmatmul.mubr.msk.bf16.gmra.mrb[112].mxu0 %vm1825_vm0, %v10133_v28  ;;  %v8987_v50 = vpack.c.bf16 %v4918_v41, %v4918_v41  ;;  %v4919_v52 = vmax.f32 %v3678_v42, 0.0  ;;  %9867 = vmatmul.mubr.msk.bf16.gmra.mrb[112].mxu1 %vm1825_vm0, %v10135_v31 }
  0xf3   :  { %v8729_v53 = vpack.c.bf16 %v4660_v44, %v4660_v44  ;;  %v4661_v54 = vmax.f32 %v2646_v45, 0.0  ;;  %v8985_v55 = vpack.c.bf16 %v4916_v46, %v4916_v46  ;;  %v4917_v56 = vmax.f32 %v3670_v47, 0.0  ;;  %9614 = vmatprep.mubr.msk.bf16.mxu0 %vm1825_vm0, %v10136_v36  ;;  %9870 = vmatprep.mubr.msk.bf16.mxu1 %vm1825_vm0, %v10138_v37  ;;  %v10141_v37 = vld [vmem:[%s13892_s0 + $0x1e8] sm:$0xff]   ;;  %v10144_v45 = vld [vmem:[%s13892_s0 + $0x1f0] sm:$0xff]  }
  0xf4   :  { %7199 = vst.msk [vmem:[%s13894_s3 + $0x18] sm:$0xf] %vm7192_vm2, %v8731_v48  ;;  %v8732_v57 = vpack.c.bf16 %v4663_v49, %v4663_v49  ;;  %7455 = vst.msk [vmem:[%s13894_s3 + $0x418] sm:$0xf] %vm7192_vm2, %v8987_v50  ;;  %v8988_v58 = vpack.c.bf16 %v4919_v52, %v4919_v52  ;;  %v10146_v46 = vld [vmem:[%s13892_s0 + $0x5f0] sm:$0xff]  }
  0xf5   :  { %7197 = vst.msk [vmem:[%s13894_s3 + $0x10] sm:$0xf] %vm7192_vm2, %v8729_v53  ;;  %v8730_v59 = vpack.c.bf16 %v4661_v54, %v4661_v54  ;;  %7453 = vst.msk [vmem:[%s13894_s3 + $0x410] sm:$0xf] %vm7192_vm2, %v8985_v55  ;;  %v9508_v60 = vpop.f32.mrb[8].mxu0  ;;  %v8986_v61 = vpack.c.bf16 %v4917_v56, %v4917_v56  ;;  %v9764_v62 = vpop.f32.mrb[8].mxu1 }
  0xf6   :  { %7200 = vst.msk [vmem:[%s13894_s3 + $0x1c] sm:$0xf] %vm7192_vm2, %v8732_v57  ;;  %7456 = vst.msk [vmem:[%s13894_s3 + $0x41c] sm:$0xf] %vm7192_vm2, %v8988_v58  ;;  %v2667_v63 = vadd.f32 %v9508_v60, %v10750_v51  ;;  %v2658_v0 = vpop.f32.mrb[9].mxu0  ;;  %v3691_v2 = vadd.f32 %v9764_v62, %v10750_v51  ;;  %v3682_v3 = vpop.f32.mrb[9].mxu1 }
  0xf7   :  { %7198 = vst.msk [vmem:[%s13894_s3 + $0x14] sm:$0xf] %vm7192_vm2, %v8730_v59  ;;  %7454 = vst.msk [vmem:[%s13894_s3 + $0x414] sm:$0xf] %vm7192_vm2, %v8986_v61  ;;  %v2659_v5 = vadd.f32 %v10750_v51, %v2658_v0  ;;  %v9509_v6 = vpop.f32.mrb[10].mxu0  ;;  %v3683_v7 = vadd.f32 %v10750_v51, %v3682_v3  ;;  %v9765_v8 = vpop.f32.mrb[10].mxu1 }
  0xf8   :  { %v4666_v11 = vmax.f32 %v2667_v63, 0.0  ;;  %v2670_v12 = vadd.f32 %v9509_v6, %v10750_v51  ;;  %v2661_v13 = vpop.f32.mrb[11].mxu0  ;;  %v4922_v14 = vmax.f32 %v3691_v2, 0.0  ;;  %v3694_v15 = vadd.f32 %v9765_v8, %v10750_v51  ;;  %v3685_v16 = vpop.f32.mrb[11].mxu1 }
  0xf9   :  { %v4664_v17 = vmax.f32 %v2659_v5, 0.0  ;;  %v2662_v18 = vadd.f32 %v10750_v51, %v2661_v13  ;;  %v4920_v19 = vmax.f32 %v3683_v7, 0.0  ;;  %v3686_v20 = vadd.f32 %v10750_v51, %v3685_v16  ;;  %v10147_v13 = vld [vmem:[%s13892_s0 + $0x5f8] sm:$0xff]  }
  0xfa   :  { %v8735_v21 = vpack.c.bf16 %v4666_v11, %v4666_v11  ;;  %v4667_v22 = vmax.f32 %v2670_v12, 0.0  ;;  %9615 = vmatmul.mubr.msk.bf16.gmra.mrb[116].mxu0 %vm1825_vm0, %v10137_v1  ;;  %v8991_v23 = vpack.c.bf16 %v4922_v14, %v4922_v14  ;;  %v4923_v24 = vmax.f32 %v3694_v15, 0.0  ;;  %9871 = vmatmul.mubr.msk.bf16.gmra.mrb[116].mxu1 %vm1825_vm0, %v10139_v4 }
  0xfb   :  { %v8733_v25 = vpack.c.bf16 %v4664_v17, %v4664_v17  ;;  %v4665_v26 = vmax.f32 %v2662_v18, 0.0  ;;  %v8989_v27 = vpack.c.bf16 %v4920_v19, %v4920_v19  ;;  %v4921_v28 = vmax.f32 %v3686_v20, 0.0  ;;  %9618 = vmatprep.mubr.msk.bf16.mxu0 %vm1825_vm0, %v10140_v9  ;;  %9874 = vmatprep.mubr.msk.bf16.mxu1 %vm1825_vm0, %v10142_v10  ;;  %v10145_v10 = vld [vmem:[%s13892_s0 + $0x1f8] sm:$0xff]   ;;  %v10148_v18 = vld [vmem:[%s13892_s0 + $0x200] sm:$0xff]  }
  0xfc   :  { %7203 = vst.msk [vmem:[%s13894_s3 + $0x28] sm:$0xf] %vm7192_vm2, %v8735_v21  ;;  %v8736_v29 = vpack.c.bf16 %v4667_v22, %v4667_v22  ;;  %7459 = vst.msk [vmem:[%s13894_s3 + $0x428] sm:$0xf] %vm7192_vm2, %v8991_v23  ;;  %v8992_v30 = vpack.c.bf16 %v4923_v24, %v4923_v24  ;;  %v10150_v19 = vld [vmem:[%s13892_s0 + $0x600] sm:$0xff]  }
  0xfd   :  { %7201 = vst.msk [vmem:[%s13894_s3 + $0x20] sm:$0xf] %vm7192_vm2, %v8733_v25  ;;  %v8734_v31 = vpack.c.bf16 %v4665_v26, %v4665_v26  ;;  %7457 = vst.msk [vmem:[%s13894_s3 + $0x420] sm:$0xf] %vm7192_vm2, %v8989_v27  ;;  %v9512_v32 = vpop.f32.mrb[12].mxu0  ;;  %v8990_v33 = vpack.c.bf16 %v4921_v28, %v4921_v28  ;;  %v9768_v34 = vpop.f32.mrb[12].mxu1 }
  0xfe   :  { %7204 = vst.msk [vmem:[%s13894_s3 + $0x2c] sm:$0xf] %vm7192_vm2, %v8736_v29  ;;  %7460 = vst.msk [vmem:[%s13894_s3 + $0x42c] sm:$0xf] %vm7192_vm2, %v8992_v30  ;;  %v2683_v35 = vadd.f32 %v9512_v32, %v10750_v51  ;;  %v2674_v36 = vpop.f32.mrb[13].mxu0  ;;  %v3707_v38 = vadd.f32 %v9768_v34, %v10750_v51  ;;  %v3698_v39 = vpop.f32.mrb[13].mxu1 }
  0xff   :  { %7202 = vst.msk [vmem:[%s13894_s3 + $0x24] sm:$0xf] %vm7192_vm2, %v8734_v31  ;;  %7458 = vst.msk [vmem:[%s13894_s3 + $0x424] sm:$0xf] %vm7192_vm2, %v8990_v33  ;;  %v2675_v41 = vadd.f32 %v10750_v51, %v2674_v36  ;;  %v9513_v42 = vpop.f32.mrb[14].mxu0  ;;  %v3699_v43 = vadd.f32 %v10750_v51, %v3698_v39  ;;  %v9769_v44 = vpop.f32.mrb[14].mxu1 }
 0x100   :  { %v4670_v47 = vmax.f32 %v2683_v35, 0.0  ;;  %v2686_v48 = vadd.f32 %v9513_v42, %v10750_v51  ;;  %v2677_v49 = vpop.f32.mrb[15].mxu0  ;;  %v4926_v50 = vmax.f32 %v3707_v38, 0.0  ;;  %v3710_v52 = vadd.f32 %v9769_v44, %v10750_v51  ;;  %v3701_v53 = vpop.f32.mrb[15].mxu1 }
 0x101   :  { %v4668_v54 = vmax.f32 %v2675_v41, 0.0  ;;  %v2678_v55 = vadd.f32 %v10750_v51, %v2677_v49  ;;  %v4924_v56 = vmax.f32 %v3699_v43, 0.0  ;;  %v3702_v57 = vadd.f32 %v10750_v51, %v3701_v53  ;;  %v10151_v49 = vld [vmem:[%s13892_s0 + $0x608] sm:$0xff]  }
 0x102   :  { %v8739_v58 = vpack.c.bf16 %v4670_v47, %v4670_v47  ;;  %v4671_v59 = vmax.f32 %v2686_v48, 0.0  ;;  %9619 = vmatmul.mubr.msk.bf16.gmra.mrb[120].mxu0 %vm1825_vm0, %v10141_v37  ;;  %v8995_v60 = vpack.c.bf16 %v4926_v50, %v4926_v50  ;;  %v4927_v61 = vmax.f32 %v3710_v52, 0.0  ;;  %9875 = vmatmul.mubr.msk.bf16.gmra.mrb[120].mxu1 %vm1825_vm0, %v10143_v40 }
 0x103   :  { %v8737_v62 = vpack.c.bf16 %v4668_v54, %v4668_v54  ;;  %v4669_v63 = vmax.f32 %v2678_v55, 0.0  ;;  %v8993_v0 = vpack.c.bf16 %v4924_v56, %v4924_v56  ;;  %v4925_v1 = vmax.f32 %v3702_v57, 0.0  ;;  %9622 = vmatprep.mubr.msk.bf16.mxu0 %vm1825_vm0, %v10144_v45  ;;  %9878 = vmatprep.mubr.msk.bf16.mxu1 %vm1825_vm0, %v10146_v46  ;;  %v10149_v46 = vld [vmem:[%s13892_s0 + $0x208] sm:$0xff]   ;;  %v10152_v55 = vld [vmem:[%s13892_s0 + $0x210] sm:$0xff]  }
 0x104   :  { %7207 = vst.msk [vmem:[%s13894_s3 + $0x38] sm:$0xf] %vm7192_vm2, %v8739_v58  ;;  %v8740_v2 = vpack.c.bf16 %v4671_v59, %v4671_v59  ;;  %7463 = vst.msk [vmem:[%s13894_s3 + $0x438] sm:$0xf] %vm7192_vm2, %v8995_v60  ;;  %v8996_v3 = vpack.c.bf16 %v4927_v61, %v4927_v61  ;;  %v10154_v56 = vld [vmem:[%s13892_s0 + $0x610] sm:$0xff]  }
 0x105   :  { %7205 = vst.msk [vmem:[%s13894_s3 + $0x30] sm:$0xf] %vm7192_vm2, %v8737_v62  ;;  %v8738_v4 = vpack.c.bf16 %v4669_v63, %v4669_v63  ;;  %7461 = vst.msk [vmem:[%s13894_s3 + $0x430] sm:$0xf] %vm7192_vm2, %v8993_v0  ;;  %v9516_v5 = vpop.f32.mrb[16].mxu0  ;;  %v8994_v6 = vpack.c.bf16 %v4925_v1, %v4925_v1  ;;  %v9772_v7 = vpop.f32.mrb[16].mxu1 }
 0x106   :  { %7208 = vst.msk [vmem:[%s13894_s3 + $0x3c] sm:$0xf] %vm7192_vm2, %v8740_v2  ;;  %7464 = vst.msk [vmem:[%s13894_s3 + $0x43c] sm:$0xf] %vm7192_vm2, %v8996_v3  ;;  %v2699_v8 = vadd.f32 %v9516_v5, %v10750_v51  ;;  %v2690_v9 = vpop.f32.mrb[17].mxu0  ;;  %v3723_v11 = vadd.f32 %v9772_v7, %v10750_v51  ;;  %v3714_v12 = vpop.f32.mrb[17].mxu1 }
 0x107   :  { %7206 = vst.msk [vmem:[%s13894_s3 + $0x34] sm:$0xf] %vm7192_vm2, %v8738_v4  ;;  %7462 = vst.msk [vmem:[%s13894_s3 + $0x434] sm:$0xf] %vm7192_vm2, %v8994_v6  ;;  %v2691_v14 = vadd.f32 %v10750_v51, %v2690_v9  ;;  %v9517_v15 = vpop.f32.mrb[18].mxu0  ;;  %v3715_v16 = vadd.f32 %v10750_v51, %v3714_v12  ;;  %v9773_v17 = vpop.f32.mrb[18].mxu1 }
 0x108   :  { %v4674_v20 = vmax.f32 %v2699_v8, 0.0  ;;  %v2702_v21 = vadd.f32 %v9517_v15, %v10750_v51  ;;  %v2693_v22 = vpop.f32.mrb[19].mxu0  ;;  %v4930_v23 = vmax.f32 %v3723_v11, 0.0  ;;  %v3726_v24 = vadd.f32 %v9773_v17, %v10750_v51  ;;  %v3717_v25 = vpop.f32.mrb[19].mxu1 }
 0x109   :  { %v4672_v26 = vmax.f32 %v2691_v14, 0.0  ;;  %v2694_v27 = vadd.f32 %v10750_v51, %v2693_v22  ;;  %v4928_v28 = vmax.f32 %v3715_v16, 0.0  ;;  %v3718_v29 = vadd.f32 %v10750_v51, %v3717_v25  ;;  %v10155_v22 = vld [vmem:[%s13892_s0 + $0x618] sm:$0xff]  }
 0x10a   :  { %v8743_v30 = vpack.c.bf16 %v4674_v20, %v4674_v20  ;;  %v4675_v31 = vmax.f32 %v2702_v21, 0.0  ;;  %9623 = vmatmul.mubr.msk.bf16.gmra.mrb[124].mxu0 %vm1825_vm0, %v10145_v10  ;;  %v8999_v32 = vpack.c.bf16 %v4930_v23, %v4930_v23  ;;  %v4931_v33 = vmax.f32 %v3726_v24, 0.0  ;;  %9879 = vmatmul.mubr.msk.bf16.gmra.mrb[124].mxu1 %vm1825_vm0, %v10147_v13 }
 0x10b   :  { %v8741_v34 = vpack.c.bf16 %v4672_v26, %v4672_v26  ;;  %v4673_v35 = vmax.f32 %v2694_v27, 0.0  ;;  %v8997_v36 = vpack.c.bf16 %v4928_v28, %v4928_v28  ;;  %v4929_v37 = vmax.f32 %v3718_v29, 0.0  ;;  %9626 = vmatprep.mubr.msk.bf16.mxu0 %vm1825_vm0, %v10148_v18  ;;  %9882 = vmatprep.mubr.msk.bf16.mxu1 %vm1825_vm0, %v10150_v19  ;;  %v10153_v19 = vld [vmem:[%s13892_s0 + $0x218] sm:$0xff]   ;;  %v10156_v27 = vld [vmem:[%s13892_s0 + $0x220] sm:$0xff]  }
 0x10c   :  { %7211 = vst.msk [vmem:[%s13894_s3 + $0x48] sm:$0xf] %vm7192_vm2, %v8743_v30  ;;  %v8744_v38 = vpack.c.bf16 %v4675_v31, %v4675_v31  ;;  %7467 = vst.msk [vmem:[%s13894_s3 + $0x448] sm:$0xf] %vm7192_vm2, %v8999_v32  ;;  %v9000_v39 = vpack.c.bf16 %v4931_v33, %v4931_v33  ;;  %v10158_v28 = vld [vmem:[%s13892_s0 + $0x620] sm:$0xff]  }
 0x10d   :  { %7209 = vst.msk [vmem:[%s13894_s3 + $0x40] sm:$0xf] %vm7192_vm2, %v8741_v34  ;;  %v8742_v40 = vpack.c.bf16 %v4673_v35, %v4673_v35  ;;  %7465 = vst.msk [vmem:[%s13894_s3 + $0x440] sm:$0xf] %vm7192_vm2, %v8997_v36  ;;  %v9520_v41 = vpop.f32.mrb[20].mxu0  ;;  %v8998_v42 = vpack.c.bf16 %v4929_v37, %v4929_v37  ;;  %v9776_v43 = vpop.f32.mrb[20].mxu1 }
 0x10e   :  { %7212 = vst.msk [vmem:[%s13894_s3 + $0x4c] sm:$0xf] %vm7192_vm2, %v8744_v38  ;;  %7468 = vst.msk [vmem:[%s13894_s3 + $0x44c] sm:$0xf] %vm7192_vm2, %v9000_v39  ;;  %v2715_v44 = vadd.f32 %v9520_v41, %v10750_v51  ;;  %v2706_v45 = vpop.f32.mrb[21].mxu0  ;;  %v3739_v47 = vadd.f32 %v9776_v43, %v10750_v51  ;;  %v3730_v48 = vpop.f32.mrb[21].mxu1 }
 0x10f   :  { %7210 = vst.msk [vmem:[%s13894_s3 + $0x44] sm:$0xf] %vm7192_vm2, %v8742_v40  ;;  %7466 = vst.msk [vmem:[%s13894_s3 + $0x444] sm:$0xf] %vm7192_vm2, %v8998_v42  ;;  %v2707_v50 = vadd.f32 %v10750_v51, %v2706_v45  ;;  %v9521_v52 = vpop.f32.mrb[22].mxu0  ;;  %v3731_v53 = vadd.f32 %v10750_v51, %v3730_v48  ;;  %v9777_v54 = vpop.f32.mrb[22].mxu1 }
 0x110   :  { %v4678_v57 = vmax.f32 %v2715_v44, 0.0  ;;  %v2718_v58 = vadd.f32 %v9521_v52, %v10750_v51  ;;  %v2709_v59 = vpop.f32.mrb[23].mxu0  ;;  %v4934_v60 = vmax.f32 %v3739_v47, 0.0  ;;  %v3742_v61 = vadd.f32 %v9777_v54, %v10750_v51  ;;  %v3733_v62 = vpop.f32.mrb[23].mxu1 }
 0x111   :  { %v4676_v63 = vmax.f32 %v2707_v50, 0.0  ;;  %v2710_v0 = vadd.f32 %v10750_v51, %v2709_v59  ;;  %v4932_v1 = vmax.f32 %v3731_v53, 0.0  ;;  %v3734_v2 = vadd.f32 %v10750_v51, %v3733_v62  ;;  %v10159_v59 = vld [vmem:[%s13892_s0 + $0x628] sm:$0xff]  }
 0x112   :  { %v8747_v3 = vpack.c.bf16 %v4678_v57, %v4678_v57  ;;  %v4679_v4 = vmax.f32 %v2718_v58, 0.0  ;;  %9627 = vmatmul.mubr.msk.bf16.gmra.mrb[128].mxu0 %vm1825_vm0, %v10149_v46  ;;  %v9003_v5 = vpack.c.bf16 %v4934_v60, %v4934_v60  ;;  %v4935_v6 = vmax.f32 %v3742_v61, 0.0  ;;  %9883 = vmatmul.mubr.msk.bf16.gmra.mrb[128].mxu1 %vm1825_vm0, %v10151_v49 }
 0x113   :  { %v8745_v7 = vpack.c.bf16 %v4676_v63, %v4676_v63  ;;  %v4677_v8 = vmax.f32 %v2710_v0, 0.0  ;;  %v9001_v9 = vpack.c.bf16 %v4932_v1, %v4932_v1  ;;  %v4933_v10 = vmax.f32 %v3734_v2, 0.0  ;;  %9630 = vmatprep.mubr.msk.bf16.mxu0 %vm1825_vm0, %v10152_v55  ;;  %9886 = vmatprep.mubr.msk.bf16.mxu1 %vm1825_vm0, %v10154_v56  ;;  %v10157_v56 = vld [vmem:[%s13892_s0 + $0x228] sm:$0xff]   ;;  %v10160_v0 = vld [vmem:[%s13892_s0 + $0x230] sm:$0xff]  }
 0x114   :  { %7215 = vst.msk [vmem:[%s13894_s3 + $0x58] sm:$0xf] %vm7192_vm2, %v8747_v3  ;;  %v8748_v11 = vpack.c.bf16 %v4679_v4, %v4679_v4  ;;  %7471 = vst.msk [vmem:[%s13894_s3 + $0x458] sm:$0xf] %vm7192_vm2, %v9003_v5  ;;  %v9004_v12 = vpack.c.bf16 %v4935_v6, %v4935_v6  ;;  %v10162_v1 = vld [vmem:[%s13892_s0 + $0x630] sm:$0xff]  }
 0x115   :  { %7213 = vst.msk [vmem:[%s13894_s3 + $0x50] sm:$0xf] %vm7192_vm2, %v8745_v7  ;;  %v8746_v13 = vpack.c.bf16 %v4677_v8, %v4677_v8  ;;  %7469 = vst.msk [vmem:[%s13894_s3 + $0x450] sm:$0xf] %vm7192_vm2, %v9001_v9  ;;  %v9524_v14 = vpop.f32.mrb[24].mxu0  ;;  %v9002_v15 = vpack.c.bf16 %v4933_v10, %v4933_v10  ;;  %v9780_v16 = vpop.f32.mrb[24].mxu1 }
 0x116   :  { %7216 = vst.msk [vmem:[%s13894_s3 + $0x5c] sm:$0xf] %vm7192_vm2, %v8748_v11  ;;  %7472 = vst.msk [vmem:[%s13894_s3 + $0x45c] sm:$0xf] %vm7192_vm2, %v9004_v12  ;;  %v2731_v17 = vadd.f32 %v9524_v14, %v10750_v51  ;;  %v2722_v18 = vpop.f32.mrb[25].mxu0  ;;  %v3755_v20 = vadd.f32 %v9780_v16, %v10750_v51  ;;  %v3746_v21 = vpop.f32.mrb[25].mxu1 }
 0x117   :  { %7214 = vst.msk [vmem:[%s13894_s3 + $0x54] sm:$0xf] %vm7192_vm2, %v8746_v13  ;;  %7470 = vst.msk [vmem:[%s13894_s3 + $0x454] sm:$0xf] %vm7192_vm2, %v9002_v15  ;;  %v2723_v23 = vadd.f32 %v10750_v51, %v2722_v18  ;;  %v9525_v24 = vpop.f32.mrb[26].mxu0  ;;  %v3747_v25 = vadd.f32 %v10750_v51, %v3746_v21  ;;  %v9781_v26 = vpop.f32.mrb[26].mxu1 }
 0x118   :  { %v4682_v29 = vmax.f32 %v2731_v17, 0.0  ;;  %v2734_v30 = vadd.f32 %v9525_v24, %v10750_v51  ;;  %v2725_v31 = vpop.f32.mrb[27].mxu0  ;;  %v4938_v32 = vmax.f32 %v3755_v20, 0.0  ;;  %v3758_v33 = vadd.f32 %v9781_v26, %v10750_v51  ;;  %v3749_v34 = vpop.f32.mrb[27].mxu1 }
 0x119   :  { %v4680_v35 = vmax.f32 %v2723_v23, 0.0  ;;  %v2726_v36 = vadd.f32 %v10750_v51, %v2725_v31  ;;  %v4936_v37 = vmax.f32 %v3747_v25, 0.0  ;;  %v3750_v38 = vadd.f32 %v10750_v51, %v3749_v34  ;;  %v10163_v31 = vld [vmem:[%s13892_s0 + $0x638] sm:$0xff]  }
 0x11a   :  { %v8751_v39 = vpack.c.bf16 %v4682_v29, %v4682_v29  ;;  %v4683_v40 = vmax.f32 %v2734_v30, 0.0  ;;  %9631 = vmatmul.mubr.msk.bf16.gmra.mrb[132].mxu0 %vm1825_vm0, %v10153_v19  ;;  %v9007_v41 = vpack.c.bf16 %v4938_v32, %v4938_v32  ;;  %v4939_v42 = vmax.f32 %v3758_v33, 0.0  ;;  %9887 = vmatmul.mubr.msk.bf16.gmra.mrb[132].mxu1 %vm1825_vm0, %v10155_v22 }
 0x11b   :  { %v8749_v43 = vpack.c.bf16 %v4680_v35, %v4680_v35  ;;  %v4681_v44 = vmax.f32 %v2726_v36, 0.0  ;;  %v9005_v45 = vpack.c.bf16 %v4936_v37, %v4936_v37  ;;  %v4937_v46 = vmax.f32 %v3750_v38, 0.0  ;;  %9634 = vmatprep.mubr.msk.bf16.mxu0 %vm1825_vm0, %v10156_v27  ;;  %9890 = vmatprep.mubr.msk.bf16.mxu1 %vm1825_vm0, %v10158_v28  ;;  %v10161_v28 = vld [vmem:[%s13892_s0 + $0x238] sm:$0xff]   ;;  %v10164_v36 = vld [vmem:[%s13892_s0 + $0x240] sm:$0xff]  }
 0x11c   :  { %7219 = vst.msk [vmem:[%s13894_s3 + $0x68] sm:$0xf] %vm7192_vm2, %v8751_v39  ;;  %v8752_v47 = vpack.c.bf16 %v4683_v40, %v4683_v40  ;;  %7475 = vst.msk [vmem:[%s13894_s3 + $0x468] sm:$0xf] %vm7192_vm2, %v9007_v41  ;;  %v9008_v48 = vpack.c.bf16 %v4939_v42, %v4939_v42  ;;  %v10166_v37 = vld [vmem:[%s13892_s0 + $0x640] sm:$0xff]  }
 0x11d   :  { %7217 = vst.msk [vmem:[%s13894_s3 + $0x60] sm:$0xf] %vm7192_vm2, %v8749_v43  ;;  %v8750_v49 = vpack.c.bf16 %v4681_v44, %v4681_v44  ;;  %7473 = vst.msk [vmem:[%s13894_s3 + $0x460] sm:$0xf] %vm7192_vm2, %v9005_v45  ;;  %v9528_v50 = vpop.f32.mrb[28].mxu0  ;;  %v9006_v52 = vpack.c.bf16 %v4937_v46, %v4937_v46  ;;  %v9784_v53 = vpop.f32.mrb[28].mxu1 }
 0x11e   :  { %7220 = vst.msk [vmem:[%s13894_s3 + $0x6c] sm:$0xf] %vm7192_vm2, %v8752_v47  ;;  %7476 = vst.msk [vmem:[%s13894_s3 + $0x46c] sm:$0xf] %vm7192_vm2, %v9008_v48  ;;  %v2747_v54 = vadd.f32 %v9528_v50, %v10750_v51  ;;  %v2738_v55 = vpop.f32.mrb[29].mxu0  ;;  %v3771_v57 = vadd.f32 %v9784_v53, %v10750_v51  ;;  %v3762_v58 = vpop.f32.mrb[29].mxu1 }
 0x11f   :  { %7218 = vst.msk [vmem:[%s13894_s3 + $0x64] sm:$0xf] %vm7192_vm2, %v8750_v49  ;;  %7474 = vst.msk [vmem:[%s13894_s3 + $0x464] sm:$0xf] %vm7192_vm2, %v9006_v52  ;;  %v2739_v60 = vadd.f32 %v10750_v51, %v2738_v55  ;;  %v9529_v61 = vpop.f32.mrb[30].mxu0  ;;  %v3763_v62 = vadd.f32 %v10750_v51, %v3762_v58  ;;  %v9785_v63 = vpop.f32.mrb[30].mxu1 }
 0x120   :  { %v4686_v2 = vmax.f32 %v2747_v54, 0.0  ;;  %v2750_v3 = vadd.f32 %v9529_v61, %v10750_v51  ;;  %v2741_v4 = vpop.f32.mrb[31].mxu0  ;;  %v4942_v5 = vmax.f32 %v3771_v57, 0.0  ;;  %v3774_v6 = vadd.f32 %v9785_v63, %v10750_v51  ;;  %v3765_v7 = vpop.f32.mrb[31].mxu1 }
 0x121   :  { %v4684_v8 = vmax.f32 %v2739_v60, 0.0  ;;  %v2742_v9 = vadd.f32 %v10750_v51, %v2741_v4  ;;  %v4940_v10 = vmax.f32 %v3763_v62, 0.0  ;;  %v3766_v11 = vadd.f32 %v10750_v51, %v3765_v7  ;;  %v10167_v4 = vld [vmem:[%s13892_s0 + $0x648] sm:$0xff]  }
 0x122   :  { %v8755_v12 = vpack.c.bf16 %v4686_v2, %v4686_v2  ;;  %v4687_v13 = vmax.f32 %v2750_v3, 0.0  ;;  %9635 = vmatmul.mubr.msk.bf16.gmra.mrb[136].mxu0 %vm1825_vm0, %v10157_v56  ;;  %v9011_v14 = vpack.c.bf16 %v4942_v5, %v4942_v5  ;;  %v4943_v15 = vmax.f32 %v3774_v6, 0.0  ;;  %9891 = vmatmul.mubr.msk.bf16.gmra.mrb[136].mxu1 %vm1825_vm0, %v10159_v59 }
 0x123   :  { %v8753_v16 = vpack.c.bf16 %v4684_v8, %v4684_v8  ;;  %v4685_v17 = vmax.f32 %v2742_v9, 0.0  ;;  %v9009_v18 = vpack.c.bf16 %v4940_v10, %v4940_v10  ;;  %v4941_v19 = vmax.f32 %v3766_v11, 0.0  ;;  %9638 = vmatprep.mubr.msk.bf16.mxu0 %vm1825_vm0, %v10160_v0  ;;  %9894 = vmatprep.mubr.msk.bf16.mxu1 %vm1825_vm0, %v10162_v1  ;;  %v10165_v1 = vld [vmem:[%s13892_s0 + $0x248] sm:$0xff]   ;;  %v10168_v9 = vld [vmem:[%s13892_s0 + $0x250] sm:$0xff]  }
 0x124   :  { %7223 = vst.msk [vmem:[%s13894_s3 + $0x78] sm:$0xf] %vm7192_vm2, %v8755_v12  ;;  %v8756_v20 = vpack.c.bf16 %v4687_v13, %v4687_v13  ;;  %7479 = vst.msk [vmem:[%s13894_s3 + $0x478] sm:$0xf] %vm7192_vm2, %v9011_v14  ;;  %v9012_v21 = vpack.c.bf16 %v4943_v15, %v4943_v15  ;;  %v10170_v10 = vld [vmem:[%s13892_s0 + $0x650] sm:$0xff]  }
 0x125   :  { %7221 = vst.msk [vmem:[%s13894_s3 + $0x70] sm:$0xf] %vm7192_vm2, %v8753_v16  ;;  %v8754_v22 = vpack.c.bf16 %v4685_v17, %v4685_v17  ;;  %7477 = vst.msk [vmem:[%s13894_s3 + $0x470] sm:$0xf] %vm7192_vm2, %v9009_v18  ;;  %v9532_v23 = vpop.f32.mrb[32].mxu0  ;;  %v9010_v24 = vpack.c.bf16 %v4941_v19, %v4941_v19  ;;  %v9788_v25 = vpop.f32.mrb[32].mxu1 }
 0x126   :  { %7224 = vst.msk [vmem:[%s13894_s3 + $0x7c] sm:$0xf] %vm7192_vm2, %v8756_v20  ;;  %7480 = vst.msk [vmem:[%s13894_s3 + $0x47c] sm:$0xf] %vm7192_vm2, %v9012_v21  ;;  %v2763_v26 = vadd.f32 %v9532_v23, %v10750_v51  ;;  %v2754_v27 = vpop.f32.mrb[33].mxu0  ;;  %v3787_v29 = vadd.f32 %v9788_v25, %v10750_v51  ;;  %v3778_v30 = vpop.f32.mrb[33].mxu1 }
 0x127   :  { %7222 = vst.msk [vmem:[%s13894_s3 + $0x74] sm:$0xf] %vm7192_vm2, %v8754_v22  ;;  %7478 = vst.msk [vmem:[%s13894_s3 + $0x474] sm:$0xf] %vm7192_vm2, %v9010_v24  ;;  %v2755_v32 = vadd.f32 %v10750_v51, %v2754_v27  ;;  %v9533_v33 = vpop.f32.mrb[34].mxu0  ;;  %v3779_v34 = vadd.f32 %v10750_v51, %v3778_v30  ;;  %v9789_v35 = vpop.f32.mrb[34].mxu1 }
 0x128   :  { %v4690_v38 = vmax.f32 %v2763_v26, 0.0  ;;  %v2766_v39 = vadd.f32 %v9533_v33, %v10750_v51  ;;  %v2757_v40 = vpop.f32.mrb[35].mxu0  ;;  %v4946_v41 = vmax.f32 %v3787_v29, 0.0  ;;  %v3790_v42 = vadd.f32 %v9789_v35, %v10750_v51  ;;  %v3781_v43 = vpop.f32.mrb[35].mxu1 }
 0x129   :  { %v4688_v44 = vmax.f32 %v2755_v32, 0.0  ;;  %v2758_v45 = vadd.f32 %v10750_v51, %v2757_v40  ;;  %v4944_v46 = vmax.f32 %v3779_v34, 0.0  ;;  %v3782_v47 = vadd.f32 %v10750_v51, %v3781_v43  ;;  %v10171_v40 = vld [vmem:[%s13892_s0 + $0x658] sm:$0xff]  }
 0x12a   :  { %v8759_v48 = vpack.c.bf16 %v4690_v38, %v4690_v38  ;;  %v4691_v49 = vmax.f32 %v2766_v39, 0.0  ;;  %9639 = vmatmul.mubr.msk.bf16.gmra.mrb[140].mxu0 %vm1825_vm0, %v10161_v28  ;;  %v9015_v50 = vpack.c.bf16 %v4946_v41, %v4946_v41  ;;  %v4947_v52 = vmax.f32 %v3790_v42, 0.0  ;;  %9895 = vmatmul.mubr.msk.bf16.gmra.mrb[140].mxu1 %vm1825_vm0, %v10163_v31 }
 0x12b   :  { %v8757_v53 = vpack.c.bf16 %v4688_v44, %v4688_v44  ;;  %v4689_v54 = vmax.f32 %v2758_v45, 0.0  ;;  %v9013_v55 = vpack.c.bf16 %v4944_v46, %v4944_v46  ;;  %v4945_v56 = vmax.f32 %v3782_v47, 0.0  ;;  %9642 = vmatprep.mubr.msk.bf16.mxu0 %vm1825_vm0, %v10164_v36  ;;  %9898 = vmatprep.mubr.msk.bf16.mxu1 %vm1825_vm0, %v10166_v37  ;;  %v10169_v37 = vld [vmem:[%s13892_s0 + $0x258] sm:$0xff]   ;;  %v10172_v45 = vld [vmem:[%s13892_s0 + $0x260] sm:$0xff]  }
 0x12c   :  { %7227 = vst.msk [vmem:[%s13894_s3 + $0x88] sm:$0xf] %vm7192_vm2, %v8759_v48  ;;  %v8760_v57 = vpack.c.bf16 %v4691_v49, %v4691_v49  ;;  %7483 = vst.msk [vmem:[%s13894_s3 + $0x488] sm:$0xf] %vm7192_vm2, %v9015_v50  ;;  %v9016_v58 = vpack.c.bf16 %v4947_v52, %v4947_v52  ;;  %v10174_v46 = vld [vmem:[%s13892_s0 + $0x660] sm:$0xff]  }
 0x12d   :  { %7225 = vst.msk [vmem:[%s13894_s3 + $0x80] sm:$0xf] %vm7192_vm2, %v8757_v53  ;;  %v8758_v59 = vpack.c.bf16 %v4689_v54, %v4689_v54  ;;  %7481 = vst.msk [vmem:[%s13894_s3 + $0x480] sm:$0xf] %vm7192_vm2, %v9013_v55  ;;  %v9536_v60 = vpop.f32.mrb[36].mxu0  ;;  %v9014_v61 = vpack.c.bf16 %v4945_v56, %v4945_v56  ;;  %v9792_v62 = vpop.f32.mrb[36].mxu1 }
 0x12e   :  { %7228 = vst.msk [vmem:[%s13894_s3 + $0x8c] sm:$0xf] %vm7192_vm2, %v8760_v57  ;;  %7484 = vst.msk [vmem:[%s13894_s3 + $0x48c] sm:$0xf] %vm7192_vm2, %v9016_v58  ;;  %v2779_v63 = vadd.f32 %v9536_v60, %v10750_v51  ;;  %v2770_v0 = vpop.f32.mrb[37].mxu0  ;;  %v3803_v2 = vadd.f32 %v9792_v62, %v10750_v51  ;;  %v3794_v3 = vpop.f32.mrb[37].mxu1 }
 0x12f   :  { %7226 = vst.msk [vmem:[%s13894_s3 + $0x84] sm:$0xf] %vm7192_vm2, %v8758_v59  ;;  %7482 = vst.msk [vmem:[%s13894_s3 + $0x484] sm:$0xf] %vm7192_vm2, %v9014_v61  ;;  %v2771_v5 = vadd.f32 %v10750_v51, %v2770_v0  ;;  %v9537_v6 = vpop.f32.mrb[38].mxu0  ;;  %v3795_v7 = vadd.f32 %v10750_v51, %v3794_v3  ;;  %v9793_v8 = vpop.f32.mrb[38].mxu1 }
 0x130   :  { %v4694_v11 = vmax.f32 %v2779_v63, 0.0  ;;  %v2782_v12 = vadd.f32 %v9537_v6, %v10750_v51  ;;  %v2773_v13 = vpop.f32.mrb[39].mxu0  ;;  %v4950_v14 = vmax.f32 %v3803_v2, 0.0  ;;  %v3806_v15 = vadd.f32 %v9793_v8, %v10750_v51  ;;  %v3797_v16 = vpop.f32.mrb[39].mxu1  ;;  %v11335_v48 = vld [vmem:[%s13893_s2] ss:$0 sm:$0xff] }
 0x131   :  { %v4692_v17 = vmax.f32 %v2771_v5, 0.0  ;;  %v2774_v18 = vadd.f32 %v10750_v51, %v2773_v13  ;;  %v4948_v19 = vmax.f32 %v3795_v7, 0.0  ;;  %v3798_v20 = vadd.f32 %v10750_v51, %v3797_v16  ;;  %v10175_v13 = vld [vmem:[%s13892_s0 + $0x668] sm:$0xff]  }
 0x132   :  { %v8763_v21 = vpack.c.bf16 %v4694_v11, %v4694_v11  ;;  %v4695_v22 = vmax.f32 %v2782_v12, 0.0  ;;  %9643 = vmatmul.mubr.msk.bf16.gmra.mrb[144].mxu0 %vm1825_vm0, %v10165_v1  ;;  %v9019_v23 = vpack.c.bf16 %v4950_v14, %v4950_v14  ;;  %v4951_v24 = vmax.f32 %v3806_v15, 0.0  ;;  %9899 = vmatmul.mubr.msk.bf16.gmra.mrb[144].mxu1 %vm1825_vm0, %v10167_v4 }
 0x133   :  { %v8761_v25 = vpack.c.bf16 %v4692_v17, %v4692_v17  ;;  %v4693_v26 = vmax.f32 %v2774_v18, 0.0  ;;  %v9017_v27 = vpack.c.bf16 %v4948_v19, %v4948_v19  ;;  %v4949_v28 = vmax.f32 %v3798_v20, 0.0  ;;  %9646 = vmatprep.mubr.msk.bf16.mxu0 %vm1825_vm0, %v10168_v9  ;;  %9902 = vmatprep.mubr.msk.bf16.mxu1 %vm1825_vm0, %v10170_v10  ;;  %v10173_v10 = vld [vmem:[%s13892_s0 + $0x268] sm:$0xff]   ;;  %v10176_v18 = vld [vmem:[%s13892_s0 + $0x270] sm:$0xff]  }
 0x134   :  { %7231 = vst.msk [vmem:[%s13894_s3 + $0x98] sm:$0xf] %vm7192_vm2, %v8763_v21  ;;  %v8764_v29 = vpack.c.bf16 %v4695_v22, %v4695_v22  ;;  %7487 = vst.msk [vmem:[%s13894_s3 + $0x498] sm:$0xf] %vm7192_vm2, %v9019_v23  ;;  %v9020_v30 = vpack.c.bf16 %v4951_v24, %v4951_v24  ;;  %v10178_v19 = vld [vmem:[%s13892_s0 + $0x670] sm:$0xff]  }
 0x135   :  { %7229 = vst.msk [vmem:[%s13894_s3 + $0x90] sm:$0xf] %vm7192_vm2, %v8761_v25  ;;  %v8762_v31 = vpack.c.bf16 %v4693_v26, %v4693_v26  ;;  %7485 = vst.msk [vmem:[%s13894_s3 + $0x490] sm:$0xf] %vm7192_vm2, %v9017_v27  ;;  %v9540_v32 = vpop.f32.mrb[40].mxu0  ;;  %v9018_v33 = vpack.c.bf16 %v4949_v28, %v4949_v28  ;;  %v9796_v34 = vpop.f32.mrb[40].mxu1 }
 0x136   :  { %7232 = vst.msk [vmem:[%s13894_s3 + $0x9c] sm:$0xf] %vm7192_vm2, %v8764_v29  ;;  %7488 = vst.msk [vmem:[%s13894_s3 + $0x49c] sm:$0xf] %vm7192_vm2, %v9020_v30  ;;  %v2795_v35 = vadd.f32 %v9540_v32, %v10750_v51  ;;  %v2786_v36 = vpop.f32.mrb[41].mxu0  ;;  %v3819_v38 = vadd.f32 %v9796_v34, %v10750_v51  ;;  %v3810_v39 = vpop.f32.mrb[41].mxu1 }
 0x137   :  { %7230 = vst.msk [vmem:[%s13894_s3 + $0x94] sm:$0xf] %vm7192_vm2, %v8762_v31  ;;  %7486 = vst.msk [vmem:[%s13894_s3 + $0x494] sm:$0xf] %vm7192_vm2, %v9018_v33  ;;  %v2787_v41 = vadd.f32 %v10750_v51, %v2786_v36  ;;  %v9541_v42 = vpop.f32.mrb[42].mxu0  ;;  %v3811_v43 = vadd.f32 %v10750_v51, %v3810_v39  ;;  %v9797_v44 = vpop.f32.mrb[42].mxu1 }
 0x138   :  { %v4698_v47 = vmax.f32 %v2795_v35, 0.0  ;;  %v2798_v49 = vadd.f32 %v11335_v48, %v9541_v42  ;;  %v2789_v50 = vpop.f32.mrb[43].mxu0  ;;  %v4954_v52 = vmax.f32 %v3819_v38, 0.0  ;;  %v3822_v51 = vadd.f32 %v11335_v48, %v9797_v44  ;;  %v3813_v53 = vpop.f32.mrb[43].mxu1 }
 0x139   :  { %v4696_v54 = vmax.f32 %v2787_v41, 0.0  ;;  %v2790_v55 = vadd.f32 %v11335_v48, %v2789_v50  ;;  %v4952_v56 = vmax.f32 %v3811_v43, 0.0  ;;  %v3814_v57 = vadd.f32 %v11335_v48, %v3813_v53  ;;  %v10179_v50 = vld [vmem:[%s13892_s0 + $0x678] sm:$0xff]  }
 0x13a   :  { %v8767_v58 = vpack.c.bf16 %v4698_v47, %v4698_v47  ;;  %v4699_v59 = vmax.f32 %v2798_v49, 0.0  ;;  %9647 = vmatmul.mubr.msk.bf16.gmra.mrb[148].mxu0 %vm1825_vm0, %v10169_v37  ;;  %v9023_v60 = vpack.c.bf16 %v4954_v52, %v4954_v52  ;;  %v4955_v61 = vmax.f32 %v3822_v51, 0.0  ;;  %9903 = vmatmul.mubr.msk.bf16.gmra.mrb[148].mxu1 %vm1825_vm0, %v10171_v40 }
 0x13b   :  { %v8765_v62 = vpack.c.bf16 %v4696_v54, %v4696_v54  ;;  %v4697_v63 = vmax.f32 %v2790_v55, 0.0  ;;  %v9021_v0 = vpack.c.bf16 %v4952_v56, %v4952_v56  ;;  %v4953_v1 = vmax.f32 %v3814_v57, 0.0  ;;  %9650 = vmatprep.mubr.msk.bf16.mxu0 %vm1825_vm0, %v10172_v45  ;;  %9906 = vmatprep.mubr.msk.bf16.mxu1 %vm1825_vm0, %v10174_v46  ;;  %v10177_v46 = vld [vmem:[%s13892_s0 + $0x278] sm:$0xff]   ;;  %v10180_v55 = vld [vmem:[%s13892_s0 + $0x280] sm:$0xff]  }
 0x13c   :  { %7235 = vst.msk [vmem:[%s13894_s3 + $0xa8] sm:$0xf] %vm7192_vm2, %v8767_v58  ;;  %v8768_v2 = vpack.c.bf16 %v4699_v59, %v4699_v59  ;;  %7491 = vst.msk [vmem:[%s13894_s3 + $0x4a8] sm:$0xf] %vm7192_vm2, %v9023_v60  ;;  %v9024_v3 = vpack.c.bf16 %v4955_v61, %v4955_v61  ;;  %v10182_v56 = vld [vmem:[%s13892_s0 + $0x680] sm:$0xff]  }
 0x13d   :  { %7233 = vst.msk [vmem:[%s13894_s3 + $0xa0] sm:$0xf] %vm7192_vm2, %v8765_v62  ;;  %v8766_v4 = vpack.c.bf16 %v4697_v63, %v4697_v63  ;;  %7489 = vst.msk [vmem:[%s13894_s3 + $0x4a0] sm:$0xf] %vm7192_vm2, %v9021_v0  ;;  %v9544_v5 = vpop.f32.mrb[44].mxu0  ;;  %v9022_v6 = vpack.c.bf16 %v4953_v1, %v4953_v1  ;;  %v9800_v7 = vpop.f32.mrb[44].mxu1 }
 0x13e   :  { %7236 = vst.msk [vmem:[%s13894_s3 + $0xac] sm:$0xf] %vm7192_vm2, %v8768_v2  ;;  %7492 = vst.msk [vmem:[%s13894_s3 + $0x4ac] sm:$0xf] %vm7192_vm2, %v9024_v3  ;;  %v2811_v8 = vadd.f32 %v11335_v48, %v9544_v5  ;;  %v2802_v9 = vpop.f32.mrb[45].mxu0  ;;  %v3835_v11 = vadd.f32 %v11335_v48, %v9800_v7  ;;  %v3826_v12 = vpop.f32.mrb[45].mxu1 }
 0x13f   :  { %7234 = vst.msk [vmem:[%s13894_s3 + $0xa4] sm:$0xf] %vm7192_vm2, %v8766_v4  ;;  %7490 = vst.msk [vmem:[%s13894_s3 + $0x4a4] sm:$0xf] %vm7192_vm2, %v9022_v6  ;;  %v2803_v14 = vadd.f32 %v11335_v48, %v2802_v9  ;;  %v9545_v15 = vpop.f32.mrb[46].mxu0  ;;  %v3827_v16 = vadd.f32 %v11335_v48, %v3826_v12  ;;  %v9801_v17 = vpop.f32.mrb[46].mxu1 }
 0x140   :  { %v4702_v20 = vmax.f32 %v2811_v8, 0.0  ;;  %v2814_v21 = vadd.f32 %v11335_v48, %v9545_v15  ;;  %v2805_v22 = vpop.f32.mrb[47].mxu0  ;;  %v4958_v23 = vmax.f32 %v3835_v11, 0.0  ;;  %v3838_v24 = vadd.f32 %v11335_v48, %v9801_v17  ;;  %v3829_v25 = vpop.f32.mrb[47].mxu1 }
 0x141   :  { %v4700_v26 = vmax.f32 %v2803_v14, 0.0  ;;  %v2806_v27 = vadd.f32 %v11335_v48, %v2805_v22  ;;  %v4956_v28 = vmax.f32 %v3827_v16, 0.0  ;;  %v3830_v29 = vadd.f32 %v11335_v48, %v3829_v25  ;;  %v10183_v22 = vld [vmem:[%s13892_s0 + $0x688] sm:$0xff]  }
 0x142   :  { %v8771_v30 = vpack.c.bf16 %v4702_v20, %v4702_v20  ;;  %v4703_v31 = vmax.f32 %v2814_v21, 0.0  ;;  %9651 = vmatmul.mubr.msk.bf16.gmra.mrb[152].mxu0 %vm1825_vm0, %v10173_v10  ;;  %v9027_v32 = vpack.c.bf16 %v4958_v23, %v4958_v23  ;;  %v4959_v33 = vmax.f32 %v3838_v24, 0.0  ;;  %9907 = vmatmul.mubr.msk.bf16.gmra.mrb[152].mxu1 %vm1825_vm0, %v10175_v13 }
 0x143   :  { %v8769_v34 = vpack.c.bf16 %v4700_v26, %v4700_v26  ;;  %v4701_v35 = vmax.f32 %v2806_v27, 0.0  ;;  %v9025_v36 = vpack.c.bf16 %v4956_v28, %v4956_v28  ;;  %v4957_v37 = vmax.f32 %v3830_v29, 0.0  ;;  %9654 = vmatprep.mubr.msk.bf16.mxu0 %vm1825_vm0, %v10176_v18  ;;  %9910 = vmatprep.mubr.msk.bf16.mxu1 %vm1825_vm0, %v10178_v19  ;;  %v10181_v19 = vld [vmem:[%s13892_s0 + $0x288] sm:$0xff]   ;;  %v10184_v27 = vld [vmem:[%s13892_s0 + $0x290] sm:$0xff]  }
 0x144   :  { %7239 = vst.msk [vmem:[%s13894_s3 + $0xb8] sm:$0xf] %vm7192_vm2, %v8771_v30  ;;  %v8772_v38 = vpack.c.bf16 %v4703_v31, %v4703_v31  ;;  %7495 = vst.msk [vmem:[%s13894_s3 + $0x4b8] sm:$0xf] %vm7192_vm2, %v9027_v32  ;;  %v9028_v39 = vpack.c.bf16 %v4959_v33, %v4959_v33  ;;  %v10186_v28 = vld [vmem:[%s13892_s0 + $0x690] sm:$0xff]  }
 0x145   :  { %7237 = vst.msk [vmem:[%s13894_s3 + $0xb0] sm:$0xf] %vm7192_vm2, %v8769_v34  ;;  %v8770_v40 = vpack.c.bf16 %v4701_v35, %v4701_v35  ;;  %7493 = vst.msk [vmem:[%s13894_s3 + $0x4b0] sm:$0xf] %vm7192_vm2, %v9025_v36  ;;  %v9548_v41 = vpop.f32.mrb[48].mxu0  ;;  %v9026_v42 = vpack.c.bf16 %v4957_v37, %v4957_v37  ;;  %v9804_v43 = vpop.f32.mrb[48].mxu1 }
 0x146   :  { %7240 = vst.msk [vmem:[%s13894_s3 + $0xbc] sm:$0xf] %vm7192_vm2, %v8772_v38  ;;  %7496 = vst.msk [vmem:[%s13894_s3 + $0x4bc] sm:$0xf] %vm7192_vm2, %v9028_v39  ;;  %v2827_v44 = vadd.f32 %v11335_v48, %v9548_v41  ;;  %v2818_v45 = vpop.f32.mrb[49].mxu0  ;;  %v3851_v47 = vadd.f32 %v11335_v48, %v9804_v43  ;;  %v3842_v49 = vpop.f32.mrb[49].mxu1 }
 0x147   :  { %7238 = vst.msk [vmem:[%s13894_s3 + $0xb4] sm:$0xf] %vm7192_vm2, %v8770_v40  ;;  %7494 = vst.msk [vmem:[%s13894_s3 + $0x4b4] sm:$0xf] %vm7192_vm2, %v9026_v42  ;;  %v2819_v52 = vadd.f32 %v11335_v48, %v2818_v45  ;;  %v9549_v51 = vpop.f32.mrb[50].mxu0  ;;  %v3843_v53 = vadd.f32 %v11335_v48, %v3842_v49  ;;  %v9805_v54 = vpop.f32.mrb[50].mxu1 }
 0x148   :  { %v4706_v57 = vmax.f32 %v2827_v44, 0.0  ;;  %v2830_v58 = vadd.f32 %v11335_v48, %v9549_v51  ;;  %v2821_v59 = vpop.f32.mrb[51].mxu0  ;;  %v4962_v60 = vmax.f32 %v3851_v47, 0.0  ;;  %v3854_v61 = vadd.f32 %v11335_v48, %v9805_v54  ;;  %v3845_v62 = vpop.f32.mrb[51].mxu1 }
 0x149   :  { %v4704_v63 = vmax.f32 %v2819_v52, 0.0  ;;  %v2822_v0 = vadd.f32 %v11335_v48, %v2821_v59  ;;  %v4960_v1 = vmax.f32 %v3843_v53, 0.0  ;;  %v3846_v2 = vadd.f32 %v11335_v48, %v3845_v62  ;;  %v10187_v59 = vld [vmem:[%s13892_s0 + $0x698] sm:$0xff]  }
 0x14a   :  { %v8775_v3 = vpack.c.bf16 %v4706_v57, %v4706_v57  ;;  %v4707_v4 = vmax.f32 %v2830_v58, 0.0  ;;  %9655 = vmatmul.mubr.msk.bf16.gmra.mrb[156].mxu0 %vm1825_vm0, %v10177_v46  ;;  %v9031_v5 = vpack.c.bf16 %v4962_v60, %v4962_v60  ;;  %v4963_v6 = vmax.f32 %v3854_v61, 0.0  ;;  %9911 = vmatmul.mubr.msk.bf16.gmra.mrb[156].mxu1 %vm1825_vm0, %v10179_v50 }
 0x14b   :  { %v8773_v7 = vpack.c.bf16 %v4704_v63, %v4704_v63  ;;  %v4705_v8 = vmax.f32 %v2822_v0, 0.0  ;;  %v9029_v9 = vpack.c.bf16 %v4960_v1, %v4960_v1  ;;  %v4961_v10 = vmax.f32 %v3846_v2, 0.0  ;;  %9658 = vmatprep.mubr.msk.bf16.mxu0 %vm1825_vm0, %v10180_v55  ;;  %9914 = vmatprep.mubr.msk.bf16.mxu1 %vm1825_vm0, %v10182_v56  ;;  %v10185_v56 = vld [vmem:[%s13892_s0 + $0x298] sm:$0xff]   ;;  %v10188_v0 = vld [vmem:[%s13892_s0 + $0x2a0] sm:$0xff]  }
 0x14c   :  { %7243 = vst.msk [vmem:[%s13894_s3 + $0xc8] sm:$0xf] %vm7192_vm2, %v8775_v3  ;;  %v8776_v11 = vpack.c.bf16 %v4707_v4, %v4707_v4  ;;  %7499 = vst.msk [vmem:[%s13894_s3 + $0x4c8] sm:$0xf] %vm7192_vm2, %v9031_v5  ;;  %v9032_v12 = vpack.c.bf16 %v4963_v6, %v4963_v6  ;;  %v10190_v1 = vld [vmem:[%s13892_s0 + $0x6a0] sm:$0xff]  }
 0x14d   :  { %7241 = vst.msk [vmem:[%s13894_s3 + $0xc0] sm:$0xf] %vm7192_vm2, %v8773_v7  ;;  %v8774_v13 = vpack.c.bf16 %v4705_v8, %v4705_v8  ;;  %7497 = vst.msk [vmem:[%s13894_s3 + $0x4c0] sm:$0xf] %vm7192_vm2, %v9029_v9  ;;  %v9552_v14 = vpop.f32.mrb[52].mxu0  ;;  %v9030_v15 = vpack.c.bf16 %v4961_v10, %v4961_v10  ;;  %v9808_v16 = vpop.f32.mrb[52].mxu1 }
 0x14e   :  { %7244 = vst.msk [vmem:[%s13894_s3 + $0xcc] sm:$0xf] %vm7192_vm2, %v8776_v11  ;;  %7500 = vst.msk [vmem:[%s13894_s3 + $0x4cc] sm:$0xf] %vm7192_vm2, %v9032_v12  ;;  %v2843_v17 = vadd.f32 %v11335_v48, %v9552_v14  ;;  %v2834_v18 = vpop.f32.mrb[53].mxu0  ;;  %v3867_v20 = vadd.f32 %v11335_v48, %v9808_v16  ;;  %v3858_v21 = vpop.f32.mrb[53].mxu1 }
 0x14f   :  { %7242 = vst.msk [vmem:[%s13894_s3 + $0xc4] sm:$0xf] %vm7192_vm2, %v8774_v13  ;;  %7498 = vst.msk [vmem:[%s13894_s3 + $0x4c4] sm:$0xf] %vm7192_vm2, %v9030_v15  ;;  %v2835_v23 = vadd.f32 %v11335_v48, %v2834_v18  ;;  %v9553_v24 = vpop.f32.mrb[54].mxu0  ;;  %v3859_v25 = vadd.f32 %v11335_v48, %v3858_v21  ;;  %v9809_v26 = vpop.f32.mrb[54].mxu1 }
 0x150   :  { %v4710_v29 = vmax.f32 %v2843_v17, 0.0  ;;  %v2846_v30 = vadd.f32 %v11335_v48, %v9553_v24  ;;  %v2837_v31 = vpop.f32.mrb[55].mxu0  ;;  %v4966_v32 = vmax.f32 %v3867_v20, 0.0  ;;  %v3870_v33 = vadd.f32 %v11335_v48, %v9809_v26  ;;  %v3861_v34 = vpop.f32.mrb[55].mxu1 }
 0x151   :  { %v4708_v35 = vmax.f32 %v2835_v23, 0.0  ;;  %v2838_v36 = vadd.f32 %v11335_v48, %v2837_v31  ;;  %v4964_v37 = vmax.f32 %v3859_v25, 0.0  ;;  %v3862_v38 = vadd.f32 %v11335_v48, %v3861_v34  ;;  %v10191_v31 = vld [vmem:[%s13892_s0 + $0x6a8] sm:$0xff]  }
 0x152   :  { %v8779_v39 = vpack.c.bf16 %v4710_v29, %v4710_v29  ;;  %v4711_v40 = vmax.f32 %v2846_v30, 0.0  ;;  %9659 = vmatmul.mubr.msk.bf16.gmra.mrb[160].mxu0 %vm1825_vm0, %v10181_v19  ;;  %v9035_v41 = vpack.c.bf16 %v4966_v32, %v4966_v32  ;;  %v4967_v42 = vmax.f32 %v3870_v33, 0.0  ;;  %9915 = vmatmul.mubr.msk.bf16.gmra.mrb[160].mxu1 %vm1825_vm0, %v10183_v22 }
 0x153   :  { %v8777_v43 = vpack.c.bf16 %v4708_v35, %v4708_v35  ;;  %v4709_v44 = vmax.f32 %v2838_v36, 0.0  ;;  %v9033_v45 = vpack.c.bf16 %v4964_v37, %v4964_v37  ;;  %v4965_v46 = vmax.f32 %v3862_v38, 0.0  ;;  %9662 = vmatprep.mubr.msk.bf16.mxu0 %vm1825_vm0, %v10184_v27  ;;  %9918 = vmatprep.mubr.msk.bf16.mxu1 %vm1825_vm0, %v10186_v28  ;;  %v10189_v28 = vld [vmem:[%s13892_s0 + $0x2a8] sm:$0xff]   ;;  %v10192_v36 = vld [vmem:[%s13892_s0 + $0x2b0] sm:$0xff]  }
 0x154   :  { %7247 = vst.msk [vmem:[%s13894_s3 + $0xd8] sm:$0xf] %vm7192_vm2, %v8779_v39  ;;  %v8780_v47 = vpack.c.bf16 %v4711_v40, %v4711_v40  ;;  %7503 = vst.msk [vmem:[%s13894_s3 + $0x4d8] sm:$0xf] %vm7192_vm2, %v9035_v41  ;;  %v9036_v49 = vpack.c.bf16 %v4967_v42, %v4967_v42  ;;  %v10194_v37 = vld [vmem:[%s13892_s0 + $0x6b0] sm:$0xff]  }
 0x155   :  { %7245 = vst.msk [vmem:[%s13894_s3 + $0xd0] sm:$0xf] %vm7192_vm2, %v8777_v43  ;;  %v8778_v50 = vpack.c.bf16 %v4709_v44, %v4709_v44  ;;  %7501 = vst.msk [vmem:[%s13894_s3 + $0x4d0] sm:$0xf] %vm7192_vm2, %v9033_v45  ;;  %v9556_v52 = vpop.f32.mrb[56].mxu0  ;;  %v9034_v51 = vpack.c.bf16 %v4965_v46, %v4965_v46  ;;  %v9812_v53 = vpop.f32.mrb[56].mxu1 }
 0x156   :  { %7248 = vst.msk [vmem:[%s13894_s3 + $0xdc] sm:$0xf] %vm7192_vm2, %v8780_v47  ;;  %7504 = vst.msk [vmem:[%s13894_s3 + $0x4dc] sm:$0xf] %vm7192_vm2, %v9036_v49  ;;  %v2859_v54 = vadd.f32 %v11335_v48, %v9556_v52  ;;  %v2850_v55 = vpop.f32.mrb[57].mxu0  ;;  %v3883_v57 = vadd.f32 %v11335_v48, %v9812_v53  ;;  %v3874_v58 = vpop.f32.mrb[57].mxu1 }
 0x157   :  { %7246 = vst.msk [vmem:[%s13894_s3 + $0xd4] sm:$0xf] %vm7192_vm2, %v8778_v50  ;;  %7502 = vst.msk [vmem:[%s13894_s3 + $0x4d4] sm:$0xf] %vm7192_vm2, %v9034_v51  ;;  %v2851_v60 = vadd.f32 %v11335_v48, %v2850_v55  ;;  %v9557_v61 = vpop.f32.mrb[58].mxu0  ;;  %v3875_v62 = vadd.f32 %v11335_v48, %v3874_v58  ;;  %v9813_v63 = vpop.f32.mrb[58].mxu1 }
 0x158   :  { %v4714_v2 = vmax.f32 %v2859_v54, 0.0  ;;  %v2862_v3 = vadd.f32 %v11335_v48, %v9557_v61  ;;  %v2853_v4 = vpop.f32.mrb[59].mxu0  ;;  %v4970_v5 = vmax.f32 %v3883_v57, 0.0  ;;  %v3886_v6 = vadd.f32 %v11335_v48, %v9813_v63  ;;  %v3877_v7 = vpop.f32.mrb[59].mxu1 }
 0x159   :  { %v4712_v8 = vmax.f32 %v2851_v60, 0.0  ;;  %v2854_v9 = vadd.f32 %v11335_v48, %v2853_v4  ;;  %v4968_v10 = vmax.f32 %v3875_v62, 0.0  ;;  %v3878_v11 = vadd.f32 %v11335_v48, %v3877_v7  ;;  %v10195_v4 = vld [vmem:[%s13892_s0 + $0x6b8] sm:$0xff]  }
 0x15a   :  { %v8783_v12 = vpack.c.bf16 %v4714_v2, %v4714_v2  ;;  %v4715_v13 = vmax.f32 %v2862_v3, 0.0  ;;  %9663 = vmatmul.mubr.msk.bf16.gmra.mrb[164].mxu0 %vm1825_vm0, %v10185_v56  ;;  %v9039_v14 = vpack.c.bf16 %v4970_v5, %v4970_v5  ;;  %v4971_v15 = vmax.f32 %v3886_v6, 0.0  ;;  %9919 = vmatmul.mubr.msk.bf16.gmra.mrb[164].mxu1 %vm1825_vm0, %v10187_v59 }
 0x15b   :  { %v8781_v16 = vpack.c.bf16 %v4712_v8, %v4712_v8  ;;  %v4713_v17 = vmax.f32 %v2854_v9, 0.0  ;;  %v9037_v18 = vpack.c.bf16 %v4968_v10, %v4968_v10  ;;  %v4969_v19 = vmax.f32 %v3878_v11, 0.0  ;;  %9666 = vmatprep.mubr.msk.bf16.mxu0 %vm1825_vm0, %v10188_v0  ;;  %9922 = vmatprep.mubr.msk.bf16.mxu1 %vm1825_vm0, %v10190_v1  ;;  %v10193_v1 = vld [vmem:[%s13892_s0 + $0x2b8] sm:$0xff]   ;;  %v10196_v9 = vld [vmem:[%s13892_s0 + $0x2c0] sm:$0xff]  }
 0x15c   :  { %7251 = vst.msk [vmem:[%s13894_s3 + $0xe8] sm:$0xf] %vm7192_vm2, %v8783_v12  ;;  %v8784_v20 = vpack.c.bf16 %v4715_v13, %v4715_v13  ;;  %7507 = vst.msk [vmem:[%s13894_s3 + $0x4e8] sm:$0xf] %vm7192_vm2, %v9039_v14  ;;  %v9040_v21 = vpack.c.bf16 %v4971_v15, %v4971_v15  ;;  %v10198_v10 = vld [vmem:[%s13892_s0 + $0x6c0] sm:$0xff]  }
 0x15d   :  { %7249 = vst.msk [vmem:[%s13894_s3 + $0xe0] sm:$0xf] %vm7192_vm2, %v8781_v16  ;;  %v8782_v22 = vpack.c.bf16 %v4713_v17, %v4713_v17  ;;  %7505 = vst.msk [vmem:[%s13894_s3 + $0x4e0] sm:$0xf] %vm7192_vm2, %v9037_v18  ;;  %v9560_v23 = vpop.f32.mrb[60].mxu0  ;;  %v9038_v24 = vpack.c.bf16 %v4969_v19, %v4969_v19  ;;  %v9816_v25 = vpop.f32.mrb[60].mxu1 }
 0x15e   :  { %7252 = vst.msk [vmem:[%s13894_s3 + $0xec] sm:$0xf] %vm7192_vm2, %v8784_v20  ;;  %7508 = vst.msk [vmem:[%s13894_s3 + $0x4ec] sm:$0xf] %vm7192_vm2, %v9040_v21  ;;  %v2875_v26 = vadd.f32 %v11335_v48, %v9560_v23  ;;  %v2866_v27 = vpop.f32.mrb[61].mxu0  ;;  %v3899_v29 = vadd.f32 %v11335_v48, %v9816_v25  ;;  %v3890_v30 = vpop.f32.mrb[61].mxu1 }
 0x15f   :  { %7250 = vst.msk [vmem:[%s13894_s3 + $0xe4] sm:$0xf] %vm7192_vm2, %v8782_v22  ;;  %7506 = vst.msk [vmem:[%s13894_s3 + $0x4e4] sm:$0xf] %vm7192_vm2, %v9038_v24  ;;  %v2867_v32 = vadd.f32 %v11335_v48, %v2866_v27  ;;  %v9561_v33 = vpop.f32.mrb[62].mxu0  ;;  %v3891_v34 = vadd.f32 %v11335_v48, %v3890_v30  ;;  %v9817_v35 = vpop.f32.mrb[62].mxu1 }
 0x160   :  { %v4718_v38 = vmax.f32 %v2875_v26, 0.0  ;;  %v2878_v39 = vadd.f32 %v11335_v48, %v9561_v33  ;;  %v2869_v40 = vpop.f32.mrb[63].mxu0  ;;  %v4974_v41 = vmax.f32 %v3899_v29, 0.0  ;;  %v3902_v42 = vadd.f32 %v11335_v48, %v9817_v35  ;;  %v3893_v43 = vpop.f32.mrb[63].mxu1 }
 0x161   :  { %v4716_v44 = vmax.f32 %v2867_v32, 0.0  ;;  %v2870_v45 = vadd.f32 %v11335_v48, %v2869_v40  ;;  %v4972_v46 = vmax.f32 %v3891_v34, 0.0  ;;  %v3894_v47 = vadd.f32 %v11335_v48, %v3893_v43  ;;  %v10199_v40 = vld [vmem:[%s13892_s0 + $0x6c8] sm:$0xff]  }
 0x162   :  { %v8787_v49 = vpack.c.bf16 %v4718_v38, %v4718_v38  ;;  %v4719_v50 = vmax.f32 %v2878_v39, 0.0  ;;  %9667 = vmatmul.mubr.msk.bf16.gmra.mrb[168].mxu0 %vm1825_vm0, %v10189_v28  ;;  %v9043_v52 = vpack.c.bf16 %v4974_v41, %v4974_v41  ;;  %v4975_v51 = vmax.f32 %v3902_v42, 0.0  ;;  %9923 = vmatmul.mubr.msk.bf16.gmra.mrb[168].mxu1 %vm1825_vm0, %v10191_v31 }
 0x163   :  { %v8785_v53 = vpack.c.bf16 %v4716_v44, %v4716_v44  ;;  %v4717_v54 = vmax.f32 %v2870_v45, 0.0  ;;  %v9041_v55 = vpack.c.bf16 %v4972_v46, %v4972_v46  ;;  %v4973_v56 = vmax.f32 %v3894_v47, 0.0  ;;  %9670 = vmatprep.mubr.msk.bf16.mxu0 %vm1825_vm0, %v10192_v36  ;;  %9926 = vmatprep.mubr.msk.bf16.mxu1 %vm1825_vm0, %v10194_v37  ;;  %v10197_v37 = vld [vmem:[%s13892_s0 + $0x2c8] sm:$0xff]   ;;  %v10200_v45 = vld [vmem:[%s13892_s0 + $0x2d0] sm:$0xff]  }
 0x164   :  { %7255 = vst.msk [vmem:[%s13894_s3 + $0xf8] sm:$0xf] %vm7192_vm2, %v8787_v49  ;;  %v8788_v57 = vpack.c.bf16 %v4719_v50, %v4719_v50  ;;  %7511 = vst.msk [vmem:[%s13894_s3 + $0x4f8] sm:$0xf] %vm7192_vm2, %v9043_v52  ;;  %v9044_v58 = vpack.c.bf16 %v4975_v51, %v4975_v51  ;;  %v10202_v46 = vld [vmem:[%s13892_s0 + $0x6d0] sm:$0xff]  }
 0x165   :  { %7253 = vst.msk [vmem:[%s13894_s3 + $0xf0] sm:$0xf] %vm7192_vm2, %v8785_v53  ;;  %v8786_v59 = vpack.c.bf16 %v4717_v54, %v4717_v54  ;;  %7509 = vst.msk [vmem:[%s13894_s3 + $0x4f0] sm:$0xf] %vm7192_vm2, %v9041_v55  ;;  %v9564_v60 = vpop.f32.mrb[64].mxu0  ;;  %v9042_v61 = vpack.c.bf16 %v4973_v56, %v4973_v56  ;;  %v9820_v62 = vpop.f32.mrb[64].mxu1 }
 0x166   :  { %7256 = vst.msk [vmem:[%s13894_s3 + $0xfc] sm:$0xf] %vm7192_vm2, %v8788_v57  ;;  %7512 = vst.msk [vmem:[%s13894_s3 + $0x4fc] sm:$0xf] %vm7192_vm2, %v9044_v58  ;;  %v2891_v63 = vadd.f32 %v11335_v48, %v9564_v60  ;;  %v2882_v0 = vpop.f32.mrb[65].mxu0  ;;  %v3915_v2 = vadd.f32 %v11335_v48, %v9820_v62  ;;  %v3906_v3 = vpop.f32.mrb[65].mxu1 }
 0x167   :  { %7254 = vst.msk [vmem:[%s13894_s3 + $0xf4] sm:$0xf] %vm7192_vm2, %v8786_v59  ;;  %7510 = vst.msk [vmem:[%s13894_s3 + $0x4f4] sm:$0xf] %vm7192_vm2, %v9042_v61  ;;  %v2883_v5 = vadd.f32 %v11335_v48, %v2882_v0  ;;  %v9565_v6 = vpop.f32.mrb[66].mxu0  ;;  %v3907_v7 = vadd.f32 %v11335_v48, %v3906_v3  ;;  %v9821_v8 = vpop.f32.mrb[66].mxu1 }
 0x168   :  { %v4722_v11 = vmax.f32 %v2891_v63, 0.0  ;;  %v2894_v12 = vadd.f32 %v11335_v48, %v9565_v6  ;;  %v2885_v13 = vpop.f32.mrb[67].mxu0  ;;  %v4978_v14 = vmax.f32 %v3915_v2, 0.0  ;;  %v3918_v15 = vadd.f32 %v11335_v48, %v9821_v8  ;;  %v3909_v16 = vpop.f32.mrb[67].mxu1 }
 0x169   :  { %v4720_v17 = vmax.f32 %v2883_v5, 0.0  ;;  %v2886_v18 = vadd.f32 %v11335_v48, %v2885_v13  ;;  %v4976_v19 = vmax.f32 %v3907_v7, 0.0  ;;  %v3910_v20 = vadd.f32 %v11335_v48, %v3909_v16  ;;  %v10203_v13 = vld [vmem:[%s13892_s0 + $0x6d8] sm:$0xff]  }
 0x16a   :  { %v8791_v21 = vpack.c.bf16 %v4722_v11, %v4722_v11  ;;  %v4723_v22 = vmax.f32 %v2894_v12, 0.0  ;;  %9671 = vmatmul.mubr.msk.bf16.gmra.mrb[172].mxu0 %vm1825_vm0, %v10193_v1  ;;  %v9047_v23 = vpack.c.bf16 %v4978_v14, %v4978_v14  ;;  %v4979_v24 = vmax.f32 %v3918_v15, 0.0  ;;  %9927 = vmatmul.mubr.msk.bf16.gmra.mrb[172].mxu1 %vm1825_vm0, %v10195_v4 }
 0x16b   :  { %v8789_v25 = vpack.c.bf16 %v4720_v17, %v4720_v17  ;;  %v4721_v26 = vmax.f32 %v2886_v18, 0.0  ;;  %v9045_v27 = vpack.c.bf16 %v4976_v19, %v4976_v19  ;;  %v4977_v28 = vmax.f32 %v3910_v20, 0.0  ;;  %9674 = vmatprep.mubr.msk.bf16.mxu0 %vm1825_vm0, %v10196_v9  ;;  %9930 = vmatprep.mubr.msk.bf16.mxu1 %vm1825_vm0, %v10198_v10  ;;  %v10201_v10 = vld [vmem:[%s13892_s0 + $0x2d8] sm:$0xff]   ;;  %v10204_v18 = vld [vmem:[%s13892_s0 + $0x2e0] sm:$0xff]  }
 0x16c   :  { %7259 = vst.msk [vmem:[%s13894_s3 + $0x108] sm:$0xf] %vm7192_vm2, %v8791_v21  ;;  %v8792_v29 = vpack.c.bf16 %v4723_v22, %v4723_v22  ;;  %7515 = vst.msk [vmem:[%s13894_s3 + $0x508] sm:$0xf] %vm7192_vm2, %v9047_v23  ;;  %v9048_v30 = vpack.c.bf16 %v4979_v24, %v4979_v24  ;;  %v10206_v19 = vld [vmem:[%s13892_s0 + $0x6e0] sm:$0xff]  }
 0x16d   :  { %7257 = vst.msk [vmem:[%s13894_s3 + $0x100] sm:$0xf] %vm7192_vm2, %v8789_v25  ;;  %v8790_v31 = vpack.c.bf16 %v4721_v26, %v4721_v26  ;;  %7513 = vst.msk [vmem:[%s13894_s3 + $0x500] sm:$0xf] %vm7192_vm2, %v9045_v27  ;;  %v9568_v32 = vpop.f32.mrb[68].mxu0  ;;  %v9046_v33 = vpack.c.bf16 %v4977_v28, %v4977_v28  ;;  %v9824_v34 = vpop.f32.mrb[68].mxu1 }
 0x16e   :  { %7260 = vst.msk [vmem:[%s13894_s3 + $0x10c] sm:$0xf] %vm7192_vm2, %v8792_v29  ;;  %7516 = vst.msk [vmem:[%s13894_s3 + $0x50c] sm:$0xf] %vm7192_vm2, %v9048_v30  ;;  %v2907_v35 = vadd.f32 %v11335_v48, %v9568_v32  ;;  %v2898_v36 = vpop.f32.mrb[69].mxu0  ;;  %v3931_v38 = vadd.f32 %v11335_v48, %v9824_v34  ;;  %v3922_v39 = vpop.f32.mrb[69].mxu1 }
 0x16f   :  { %7258 = vst.msk [vmem:[%s13894_s3 + $0x104] sm:$0xf] %vm7192_vm2, %v8790_v31  ;;  %7514 = vst.msk [vmem:[%s13894_s3 + $0x504] sm:$0xf] %vm7192_vm2, %v9046_v33  ;;  %v2899_v41 = vadd.f32 %v11335_v48, %v2898_v36  ;;  %v9569_v42 = vpop.f32.mrb[70].mxu0  ;;  %v3923_v43 = vadd.f32 %v11335_v48, %v3922_v39  ;;  %v9825_v44 = vpop.f32.mrb[70].mxu1 }
 0x170   :  { %v4726_v47 = vmax.f32 %v2907_v35, 0.0  ;;  %v2910_v49 = vadd.f32 %v11335_v48, %v9569_v42  ;;  %v2901_v50 = vpop.f32.mrb[71].mxu0  ;;  %v4982_v52 = vmax.f32 %v3931_v38, 0.0  ;;  %v3934_v51 = vadd.f32 %v11335_v48, %v9825_v44  ;;  %v3925_v53 = vpop.f32.mrb[71].mxu1 }
 0x171   :  { %v4724_v54 = vmax.f32 %v2899_v41, 0.0  ;;  %v2902_v55 = vadd.f32 %v11335_v48, %v2901_v50  ;;  %v4980_v56 = vmax.f32 %v3923_v43, 0.0  ;;  %v3926_v57 = vadd.f32 %v11335_v48, %v3925_v53  ;;  %v10207_v50 = vld [vmem:[%s13892_s0 + $0x6e8] sm:$0xff]  }
 0x172   :  { %v8795_v58 = vpack.c.bf16 %v4726_v47, %v4726_v47  ;;  %v4727_v59 = vmax.f32 %v2910_v49, 0.0  ;;  %9675 = vmatmul.mubr.msk.bf16.gmra.mrb[176].mxu0 %vm1825_vm0, %v10197_v37  ;;  %v9051_v60 = vpack.c.bf16 %v4982_v52, %v4982_v52  ;;  %v4983_v61 = vmax.f32 %v3934_v51, 0.0  ;;  %9931 = vmatmul.mubr.msk.bf16.gmra.mrb[176].mxu1 %vm1825_vm0, %v10199_v40 }
 0x173   :  { %v8793_v62 = vpack.c.bf16 %v4724_v54, %v4724_v54  ;;  %v4725_v63 = vmax.f32 %v2902_v55, 0.0  ;;  %v9049_v0 = vpack.c.bf16 %v4980_v56, %v4980_v56  ;;  %v4981_v1 = vmax.f32 %v3926_v57, 0.0  ;;  %9678 = vmatprep.mubr.msk.bf16.mxu0 %vm1825_vm0, %v10200_v45  ;;  %9934 = vmatprep.mubr.msk.bf16.mxu1 %vm1825_vm0, %v10202_v46  ;;  %v10205_v46 = vld [vmem:[%s13892_s0 + $0x2e8] sm:$0xff]   ;;  %v10208_v55 = vld [vmem:[%s13892_s0 + $0x2f0] sm:$0xff]  }
 0x174   :  { %7263 = vst.msk [vmem:[%s13894_s3 + $0x118] sm:$0xf] %vm7192_vm2, %v8795_v58  ;;  %v8796_v2 = vpack.c.bf16 %v4727_v59, %v4727_v59  ;;  %7519 = vst.msk [vmem:[%s13894_s3 + $0x518] sm:$0xf] %vm7192_vm2, %v9051_v60  ;;  %v9052_v3 = vpack.c.bf16 %v4983_v61, %v4983_v61  ;;  %v10210_v56 = vld [vmem:[%s13892_s0 + $0x6f0] sm:$0xff]  }
 0x175   :  { %7261 = vst.msk [vmem:[%s13894_s3 + $0x110] sm:$0xf] %vm7192_vm2, %v8793_v62  ;;  %v8794_v4 = vpack.c.bf16 %v4725_v63, %v4725_v63  ;;  %7517 = vst.msk [vmem:[%s13894_s3 + $0x510] sm:$0xf] %vm7192_vm2, %v9049_v0  ;;  %v9572_v5 = vpop.f32.mrb[72].mxu0  ;;  %v9050_v6 = vpack.c.bf16 %v4981_v1, %v4981_v1  ;;  %v9828_v7 = vpop.f32.mrb[72].mxu1 }
 0x176   :  { %7264 = vst.msk [vmem:[%s13894_s3 + $0x11c] sm:$0xf] %vm7192_vm2, %v8796_v2  ;;  %7520 = vst.msk [vmem:[%s13894_s3 + $0x51c] sm:$0xf] %vm7192_vm2, %v9052_v3  ;;  %v2923_v8 = vadd.f32 %v11335_v48, %v9572_v5  ;;  %v2914_v9 = vpop.f32.mrb[73].mxu0  ;;  %v3947_v11 = vadd.f32 %v11335_v48, %v9828_v7  ;;  %v3938_v12 = vpop.f32.mrb[73].mxu1 }
 0x177   :  { %7262 = vst.msk [vmem:[%s13894_s3 + $0x114] sm:$0xf] %vm7192_vm2, %v8794_v4  ;;  %7518 = vst.msk [vmem:[%s13894_s3 + $0x514] sm:$0xf] %vm7192_vm2, %v9050_v6  ;;  %v2915_v14 = vadd.f32 %v11335_v48, %v2914_v9  ;;  %v9573_v15 = vpop.f32.mrb[74].mxu0  ;;  %v3939_v16 = vadd.f32 %v11335_v48, %v3938_v12  ;;  %v9829_v17 = vpop.f32.mrb[74].mxu1 }
 0x178   :  { %v4730_v20 = vmax.f32 %v2923_v8, 0.0  ;;  %v2926_v21 = vadd.f32 %v11335_v48, %v9573_v15  ;;  %v2917_v22 = vpop.f32.mrb[75].mxu0  ;;  %v4986_v23 = vmax.f32 %v3947_v11, 0.0  ;;  %v3950_v24 = vadd.f32 %v11335_v48, %v9829_v17  ;;  %v3941_v25 = vpop.f32.mrb[75].mxu1 }
 0x179   :  { %v4728_v26 = vmax.f32 %v2915_v14, 0.0  ;;  %v2918_v27 = vadd.f32 %v11335_v48, %v2917_v22  ;;  %v4984_v28 = vmax.f32 %v3939_v16, 0.0  ;;  %v3942_v29 = vadd.f32 %v11335_v48, %v3941_v25  ;;  %v10211_v22 = vld [vmem:[%s13892_s0 + $0x6f8] sm:$0xff]  }
 0x17a   :  { %v8799_v30 = vpack.c.bf16 %v4730_v20, %v4730_v20  ;;  %v4731_v31 = vmax.f32 %v2926_v21, 0.0  ;;  %9679 = vmatmul.mubr.msk.bf16.gmra.mrb[180].mxu0 %vm1825_vm0, %v10201_v10  ;;  %v9055_v32 = vpack.c.bf16 %v4986_v23, %v4986_v23  ;;  %v4987_v33 = vmax.f32 %v3950_v24, 0.0  ;;  %9935 = vmatmul.mubr.msk.bf16.gmra.mrb[180].mxu1 %vm1825_vm0, %v10203_v13 }
 0x17b   :  { %v8797_v34 = vpack.c.bf16 %v4728_v26, %v4728_v26  ;;  %v4729_v35 = vmax.f32 %v2918_v27, 0.0  ;;  %v9053_v36 = vpack.c.bf16 %v4984_v28, %v4984_v28  ;;  %v4985_v37 = vmax.f32 %v3942_v29, 0.0  ;;  %9682 = vmatprep.mubr.msk.bf16.mxu0 %vm1825_vm0, %v10204_v18  ;;  %9938 = vmatprep.mubr.msk.bf16.mxu1 %vm1825_vm0, %v10206_v19  ;;  %v10209_v19 = vld [vmem:[%s13892_s0 + $0x2f8] sm:$0xff]   ;;  %v10212_v27 = vld [vmem:[%s13892_s0 + $0x300] sm:$0xff]  }
 0x17c   :  { %7267 = vst.msk [vmem:[%s13894_s3 + $0x128] sm:$0xf] %vm7192_vm2, %v8799_v30  ;;  %v8800_v38 = vpack.c.bf16 %v4731_v31, %v4731_v31  ;;  %7523 = vst.msk [vmem:[%s13894_s3 + $0x528] sm:$0xf] %vm7192_vm2, %v9055_v32  ;;  %v9056_v39 = vpack.c.bf16 %v4987_v33, %v4987_v33  ;;  %v10214_v28 = vld [vmem:[%s13892_s0 + $0x700] sm:$0xff]  }
 0x17d   :  { %7265 = vst.msk [vmem:[%s13894_s3 + $0x120] sm:$0xf] %vm7192_vm2, %v8797_v34  ;;  %v8798_v40 = vpack.c.bf16 %v4729_v35, %v4729_v35  ;;  %7521 = vst.msk [vmem:[%s13894_s3 + $0x520] sm:$0xf] %vm7192_vm2, %v9053_v36  ;;  %v9576_v41 = vpop.f32.mrb[76].mxu0  ;;  %v9054_v42 = vpack.c.bf16 %v4985_v37, %v4985_v37  ;;  %v9832_v43 = vpop.f32.mrb[76].mxu1 }
 0x17e   :  { %7268 = vst.msk [vmem:[%s13894_s3 + $0x12c] sm:$0xf] %vm7192_vm2, %v8800_v38  ;;  %7524 = vst.msk [vmem:[%s13894_s3 + $0x52c] sm:$0xf] %vm7192_vm2, %v9056_v39  ;;  %v2939_v44 = vadd.f32 %v11335_v48, %v9576_v41  ;;  %v2930_v45 = vpop.f32.mrb[77].mxu0  ;;  %v3963_v47 = vadd.f32 %v11335_v48, %v9832_v43  ;;  %v3954_v49 = vpop.f32.mrb[77].mxu1 }
 0x17f   :  { %7266 = vst.msk [vmem:[%s13894_s3 + $0x124] sm:$0xf] %vm7192_vm2, %v8798_v40  ;;  %7522 = vst.msk [vmem:[%s13894_s3 + $0x524] sm:$0xf] %vm7192_vm2, %v9054_v42  ;;  %v2931_v52 = vadd.f32 %v11335_v48, %v2930_v45  ;;  %v9577_v51 = vpop.f32.mrb[78].mxu0  ;;  %v3955_v53 = vadd.f32 %v11335_v48, %v3954_v49  ;;  %v9833_v54 = vpop.f32.mrb[78].mxu1 }
 0x180   :  { %v4734_v57 = vmax.f32 %v2939_v44, 0.0  ;;  %v2942_v58 = vadd.f32 %v11335_v48, %v9577_v51  ;;  %v2933_v59 = vpop.f32.mrb[79].mxu0  ;;  %v4990_v60 = vmax.f32 %v3963_v47, 0.0  ;;  %v3966_v61 = vadd.f32 %v11335_v48, %v9833_v54  ;;  %v3957_v62 = vpop.f32.mrb[79].mxu1 }
 0x181   :  { %v4732_v63 = vmax.f32 %v2931_v52, 0.0  ;;  %v2934_v0 = vadd.f32 %v11335_v48, %v2933_v59  ;;  %v4988_v1 = vmax.f32 %v3955_v53, 0.0  ;;  %v3958_v2 = vadd.f32 %v11335_v48, %v3957_v62  ;;  %v11932_v53 = vld [vmem:[%s13893_s2] ss:$0 sm:$0xff]  ;;  %v10215_v59 = vld [vmem:[%s13892_s0 + $0x708] sm:$0xff]  }
 0x182   :  { %v8803_v3 = vpack.c.bf16 %v4734_v57, %v4734_v57  ;;  %v4735_v4 = vmax.f32 %v2942_v58, 0.0  ;;  %9683 = vmatmul.mubr.msk.bf16.gmra.mrb[184].mxu0 %vm1825_vm0, %v10205_v46  ;;  %v9059_v5 = vpack.c.bf16 %v4990_v60, %v4990_v60  ;;  %v4991_v6 = vmax.f32 %v3966_v61, 0.0  ;;  %9939 = vmatmul.mubr.msk.bf16.gmra.mrb[184].mxu1 %vm1825_vm0, %v10207_v50 }
 0x183   :  { %v8801_v7 = vpack.c.bf16 %v4732_v63, %v4732_v63  ;;  %v4733_v8 = vmax.f32 %v2934_v0, 0.0  ;;  %v9057_v9 = vpack.c.bf16 %v4988_v1, %v4988_v1  ;;  %v4989_v10 = vmax.f32 %v3958_v2, 0.0  ;;  %9686 = vmatprep.mubr.msk.bf16.mxu0 %vm1825_vm0, %v10208_v55  ;;  %9942 = vmatprep.mubr.msk.bf16.mxu1 %vm1825_vm0, %v10210_v56  ;;  %v10213_v56 = vld [vmem:[%s13892_s0 + $0x308] sm:$0xff]   ;;  %v10216_v0 = vld [vmem:[%s13892_s0 + $0x310] sm:$0xff]  }
 0x184   :  { %7271 = vst.msk [vmem:[%s13894_s3 + $0x138] sm:$0xf] %vm7192_vm2, %v8803_v3  ;;  %v8804_v11 = vpack.c.bf16 %v4735_v4, %v4735_v4  ;;  %7527 = vst.msk [vmem:[%s13894_s3 + $0x538] sm:$0xf] %vm7192_vm2, %v9059_v5  ;;  %v9060_v12 = vpack.c.bf16 %v4991_v6, %v4991_v6  ;;  %v10218_v1 = vld [vmem:[%s13892_s0 + $0x710] sm:$0xff]  }
 0x185   :  { %7269 = vst.msk [vmem:[%s13894_s3 + $0x130] sm:$0xf] %vm7192_vm2, %v8801_v7  ;;  %v8802_v13 = vpack.c.bf16 %v4733_v8, %v4733_v8  ;;  %7525 = vst.msk [vmem:[%s13894_s3 + $0x530] sm:$0xf] %vm7192_vm2, %v9057_v9  ;;  %v9580_v14 = vpop.f32.mrb[80].mxu0  ;;  %v9058_v15 = vpack.c.bf16 %v4989_v10, %v4989_v10  ;;  %v9836_v16 = vpop.f32.mrb[80].mxu1 }
 0x186   :  { %7272 = vst.msk [vmem:[%s13894_s3 + $0x13c] sm:$0xf] %vm7192_vm2, %v8804_v11  ;;  %7528 = vst.msk [vmem:[%s13894_s3 + $0x53c] sm:$0xf] %vm7192_vm2, %v9060_v12  ;;  %v2955_v17 = vadd.f32 %v11335_v48, %v9580_v14  ;;  %v2946_v18 = vpop.f32.mrb[81].mxu0  ;;  %v3979_v20 = vadd.f32 %v11335_v48, %v9836_v16  ;;  %v3970_v21 = vpop.f32.mrb[81].mxu1 }
 0x187   :  { %7270 = vst.msk [vmem:[%s13894_s3 + $0x134] sm:$0xf] %vm7192_vm2, %v8802_v13  ;;  %7526 = vst.msk [vmem:[%s13894_s3 + $0x534] sm:$0xf] %vm7192_vm2, %v9058_v15  ;;  %v2947_v23 = vadd.f32 %v11335_v48, %v2946_v18  ;;  %v9581_v24 = vpop.f32.mrb[82].mxu0  ;;  %v3971_v25 = vadd.f32 %v11335_v48, %v3970_v21  ;;  %v9837_v26 = vpop.f32.mrb[82].mxu1 }
 0x188   :  { %v4738_v29 = vmax.f32 %v2955_v17, 0.0  ;;  %v2958_v30 = vadd.f32 %v11335_v48, %v9581_v24  ;;  %v2949_v31 = vpop.f32.mrb[83].mxu0  ;;  %v4994_v32 = vmax.f32 %v3979_v20, 0.0  ;;  %v3982_v33 = vadd.f32 %v11335_v48, %v9837_v26  ;;  %v3973_v34 = vpop.f32.mrb[83].mxu1 }
 0x189   :  { %v4736_v35 = vmax.f32 %v2947_v23, 0.0  ;;  %v2950_v36 = vadd.f32 %v11335_v48, %v2949_v31  ;;  %v4992_v37 = vmax.f32 %v3971_v25, 0.0  ;;  %v3974_v38 = vadd.f32 %v11335_v48, %v3973_v34  ;;  %v10219_v31 = vld [vmem:[%s13892_s0 + $0x718] sm:$0xff]  }
 0x18a   :  { %v8807_v39 = vpack.c.bf16 %v4738_v29, %v4738_v29  ;;  %v4739_v40 = vmax.f32 %v2958_v30, 0.0  ;;  %9687 = vmatmul.mubr.msk.bf16.gmra.mrb[188].mxu0 %vm1825_vm0, %v10209_v19  ;;  %v9063_v41 = vpack.c.bf16 %v4994_v32, %v4994_v32  ;;  %v4995_v42 = vmax.f32 %v3982_v33, 0.0  ;;  %9943 = vmatmul.mubr.msk.bf16.gmra.mrb[188].mxu1 %vm1825_vm0, %v10211_v22 }
 0x18b   :  { %v8805_v43 = vpack.c.bf16 %v4736_v35, %v4736_v35  ;;  %v4737_v44 = vmax.f32 %v2950_v36, 0.0  ;;  %v9061_v45 = vpack.c.bf16 %v4992_v37, %v4992_v37  ;;  %v4993_v46 = vmax.f32 %v3974_v38, 0.0  ;;  %9690 = vmatprep.mubr.msk.bf16.mxu0 %vm1825_vm0, %v10212_v27  ;;  %9946 = vmatprep.mubr.msk.bf16.mxu1 %vm1825_vm0, %v10214_v28  ;;  %v10217_v28 = vld [vmem:[%s13892_s0 + $0x318] sm:$0xff]   ;;  %v10220_v36 = vld [vmem:[%s13892_s0 + $0x320] sm:$0xff]  }
 0x18c   :  { %7275 = vst.msk [vmem:[%s13894_s3 + $0x148] sm:$0xf] %vm7192_vm2, %v8807_v39  ;;  %v8808_v48 = vpack.c.bf16 %v4739_v40, %v4739_v40  ;;  %7531 = vst.msk [vmem:[%s13894_s3 + $0x548] sm:$0xf] %vm7192_vm2, %v9063_v41  ;;  %v9064_v47 = vpack.c.bf16 %v4995_v42, %v4995_v42  ;;  %v10222_v37 = vld [vmem:[%s13892_s0 + $0x720] sm:$0xff]  }
 0x18d   :  { %7273 = vst.msk [vmem:[%s13894_s3 + $0x140] sm:$0xf] %vm7192_vm2, %v8805_v43  ;;  %v8806_v49 = vpack.c.bf16 %v4737_v44, %v4737_v44  ;;  %7529 = vst.msk [vmem:[%s13894_s3 + $0x540] sm:$0xf] %vm7192_vm2, %v9061_v45  ;;  %v9584_v50 = vpop.f32.mrb[84].mxu0  ;;  %v9062_v52 = vpack.c.bf16 %v4993_v46, %v4993_v46  ;;  %v9840_v51 = vpop.f32.mrb[84].mxu1 }
 0x18e   :  { %7276 = vst.msk [vmem:[%s13894_s3 + $0x14c] sm:$0xf] %vm7192_vm2, %v8808_v48  ;;  %7532 = vst.msk [vmem:[%s13894_s3 + $0x54c] sm:$0xf] %vm7192_vm2, %v9064_v47  ;;  %v2971_v54 = vadd.f32 %v11932_v53, %v9584_v50  ;;  %v2962_v55 = vpop.f32.mrb[85].mxu0  ;;  %v3995_v57 = vadd.f32 %v11932_v53, %v9840_v51  ;;  %v3986_v58 = vpop.f32.mrb[85].mxu1 }
 0x18f   :  { %7274 = vst.msk [vmem:[%s13894_s3 + $0x144] sm:$0xf] %vm7192_vm2, %v8806_v49  ;;  %7530 = vst.msk [vmem:[%s13894_s3 + $0x544] sm:$0xf] %vm7192_vm2, %v9062_v52  ;;  %v2963_v60 = vadd.f32 %v11932_v53, %v2962_v55  ;;  %v9585_v61 = vpop.f32.mrb[86].mxu0  ;;  %v3987_v62 = vadd.f32 %v11932_v53, %v3986_v58  ;;  %v9841_v63 = vpop.f32.mrb[86].mxu1 }
 0x190   :  { %v4742_v2 = vmax.f32 %v2971_v54, 0.0  ;;  %v2974_v3 = vadd.f32 %v11932_v53, %v9585_v61  ;;  %v2965_v4 = vpop.f32.mrb[87].mxu0  ;;  %v4998_v5 = vmax.f32 %v3995_v57, 0.0  ;;  %v3998_v6 = vadd.f32 %v11932_v53, %v9841_v63  ;;  %v3989_v7 = vpop.f32.mrb[87].mxu1 }
 0x191   :  { %v4740_v8 = vmax.f32 %v2963_v60, 0.0  ;;  %v2966_v9 = vadd.f32 %v11932_v53, %v2965_v4  ;;  %v4996_v10 = vmax.f32 %v3987_v62, 0.0  ;;  %v3990_v11 = vadd.f32 %v11932_v53, %v3989_v7  ;;  %v10223_v4 = vld [vmem:[%s13892_s0 + $0x728] sm:$0xff]  }
 0x192   :  { %v8811_v12 = vpack.c.bf16 %v4742_v2, %v4742_v2  ;;  %v4743_v13 = vmax.f32 %v2974_v3, 0.0  ;;  %9691 = vmatmul.mubr.msk.bf16.gmra.mrb[192].mxu0 %vm1825_vm0, %v10213_v56  ;;  %v9067_v14 = vpack.c.bf16 %v4998_v5, %v4998_v5  ;;  %v4999_v15 = vmax.f32 %v3998_v6, 0.0  ;;  %9947 = vmatmul.mubr.msk.bf16.gmra.mrb[192].mxu1 %vm1825_vm0, %v10215_v59 }
 0x193   :  { %v8809_v16 = vpack.c.bf16 %v4740_v8, %v4740_v8  ;;  %v4741_v17 = vmax.f32 %v2966_v9, 0.0  ;;  %v9065_v18 = vpack.c.bf16 %v4996_v10, %v4996_v10  ;;  %v4997_v19 = vmax.f32 %v3990_v11, 0.0  ;;  %9694 = vmatprep.mubr.msk.bf16.mxu0 %vm1825_vm0, %v10216_v0  ;;  %9950 = vmatprep.mubr.msk.bf16.mxu1 %vm1825_vm0, %v10218_v1  ;;  %v10221_v1 = vld [vmem:[%s13892_s0 + $0x328] sm:$0xff]   ;;  %v10224_v9 = vld [vmem:[%s13892_s0 + $0x330] sm:$0xff]  }
 0x194   :  { %7279 = vst.msk [vmem:[%s13894_s3 + $0x158] sm:$0xf] %vm7192_vm2, %v8811_v12  ;;  %v8812_v20 = vpack.c.bf16 %v4743_v13, %v4743_v13  ;;  %7535 = vst.msk [vmem:[%s13894_s3 + $0x558] sm:$0xf] %vm7192_vm2, %v9067_v14  ;;  %v9068_v21 = vpack.c.bf16 %v4999_v15, %v4999_v15  ;;  %v10226_v10 = vld [vmem:[%s13892_s0 + $0x730] sm:$0xff]  }
 0x195   :  { %7277 = vst.msk [vmem:[%s13894_s3 + $0x150] sm:$0xf] %vm7192_vm2, %v8809_v16  ;;  %v8810_v22 = vpack.c.bf16 %v4741_v17, %v4741_v17  ;;  %7533 = vst.msk [vmem:[%s13894_s3 + $0x550] sm:$0xf] %vm7192_vm2, %v9065_v18  ;;  %v9588_v23 = vpop.f32.mrb[88].mxu0  ;;  %v9066_v24 = vpack.c.bf16 %v4997_v19, %v4997_v19  ;;  %v9844_v25 = vpop.f32.mrb[88].mxu1 }
 0x196   :  { %7280 = vst.msk [vmem:[%s13894_s3 + $0x15c] sm:$0xf] %vm7192_vm2, %v8812_v20  ;;  %7536 = vst.msk [vmem:[%s13894_s3 + $0x55c] sm:$0xf] %vm7192_vm2, %v9068_v21  ;;  %v2987_v26 = vadd.f32 %v11932_v53, %v9588_v23  ;;  %v2978_v27 = vpop.f32.mrb[89].mxu0  ;;  %v4011_v29 = vadd.f32 %v11932_v53, %v9844_v25  ;;  %v4002_v30 = vpop.f32.mrb[89].mxu1 }
 0x197   :  { %7278 = vst.msk [vmem:[%s13894_s3 + $0x154] sm:$0xf] %vm7192_vm2, %v8810_v22  ;;  %7534 = vst.msk [vmem:[%s13894_s3 + $0x554] sm:$0xf] %vm7192_vm2, %v9066_v24  ;;  %v2979_v32 = vadd.f32 %v11932_v53, %v2978_v27  ;;  %v9589_v33 = vpop.f32.mrb[90].mxu0  ;;  %v4003_v34 = vadd.f32 %v11932_v53, %v4002_v30  ;;  %v9845_v35 = vpop.f32.mrb[90].mxu1 }
 0x198   :  { %v4746_v38 = vmax.f32 %v2987_v26, 0.0  ;;  %v2990_v39 = vadd.f32 %v11932_v53, %v9589_v33  ;;  %v2981_v40 = vpop.f32.mrb[91].mxu0  ;;  %v5002_v41 = vmax.f32 %v4011_v29, 0.0  ;;  %v4014_v42 = vadd.f32 %v11932_v53, %v9845_v35  ;;  %v4005_v43 = vpop.f32.mrb[91].mxu1 }
 0x199   :  { %v4744_v44 = vmax.f32 %v2979_v32, 0.0  ;;  %v2982_v45 = vadd.f32 %v11932_v53, %v2981_v40  ;;  %v5000_v46 = vmax.f32 %v4003_v34, 0.0  ;;  %v4006_v48 = vadd.f32 %v11932_v53, %v4005_v43  ;;  %v10227_v40 = vld [vmem:[%s13892_s0 + $0x738] sm:$0xff]  }
 0x19a   :  { %v8815_v47 = vpack.c.bf16 %v4746_v38, %v4746_v38  ;;  %v4747_v49 = vmax.f32 %v2990_v39, 0.0  ;;  %9695 = vmatmul.mubr.msk.bf16.gmra.mrb[196].mxu0 %vm1825_vm0, %v10217_v28  ;;  %v9071_v50 = vpack.c.bf16 %v5002_v41, %v5002_v41  ;;  %v5003_v52 = vmax.f32 %v4014_v42, 0.0  ;;  %9951 = vmatmul.mubr.msk.bf16.gmra.mrb[196].mxu1 %vm1825_vm0, %v10219_v31 }
 0x19b   :  { %v8813_v51 = vpack.c.bf16 %v4744_v44, %v4744_v44  ;;  %v4745_v54 = vmax.f32 %v2982_v45, 0.0  ;;  %v9069_v55 = vpack.c.bf16 %v5000_v46, %v5000_v46  ;;  %v5001_v56 = vmax.f32 %v4006_v48, 0.0  ;;  %9698 = vmatprep.mubr.msk.bf16.mxu0 %vm1825_vm0, %v10220_v36  ;;  %9954 = vmatprep.mubr.msk.bf16.mxu1 %vm1825_vm0, %v10222_v37  ;;  %v10225_v37 = vld [vmem:[%s13892_s0 + $0x338] sm:$0xff]   ;;  %v10228_v45 = vld [vmem:[%s13892_s0 + $0x340] sm:$0xff]  }
 0x19c   :  { %7283 = vst.msk [vmem:[%s13894_s3 + $0x168] sm:$0xf] %vm7192_vm2, %v8815_v47  ;;  %v8816_v57 = vpack.c.bf16 %v4747_v49, %v4747_v49  ;;  %7539 = vst.msk [vmem:[%s13894_s3 + $0x568] sm:$0xf] %vm7192_vm2, %v9071_v50  ;;  %v9072_v58 = vpack.c.bf16 %v5003_v52, %v5003_v52  ;;  %v10230_v46 = vld [vmem:[%s13892_s0 + $0x740] sm:$0xff]  }
 0x19d   :  { %7281 = vst.msk [vmem:[%s13894_s3 + $0x160] sm:$0xf] %vm7192_vm2, %v8813_v51  ;;  %v8814_v59 = vpack.c.bf16 %v4745_v54, %v4745_v54  ;;  %7537 = vst.msk [vmem:[%s13894_s3 + $0x560] sm:$0xf] %vm7192_vm2, %v9069_v55  ;;  %v9592_v60 = vpop.f32.mrb[92].mxu0  ;;  %v9070_v61 = vpack.c.bf16 %v5001_v56, %v5001_v56  ;;  %v9848_v62 = vpop.f32.mrb[92].mxu1 }
 0x19e   :  { %7284 = vst.msk [vmem:[%s13894_s3 + $0x16c] sm:$0xf] %vm7192_vm2, %v8816_v57  ;;  %7540 = vst.msk [vmem:[%s13894_s3 + $0x56c] sm:$0xf] %vm7192_vm2, %v9072_v58  ;;  %v3003_v63 = vadd.f32 %v11932_v53, %v9592_v60  ;;  %v2994_v0 = vpop.f32.mrb[93].mxu0  ;;  %v4027_v2 = vadd.f32 %v11932_v53, %v9848_v62  ;;  %v4018_v3 = vpop.f32.mrb[93].mxu1 }
 0x19f   :  { %7282 = vst.msk [vmem:[%s13894_s3 + $0x164] sm:$0xf] %vm7192_vm2, %v8814_v59  ;;  %7538 = vst.msk [vmem:[%s13894_s3 + $0x564] sm:$0xf] %vm7192_vm2, %v9070_v61  ;;  %v2995_v5 = vadd.f32 %v11932_v53, %v2994_v0  ;;  %v9593_v6 = vpop.f32.mrb[94].mxu0  ;;  %v4019_v7 = vadd.f32 %v11932_v53, %v4018_v3  ;;  %v9849_v8 = vpop.f32.mrb[94].mxu1 }
 0x1a0   :  { %v4750_v11 = vmax.f32 %v3003_v63, 0.0  ;;  %v3006_v12 = vadd.f32 %v11932_v53, %v9593_v6  ;;  %v2997_v13 = vpop.f32.mrb[95].mxu0  ;;  %v5006_v14 = vmax.f32 %v4027_v2, 0.0  ;;  %v4030_v15 = vadd.f32 %v11932_v53, %v9849_v8  ;;  %v4021_v16 = vpop.f32.mrb[95].mxu1 }
 0x1a1   :  { %v4748_v17 = vmax.f32 %v2995_v5, 0.0  ;;  %v2998_v18 = vadd.f32 %v11932_v53, %v2997_v13  ;;  %v5004_v19 = vmax.f32 %v4019_v7, 0.0  ;;  %v4022_v20 = vadd.f32 %v11932_v53, %v4021_v16  ;;  %v10231_v13 = vld [vmem:[%s13892_s0 + $0x748] sm:$0xff]  }
 0x1a2   :  { %v8819_v21 = vpack.c.bf16 %v4750_v11, %v4750_v11  ;;  %v4751_v22 = vmax.f32 %v3006_v12, 0.0  ;;  %9699 = vmatmul.mubr.msk.bf16.gmra.mrb[200].mxu0 %vm1825_vm0, %v10221_v1  ;;  %v9075_v23 = vpack.c.bf16 %v5006_v14, %v5006_v14  ;;  %v5007_v24 = vmax.f32 %v4030_v15, 0.0  ;;  %9955 = vmatmul.mubr.msk.bf16.gmra.mrb[200].mxu1 %vm1825_vm0, %v10223_v4 }
 0x1a3   :  { %v8817_v25 = vpack.c.bf16 %v4748_v17, %v4748_v17  ;;  %v4749_v26 = vmax.f32 %v2998_v18, 0.0  ;;  %v9073_v27 = vpack.c.bf16 %v5004_v19, %v5004_v19  ;;  %v5005_v28 = vmax.f32 %v4022_v20, 0.0  ;;  %9702 = vmatprep.mubr.msk.bf16.mxu0 %vm1825_vm0, %v10224_v9  ;;  %9958 = vmatprep.mubr.msk.bf16.mxu1 %vm1825_vm0, %v10226_v10  ;;  %v10229_v10 = vld [vmem:[%s13892_s0 + $0x348] sm:$0xff]   ;;  %v10232_v18 = vld [vmem:[%s13892_s0 + $0x350] sm:$0xff]  }
 0x1a4   :  { %7287 = vst.msk [vmem:[%s13894_s3 + $0x178] sm:$0xf] %vm7192_vm2, %v8819_v21  ;;  %v8820_v29 = vpack.c.bf16 %v4751_v22, %v4751_v22  ;;  %7543 = vst.msk [vmem:[%s13894_s3 + $0x578] sm:$0xf] %vm7192_vm2, %v9075_v23  ;;  %v9076_v30 = vpack.c.bf16 %v5007_v24, %v5007_v24  ;;  %v10234_v19 = vld [vmem:[%s13892_s0 + $0x750] sm:$0xff]  }
 0x1a5   :  { %7285 = vst.msk [vmem:[%s13894_s3 + $0x170] sm:$0xf] %vm7192_vm2, %v8817_v25  ;;  %v8818_v31 = vpack.c.bf16 %v4749_v26, %v4749_v26  ;;  %7541 = vst.msk [vmem:[%s13894_s3 + $0x570] sm:$0xf] %vm7192_vm2, %v9073_v27  ;;  %v9596_v32 = vpop.f32.mrb[96].mxu0  ;;  %v9074_v33 = vpack.c.bf16 %v5005_v28, %v5005_v28  ;;  %v9852_v34 = vpop.f32.mrb[96].mxu1 }
 0x1a6   :  { %7288 = vst.msk [vmem:[%s13894_s3 + $0x17c] sm:$0xf] %vm7192_vm2, %v8820_v29  ;;  %7544 = vst.msk [vmem:[%s13894_s3 + $0x57c] sm:$0xf] %vm7192_vm2, %v9076_v30  ;;  %v3019_v35 = vadd.f32 %v11932_v53, %v9596_v32  ;;  %v3010_v36 = vpop.f32.mrb[97].mxu0  ;;  %v4043_v38 = vadd.f32 %v11932_v53, %v9852_v34  ;;  %v4034_v39 = vpop.f32.mrb[97].mxu1 }
 0x1a7   :  { %7286 = vst.msk [vmem:[%s13894_s3 + $0x174] sm:$0xf] %vm7192_vm2, %v8818_v31  ;;  %7542 = vst.msk [vmem:[%s13894_s3 + $0x574] sm:$0xf] %vm7192_vm2, %v9074_v33  ;;  %v3011_v41 = vadd.f32 %v11932_v53, %v3010_v36  ;;  %v9597_v42 = vpop.f32.mrb[98].mxu0  ;;  %v4035_v43 = vadd.f32 %v11932_v53, %v4034_v39  ;;  %v9853_v44 = vpop.f32.mrb[98].mxu1 }
 0x1a8   :  { %v4754_v48 = vmax.f32 %v3019_v35, 0.0  ;;  %v3022_v47 = vadd.f32 %v11932_v53, %v9597_v42  ;;  %v3013_v49 = vpop.f32.mrb[99].mxu0  ;;  %v5010_v50 = vmax.f32 %v4043_v38, 0.0  ;;  %v4046_v52 = vadd.f32 %v11932_v53, %v9853_v44  ;;  %v4037_v51 = vpop.f32.mrb[99].mxu1 }
 0x1a9   :  { %v4752_v54 = vmax.f32 %v3011_v41, 0.0  ;;  %v3014_v55 = vadd.f32 %v11932_v53, %v3013_v49  ;;  %v5008_v56 = vmax.f32 %v4035_v43, 0.0  ;;  %v4038_v57 = vadd.f32 %v11932_v53, %v4037_v51  ;;  %v10235_v49 = vld [vmem:[%s13892_s0 + $0x758] sm:$0xff]  }
 0x1aa   :  { %v8823_v58 = vpack.c.bf16 %v4754_v48, %v4754_v48  ;;  %v4755_v59 = vmax.f32 %v3022_v47, 0.0  ;;  %9703 = vmatmul.mubr.msk.bf16.gmra.mrb[204].mxu0 %vm1825_vm0, %v10225_v37  ;;  %v9079_v60 = vpack.c.bf16 %v5010_v50, %v5010_v50  ;;  %v5011_v61 = vmax.f32 %v4046_v52, 0.0  ;;  %9959 = vmatmul.mubr.msk.bf16.gmra.mrb[204].mxu1 %vm1825_vm0, %v10227_v40 }
 0x1ab   :  { %v8821_v62 = vpack.c.bf16 %v4752_v54, %v4752_v54  ;;  %v4753_v63 = vmax.f32 %v3014_v55, 0.0  ;;  %v9077_v0 = vpack.c.bf16 %v5008_v56, %v5008_v56  ;;  %v5009_v1 = vmax.f32 %v4038_v57, 0.0  ;;  %9706 = vmatprep.mubr.msk.bf16.mxu0 %vm1825_vm0, %v10228_v45  ;;  %9962 = vmatprep.mubr.msk.bf16.mxu1 %vm1825_vm0, %v10230_v46  ;;  %v10233_v46 = vld [vmem:[%s13892_s0 + $0x358] sm:$0xff]   ;;  %v10236_v55 = vld [vmem:[%s13892_s0 + $0x360] sm:$0xff]  }
 0x1ac   :  { %7291 = vst.msk [vmem:[%s13894_s3 + $0x188] sm:$0xf] %vm7192_vm2, %v8823_v58  ;;  %v8824_v2 = vpack.c.bf16 %v4755_v59, %v4755_v59  ;;  %7547 = vst.msk [vmem:[%s13894_s3 + $0x588] sm:$0xf] %vm7192_vm2, %v9079_v60  ;;  %v9080_v3 = vpack.c.bf16 %v5011_v61, %v5011_v61  ;;  %v10238_v56 = vld [vmem:[%s13892_s0 + $0x760] sm:$0xff]  }
 0x1ad   :  { %7289 = vst.msk [vmem:[%s13894_s3 + $0x180] sm:$0xf] %vm7192_vm2, %v8821_v62  ;;  %v8822_v4 = vpack.c.bf16 %v4753_v63, %v4753_v63  ;;  %7545 = vst.msk [vmem:[%s13894_s3 + $0x580] sm:$0xf] %vm7192_vm2, %v9077_v0  ;;  %v9600_v5 = vpop.f32.mrb[100].mxu0  ;;  %v9078_v6 = vpack.c.bf16 %v5009_v1, %v5009_v1  ;;  %v9856_v7 = vpop.f32.mrb[100].mxu1 }
 0x1ae   :  { %7292 = vst.msk [vmem:[%s13894_s3 + $0x18c] sm:$0xf] %vm7192_vm2, %v8824_v2  ;;  %7548 = vst.msk [vmem:[%s13894_s3 + $0x58c] sm:$0xf] %vm7192_vm2, %v9080_v3  ;;  %v3035_v8 = vadd.f32 %v11932_v53, %v9600_v5  ;;  %v3026_v9 = vpop.f32.mrb[101].mxu0  ;;  %v4059_v11 = vadd.f32 %v11932_v53, %v9856_v7  ;;  %v4050_v12 = vpop.f32.mrb[101].mxu1 }
 0x1af   :  { %7290 = vst.msk [vmem:[%s13894_s3 + $0x184] sm:$0xf] %vm7192_vm2, %v8822_v4  ;;  %7546 = vst.msk [vmem:[%s13894_s3 + $0x584] sm:$0xf] %vm7192_vm2, %v9078_v6  ;;  %v3027_v14 = vadd.f32 %v11932_v53, %v3026_v9  ;;  %v9601_v15 = vpop.f32.mrb[102].mxu0  ;;  %v4051_v16 = vadd.f32 %v11932_v53, %v4050_v12  ;;  %v9857_v17 = vpop.f32.mrb[102].mxu1 }
 0x1b0   :  { %v4758_v20 = vmax.f32 %v3035_v8, 0.0  ;;  %v3038_v21 = vadd.f32 %v11932_v53, %v9601_v15  ;;  %v3029_v22 = vpop.f32.mrb[103].mxu0  ;;  %v5014_v23 = vmax.f32 %v4059_v11, 0.0  ;;  %v4062_v24 = vadd.f32 %v11932_v53, %v9857_v17  ;;  %v4053_v25 = vpop.f32.mrb[103].mxu1 }
 0x1b1   :  { %v4756_v26 = vmax.f32 %v3027_v14, 0.0  ;;  %v3030_v27 = vadd.f32 %v11932_v53, %v3029_v22  ;;  %v5012_v28 = vmax.f32 %v4051_v16, 0.0  ;;  %v4054_v29 = vadd.f32 %v11932_v53, %v4053_v25  ;;  %v10239_v22 = vld [vmem:[%s13892_s0 + $0x768] sm:$0xff]  }
 0x1b2   :  { %v8827_v30 = vpack.c.bf16 %v4758_v20, %v4758_v20  ;;  %v4759_v31 = vmax.f32 %v3038_v21, 0.0  ;;  %9707 = vmatmul.mubr.msk.bf16.gmra.mrb[208].mxu0 %vm1825_vm0, %v10229_v10  ;;  %v9083_v32 = vpack.c.bf16 %v5014_v23, %v5014_v23  ;;  %v5015_v33 = vmax.f32 %v4062_v24, 0.0  ;;  %9963 = vmatmul.mubr.msk.bf16.gmra.mrb[208].mxu1 %vm1825_vm0, %v10231_v13 }
 0x1b3   :  { %v8825_v34 = vpack.c.bf16 %v4756_v26, %v4756_v26  ;;  %v4757_v35 = vmax.f32 %v3030_v27, 0.0  ;;  %v9081_v36 = vpack.c.bf16 %v5012_v28, %v5012_v28  ;;  %v5013_v37 = vmax.f32 %v4054_v29, 0.0  ;;  %9710 = vmatprep.mubr.msk.bf16.mxu0 %vm1825_vm0, %v10232_v18  ;;  %9966 = vmatprep.mubr.msk.bf16.mxu1 %vm1825_vm0, %v10234_v19  ;;  %v10237_v19 = vld [vmem:[%s13892_s0 + $0x368] sm:$0xff]   ;;  %v10240_v27 = vld [vmem:[%s13892_s0 + $0x370] sm:$0xff]  }
 0x1b4   :  { %7295 = vst.msk [vmem:[%s13894_s3 + $0x198] sm:$0xf] %vm7192_vm2, %v8827_v30  ;;  %v8828_v38 = vpack.c.bf16 %v4759_v31, %v4759_v31  ;;  %7551 = vst.msk [vmem:[%s13894_s3 + $0x598] sm:$0xf] %vm7192_vm2, %v9083_v32  ;;  %v9084_v39 = vpack.c.bf16 %v5015_v33, %v5015_v33  ;;  %v10242_v28 = vld [vmem:[%s13892_s0 + $0x770] sm:$0xff]  }
 0x1b5   :  { %7293 = vst.msk [vmem:[%s13894_s3 + $0x190] sm:$0xf] %vm7192_vm2, %v8825_v34  ;;  %v8826_v40 = vpack.c.bf16 %v4757_v35, %v4757_v35  ;;  %7549 = vst.msk [vmem:[%s13894_s3 + $0x590] sm:$0xf] %vm7192_vm2, %v9081_v36  ;;  %v9604_v41 = vpop.f32.mrb[104].mxu0  ;;  %v9082_v42 = vpack.c.bf16 %v5013_v37, %v5013_v37  ;;  %v9860_v43 = vpop.f32.mrb[104].mxu1 }
 0x1b6   :  { %7296 = vst.msk [vmem:[%s13894_s3 + $0x19c] sm:$0xf] %vm7192_vm2, %v8828_v38  ;;  %7552 = vst.msk [vmem:[%s13894_s3 + $0x59c] sm:$0xf] %vm7192_vm2, %v9084_v39  ;;  %v3051_v44 = vadd.f32 %v11932_v53, %v9604_v41  ;;  %v3042_v45 = vpop.f32.mrb[105].mxu0  ;;  %v4075_v48 = vadd.f32 %v11932_v53, %v9860_v43  ;;  %v4066_v47 = vpop.f32.mrb[105].mxu1 }
 0x1b7   :  { %7294 = vst.msk [vmem:[%s13894_s3 + $0x194] sm:$0xf] %vm7192_vm2, %v8826_v40  ;;  %7550 = vst.msk [vmem:[%s13894_s3 + $0x594] sm:$0xf] %vm7192_vm2, %v9082_v42  ;;  %v3043_v50 = vadd.f32 %v11932_v53, %v3042_v45  ;;  %v9605_v52 = vpop.f32.mrb[106].mxu0  ;;  %v4067_v51 = vadd.f32 %v11932_v53, %v4066_v47  ;;  %v9861_v54 = vpop.f32.mrb[106].mxu1 }
 0x1b8   :  { %v4762_v57 = vmax.f32 %v3051_v44, 0.0  ;;  %v3054_v58 = vadd.f32 %v11932_v53, %v9605_v52  ;;  %v3045_v59 = vpop.f32.mrb[107].mxu0  ;;  %v5018_v60 = vmax.f32 %v4075_v48, 0.0  ;;  %v4078_v61 = vadd.f32 %v11932_v53, %v9861_v54  ;;  %v4069_v62 = vpop.f32.mrb[107].mxu1 }
 0x1b9   :  { %v4760_v63 = vmax.f32 %v3043_v50, 0.0  ;;  %v3046_v0 = vadd.f32 %v11932_v53, %v3045_v59  ;;  %v5016_v1 = vmax.f32 %v4067_v51, 0.0  ;;  %v4070_v2 = vadd.f32 %v11932_v53, %v4069_v62  ;;  %v10243_v59 = vld [vmem:[%s13892_s0 + $0x778] sm:$0xff]  }
 0x1ba   :  { %v8831_v3 = vpack.c.bf16 %v4762_v57, %v4762_v57  ;;  %v4763_v4 = vmax.f32 %v3054_v58, 0.0  ;;  %9711 = vmatmul.mubr.msk.bf16.gmra.mrb[212].mxu0 %vm1825_vm0, %v10233_v46  ;;  %v9087_v5 = vpack.c.bf16 %v5018_v60, %v5018_v60  ;;  %v5019_v6 = vmax.f32 %v4078_v61, 0.0  ;;  %9967 = vmatmul.mubr.msk.bf16.gmra.mrb[212].mxu1 %vm1825_vm0, %v10235_v49 }
 0x1bb   :  { %v8829_v7 = vpack.c.bf16 %v4760_v63, %v4760_v63  ;;  %v4761_v8 = vmax.f32 %v3046_v0, 0.0  ;;  %v9085_v9 = vpack.c.bf16 %v5016_v1, %v5016_v1  ;;  %v5017_v10 = vmax.f32 %v4070_v2, 0.0  ;;  %9714 = vmatprep.mubr.msk.bf16.mxu0 %vm1825_vm0, %v10236_v55  ;;  %9970 = vmatprep.mubr.msk.bf16.mxu1 %vm1825_vm0, %v10238_v56  ;;  %v10241_v56 = vld [vmem:[%s13892_s0 + $0x378] sm:$0xff]   ;;  %v10244_v0 = vld [vmem:[%s13892_s0 + $0x380] sm:$0xff]  }
 0x1bc   :  { %7299 = vst.msk [vmem:[%s13894_s3 + $0x1a8] sm:$0xf] %vm7192_vm2, %v8831_v3  ;;  %v8832_v11 = vpack.c.bf16 %v4763_v4, %v4763_v4  ;;  %7555 = vst.msk [vmem:[%s13894_s3 + $0x5a8] sm:$0xf] %vm7192_vm2, %v9087_v5  ;;  %v9088_v12 = vpack.c.bf16 %v5019_v6, %v5019_v6  ;;  %v10246_v1 = vld [vmem:[%s13892_s0 + $0x780] sm:$0xff]  }
 0x1bd   :  { %7297 = vst.msk [vmem:[%s13894_s3 + $0x1a0] sm:$0xf] %vm7192_vm2, %v8829_v7  ;;  %v8830_v13 = vpack.c.bf16 %v4761_v8, %v4761_v8  ;;  %7553 = vst.msk [vmem:[%s13894_s3 + $0x5a0] sm:$0xf] %vm7192_vm2, %v9085_v9  ;;  %v9608_v14 = vpop.f32.mrb[108].mxu0  ;;  %v9086_v15 = vpack.c.bf16 %v5017_v10, %v5017_v10  ;;  %v9864_v16 = vpop.f32.mrb[108].mxu1 }
 0x1be   :  { %7300 = vst.msk [vmem:[%s13894_s3 + $0x1ac] sm:$0xf] %vm7192_vm2, %v8832_v11  ;;  %7556 = vst.msk [vmem:[%s13894_s3 + $0x5ac] sm:$0xf] %vm7192_vm2, %v9088_v12  ;;  %v3067_v17 = vadd.f32 %v11932_v53, %v9608_v14  ;;  %v3058_v18 = vpop.f32.mrb[109].mxu0  ;;  %v4091_v20 = vadd.f32 %v11932_v53, %v9864_v16  ;;  %v4082_v21 = vpop.f32.mrb[109].mxu1 }
 0x1bf   :  { %7298 = vst.msk [vmem:[%s13894_s3 + $0x1a4] sm:$0xf] %vm7192_vm2, %v8830_v13  ;;  %7554 = vst.msk [vmem:[%s13894_s3 + $0x5a4] sm:$0xf] %vm7192_vm2, %v9086_v15  ;;  %v3059_v23 = vadd.f32 %v11932_v53, %v3058_v18  ;;  %v9609_v24 = vpop.f32.mrb[110].mxu0  ;;  %v4083_v25 = vadd.f32 %v11932_v53, %v4082_v21  ;;  %v9865_v26 = vpop.f32.mrb[110].mxu1 }
 0x1c0   :  { %v4766_v29 = vmax.f32 %v3067_v17, 0.0  ;;  %v3070_v30 = vadd.f32 %v11932_v53, %v9609_v24  ;;  %v3061_v31 = vpop.f32.mrb[111].mxu0  ;;  %v5022_v32 = vmax.f32 %v4091_v20, 0.0  ;;  %v4094_v33 = vadd.f32 %v11932_v53, %v9865_v26  ;;  %v4085_v34 = vpop.f32.mrb[111].mxu1 }
 0x1c1   :  { %v4764_v35 = vmax.f32 %v3059_v23, 0.0  ;;  %v3062_v36 = vadd.f32 %v11932_v53, %v3061_v31  ;;  %v5020_v37 = vmax.f32 %v4083_v25, 0.0  ;;  %v4086_v38 = vadd.f32 %v11932_v53, %v4085_v34  ;;  %v10247_v31 = vld [vmem:[%s13892_s0 + $0x788] sm:$0xff]  }
 0x1c2   :  { %v8835_v39 = vpack.c.bf16 %v4766_v29, %v4766_v29  ;;  %v4767_v40 = vmax.f32 %v3070_v30, 0.0  ;;  %9715 = vmatmul.mubr.msk.bf16.gmra.mrb[216].mxu0 %vm1825_vm0, %v10237_v19  ;;  %v9091_v41 = vpack.c.bf16 %v5022_v32, %v5022_v32  ;;  %v5023_v42 = vmax.f32 %v4094_v33, 0.0  ;;  %9971 = vmatmul.mubr.msk.bf16.gmra.mrb[216].mxu1 %vm1825_vm0, %v10239_v22 }
 0x1c3   :  { %v8833_v43 = vpack.c.bf16 %v4764_v35, %v4764_v35  ;;  %v4765_v44 = vmax.f32 %v3062_v36, 0.0  ;;  %v9089_v45 = vpack.c.bf16 %v5020_v37, %v5020_v37  ;;  %v5021_v46 = vmax.f32 %v4086_v38, 0.0  ;;  %9718 = vmatprep.mubr.msk.bf16.mxu0 %vm1825_vm0, %v10240_v27  ;;  %9974 = vmatprep.mubr.msk.bf16.mxu1 %vm1825_vm0, %v10242_v28  ;;  %v10245_v28 = vld [vmem:[%s13892_s0 + $0x388] sm:$0xff]   ;;  %v10248_v36 = vld [vmem:[%s13892_s0 + $0x390] sm:$0xff]  }
 0x1c4   :  { %7303 = vst.msk [vmem:[%s13894_s3 + $0x1b8] sm:$0xf] %vm7192_vm2, %v8835_v39  ;;  %v8836_v48 = vpack.c.bf16 %v4767_v40, %v4767_v40  ;;  %7559 = vst.msk [vmem:[%s13894_s3 + $0x5b8] sm:$0xf] %vm7192_vm2, %v9091_v41  ;;  %v9092_v47 = vpack.c.bf16 %v5023_v42, %v5023_v42  ;;  %v10250_v37 = vld [vmem:[%s13892_s0 + $0x790] sm:$0xff]  }
 0x1c5   :  { %7301 = vst.msk [vmem:[%s13894_s3 + $0x1b0] sm:$0xf] %vm7192_vm2, %v8833_v43  ;;  %v8834_v49 = vpack.c.bf16 %v4765_v44, %v4765_v44  ;;  %7557 = vst.msk [vmem:[%s13894_s3 + $0x5b0] sm:$0xf] %vm7192_vm2, %v9089_v45  ;;  %v9612_v50 = vpop.f32.mrb[112].mxu0  ;;  %v9090_v52 = vpack.c.bf16 %v5021_v46, %v5021_v46  ;;  %v9868_v51 = vpop.f32.mrb[112].mxu1 }
 0x1c6   :  { %7304 = vst.msk [vmem:[%s13894_s3 + $0x1bc] sm:$0xf] %vm7192_vm2, %v8836_v48  ;;  %7560 = vst.msk [vmem:[%s13894_s3 + $0x5bc] sm:$0xf] %vm7192_vm2, %v9092_v47  ;;  %v3083_v54 = vadd.f32 %v11932_v53, %v9612_v50  ;;  %v3074_v55 = vpop.f32.mrb[113].mxu0  ;;  %v4107_v57 = vadd.f32 %v11932_v53, %v9868_v51  ;;  %v4098_v58 = vpop.f32.mrb[113].mxu1 }
 0x1c7   :  { %7302 = vst.msk [vmem:[%s13894_s3 + $0x1b4] sm:$0xf] %vm7192_vm2, %v8834_v49  ;;  %7558 = vst.msk [vmem:[%s13894_s3 + $0x5b4] sm:$0xf] %vm7192_vm2, %v9090_v52  ;;  %v3075_v60 = vadd.f32 %v11932_v53, %v3074_v55  ;;  %v9613_v61 = vpop.f32.mrb[114].mxu0  ;;  %v4099_v62 = vadd.f32 %v11932_v53, %v4098_v58  ;;  %v9869_v63 = vpop.f32.mrb[114].mxu1 }
 0x1c8   :  { %v4770_v2 = vmax.f32 %v3083_v54, 0.0  ;;  %v3086_v3 = vadd.f32 %v11932_v53, %v9613_v61  ;;  %v3077_v4 = vpop.f32.mrb[115].mxu0  ;;  %v5026_v5 = vmax.f32 %v4107_v57, 0.0  ;;  %v4110_v6 = vadd.f32 %v11932_v53, %v9869_v63  ;;  %v4101_v7 = vpop.f32.mrb[115].mxu1 }
 0x1c9   :  { %v4768_v8 = vmax.f32 %v3075_v60, 0.0  ;;  %v3078_v9 = vadd.f32 %v11932_v53, %v3077_v4  ;;  %v5024_v10 = vmax.f32 %v4099_v62, 0.0  ;;  %v4102_v11 = vadd.f32 %v11932_v53, %v4101_v7  ;;  %v10251_v4 = vld [vmem:[%s13892_s0 + $0x798] sm:$0xff]  }
 0x1ca   :  { %v8839_v12 = vpack.c.bf16 %v4770_v2, %v4770_v2  ;;  %v4771_v13 = vmax.f32 %v3086_v3, 0.0  ;;  %9719 = vmatmul.mubr.msk.bf16.gmra.mrb[220].mxu0 %vm1825_vm0, %v10241_v56  ;;  %v9095_v14 = vpack.c.bf16 %v5026_v5, %v5026_v5  ;;  %v5027_v15 = vmax.f32 %v4110_v6, 0.0  ;;  %9975 = vmatmul.mubr.msk.bf16.gmra.mrb[220].mxu1 %vm1825_vm0, %v10243_v59 }
 0x1cb   :  { %v8837_v16 = vpack.c.bf16 %v4768_v8, %v4768_v8  ;;  %v4769_v17 = vmax.f32 %v3078_v9, 0.0  ;;  %v9093_v18 = vpack.c.bf16 %v5024_v10, %v5024_v10  ;;  %v5025_v19 = vmax.f32 %v4102_v11, 0.0  ;;  %9722 = vmatprep.mubr.msk.bf16.mxu0 %vm1825_vm0, %v10244_v0  ;;  %9978 = vmatprep.mubr.msk.bf16.mxu1 %vm1825_vm0, %v10246_v1  ;;  %v10249_v1 = vld [vmem:[%s13892_s0 + $0x398] sm:$0xff]   ;;  %v10252_v9 = vld [vmem:[%s13892_s0 + $0x3a0] sm:$0xff]  }
 0x1cc   :  { %7307 = vst.msk [vmem:[%s13894_s3 + $0x1c8] sm:$0xf] %vm7192_vm2, %v8839_v12  ;;  %v8840_v20 = vpack.c.bf16 %v4771_v13, %v4771_v13  ;;  %7563 = vst.msk [vmem:[%s13894_s3 + $0x5c8] sm:$0xf] %vm7192_vm2, %v9095_v14  ;;  %v9096_v21 = vpack.c.bf16 %v5027_v15, %v5027_v15  ;;  %v10254_v10 = vld [vmem:[%s13892_s0 + $0x7a0] sm:$0xff]  }
 0x1cd   :  { %7305 = vst.msk [vmem:[%s13894_s3 + $0x1c0] sm:$0xf] %vm7192_vm2, %v8837_v16  ;;  %v8838_v22 = vpack.c.bf16 %v4769_v17, %v4769_v17  ;;  %7561 = vst.msk [vmem:[%s13894_s3 + $0x5c0] sm:$0xf] %vm7192_vm2, %v9093_v18  ;;  %v9616_v23 = vpop.f32.mrb[116].mxu0  ;;  %v9094_v24 = vpack.c.bf16 %v5025_v19, %v5025_v19  ;;  %v9872_v25 = vpop.f32.mrb[116].mxu1 }
 0x1ce   :  { %7308 = vst.msk [vmem:[%s13894_s3 + $0x1cc] sm:$0xf] %vm7192_vm2, %v8840_v20  ;;  %7564 = vst.msk [vmem:[%s13894_s3 + $0x5cc] sm:$0xf] %vm7192_vm2, %v9096_v21  ;;  %v3099_v26 = vadd.f32 %v11932_v53, %v9616_v23  ;;  %v3090_v27 = vpop.f32.mrb[117].mxu0  ;;  %v4123_v29 = vadd.f32 %v11932_v53, %v9872_v25  ;;  %v4114_v30 = vpop.f32.mrb[117].mxu1 }
 0x1cf   :  { %7306 = vst.msk [vmem:[%s13894_s3 + $0x1c4] sm:$0xf] %vm7192_vm2, %v8838_v22  ;;  %7562 = vst.msk [vmem:[%s13894_s3 + $0x5c4] sm:$0xf] %vm7192_vm2, %v9094_v24  ;;  %v3091_v32 = vadd.f32 %v11932_v53, %v3090_v27  ;;  %v9617_v33 = vpop.f32.mrb[118].mxu0  ;;  %v4115_v34 = vadd.f32 %v11932_v53, %v4114_v30  ;;  %v9873_v35 = vpop.f32.mrb[118].mxu1 }
 0x1d0   :  { %v4774_v38 = vmax.f32 %v3099_v26, 0.0  ;;  %v3102_v39 = vadd.f32 %v11932_v53, %v9617_v33  ;;  %v3093_v40 = vpop.f32.mrb[119].mxu0  ;;  %v5030_v41 = vmax.f32 %v4123_v29, 0.0  ;;  %v4126_v42 = vadd.f32 %v11932_v53, %v9873_v35  ;;  %v4117_v43 = vpop.f32.mrb[119].mxu1 }
 0x1d1   :  { %v4772_v44 = vmax.f32 %v3091_v32, 0.0  ;;  %v3094_v45 = vadd.f32 %v11932_v53, %v3093_v40  ;;  %v5028_v46 = vmax.f32 %v4115_v34, 0.0  ;;  %v4118_v48 = vadd.f32 %v11932_v53, %v4117_v43  ;;  %v10255_v40 = vld [vmem:[%s13892_s0 + $0x7a8] sm:$0xff]  }
 0x1d2   :  { %v8843_v47 = vpack.c.bf16 %v4774_v38, %v4774_v38  ;;  %v4775_v49 = vmax.f32 %v3102_v39, 0.0  ;;  %9723 = vmatmul.mubr.msk.bf16.gmra.mrb[224].mxu0 %vm1825_vm0, %v10245_v28  ;;  %v9099_v50 = vpack.c.bf16 %v5030_v41, %v5030_v41  ;;  %v5031_v52 = vmax.f32 %v4126_v42, 0.0  ;;  %9979 = vmatmul.mubr.msk.bf16.gmra.mrb[224].mxu1 %vm1825_vm0, %v10247_v31 }
 0x1d3   :  { %v8841_v51 = vpack.c.bf16 %v4772_v44, %v4772_v44  ;;  %v4773_v54 = vmax.f32 %v3094_v45, 0.0  ;;  %v9097_v55 = vpack.c.bf16 %v5028_v46, %v5028_v46  ;;  %v5029_v56 = vmax.f32 %v4118_v48, 0.0  ;;  %9726 = vmatprep.mubr.msk.bf16.mxu0 %vm1825_vm0, %v10248_v36  ;;  %9982 = vmatprep.mubr.msk.bf16.mxu1 %vm1825_vm0, %v10250_v37  ;;  %v10253_v37 = vld [vmem:[%s13892_s0 + $0x3a8] sm:$0xff]   ;;  %v10256_v45 = vld [vmem:[%s13892_s0 + $0x3b0] sm:$0xff]  }
 0x1d4   :  { %7311 = vst.msk [vmem:[%s13894_s3 + $0x1d8] sm:$0xf] %vm7192_vm2, %v8843_v47  ;;  %v8844_v57 = vpack.c.bf16 %v4775_v49, %v4775_v49  ;;  %7567 = vst.msk [vmem:[%s13894_s3 + $0x5d8] sm:$0xf] %vm7192_vm2, %v9099_v50  ;;  %v9100_v58 = vpack.c.bf16 %v5031_v52, %v5031_v52  ;;  %v10258_v46 = vld [vmem:[%s13892_s0 + $0x7b0] sm:$0xff]  }
 0x1d5   :  { %7309 = vst.msk [vmem:[%s13894_s3 + $0x1d0] sm:$0xf] %vm7192_vm2, %v8841_v51  ;;  %v8842_v59 = vpack.c.bf16 %v4773_v54, %v4773_v54  ;;  %7565 = vst.msk [vmem:[%s13894_s3 + $0x5d0] sm:$0xf] %vm7192_vm2, %v9097_v55  ;;  %v9620_v60 = vpop.f32.mrb[120].mxu0  ;;  %v9098_v61 = vpack.c.bf16 %v5029_v56, %v5029_v56  ;;  %v9876_v62 = vpop.f32.mrb[120].mxu1 }
 0x1d6   :  { %7312 = vst.msk [vmem:[%s13894_s3 + $0x1dc] sm:$0xf] %vm7192_vm2, %v8844_v57  ;;  %7568 = vst.msk [vmem:[%s13894_s3 + $0x5dc] sm:$0xf] %vm7192_vm2, %v9100_v58  ;;  %v3115_v63 = vadd.f32 %v11932_v53, %v9620_v60  ;;  %v3106_v0 = vpop.f32.mrb[121].mxu0  ;;  %v4139_v2 = vadd.f32 %v11932_v53, %v9876_v62  ;;  %v4130_v3 = vpop.f32.mrb[121].mxu1 }
 0x1d7   :  { %7310 = vst.msk [vmem:[%s13894_s3 + $0x1d4] sm:$0xf] %vm7192_vm2, %v8842_v59  ;;  %7566 = vst.msk [vmem:[%s13894_s3 + $0x5d4] sm:$0xf] %vm7192_vm2, %v9098_v61  ;;  %v3107_v5 = vadd.f32 %v11932_v53, %v3106_v0  ;;  %v9621_v6 = vpop.f32.mrb[122].mxu0  ;;  %v4131_v7 = vadd.f32 %v11932_v53, %v4130_v3  ;;  %v9877_v8 = vpop.f32.mrb[122].mxu1 }
 0x1d8   :  { %v4778_v11 = vmax.f32 %v3115_v63, 0.0  ;;  %v3118_v12 = vadd.f32 %v11932_v53, %v9621_v6  ;;  %v3109_v13 = vpop.f32.mrb[123].mxu0  ;;  %v5034_v14 = vmax.f32 %v4139_v2, 0.0  ;;  %v4142_v15 = vadd.f32 %v11932_v53, %v9877_v8  ;;  %v4133_v16 = vpop.f32.mrb[123].mxu1 }
 0x1d9   :  { %v4776_v17 = vmax.f32 %v3107_v5, 0.0  ;;  %v3110_v18 = vadd.f32 %v11932_v53, %v3109_v13  ;;  %v5032_v19 = vmax.f32 %v4131_v7, 0.0  ;;  %v4134_v20 = vadd.f32 %v11932_v53, %v4133_v16  ;;  %v12553_v7 = vld [vmem:[%s13893_s2] ss:$0 sm:$0xff]  ;;  %v10259_v13 = vld [vmem:[%s13892_s0 + $0x7b8] sm:$0xff]  }
 0x1da   :  { %v8847_v21 = vpack.c.bf16 %v4778_v11, %v4778_v11  ;;  %v4779_v22 = vmax.f32 %v3118_v12, 0.0  ;;  %9727 = vmatmul.mubr.msk.bf16.gmra.mrb[228].mxu0 %vm1825_vm0, %v10249_v1  ;;  %v9103_v23 = vpack.c.bf16 %v5034_v14, %v5034_v14  ;;  %v5035_v24 = vmax.f32 %v4142_v15, 0.0  ;;  %9983 = vmatmul.mubr.msk.bf16.gmra.mrb[228].mxu1 %vm1825_vm0, %v10251_v4 }
 0x1db   :  { %v8845_v25 = vpack.c.bf16 %v4776_v17, %v4776_v17  ;;  %v4777_v26 = vmax.f32 %v3110_v18, 0.0  ;;  %v9101_v27 = vpack.c.bf16 %v5032_v19, %v5032_v19  ;;  %v5033_v28 = vmax.f32 %v4134_v20, 0.0  ;;  %9730 = vmatprep.mubr.msk.bf16.mxu0 %vm1825_vm0, %v10252_v9  ;;  %9986 = vmatprep.mubr.msk.bf16.mxu1 %vm1825_vm0, %v10254_v10  ;;  %v10257_v10 = vld [vmem:[%s13892_s0 + $0x3b8] sm:$0xff]   ;;  %v10260_v18 = vld [vmem:[%s13892_s0 + $0x3c0] sm:$0xff]  }
 0x1dc   :  { %7315 = vst.msk [vmem:[%s13894_s3 + $0x1e8] sm:$0xf] %vm7192_vm2, %v8847_v21  ;;  %v8848_v29 = vpack.c.bf16 %v4779_v22, %v4779_v22  ;;  %7571 = vst.msk [vmem:[%s13894_s3 + $0x5e8] sm:$0xf] %vm7192_vm2, %v9103_v23  ;;  %v9104_v30 = vpack.c.bf16 %v5035_v24, %v5035_v24  ;;  %v10262_v19 = vld [vmem:[%s13892_s0 + $0x7c0] sm:$0xff]  }
 0x1dd   :  { %7313 = vst.msk [vmem:[%s13894_s3 + $0x1e0] sm:$0xf] %vm7192_vm2, %v8845_v25  ;;  %v8846_v31 = vpack.c.bf16 %v4777_v26, %v4777_v26  ;;  %7569 = vst.msk [vmem:[%s13894_s3 + $0x5e0] sm:$0xf] %vm7192_vm2, %v9101_v27  ;;  %v9624_v32 = vpop.f32.mrb[124].mxu0  ;;  %v9102_v33 = vpack.c.bf16 %v5033_v28, %v5033_v28  ;;  %v9880_v34 = vpop.f32.mrb[124].mxu1 }
 0x1de   :  { %7316 = vst.msk [vmem:[%s13894_s3 + $0x1ec] sm:$0xf] %vm7192_vm2, %v8848_v29  ;;  %7572 = vst.msk [vmem:[%s13894_s3 + $0x5ec] sm:$0xf] %vm7192_vm2, %v9104_v30  ;;  %v3131_v35 = vadd.f32 %v11932_v53, %v9624_v32  ;;  %v3122_v36 = vpop.f32.mrb[125].mxu0  ;;  %v4155_v38 = vadd.f32 %v11932_v53, %v9880_v34  ;;  %v4146_v39 = vpop.f32.mrb[125].mxu1 }
 0x1df   :  { %7314 = vst.msk [vmem:[%s13894_s3 + $0x1e4] sm:$0xf] %vm7192_vm2, %v8846_v31  ;;  %7570 = vst.msk [vmem:[%s13894_s3 + $0x5e4] sm:$0xf] %vm7192_vm2, %v9102_v33  ;;  %v3123_v41 = vadd.f32 %v11932_v53, %v3122_v36  ;;  %v9625_v42 = vpop.f32.mrb[126].mxu0  ;;  %v4147_v43 = vadd.f32 %v11932_v53, %v4146_v39  ;;  %v9881_v44 = vpop.f32.mrb[126].mxu1 }
 0x1e0   :  { %v4782_v48 = vmax.f32 %v3131_v35, 0.0  ;;  %v3134_v47 = vadd.f32 %v11932_v53, %v9625_v42  ;;  %v3125_v49 = vpop.f32.mrb[127].mxu0  ;;  %v5038_v50 = vmax.f32 %v4155_v38, 0.0  ;;  %v4158_v52 = vadd.f32 %v11932_v53, %v9881_v44  ;;  %v4149_v51 = vpop.f32.mrb[127].mxu1 }
 0x1e1   :  { %v4780_v54 = vmax.f32 %v3123_v41, 0.0  ;;  %v3126_v55 = vadd.f32 %v11932_v53, %v3125_v49  ;;  %v5036_v56 = vmax.f32 %v4147_v43, 0.0  ;;  %v4150_v57 = vadd.f32 %v11932_v53, %v4149_v51  ;;  %v10263_v49 = vld [vmem:[%s13892_s0 + $0x7c8] sm:$0xff]  }
 0x1e2   :  { %v8851_v58 = vpack.c.bf16 %v4782_v48, %v4782_v48  ;;  %v4783_v59 = vmax.f32 %v3134_v47, 0.0  ;;  %9731 = vmatmul.mubr.msk.bf16.gmra.mrb[232].mxu0 %vm1825_vm0, %v10253_v37  ;;  %v9107_v60 = vpack.c.bf16 %v5038_v50, %v5038_v50  ;;  %v5039_v61 = vmax.f32 %v4158_v52, 0.0  ;;  %9987 = vmatmul.mubr.msk.bf16.gmra.mrb[232].mxu1 %vm1825_vm0, %v10255_v40 }
 0x1e3   :  { %v8849_v62 = vpack.c.bf16 %v4780_v54, %v4780_v54  ;;  %v4781_v63 = vmax.f32 %v3126_v55, 0.0  ;;  %v9105_v0 = vpack.c.bf16 %v5036_v56, %v5036_v56  ;;  %v5037_v1 = vmax.f32 %v4150_v57, 0.0  ;;  %9734 = vmatprep.mubr.msk.bf16.mxu0 %vm1825_vm0, %v10256_v45  ;;  %9990 = vmatprep.mubr.msk.bf16.mxu1 %vm1825_vm0, %v10258_v46  ;;  %v10261_v46 = vld [vmem:[%s13892_s0 + $0x3c8] sm:$0xff]   ;;  %v10264_v55 = vld [vmem:[%s13892_s0 + $0x3d0] sm:$0xff]  }
 0x1e4   :  { %7319 = vst.msk [vmem:[%s13894_s3 + $0x1f8] sm:$0xf] %vm7192_vm2, %v8851_v58  ;;  %v8852_v53 = vpack.c.bf16 %v4783_v59, %v4783_v59  ;;  %7575 = vst.msk [vmem:[%s13894_s3 + $0x5f8] sm:$0xf] %vm7192_vm2, %v9107_v60  ;;  %v9108_v2 = vpack.c.bf16 %v5039_v61, %v5039_v61  ;;  %v10266_v56 = vld [vmem:[%s13892_s0 + $0x7d0] sm:$0xff]  }
 0x1e5   :  { %7317 = vst.msk [vmem:[%s13894_s3 + $0x1f0] sm:$0xf] %vm7192_vm2, %v8849_v62  ;;  %v8850_v3 = vpack.c.bf16 %v4781_v63, %v4781_v63  ;;  %7573 = vst.msk [vmem:[%s13894_s3 + $0x5f0] sm:$0xf] %vm7192_vm2, %v9105_v0  ;;  %v9628_v4 = vpop.f32.mrb[128].mxu0  ;;  %v9106_v5 = vpack.c.bf16 %v5037_v1, %v5037_v1  ;;  %v9884_v6 = vpop.f32.mrb[128].mxu1 }
 0x1e6   :  { %7320 = vst.msk [vmem:[%s13894_s3 + $0x1fc] sm:$0xf] %vm7192_vm2, %v8852_v53  ;;  %7576 = vst.msk [vmem:[%s13894_s3 + $0x5fc] sm:$0xf] %vm7192_vm2, %v9108_v2  ;;  %v3147_v8 = vadd.f32 %v12553_v7, %v9628_v4  ;;  %v3138_v9 = vpop.f32.mrb[129].mxu0  ;;  %v4171_v11 = vadd.f32 %v12553_v7, %v9884_v6  ;;  %v4162_v12 = vpop.f32.mrb[129].mxu1 }
 0x1e7   :  { %7318 = vst.msk [vmem:[%s13894_s3 + $0x1f4] sm:$0xf] %vm7192_vm2, %v8850_v3  ;;  %7574 = vst.msk [vmem:[%s13894_s3 + $0x5f4] sm:$0xf] %vm7192_vm2, %v9106_v5  ;;  %v3139_v14 = vadd.f32 %v12553_v7, %v3138_v9  ;;  %v9629_v15 = vpop.f32.mrb[130].mxu0  ;;  %v4163_v16 = vadd.f32 %v12553_v7, %v4162_v12  ;;  %v9885_v17 = vpop.f32.mrb[130].mxu1 }
 0x1e8   :  { %v4786_v20 = vmax.f32 %v3147_v8, 0.0  ;;  %v3150_v21 = vadd.f32 %v12553_v7, %v9629_v15  ;;  %v3141_v22 = vpop.f32.mrb[131].mxu0  ;;  %v5042_v23 = vmax.f32 %v4171_v11, 0.0  ;;  %v4174_v24 = vadd.f32 %v12553_v7, %v9885_v17  ;;  %v4165_v25 = vpop.f32.mrb[131].mxu1 }
 0x1e9   :  { %v4784_v26 = vmax.f32 %v3139_v14, 0.0  ;;  %v3142_v27 = vadd.f32 %v12553_v7, %v3141_v22  ;;  %v5040_v28 = vmax.f32 %v4163_v16, 0.0  ;;  %v4166_v29 = vadd.f32 %v12553_v7, %v4165_v25  ;;  %v10267_v22 = vld [vmem:[%s13892_s0 + $0x7d8] sm:$0xff]  }
 0x1ea   :  { %v8855_v30 = vpack.c.bf16 %v4786_v20, %v4786_v20  ;;  %v4787_v31 = vmax.f32 %v3150_v21, 0.0  ;;  %9735 = vmatmul.mubr.msk.bf16.gmra.mrb[236].mxu0 %vm1825_vm0, %v10257_v10  ;;  %v9111_v32 = vpack.c.bf16 %v5042_v23, %v5042_v23  ;;  %v5043_v33 = vmax.f32 %v4174_v24, 0.0  ;;  %9991 = vmatmul.mubr.msk.bf16.gmra.mrb[236].mxu1 %vm1825_vm0, %v10259_v13 }
 0x1eb   :  { %v8853_v34 = vpack.c.bf16 %v4784_v26, %v4784_v26  ;;  %v4785_v35 = vmax.f32 %v3142_v27, 0.0  ;;  %v9109_v36 = vpack.c.bf16 %v5040_v28, %v5040_v28  ;;  %v5041_v37 = vmax.f32 %v4166_v29, 0.0  ;;  %9738 = vmatprep.mubr.msk.bf16.mxu0 %vm1825_vm0, %v10260_v18  ;;  %9994 = vmatprep.mubr.msk.bf16.mxu1 %vm1825_vm0, %v10262_v19  ;;  %v10265_v19 = vld [vmem:[%s13892_s0 + $0x3d8] sm:$0xff]   ;;  %v10268_v27 = vld [vmem:[%s13892_s0 + $0x3e0] sm:$0xff]  }
 0x1ec   :  { %7323 = vst.msk [vmem:[%s13894_s3 + $0x208] sm:$0xf] %vm7192_vm2, %v8855_v30  ;;  %v8856_v38 = vpack.c.bf16 %v4787_v31, %v4787_v31  ;;  %7579 = vst.msk [vmem:[%s13894_s3 + $0x608] sm:$0xf] %vm7192_vm2, %v9111_v32  ;;  %v9112_v39 = vpack.c.bf16 %v5043_v33, %v5043_v33  ;;  %v10270_v28 = vld [vmem:[%s13892_s0 + $0x7e0] sm:$0xff]  }
 0x1ed   :  { %7321 = vst.msk [vmem:[%s13894_s3 + $0x200] sm:$0xf] %vm7192_vm2, %v8853_v34  ;;  %v8854_v40 = vpack.c.bf16 %v4785_v35, %v4785_v35  ;;  %7577 = vst.msk [vmem:[%s13894_s3 + $0x600] sm:$0xf] %vm7192_vm2, %v9109_v36  ;;  %v9632_v41 = vpop.f32.mrb[132].mxu0  ;;  %v9110_v42 = vpack.c.bf16 %v5041_v37, %v5041_v37  ;;  %v9888_v43 = vpop.f32.mrb[132].mxu1 }
 0x1ee   :  { %7324 = vst.msk [vmem:[%s13894_s3 + $0x20c] sm:$0xf] %vm7192_vm2, %v8856_v38  ;;  %7580 = vst.msk [vmem:[%s13894_s3 + $0x60c] sm:$0xf] %vm7192_vm2, %v9112_v39  ;;  %v3163_v44 = vadd.f32 %v12553_v7, %v9632_v41  ;;  %v3154_v45 = vpop.f32.mrb[133].mxu0  ;;  %v4187_v48 = vadd.f32 %v12553_v7, %v9888_v43  ;;  %v4178_v47 = vpop.f32.mrb[133].mxu1 }
 0x1ef   :  { %7322 = vst.msk [vmem:[%s13894_s3 + $0x204] sm:$0xf] %vm7192_vm2, %v8854_v40  ;;  %7578 = vst.msk [vmem:[%s13894_s3 + $0x604] sm:$0xf] %vm7192_vm2, %v9110_v42  ;;  %v3155_v50 = vadd.f32 %v12553_v7, %v3154_v45  ;;  %v9633_v52 = vpop.f32.mrb[134].mxu0  ;;  %v4179_v51 = vadd.f32 %v12553_v7, %v4178_v47  ;;  %v9889_v54 = vpop.f32.mrb[134].mxu1 }
 0x1f0   :  { %v4790_v57 = vmax.f32 %v3163_v44, 0.0  ;;  %v3166_v58 = vadd.f32 %v12553_v7, %v9633_v52  ;;  %v3157_v59 = vpop.f32.mrb[135].mxu0  ;;  %v5046_v60 = vmax.f32 %v4187_v48, 0.0  ;;  %v4190_v61 = vadd.f32 %v12553_v7, %v9889_v54  ;;  %v4181_v62 = vpop.f32.mrb[135].mxu1 }
 0x1f1   :  { %v4788_v63 = vmax.f32 %v3155_v50, 0.0  ;;  %v3158_v0 = vadd.f32 %v12553_v7, %v3157_v59  ;;  %v5044_v1 = vmax.f32 %v4179_v51, 0.0  ;;  %v4182_v53 = vadd.f32 %v12553_v7, %v4181_v62  ;;  %v10271_v59 = vld [vmem:[%s13892_s0 + $0x7e8] ss:$0 sps:$4 sm:$0x11]  }
 0x1f2   :  { %v8859_v2 = vpack.c.bf16 %v4790_v57, %v4790_v57  ;;  %v4791_v3 = vmax.f32 %v3166_v58, 0.0  ;;  %9739 = vmatmul.mubr.msk.bf16.gmra.mrb[240].mxu0 %vm1825_vm0, %v10261_v46  ;;  %v9115_v4 = vpack.c.bf16 %v5046_v60, %v5046_v60  ;;  %v5047_v5 = vmax.f32 %v4190_v61, 0.0  ;;  %9995 = vmatmul.mubr.msk.bf16.gmra.mrb[240].mxu1 %vm1825_vm0, %v10263_v49 }
 0x1f3   :  { %v8857_v6 = vpack.c.bf16 %v4788_v63, %v4788_v63  ;;  %v4789_v8 = vmax.f32 %v3158_v0, 0.0  ;;  %v9113_v9 = vpack.c.bf16 %v5044_v1, %v5044_v1  ;;  %v5045_v10 = vmax.f32 %v4182_v53, 0.0  ;;  %9742 = vmatprep.mubr.msk.bf16.mxu0 %vm1825_vm0, %v10264_v55  ;;  %9998 = vmatprep.mubr.msk.bf16.mxu1 %vm1825_vm0, %v10266_v56  ;;  %v10269_v56 = vld [vmem:[%s13892_s0 + $0x3e8] sm:$0xff]   ;;  %v10272_v0 = vld [vmem:[%s13892_s0 + $0x3f0] sm:$0xff]  }
 0x1f4   :  { %7327 = vst.msk [vmem:[%s13894_s3 + $0x218] sm:$0xf] %vm7192_vm2, %v8859_v2  ;;  %v8860_v11 = vpack.c.bf16 %v4791_v3, %v4791_v3  ;;  %7583 = vst.msk [vmem:[%s13894_s3 + $0x618] sm:$0xf] %vm7192_vm2, %v9115_v4  ;;  %v9116_v12 = vpack.c.bf16 %v5047_v5, %v5047_v5 }
 0x1f5   :  { %7325 = vst.msk [vmem:[%s13894_s3 + $0x210] sm:$0xf] %vm7192_vm2, %v8857_v6  ;;  %v8858_v13 = vpack.c.bf16 %v4789_v8, %v4789_v8  ;;  %7581 = vst.msk [vmem:[%s13894_s3 + $0x610] sm:$0xf] %vm7192_vm2, %v9113_v9  ;;  %v9636_v14 = vpop.f32.mrb[136].mxu0  ;;  %v9114_v15 = vpack.c.bf16 %v5045_v10, %v5045_v10  ;;  %v9892_v16 = vpop.f32.mrb[136].mxu1 }
 0x1f6   :  { %7328 = vst.msk [vmem:[%s13894_s3 + $0x21c] sm:$0xf] %vm7192_vm2, %v8860_v11  ;;  %7584 = vst.msk [vmem:[%s13894_s3 + $0x61c] sm:$0xf] %vm7192_vm2, %v9116_v12  ;;  %v3179_v17 = vadd.f32 %v12553_v7, %v9636_v14  ;;  %v3170_v18 = vpop.f32.mrb[137].mxu0  ;;  %v4203_v20 = vadd.f32 %v12553_v7, %v9892_v16  ;;  %v4194_v21 = vpop.f32.mrb[137].mxu1 }
 0x1f7   :  { %7326 = vst.msk [vmem:[%s13894_s3 + $0x214] sm:$0xf] %vm7192_vm2, %v8858_v13  ;;  %7582 = vst.msk [vmem:[%s13894_s3 + $0x614] sm:$0xf] %vm7192_vm2, %v9114_v15  ;;  %v3171_v23 = vadd.f32 %v12553_v7, %v3170_v18  ;;  %v9637_v24 = vpop.f32.mrb[138].mxu0  ;;  %v4195_v25 = vadd.f32 %v12553_v7, %v4194_v21  ;;  %v9893_v26 = vpop.f32.mrb[138].mxu1 }
 0x1f8   :  { %v4794_v29 = vmax.f32 %v3179_v17, 0.0  ;;  %v3182_v30 = vadd.f32 %v12553_v7, %v9637_v24  ;;  %v3173_v31 = vpop.f32.mrb[139].mxu0  ;;  %v5050_v32 = vmax.f32 %v4203_v20, 0.0  ;;  %v4206_v33 = vadd.f32 %v12553_v7, %v9893_v26  ;;  %v4197_v34 = vpop.f32.mrb[139].mxu1 }
 0x1f9   :  { %v4792_v35 = vmax.f32 %v3171_v23, 0.0  ;;  %v3174_v36 = vadd.f32 %v12553_v7, %v3173_v31  ;;  %v5048_v37 = vmax.f32 %v4195_v25, 0.0  ;;  %v4198_v38 = vadd.f32 %v12553_v7, %v4197_v34 }
 0x1fa   :  { %v8863_v39 = vpack.c.bf16 %v4794_v29, %v4794_v29  ;;  %v4795_v40 = vmax.f32 %v3182_v30, 0.0  ;;  %9743 = vmatmul.mubr.msk.bf16.gmra.mrb[244].mxu0 %vm1825_vm0, %v10265_v19  ;;  %v9119_v41 = vpack.c.bf16 %v5050_v32, %v5050_v32  ;;  %v5051_v42 = vmax.f32 %v4206_v33, 0.0  ;;  %9999 = vmatmul.mubr.msk.bf16.gmra.mrb[244].mxu1 %vm1825_vm0, %v10267_v22 }
 0x1fb   :  { %v8861_v43 = vpack.c.bf16 %v4792_v35, %v4792_v35  ;;  %v4793_v44 = vmax.f32 %v3174_v36, 0.0  ;;  %v9117_v45 = vpack.c.bf16 %v5048_v37, %v5048_v37  ;;  %v5049_v46 = vmax.f32 %v4198_v38, 0.0  ;;  %9746 = vmatprep.mubr.msk.bf16.mxu0 %vm1825_vm0, %v10268_v27  ;;  %10002 = vmatprep.mubr.msk.bf16.mxu1 %vm1825_vm0, %v10270_v28  ;;  %v10273_v27 = vld [vmem:[%s13892_s0 + $0x3f8] sm:$0xff]  }
 0x1fc   :  { %7331 = vst.msk [vmem:[%s13894_s3 + $0x228] sm:$0xf] %vm7192_vm2, %v8863_v39  ;;  %v8864_v48 = vpack.c.bf16 %v4795_v40, %v4795_v40  ;;  %7587 = vst.msk [vmem:[%s13894_s3 + $0x628] sm:$0xf] %vm7192_vm2, %v9119_v41  ;;  %v9120_v47 = vpack.c.bf16 %v5051_v42, %v5051_v42 }
 0x1fd   :  { %7329 = vst.msk [vmem:[%s13894_s3 + $0x220] sm:$0xf] %vm7192_vm2, %v8861_v43  ;;  %v8862_v49 = vpack.c.bf16 %v4793_v44, %v4793_v44  ;;  %7585 = vst.msk [vmem:[%s13894_s3 + $0x620] sm:$0xf] %vm7192_vm2, %v9117_v45  ;;  %v9640_v50 = vpop.f32.mrb[140].mxu0  ;;  %v9118_v52 = vpack.c.bf16 %v5049_v46, %v5049_v46  ;;  %v9896_v51 = vpop.f32.mrb[140].mxu1 }
 0x1fe   :  { %7332 = vst.msk [vmem:[%s13894_s3 + $0x22c] sm:$0xf] %vm7192_vm2, %v8864_v48  ;;  %7588 = vst.msk [vmem:[%s13894_s3 + $0x62c] sm:$0xf] %vm7192_vm2, %v9120_v47  ;;  %v3195_v54 = vadd.f32 %v12553_v7, %v9640_v50  ;;  %v3186_v55 = vpop.f32.mrb[141].mxu0  ;;  %v4219_v57 = vadd.f32 %v12553_v7, %v9896_v51  ;;  %v4210_v58 = vpop.f32.mrb[141].mxu1 }
 0x1ff   :  { %7330 = vst.msk [vmem:[%s13894_s3 + $0x224] sm:$0xf] %vm7192_vm2, %v8862_v49  ;;  %7586 = vst.msk [vmem:[%s13894_s3 + $0x624] sm:$0xf] %vm7192_vm2, %v9118_v52  ;;  %v3187_v60 = vadd.f32 %v12553_v7, %v3186_v55  ;;  %v9641_v61 = vpop.f32.mrb[142].mxu0  ;;  %v4211_v62 = vadd.f32 %v12553_v7, %v4210_v58  ;;  %v9897_v63 = vpop.f32.mrb[142].mxu1 }
 0x200   :  { %v4798_v1 = vmax.f32 %v3195_v54, 0.0  ;;  %v3198_v53 = vadd.f32 %v12553_v7, %v9641_v61  ;;  %v3189_v2 = vpop.f32.mrb[143].mxu0  ;;  %v5054_v3 = vmax.f32 %v4219_v57, 0.0  ;;  %v4222_v4 = vadd.f32 %v12553_v7, %v9897_v63  ;;  %v4213_v5 = vpop.f32.mrb[143].mxu1 }
 0x201   :  { %v4796_v6 = vmax.f32 %v3187_v60, 0.0  ;;  %v3190_v8 = vadd.f32 %v12553_v7, %v3189_v2  ;;  %v5052_v9 = vmax.f32 %v4211_v62, 0.0  ;;  %v4214_v10 = vadd.f32 %v12553_v7, %v4213_v5 }
 0x202   :  { %v8867_v11 = vpack.c.bf16 %v4798_v1, %v4798_v1  ;;  %v4799_v12 = vmax.f32 %v3198_v53, 0.0  ;;  %9747 = vmatmul.mubr.msk.bf16.gmra.mrb[248].mxu0 %vm1825_vm0, %v10269_v56  ;;  %v9123_v13 = vpack.c.bf16 %v5054_v3, %v5054_v3  ;;  %v5055_v14 = vmax.f32 %v4222_v4, 0.0  ;;  %10003 = vmatmul.mubr.msk.bf16.gmra.mrb[248].mxu1 %vm1825_vm0, %v10271_v59 }
 0x203   :  { %v8865_v15 = vpack.c.bf16 %v4796_v6, %v4796_v6  ;;  %v4797_v16 = vmax.f32 %v3190_v8, 0.0  ;;  %v9121_v17 = vpack.c.bf16 %v5052_v9, %v5052_v9  ;;  %v5053_v18 = vmax.f32 %v4214_v10, 0.0  ;;  %9750 = vmatprep.mubr.msk.bf16.mxu0 %vm1825_vm0, %v10272_v0 }
 0x204   :  { %7335 = vst.msk [vmem:[%s13894_s3 + $0x238] sm:$0xf] %vm7192_vm2, %v8867_v11  ;;  %v8868_v19 = vpack.c.bf16 %v4799_v12, %v4799_v12  ;;  %7591 = vst.msk [vmem:[%s13894_s3 + $0x638] sm:$0xf] %vm7192_vm2, %v9123_v13  ;;  %v9124_v20 = vpack.c.bf16 %v5055_v14, %v5055_v14 }
 0x205   :  { %7333 = vst.msk [vmem:[%s13894_s3 + $0x230] sm:$0xf] %vm7192_vm2, %v8865_v15  ;;  %v8866_v21 = vpack.c.bf16 %v4797_v16, %v4797_v16  ;;  %7589 = vst.msk [vmem:[%s13894_s3 + $0x630] sm:$0xf] %vm7192_vm2, %v9121_v17  ;;  %v9644_v22 = vpop.f32.mrb[144].mxu0  ;;  %v9122_v23 = vpack.c.bf16 %v5053_v18, %v5053_v18  ;;  %v9900_v24 = vpop.f32.mrb[144].mxu1 }
 0x206   :  { %7336 = vst.msk [vmem:[%s13894_s3 + $0x23c] sm:$0xf] %vm7192_vm2, %v8868_v19  ;;  %7592 = vst.msk [vmem:[%s13894_s3 + $0x63c] sm:$0xf] %vm7192_vm2, %v9124_v20  ;;  %v3211_v25 = vadd.f32 %v12553_v7, %v9644_v22  ;;  %v3202_v26 = vpop.f32.mrb[145].mxu0  ;;  %v4235_v28 = vadd.f32 %v12553_v7, %v9900_v24  ;;  %v4226_v29 = vpop.f32.mrb[145].mxu1 }
 0x207   :  { %7334 = vst.msk [vmem:[%s13894_s3 + $0x234] sm:$0xf] %vm7192_vm2, %v8866_v21  ;;  %7590 = vst.msk [vmem:[%s13894_s3 + $0x634] sm:$0xf] %vm7192_vm2, %v9122_v23  ;;  %v3203_v30 = vadd.f32 %v12553_v7, %v3202_v26  ;;  %v9645_v31 = vpop.f32.mrb[146].mxu0  ;;  %v4227_v32 = vadd.f32 %v12553_v7, %v4226_v29  ;;  %v9901_v33 = vpop.f32.mrb[146].mxu1 }
 0x208   :  { %v4802_v34 = vmax.f32 %v3211_v25, 0.0  ;;  %v3214_v35 = vadd.f32 %v12553_v7, %v9645_v31  ;;  %v3205_v36 = vpop.f32.mrb[147].mxu0  ;;  %v5058_v37 = vmax.f32 %v4235_v28, 0.0  ;;  %v4238_v38 = vadd.f32 %v12553_v7, %v9901_v33  ;;  %v4229_v39 = vpop.f32.mrb[147].mxu1 }
 0x209   :  { %v4800_v40 = vmax.f32 %v3203_v30, 0.0  ;;  %v3206_v41 = vadd.f32 %v12553_v7, %v3205_v36  ;;  %v5056_v42 = vmax.f32 %v4227_v32, 0.0  ;;  %v4230_v43 = vadd.f32 %v12553_v7, %v4229_v39 }
 0x20a   :  { %v8871_v44 = vpack.c.bf16 %v4802_v34, %v4802_v34  ;;  %v4803_v45 = vmax.f32 %v3214_v35, 0.0  ;;  %9751 = vmatmul.mubr.msk.bf16.gmra.mrb[252].mxu0 %vm1825_vm0, %v10273_v27  ;;  %v9127_v46 = vpack.c.bf16 %v5058_v37, %v5058_v37  ;;  %v5059_v48 = vmax.f32 %v4238_v38, 0.0 }
 0x20b   :  { %v8869_v47 = vpack.c.bf16 %v4800_v40, %v4800_v40  ;;  %v4801_v49 = vmax.f32 %v3206_v41, 0.0  ;;  %v9125_v50 = vpack.c.bf16 %v5056_v42, %v5056_v42  ;;  %v5057_v52 = vmax.f32 %v4230_v43, 0.0 }
 0x20c   :  { %7339 = vst.msk [vmem:[%s13894_s3 + $0x248] sm:$0xf] %vm7192_vm2, %v8871_v44  ;;  %v8872_v51 = vpack.c.bf16 %v4803_v45, %v4803_v45  ;;  %7595 = vst.msk [vmem:[%s13894_s3 + $0x648] sm:$0xf] %vm7192_vm2, %v9127_v46  ;;  %v9128_v54 = vpack.c.bf16 %v5059_v48, %v5059_v48 }
 0x20d   :  { %7337 = vst.msk [vmem:[%s13894_s3 + $0x240] sm:$0xf] %vm7192_vm2, %v8869_v47  ;;  %v8870_v55 = vpack.c.bf16 %v4801_v49, %v4801_v49  ;;  %7593 = vst.msk [vmem:[%s13894_s3 + $0x640] sm:$0xf] %vm7192_vm2, %v9125_v50  ;;  %v9648_v56 = vpop.f32.mrb[148].mxu0  ;;  %v9126_v57 = vpack.c.bf16 %v5057_v52, %v5057_v52  ;;  %v9904_v58 = vpop.f32.mrb[148].mxu1 }
 0x20e   :  { %7340 = vst.msk [vmem:[%s13894_s3 + $0x24c] sm:$0xf] %vm7192_vm2, %v8872_v51  ;;  %7596 = vst.msk [vmem:[%s13894_s3 + $0x64c] sm:$0xf] %vm7192_vm2, %v9128_v54  ;;  %v3227_v59 = vadd.f32 %v12553_v7, %v9648_v56  ;;  %v3218_v60 = vpop.f32.mrb[149].mxu0  ;;  %v4251_v61 = vadd.f32 %v12553_v7, %v9904_v58  ;;  %v4242_v62 = vpop.f32.mrb[149].mxu1 }
 0x20f   :  { %7338 = vst.msk [vmem:[%s13894_s3 + $0x244] sm:$0xf] %vm7192_vm2, %v8870_v55  ;;  %7594 = vst.msk [vmem:[%s13894_s3 + $0x644] sm:$0xf] %vm7192_vm2, %v9126_v57  ;;  %v3219_v63 = vadd.f32 %v12553_v7, %v3218_v60  ;;  %v9649_v0 = vpop.f32.mrb[150].mxu0  ;;  %v4243_v1 = vadd.f32 %v12553_v7, %v4242_v62  ;;  %v9905_v53 = vpop.f32.mrb[150].mxu1 }
 0x210   :  { %v4806_v2 = vmax.f32 %v3227_v59, 0.0  ;;  %v3230_v3 = vadd.f32 %v12553_v7, %v9649_v0  ;;  %v3221_v4 = vpop.f32.mrb[151].mxu0  ;;  %v5062_v5 = vmax.f32 %v4251_v61, 0.0  ;;  %v4254_v6 = vadd.f32 %v12553_v7, %v9905_v53  ;;  %v4245_v8 = vpop.f32.mrb[151].mxu1 }
 0x211   :  { %v4804_v9 = vmax.f32 %v3219_v63, 0.0  ;;  %v3222_v10 = vadd.f32 %v12553_v7, %v3221_v4  ;;  %v5060_v11 = vmax.f32 %v4243_v1, 0.0  ;;  %v4246_v12 = vadd.f32 %v12553_v7, %v4245_v8 }
 0x212   :  { %v8875_v13 = vpack.c.bf16 %v4806_v2, %v4806_v2  ;;  %v4807_v14 = vmax.f32 %v3230_v3, 0.0  ;;  %v9131_v15 = vpack.c.bf16 %v5062_v5, %v5062_v5  ;;  %v5063_v16 = vmax.f32 %v4254_v6, 0.0 }
 0x213   :  { %v8873_v17 = vpack.c.bf16 %v4804_v9, %v4804_v9  ;;  %v4805_v18 = vmax.f32 %v3222_v10, 0.0  ;;  %v9129_v19 = vpack.c.bf16 %v5060_v11, %v5060_v11  ;;  %v5061_v20 = vmax.f32 %v4246_v12, 0.0 }
 0x214   :  { %7343 = vst.msk [vmem:[%s13894_s3 + $0x258] sm:$0xf] %vm7192_vm2, %v8875_v13  ;;  %v8876_v21 = vpack.c.bf16 %v4807_v14, %v4807_v14  ;;  %7599 = vst.msk [vmem:[%s13894_s3 + $0x658] sm:$0xf] %vm7192_vm2, %v9131_v15  ;;  %v9132_v22 = vpack.c.bf16 %v5063_v16, %v5063_v16 }
 0x215   :  { %7341 = vst.msk [vmem:[%s13894_s3 + $0x250] sm:$0xf] %vm7192_vm2, %v8873_v17  ;;  %v8874_v23 = vpack.c.bf16 %v4805_v18, %v4805_v18  ;;  %7597 = vst.msk [vmem:[%s13894_s3 + $0x650] sm:$0xf] %vm7192_vm2, %v9129_v19  ;;  %v9652_v24 = vpop.f32.mrb[152].mxu0  ;;  %v9130_v25 = vpack.c.bf16 %v5061_v20, %v5061_v20  ;;  %v9908_v26 = vpop.f32.mrb[152].mxu1 }
 0x216   :  { %7344 = vst.msk [vmem:[%s13894_s3 + $0x25c] sm:$0xf] %vm7192_vm2, %v8876_v21  ;;  %7600 = vst.msk [vmem:[%s13894_s3 + $0x65c] sm:$0xf] %vm7192_vm2, %v9132_v22  ;;  %v3243_v27 = vadd.f32 %v12553_v7, %v9652_v24  ;;  %v3234_v28 = vpop.f32.mrb[153].mxu0  ;;  %v4267_v29 = vadd.f32 %v12553_v7, %v9908_v26  ;;  %v4258_v30 = vpop.f32.mrb[153].mxu1 }
 0x217   :  { %7342 = vst.msk [vmem:[%s13894_s3 + $0x254] sm:$0xf] %vm7192_vm2, %v8874_v23  ;;  %7598 = vst.msk [vmem:[%s13894_s3 + $0x654] sm:$0xf] %vm7192_vm2, %v9130_v25  ;;  %v3235_v31 = vadd.f32 %v12553_v7, %v3234_v28  ;;  %v9653_v32 = vpop.f32.mrb[154].mxu0  ;;  %v4259_v33 = vadd.f32 %v12553_v7, %v4258_v30  ;;  %v9909_v34 = vpop.f32.mrb[154].mxu1 }
 0x218   :  { %v4810_v35 = vmax.f32 %v3243_v27, 0.0  ;;  %v3246_v36 = vadd.f32 %v12553_v7, %v9653_v32  ;;  %v3237_v37 = vpop.f32.mrb[155].mxu0  ;;  %v5066_v38 = vmax.f32 %v4267_v29, 0.0  ;;  %v4270_v39 = vadd.f32 %v12553_v7, %v9909_v34  ;;  %v4261_v40 = vpop.f32.mrb[155].mxu1 }
 0x219   :  { %v4808_v41 = vmax.f32 %v3235_v31, 0.0  ;;  %v3238_v42 = vadd.f32 %v12553_v7, %v3237_v37  ;;  %v5064_v43 = vmax.f32 %v4259_v33, 0.0  ;;  %v4262_v44 = vadd.f32 %v12553_v7, %v4261_v40 }
 0x21a   :  { %v8879_v45 = vpack.c.bf16 %v4810_v35, %v4810_v35  ;;  %v4811_v46 = vmax.f32 %v3246_v36, 0.0  ;;  %v9135_v48 = vpack.c.bf16 %v5066_v38, %v5066_v38  ;;  %v5067_v47 = vmax.f32 %v4270_v39, 0.0 }
 0x21b   :  { %v8877_v49 = vpack.c.bf16 %v4808_v41, %v4808_v41  ;;  %v4809_v50 = vmax.f32 %v3238_v42, 0.0  ;;  %v9133_v52 = vpack.c.bf16 %v5064_v43, %v5064_v43  ;;  %v5065_v51 = vmax.f32 %v4262_v44, 0.0 }
 0x21c   :  { %7347 = vst.msk [vmem:[%s13894_s3 + $0x268] sm:$0xf] %vm7192_vm2, %v8879_v45  ;;  %v8880_v54 = vpack.c.bf16 %v4811_v46, %v4811_v46  ;;  %7603 = vst.msk [vmem:[%s13894_s3 + $0x668] sm:$0xf] %vm7192_vm2, %v9135_v48  ;;  %v9136_v55 = vpack.c.bf16 %v5067_v47, %v5067_v47 }
 0x21d   :  { %7345 = vst.msk [vmem:[%s13894_s3 + $0x260] sm:$0xf] %vm7192_vm2, %v8877_v49  ;;  %v8878_v56 = vpack.c.bf16 %v4809_v50, %v4809_v50  ;;  %7601 = vst.msk [vmem:[%s13894_s3 + $0x660] sm:$0xf] %vm7192_vm2, %v9133_v52  ;;  %v9656_v57 = vpop.f32.mrb[156].mxu0  ;;  %v9134_v58 = vpack.c.bf16 %v5065_v51, %v5065_v51  ;;  %v9912_v59 = vpop.f32.mrb[156].mxu1 }
 0x21e   :  { %7348 = vst.msk [vmem:[%s13894_s3 + $0x26c] sm:$0xf] %vm7192_vm2, %v8880_v54  ;;  %7604 = vst.msk [vmem:[%s13894_s3 + $0x66c] sm:$0xf] %vm7192_vm2, %v9136_v55  ;;  %v3259_v60 = vadd.f32 %v12553_v7, %v9656_v57  ;;  %v3250_v61 = vpop.f32.mrb[157].mxu0  ;;  %v4283_v62 = vadd.f32 %v12553_v7, %v9912_v59  ;;  %v4274_v63 = vpop.f32.mrb[157].mxu1 }
 0x21f   :  { %7346 = vst.msk [vmem:[%s13894_s3 + $0x264] sm:$0xf] %vm7192_vm2, %v8878_v56  ;;  %7602 = vst.msk [vmem:[%s13894_s3 + $0x664] sm:$0xf] %vm7192_vm2, %v9134_v58  ;;  %v3251_v0 = vadd.f32 %v12553_v7, %v3250_v61  ;;  %v9657_v1 = vpop.f32.mrb[158].mxu0  ;;  %v4275_v53 = vadd.f32 %v12553_v7, %v4274_v63  ;;  %v9913_v2 = vpop.f32.mrb[158].mxu1 }
 0x220   :  { %v4814_v3 = vmax.f32 %v3259_v60, 0.0  ;;  %v3262_v4 = vadd.f32 %v12553_v7, %v9657_v1  ;;  %v3253_v5 = vpop.f32.mrb[159].mxu0  ;;  %v5070_v6 = vmax.f32 %v4283_v62, 0.0  ;;  %v4286_v8 = vadd.f32 %v12553_v7, %v9913_v2  ;;  %v4277_v9 = vpop.f32.mrb[159].mxu1 }
 0x221   :  { %v4812_v10 = vmax.f32 %v3251_v0, 0.0  ;;  %v3254_v11 = vadd.f32 %v12553_v7, %v3253_v5  ;;  %v5068_v12 = vmax.f32 %v4275_v53, 0.0  ;;  %v4278_v13 = vadd.f32 %v12553_v7, %v4277_v9 }
 0x222   :  { %v8883_v14 = vpack.c.bf16 %v4814_v3, %v4814_v3  ;;  %v4815_v15 = vmax.f32 %v3262_v4, 0.0  ;;  %v9139_v16 = vpack.c.bf16 %v5070_v6, %v5070_v6  ;;  %v5071_v17 = vmax.f32 %v4286_v8, 0.0 }
 0x223   :  { %v8881_v18 = vpack.c.bf16 %v4812_v10, %v4812_v10  ;;  %v4813_v19 = vmax.f32 %v3254_v11, 0.0  ;;  %v9137_v20 = vpack.c.bf16 %v5068_v12, %v5068_v12  ;;  %v5069_v21 = vmax.f32 %v4278_v13, 0.0 }
 0x224   :  { %7351 = vst.msk [vmem:[%s13894_s3 + $0x278] sm:$0xf] %vm7192_vm2, %v8883_v14  ;;  %v8884_v22 = vpack.c.bf16 %v4815_v15, %v4815_v15  ;;  %7607 = vst.msk [vmem:[%s13894_s3 + $0x678] sm:$0xf] %vm7192_vm2, %v9139_v16  ;;  %v9140_v23 = vpack.c.bf16 %v5071_v17, %v5071_v17 }
 0x225   :  { %7349 = vst.msk [vmem:[%s13894_s3 + $0x270] sm:$0xf] %vm7192_vm2, %v8881_v18  ;;  %v8882_v24 = vpack.c.bf16 %v4813_v19, %v4813_v19  ;;  %7605 = vst.msk [vmem:[%s13894_s3 + $0x670] sm:$0xf] %vm7192_vm2, %v9137_v20  ;;  %v9660_v25 = vpop.f32.mrb[160].mxu0  ;;  %v9138_v26 = vpack.c.bf16 %v5069_v21, %v5069_v21  ;;  %v9916_v27 = vpop.f32.mrb[160].mxu1 }
 0x226   :  { %7352 = vst.msk [vmem:[%s13894_s3 + $0x27c] sm:$0xf] %vm7192_vm2, %v8884_v22  ;;  %7608 = vst.msk [vmem:[%s13894_s3 + $0x67c] sm:$0xf] %vm7192_vm2, %v9140_v23  ;;  %v3275_v28 = vadd.f32 %v12553_v7, %v9660_v25  ;;  %v3266_v29 = vpop.f32.mrb[161].mxu0  ;;  %v4299_v30 = vadd.f32 %v12553_v7, %v9916_v27  ;;  %v4290_v31 = vpop.f32.mrb[161].mxu1 }
 0x227   :  { %7350 = vst.msk [vmem:[%s13894_s3 + $0x274] sm:$0xf] %vm7192_vm2, %v8882_v24  ;;  %7606 = vst.msk [vmem:[%s13894_s3 + $0x674] sm:$0xf] %vm7192_vm2, %v9138_v26  ;;  %v3267_v32 = vadd.f32 %v12553_v7, %v3266_v29  ;;  %v9661_v33 = vpop.f32.mrb[162].mxu0  ;;  %v4291_v34 = vadd.f32 %v12553_v7, %v4290_v31  ;;  %v9917_v35 = vpop.f32.mrb[162].mxu1 }
 0x228   :  { %v4818_v36 = vmax.f32 %v3275_v28, 0.0  ;;  %v3278_v37 = vadd.f32 %v12553_v7, %v9661_v33  ;;  %v3269_v38 = vpop.f32.mrb[163].mxu0  ;;  %v5074_v39 = vmax.f32 %v4299_v30, 0.0  ;;  %v4302_v40 = vadd.f32 %v12553_v7, %v9917_v35  ;;  %v4293_v41 = vpop.f32.mrb[163].mxu1 }
 0x229   :  { %v4816_v42 = vmax.f32 %v3267_v32, 0.0  ;;  %v3270_v43 = vadd.f32 %v12553_v7, %v3269_v38  ;;  %v5072_v44 = vmax.f32 %v4291_v34, 0.0  ;;  %v4294_v45 = vadd.f32 %v12553_v7, %v4293_v41 }
 0x22a   :  { %v8887_v46 = vpack.c.bf16 %v4818_v36, %v4818_v36  ;;  %v4819_v48 = vmax.f32 %v3278_v37, 0.0  ;;  %v9143_v47 = vpack.c.bf16 %v5074_v39, %v5074_v39  ;;  %v5075_v49 = vmax.f32 %v4302_v40, 0.0 }
 0x22b   :  { %v8885_v50 = vpack.c.bf16 %v4816_v42, %v4816_v42  ;;  %v4817_v52 = vmax.f32 %v3270_v43, 0.0  ;;  %v9141_v51 = vpack.c.bf16 %v5072_v44, %v5072_v44  ;;  %v5073_v54 = vmax.f32 %v4294_v45, 0.0 }
 0x22c   :  { %7355 = vst.msk [vmem:[%s13894_s3 + $0x288] sm:$0xf] %vm7192_vm2, %v8887_v46  ;;  %v8888_v55 = vpack.c.bf16 %v4819_v48, %v4819_v48  ;;  %7611 = vst.msk [vmem:[%s13894_s3 + $0x688] sm:$0xf] %vm7192_vm2, %v9143_v47  ;;  %v9144_v56 = vpack.c.bf16 %v5075_v49, %v5075_v49 }
 0x22d   :  { %7353 = vst.msk [vmem:[%s13894_s3 + $0x280] sm:$0xf] %vm7192_vm2, %v8885_v50  ;;  %v8886_v57 = vpack.c.bf16 %v4817_v52, %v4817_v52  ;;  %7609 = vst.msk [vmem:[%s13894_s3 + $0x680] sm:$0xf] %vm7192_vm2, %v9141_v51  ;;  %v9664_v58 = vpop.f32.mrb[164].mxu0  ;;  %v9142_v59 = vpack.c.bf16 %v5073_v54, %v5073_v54  ;;  %v9920_v60 = vpop.f32.mrb[164].mxu1 }
 0x22e   :  { %7356 = vst.msk [vmem:[%s13894_s3 + $0x28c] sm:$0xf] %vm7192_vm2, %v8888_v55  ;;  %7612 = vst.msk [vmem:[%s13894_s3 + $0x68c] sm:$0xf] %vm7192_vm2, %v9144_v56  ;;  %v3291_v61 = vadd.f32 %v12553_v7, %v9664_v58  ;;  %v3282_v62 = vpop.f32.mrb[165].mxu0  ;;  %v4315_v63 = vadd.f32 %v12553_v7, %v9920_v60  ;;  %v4306_v0 = vpop.f32.mrb[165].mxu1 }
 0x22f   :  { %7354 = vst.msk [vmem:[%s13894_s3 + $0x284] sm:$0xf] %vm7192_vm2, %v8886_v57  ;;  %7610 = vst.msk [vmem:[%s13894_s3 + $0x684] sm:$0xf] %vm7192_vm2, %v9142_v59  ;;  %v3283_v1 = vadd.f32 %v12553_v7, %v3282_v62  ;;  %v9665_v53 = vpop.f32.mrb[166].mxu0  ;;  %v4307_v2 = vadd.f32 %v12553_v7, %v4306_v0  ;;  %v9921_v3 = vpop.f32.mrb[166].mxu1 }
 0x230   :  { %v4822_v4 = vmax.f32 %v3291_v61, 0.0  ;;  %v3294_v5 = vadd.f32 %v12553_v7, %v9665_v53  ;;  %v3285_v6 = vpop.f32.mrb[167].mxu0  ;;  %v5078_v8 = vmax.f32 %v4315_v63, 0.0  ;;  %v4318_v9 = vadd.f32 %v12553_v7, %v9921_v3  ;;  %v4309_v10 = vpop.f32.mrb[167].mxu1 }
 0x231   :  { %v4820_v11 = vmax.f32 %v3283_v1, 0.0  ;;  %v3286_v12 = vadd.f32 %v12553_v7, %v3285_v6  ;;  %v5076_v13 = vmax.f32 %v4307_v2, 0.0  ;;  %v4310_v14 = vadd.f32 %v12553_v7, %v4309_v10 }
 0x232   :  { %v8891_v15 = vpack.c.bf16 %v4822_v4, %v4822_v4  ;;  %v4823_v16 = vmax.f32 %v3294_v5, 0.0  ;;  %v9147_v17 = vpack.c.bf16 %v5078_v8, %v5078_v8  ;;  %v5079_v18 = vmax.f32 %v4318_v9, 0.0 }
 0x233   :  { %v8889_v19 = vpack.c.bf16 %v4820_v11, %v4820_v11  ;;  %v4821_v20 = vmax.f32 %v3286_v12, 0.0  ;;  %v9145_v21 = vpack.c.bf16 %v5076_v13, %v5076_v13  ;;  %v5077_v22 = vmax.f32 %v4310_v14, 0.0 }
 0x234   :  { %7359 = vst.msk [vmem:[%s13894_s3 + $0x298] sm:$0xf] %vm7192_vm2, %v8891_v15  ;;  %v8892_v23 = vpack.c.bf16 %v4823_v16, %v4823_v16  ;;  %7615 = vst.msk [vmem:[%s13894_s3 + $0x698] sm:$0xf] %vm7192_vm2, %v9147_v17  ;;  %v9148_v24 = vpack.c.bf16 %v5079_v18, %v5079_v18 }
 0x235   :  { %7357 = vst.msk [vmem:[%s13894_s3 + $0x290] sm:$0xf] %vm7192_vm2, %v8889_v19  ;;  %v8890_v25 = vpack.c.bf16 %v4821_v20, %v4821_v20  ;;  %7613 = vst.msk [vmem:[%s13894_s3 + $0x690] sm:$0xf] %vm7192_vm2, %v9145_v21  ;;  %v9668_v26 = vpop.f32.mrb[168].mxu0  ;;  %v9146_v27 = vpack.c.bf16 %v5077_v22, %v5077_v22  ;;  %v9924_v28 = vpop.f32.mrb[168].mxu1 }
 0x236   :  { %7360 = vst.msk [vmem:[%s13894_s3 + $0x29c] sm:$0xf] %vm7192_vm2, %v8892_v23  ;;  %7616 = vst.msk [vmem:[%s13894_s3 + $0x69c] sm:$0xf] %vm7192_vm2, %v9148_v24  ;;  %v3307_v29 = vadd.f32 %v12553_v7, %v9668_v26  ;;  %v3298_v30 = vpop.f32.mrb[169].mxu0  ;;  %v4331_v31 = vadd.f32 %v12553_v7, %v9924_v28  ;;  %v4322_v32 = vpop.f32.mrb[169].mxu1 }
 0x237   :  { %7358 = vst.msk [vmem:[%s13894_s3 + $0x294] sm:$0xf] %vm7192_vm2, %v8890_v25  ;;  %7614 = vst.msk [vmem:[%s13894_s3 + $0x694] sm:$0xf] %vm7192_vm2, %v9146_v27  ;;  %v3299_v33 = vadd.f32 %v12553_v7, %v3298_v30  ;;  %v9669_v34 = vpop.f32.mrb[170].mxu0  ;;  %v4323_v35 = vadd.f32 %v12553_v7, %v4322_v32  ;;  %v9925_v36 = vpop.f32.mrb[170].mxu1 }
 0x238   :  { %v4826_v37 = vmax.f32 %v3307_v29, 0.0  ;;  %v3310_v38 = vadd.f32 %v12553_v7, %v9669_v34  ;;  %v3301_v39 = vpop.f32.mrb[171].mxu0  ;;  %v5082_v40 = vmax.f32 %v4331_v31, 0.0  ;;  %v4334_v41 = vadd.f32 %v12553_v7, %v9925_v36  ;;  %v4325_v42 = vpop.f32.mrb[171].mxu1  ;;  %v13102_v29 = vld [vmem:[%s13893_s2] ss:$0 sm:$0xff] }
 0x239   :  { %v4824_v43 = vmax.f32 %v3299_v33, 0.0  ;;  %v3302_v44 = vadd.f32 %v12553_v7, %v3301_v39  ;;  %v5080_v45 = vmax.f32 %v4323_v35, 0.0  ;;  %v4326_v46 = vadd.f32 %v12553_v7, %v4325_v42 }
 0x23a   :  { %v8895_v48 = vpack.c.bf16 %v4826_v37, %v4826_v37  ;;  %v4827_v47 = vmax.f32 %v3310_v38, 0.0  ;;  %v9151_v49 = vpack.c.bf16 %v5082_v40, %v5082_v40  ;;  %v5083_v50 = vmax.f32 %v4334_v41, 0.0 }
 0x23b   :  { %v8893_v52 = vpack.c.bf16 %v4824_v43, %v4824_v43  ;;  %v4825_v51 = vmax.f32 %v3302_v44, 0.0  ;;  %v9149_v54 = vpack.c.bf16 %v5080_v45, %v5080_v45  ;;  %v5081_v55 = vmax.f32 %v4326_v46, 0.0 }
 0x23c   :  { %7363 = vst.msk [vmem:[%s13894_s3 + $0x2a8] sm:$0xf] %vm7192_vm2, %v8895_v48  ;;  %v8896_v56 = vpack.c.bf16 %v4827_v47, %v4827_v47  ;;  %7619 = vst.msk [vmem:[%s13894_s3 + $0x6a8] sm:$0xf] %vm7192_vm2, %v9151_v49  ;;  %v9152_v57 = vpack.c.bf16 %v5083_v50, %v5083_v50 }
 0x23d   :  { %7361 = vst.msk [vmem:[%s13894_s3 + $0x2a0] sm:$0xf] %vm7192_vm2, %v8893_v52  ;;  %v8894_v58 = vpack.c.bf16 %v4825_v51, %v4825_v51  ;;  %7617 = vst.msk [vmem:[%s13894_s3 + $0x6a0] sm:$0xf] %vm7192_vm2, %v9149_v54  ;;  %v9672_v59 = vpop.f32.mrb[172].mxu0  ;;  %v9150_v60 = vpack.c.bf16 %v5081_v55, %v5081_v55  ;;  %v9928_v61 = vpop.f32.mrb[172].mxu1 }
 0x23e   :  { %7364 = vst.msk [vmem:[%s13894_s3 + $0x2ac] sm:$0xf] %vm7192_vm2, %v8896_v56  ;;  %7620 = vst.msk [vmem:[%s13894_s3 + $0x6ac] sm:$0xf] %vm7192_vm2, %v9152_v57  ;;  %v3323_v62 = vadd.f32 %v12553_v7, %v9672_v59  ;;  %v3314_v63 = vpop.f32.mrb[173].mxu0  ;;  %v4347_v0 = vadd.f32 %v12553_v7, %v9928_v61  ;;  %v4338_v1 = vpop.f32.mrb[173].mxu1 }
 0x23f   :  { %7362 = vst.msk [vmem:[%s13894_s3 + $0x2a4] sm:$0xf] %vm7192_vm2, %v8894_v58  ;;  %7618 = vst.msk [vmem:[%s13894_s3 + $0x6a4] sm:$0xf] %vm7192_vm2, %v9150_v60  ;;  %v3315_v53 = vadd.f32 %v12553_v7, %v3314_v63  ;;  %v9673_v2 = vpop.f32.mrb[174].mxu0  ;;  %v4339_v3 = vadd.f32 %v12553_v7, %v4338_v1  ;;  %v9929_v4 = vpop.f32.mrb[174].mxu1 }
 0x240   :  { %v4830_v5 = vmax.f32 %v3323_v62, 0.0  ;;  %v3326_v6 = vadd.f32 %v12553_v7, %v9673_v2  ;;  %v3317_v8 = vpop.f32.mrb[175].mxu0  ;;  %v5086_v9 = vmax.f32 %v4347_v0, 0.0  ;;  %v4350_v10 = vadd.f32 %v12553_v7, %v9929_v4  ;;  %v4341_v11 = vpop.f32.mrb[175].mxu1 }
 0x241   :  { %v4828_v12 = vmax.f32 %v3315_v53, 0.0  ;;  %v3318_v13 = vadd.f32 %v12553_v7, %v3317_v8  ;;  %v5084_v14 = vmax.f32 %v4339_v3, 0.0  ;;  %v4342_v15 = vadd.f32 %v12553_v7, %v4341_v11 }
 0x242   :  { %v8899_v16 = vpack.c.bf16 %v4830_v5, %v4830_v5  ;;  %v4831_v17 = vmax.f32 %v3326_v6, 0.0  ;;  %v9155_v18 = vpack.c.bf16 %v5086_v9, %v5086_v9  ;;  %v5087_v19 = vmax.f32 %v4350_v10, 0.0 }
 0x243   :  { %v8897_v20 = vpack.c.bf16 %v4828_v12, %v4828_v12  ;;  %v4829_v21 = vmax.f32 %v3318_v13, 0.0  ;;  %v9153_v22 = vpack.c.bf16 %v5084_v14, %v5084_v14  ;;  %v5085_v23 = vmax.f32 %v4342_v15, 0.0 }
 0x244   :  { %7367 = vst.msk [vmem:[%s13894_s3 + $0x2b8] sm:$0xf] %vm7192_vm2, %v8899_v16  ;;  %v8900_v24 = vpack.c.bf16 %v4831_v17, %v4831_v17  ;;  %7623 = vst.msk [vmem:[%s13894_s3 + $0x6b8] sm:$0xf] %vm7192_vm2, %v9155_v18  ;;  %v9156_v7 = vpack.c.bf16 %v5087_v19, %v5087_v19 }
 0x245   :  { %7365 = vst.msk [vmem:[%s13894_s3 + $0x2b0] sm:$0xf] %vm7192_vm2, %v8897_v20  ;;  %v8898_v25 = vpack.c.bf16 %v4829_v21, %v4829_v21  ;;  %7621 = vst.msk [vmem:[%s13894_s3 + $0x6b0] sm:$0xf] %vm7192_vm2, %v9153_v22  ;;  %v9676_v26 = vpop.f32.mrb[176].mxu0  ;;  %v9154_v27 = vpack.c.bf16 %v5085_v23, %v5085_v23  ;;  %v9932_v28 = vpop.f32.mrb[176].mxu1 }
 0x246   :  { %7368 = vst.msk [vmem:[%s13894_s3 + $0x2bc] sm:$0xf] %vm7192_vm2, %v8900_v24  ;;  %7624 = vst.msk [vmem:[%s13894_s3 + $0x6bc] sm:$0xf] %vm7192_vm2, %v9156_v7  ;;  %v3339_v30 = vadd.f32 %v13102_v29, %v9676_v26  ;;  %v3330_v31 = vpop.f32.mrb[177].mxu0  ;;  %v4363_v32 = vadd.f32 %v13102_v29, %v9932_v28  ;;  %v4354_v33 = vpop.f32.mrb[177].mxu1 }
 0x247   :  { %7366 = vst.msk [vmem:[%s13894_s3 + $0x2b4] sm:$0xf] %vm7192_vm2, %v8898_v25  ;;  %7622 = vst.msk [vmem:[%s13894_s3 + $0x6b4] sm:$0xf] %vm7192_vm2, %v9154_v27  ;;  %v3331_v34 = vadd.f32 %v13102_v29, %v3330_v31  ;;  %v9677_v35 = vpop.f32.mrb[178].mxu0  ;;  %v4355_v36 = vadd.f32 %v13102_v29, %v4354_v33  ;;  %v9933_v37 = vpop.f32.mrb[178].mxu1 }
 0x248   :  { %v4834_v38 = vmax.f32 %v3339_v30, 0.0  ;;  %v3342_v39 = vadd.f32 %v13102_v29, %v9677_v35  ;;  %v3333_v40 = vpop.f32.mrb[179].mxu0  ;;  %v5090_v41 = vmax.f32 %v4363_v32, 0.0  ;;  %v4366_v42 = vadd.f32 %v13102_v29, %v9933_v37  ;;  %v4357_v43 = vpop.f32.mrb[179].mxu1 }
 0x249   :  { %v4832_v44 = vmax.f32 %v3331_v34, 0.0  ;;  %v3334_v45 = vadd.f32 %v13102_v29, %v3333_v40  ;;  %v5088_v46 = vmax.f32 %v4355_v36, 0.0  ;;  %v4358_v48 = vadd.f32 %v13102_v29, %v4357_v43 }
 0x24a   :  { %v8903_v47 = vpack.c.bf16 %v4834_v38, %v4834_v38  ;;  %v4835_v49 = vmax.f32 %v3342_v39, 0.0  ;;  %v9159_v50 = vpack.c.bf16 %v5090_v41, %v5090_v41  ;;  %v5091_v52 = vmax.f32 %v4366_v42, 0.0 }
 0x24b   :  { %v8901_v51 = vpack.c.bf16 %v4832_v44, %v4832_v44  ;;  %v4833_v54 = vmax.f32 %v3334_v45, 0.0  ;;  %v9157_v55 = vpack.c.bf16 %v5088_v46, %v5088_v46  ;;  %v5089_v56 = vmax.f32 %v4358_v48, 0.0 }
 0x24c   :  { %7371 = vst.msk [vmem:[%s13894_s3 + $0x2c8] sm:$0xf] %vm7192_vm2, %v8903_v47  ;;  %v8904_v57 = vpack.c.bf16 %v4835_v49, %v4835_v49  ;;  %7627 = vst.msk [vmem:[%s13894_s3 + $0x6c8] sm:$0xf] %vm7192_vm2, %v9159_v50  ;;  %v9160_v58 = vpack.c.bf16 %v5091_v52, %v5091_v52 }
 0x24d   :  { %7369 = vst.msk [vmem:[%s13894_s3 + $0x2c0] sm:$0xf] %vm7192_vm2, %v8901_v51  ;;  %v8902_v59 = vpack.c.bf16 %v4833_v54, %v4833_v54  ;;  %7625 = vst.msk [vmem:[%s13894_s3 + $0x6c0] sm:$0xf] %vm7192_vm2, %v9157_v55  ;;  %v9680_v60 = vpop.f32.mrb[180].mxu0  ;;  %v9158_v61 = vpack.c.bf16 %v5089_v56, %v5089_v56  ;;  %v9936_v62 = vpop.f32.mrb[180].mxu1 }
 0x24e   :  { %7372 = vst.msk [vmem:[%s13894_s3 + $0x2cc] sm:$0xf] %vm7192_vm2, %v8904_v57  ;;  %7628 = vst.msk [vmem:[%s13894_s3 + $0x6cc] sm:$0xf] %vm7192_vm2, %v9160_v58  ;;  %v3355_v63 = vadd.f32 %v13102_v29, %v9680_v60  ;;  %v3346_v0 = vpop.f32.mrb[181].mxu0  ;;  %v4379_v1 = vadd.f32 %v13102_v29, %v9936_v62  ;;  %v4370_v53 = vpop.f32.mrb[181].mxu1 }
 0x24f   :  { %7370 = vst.msk [vmem:[%s13894_s3 + $0x2c4] sm:$0xf] %vm7192_vm2, %v8902_v59  ;;  %7626 = vst.msk [vmem:[%s13894_s3 + $0x6c4] sm:$0xf] %vm7192_vm2, %v9158_v61  ;;  %v3347_v2 = vadd.f32 %v13102_v29, %v3346_v0  ;;  %v9681_v3 = vpop.f32.mrb[182].mxu0  ;;  %v4371_v4 = vadd.f32 %v13102_v29, %v4370_v53  ;;  %v9937_v5 = vpop.f32.mrb[182].mxu1 }
 0x250   :  { %v4838_v6 = vmax.f32 %v3355_v63, 0.0  ;;  %v3358_v8 = vadd.f32 %v13102_v29, %v9681_v3  ;;  %v3349_v9 = vpop.f32.mrb[183].mxu0  ;;  %v5094_v10 = vmax.f32 %v4379_v1, 0.0  ;;  %v4382_v11 = vadd.f32 %v13102_v29, %v9937_v5  ;;  %v4373_v12 = vpop.f32.mrb[183].mxu1 }
 0x251   :  { %v4836_v13 = vmax.f32 %v3347_v2, 0.0  ;;  %v3350_v14 = vadd.f32 %v13102_v29, %v3349_v9  ;;  %v5092_v15 = vmax.f32 %v4371_v4, 0.0  ;;  %v4374_v16 = vadd.f32 %v13102_v29, %v4373_v12 }
 0x252   :  { %v8907_v17 = vpack.c.bf16 %v4838_v6, %v4838_v6  ;;  %v4839_v18 = vmax.f32 %v3358_v8, 0.0  ;;  %v9163_v19 = vpack.c.bf16 %v5094_v10, %v5094_v10  ;;  %v5095_v20 = vmax.f32 %v4382_v11, 0.0 }
 0x253   :  { %v8905_v21 = vpack.c.bf16 %v4836_v13, %v4836_v13  ;;  %v4837_v22 = vmax.f32 %v3350_v14, 0.0  ;;  %v9161_v23 = vpack.c.bf16 %v5092_v15, %v5092_v15  ;;  %v5093_v24 = vmax.f32 %v4374_v16, 0.0 }
 0x254   :  { %7375 = vst.msk [vmem:[%s13894_s3 + $0x2d8] sm:$0xf] %vm7192_vm2, %v8907_v17  ;;  %v8908_v7 = vpack.c.bf16 %v4839_v18, %v4839_v18  ;;  %7631 = vst.msk [vmem:[%s13894_s3 + $0x6d8] sm:$0xf] %vm7192_vm2, %v9163_v19  ;;  %v9164_v25 = vpack.c.bf16 %v5095_v20, %v5095_v20 }
 0x255   :  { %7373 = vst.msk [vmem:[%s13894_s3 + $0x2d0] sm:$0xf] %vm7192_vm2, %v8905_v21  ;;  %v8906_v26 = vpack.c.bf16 %v4837_v22, %v4837_v22  ;;  %7629 = vst.msk [vmem:[%s13894_s3 + $0x6d0] sm:$0xf] %vm7192_vm2, %v9161_v23  ;;  %v9684_v27 = vpop.f32.mrb[184].mxu0  ;;  %v9162_v28 = vpack.c.bf16 %v5093_v24, %v5093_v24  ;;  %v9940_v30 = vpop.f32.mrb[184].mxu1 }
 0x256   :  { %7376 = vst.msk [vmem:[%s13894_s3 + $0x2dc] sm:$0xf] %vm7192_vm2, %v8908_v7  ;;  %7632 = vst.msk [vmem:[%s13894_s3 + $0x6dc] sm:$0xf] %vm7192_vm2, %v9164_v25  ;;  %v3371_v31 = vadd.f32 %v13102_v29, %v9684_v27  ;;  %v3362_v32 = vpop.f32.mrb[185].mxu0  ;;  %v4395_v33 = vadd.f32 %v13102_v29, %v9940_v30  ;;  %v4386_v34 = vpop.f32.mrb[185].mxu1 }
 0x257   :  { %7374 = vst.msk [vmem:[%s13894_s3 + $0x2d4] sm:$0xf] %vm7192_vm2, %v8906_v26  ;;  %7630 = vst.msk [vmem:[%s13894_s3 + $0x6d4] sm:$0xf] %vm7192_vm2, %v9162_v28  ;;  %v3363_v35 = vadd.f32 %v13102_v29, %v3362_v32  ;;  %v9685_v36 = vpop.f32.mrb[186].mxu0  ;;  %v4387_v37 = vadd.f32 %v13102_v29, %v4386_v34  ;;  %v9941_v38 = vpop.f32.mrb[186].mxu1 }
 0x258   :  { %v4842_v39 = vmax.f32 %v3371_v31, 0.0  ;;  %v3374_v40 = vadd.f32 %v13102_v29, %v9685_v36  ;;  %v3365_v41 = vpop.f32.mrb[187].mxu0  ;;  %v5098_v42 = vmax.f32 %v4395_v33, 0.0  ;;  %v4398_v43 = vadd.f32 %v13102_v29, %v9941_v38  ;;  %v4389_v44 = vpop.f32.mrb[187].mxu1 }
 0x259   :  { %v4840_v45 = vmax.f32 %v3363_v35, 0.0  ;;  %v3366_v46 = vadd.f32 %v13102_v29, %v3365_v41  ;;  %v5096_v48 = vmax.f32 %v4387_v37, 0.0  ;;  %v4390_v47 = vadd.f32 %v13102_v29, %v4389_v44 }
 0x25a   :  { %v8911_v49 = vpack.c.bf16 %v4842_v39, %v4842_v39  ;;  %v4843_v50 = vmax.f32 %v3374_v40, 0.0  ;;  %v9167_v52 = vpack.c.bf16 %v5098_v42, %v5098_v42  ;;  %v5099_v51 = vmax.f32 %v4398_v43, 0.0 }
 0x25b   :  { %v8909_v54 = vpack.c.bf16 %v4840_v45, %v4840_v45  ;;  %v4841_v55 = vmax.f32 %v3366_v46, 0.0  ;;  %v9165_v56 = vpack.c.bf16 %v5096_v48, %v5096_v48  ;;  %v5097_v57 = vmax.f32 %v4390_v47, 0.0 }
 0x25c   :  { %7379 = vst.msk [vmem:[%s13894_s3 + $0x2e8] sm:$0xf] %vm7192_vm2, %v8911_v49  ;;  %v8912_v58 = vpack.c.bf16 %v4843_v50, %v4843_v50  ;;  %7635 = vst.msk [vmem:[%s13894_s3 + $0x6e8] sm:$0xf] %vm7192_vm2, %v9167_v52  ;;  %v9168_v59 = vpack.c.bf16 %v5099_v51, %v5099_v51 }
 0x25d   :  { %7377 = vst.msk [vmem:[%s13894_s3 + $0x2e0] sm:$0xf] %vm7192_vm2, %v8909_v54  ;;  %v8910_v60 = vpack.c.bf16 %v4841_v55, %v4841_v55  ;;  %7633 = vst.msk [vmem:[%s13894_s3 + $0x6e0] sm:$0xf] %vm7192_vm2, %v9165_v56  ;;  %v9688_v61 = vpop.f32.mrb[188].mxu0  ;;  %v9166_v62 = vpack.c.bf16 %v5097_v57, %v5097_v57  ;;  %v9944_v63 = vpop.f32.mrb[188].mxu1 }
 0x25e   :  { %7380 = vst.msk [vmem:[%s13894_s3 + $0x2ec] sm:$0xf] %vm7192_vm2, %v8912_v58  ;;  %7636 = vst.msk [vmem:[%s13894_s3 + $0x6ec] sm:$0xf] %vm7192_vm2, %v9168_v59  ;;  %v3387_v0 = vadd.f32 %v13102_v29, %v9688_v61  ;;  %v3378_v1 = vpop.f32.mrb[189].mxu0  ;;  %v4411_v53 = vadd.f32 %v13102_v29, %v9944_v63  ;;  %v4402_v2 = vpop.f32.mrb[189].mxu1 }
 0x25f   :  { %7378 = vst.msk [vmem:[%s13894_s3 + $0x2e4] sm:$0xf] %vm7192_vm2, %v8910_v60  ;;  %7634 = vst.msk [vmem:[%s13894_s3 + $0x6e4] sm:$0xf] %vm7192_vm2, %v9166_v62  ;;  %v3379_v3 = vadd.f32 %v13102_v29, %v3378_v1  ;;  %v9689_v4 = vpop.f32.mrb[190].mxu0  ;;  %v4403_v5 = vadd.f32 %v13102_v29, %v4402_v2  ;;  %v9945_v6 = vpop.f32.mrb[190].mxu1 }
 0x260   :  { %v4846_v8 = vmax.f32 %v3387_v0, 0.0  ;;  %v3390_v9 = vadd.f32 %v13102_v29, %v9689_v4  ;;  %v3381_v10 = vpop.f32.mrb[191].mxu0  ;;  %v5102_v11 = vmax.f32 %v4411_v53, 0.0  ;;  %v4414_v12 = vadd.f32 %v13102_v29, %v9945_v6  ;;  %v4405_v13 = vpop.f32.mrb[191].mxu1 }
 0x261   :  { %v4844_v14 = vmax.f32 %v3379_v3, 0.0  ;;  %v3382_v15 = vadd.f32 %v13102_v29, %v3381_v10  ;;  %v5100_v16 = vmax.f32 %v4403_v5, 0.0  ;;  %v4406_v17 = vadd.f32 %v13102_v29, %v4405_v13 }
 0x262   :  { %v8915_v18 = vpack.c.bf16 %v4846_v8, %v4846_v8  ;;  %v4847_v19 = vmax.f32 %v3390_v9, 0.0  ;;  %v9171_v20 = vpack.c.bf16 %v5102_v11, %v5102_v11  ;;  %v5103_v21 = vmax.f32 %v4414_v12, 0.0 }
 0x263   :  { %v8913_v22 = vpack.c.bf16 %v4844_v14, %v4844_v14  ;;  %v4845_v23 = vmax.f32 %v3382_v15, 0.0  ;;  %v9169_v24 = vpack.c.bf16 %v5100_v16, %v5100_v16  ;;  %v5101_v7 = vmax.f32 %v4406_v17, 0.0 }
 0x264   :  { %7383 = vst.msk [vmem:[%s13894_s3 + $0x2f8] sm:$0xf] %vm7192_vm2, %v8915_v18  ;;  %v8916_v25 = vpack.c.bf16 %v4847_v19, %v4847_v19  ;;  %7639 = vst.msk [vmem:[%s13894_s3 + $0x6f8] sm:$0xf] %vm7192_vm2, %v9171_v20  ;;  %v9172_v26 = vpack.c.bf16 %v5103_v21, %v5103_v21 }
 0x265   :  { %7381 = vst.msk [vmem:[%s13894_s3 + $0x2f0] sm:$0xf] %vm7192_vm2, %v8913_v22  ;;  %v8914_v27 = vpack.c.bf16 %v4845_v23, %v4845_v23  ;;  %7637 = vst.msk [vmem:[%s13894_s3 + $0x6f0] sm:$0xf] %vm7192_vm2, %v9169_v24  ;;  %v9692_v28 = vpop.f32.mrb[192].mxu0  ;;  %v9170_v30 = vpack.c.bf16 %v5101_v7, %v5101_v7  ;;  %v9948_v31 = vpop.f32.mrb[192].mxu1 }
 0x266   :  { %7384 = vst.msk [vmem:[%s13894_s3 + $0x2fc] sm:$0xf] %vm7192_vm2, %v8916_v25  ;;  %7640 = vst.msk [vmem:[%s13894_s3 + $0x6fc] sm:$0xf] %vm7192_vm2, %v9172_v26  ;;  %v3403_v32 = vadd.f32 %v13102_v29, %v9692_v28  ;;  %v3394_v33 = vpop.f32.mrb[193].mxu0  ;;  %v4427_v34 = vadd.f32 %v13102_v29, %v9948_v31  ;;  %v4418_v35 = vpop.f32.mrb[193].mxu1 }
 0x267   :  { %7382 = vst.msk [vmem:[%s13894_s3 + $0x2f4] sm:$0xf] %vm7192_vm2, %v8914_v27  ;;  %7638 = vst.msk [vmem:[%s13894_s3 + $0x6f4] sm:$0xf] %vm7192_vm2, %v9170_v30  ;;  %v3395_v36 = vadd.f32 %v13102_v29, %v3394_v33  ;;  %v9693_v37 = vpop.f32.mrb[194].mxu0  ;;  %v4419_v38 = vadd.f32 %v13102_v29, %v4418_v35  ;;  %v9949_v39 = vpop.f32.mrb[194].mxu1 }
 0x268   :  { %v4850_v40 = vmax.f32 %v3403_v32, 0.0  ;;  %v3406_v41 = vadd.f32 %v13102_v29, %v9693_v37  ;;  %v3397_v42 = vpop.f32.mrb[195].mxu0  ;;  %v5106_v43 = vmax.f32 %v4427_v34, 0.0  ;;  %v4430_v44 = vadd.f32 %v13102_v29, %v9949_v39  ;;  %v4421_v45 = vpop.f32.mrb[195].mxu1 }
 0x269   :  { %v4848_v46 = vmax.f32 %v3395_v36, 0.0  ;;  %v3398_v48 = vadd.f32 %v13102_v29, %v3397_v42  ;;  %v5104_v47 = vmax.f32 %v4419_v38, 0.0  ;;  %v4422_v49 = vadd.f32 %v13102_v29, %v4421_v45 }
 0x26a   :  { %v8919_v50 = vpack.c.bf16 %v4850_v40, %v4850_v40  ;;  %v4851_v52 = vmax.f32 %v3406_v41, 0.0  ;;  %v9175_v51 = vpack.c.bf16 %v5106_v43, %v5106_v43  ;;  %v5107_v54 = vmax.f32 %v4430_v44, 0.0 }
 0x26b   :  { %v8917_v55 = vpack.c.bf16 %v4848_v46, %v4848_v46  ;;  %v4849_v56 = vmax.f32 %v3398_v48, 0.0  ;;  %v9173_v57 = vpack.c.bf16 %v5104_v47, %v5104_v47  ;;  %v5105_v58 = vmax.f32 %v4422_v49, 0.0 }
 0x26c   :  { %7387 = vst.msk [vmem:[%s13894_s3 + $0x308] sm:$0xf] %vm7192_vm2, %v8919_v50  ;;  %v8920_v59 = vpack.c.bf16 %v4851_v52, %v4851_v52  ;;  %7643 = vst.msk [vmem:[%s13894_s3 + $0x708] sm:$0xf] %vm7192_vm2, %v9175_v51  ;;  %v9176_v60 = vpack.c.bf16 %v5107_v54, %v5107_v54 }
 0x26d   :  { %7385 = vst.msk [vmem:[%s13894_s3 + $0x300] sm:$0xf] %vm7192_vm2, %v8917_v55  ;;  %v8918_v61 = vpack.c.bf16 %v4849_v56, %v4849_v56  ;;  %7641 = vst.msk [vmem:[%s13894_s3 + $0x700] sm:$0xf] %vm7192_vm2, %v9173_v57  ;;  %v9696_v62 = vpop.f32.mrb[196].mxu0  ;;  %v9174_v63 = vpack.c.bf16 %v5105_v58, %v5105_v58  ;;  %v9952_v0 = vpop.f32.mrb[196].mxu1 }
 0x26e   :  { %7388 = vst.msk [vmem:[%s13894_s3 + $0x30c] sm:$0xf] %vm7192_vm2, %v8920_v59  ;;  %7644 = vst.msk [vmem:[%s13894_s3 + $0x70c] sm:$0xf] %vm7192_vm2, %v9176_v60  ;;  %v3419_v1 = vadd.f32 %v13102_v29, %v9696_v62  ;;  %v3410_v53 = vpop.f32.mrb[197].mxu0  ;;  %v4443_v2 = vadd.f32 %v13102_v29, %v9952_v0  ;;  %v4434_v3 = vpop.f32.mrb[197].mxu1 }
 0x26f   :  { %7386 = vst.msk [vmem:[%s13894_s3 + $0x304] sm:$0xf] %vm7192_vm2, %v8918_v61  ;;  %7642 = vst.msk [vmem:[%s13894_s3 + $0x704] sm:$0xf] %vm7192_vm2, %v9174_v63  ;;  %v3411_v4 = vadd.f32 %v13102_v29, %v3410_v53  ;;  %v9697_v5 = vpop.f32.mrb[198].mxu0  ;;  %v4435_v6 = vadd.f32 %v13102_v29, %v4434_v3  ;;  %v9953_v8 = vpop.f32.mrb[198].mxu1 }
 0x270   :  { %v4854_v9 = vmax.f32 %v3419_v1, 0.0  ;;  %v3422_v10 = vadd.f32 %v13102_v29, %v9697_v5  ;;  %v3413_v11 = vpop.f32.mrb[199].mxu0  ;;  %v5110_v12 = vmax.f32 %v4443_v2, 0.0  ;;  %v4446_v13 = vadd.f32 %v13102_v29, %v9953_v8  ;;  %v4437_v14 = vpop.f32.mrb[199].mxu1 }
 0x271   :  { %v4852_v15 = vmax.f32 %v3411_v4, 0.0  ;;  %v3414_v16 = vadd.f32 %v13102_v29, %v3413_v11  ;;  %v5108_v17 = vmax.f32 %v4435_v6, 0.0  ;;  %v4438_v18 = vadd.f32 %v13102_v29, %v4437_v14 }
 0x272   :  { %v8923_v19 = vpack.c.bf16 %v4854_v9, %v4854_v9  ;;  %v4855_v20 = vmax.f32 %v3422_v10, 0.0  ;;  %v9179_v21 = vpack.c.bf16 %v5110_v12, %v5110_v12  ;;  %v5111_v22 = vmax.f32 %v4446_v13, 0.0 }
 0x273   :  { %v8921_v23 = vpack.c.bf16 %v4852_v15, %v4852_v15  ;;  %v4853_v24 = vmax.f32 %v3414_v16, 0.0  ;;  %v9177_v7 = vpack.c.bf16 %v5108_v17, %v5108_v17  ;;  %v5109_v25 = vmax.f32 %v4438_v18, 0.0 }
 0x274   :  { %7391 = vst.msk [vmem:[%s13894_s3 + $0x318] sm:$0xf] %vm7192_vm2, %v8923_v19  ;;  %v8924_v26 = vpack.c.bf16 %v4855_v20, %v4855_v20  ;;  %7647 = vst.msk [vmem:[%s13894_s3 + $0x718] sm:$0xf] %vm7192_vm2, %v9179_v21  ;;  %v9180_v27 = vpack.c.bf16 %v5111_v22, %v5111_v22 }
 0x275   :  { %7389 = vst.msk [vmem:[%s13894_s3 + $0x310] sm:$0xf] %vm7192_vm2, %v8921_v23  ;;  %v8922_v28 = vpack.c.bf16 %v4853_v24, %v4853_v24  ;;  %7645 = vst.msk [vmem:[%s13894_s3 + $0x710] sm:$0xf] %vm7192_vm2, %v9177_v7  ;;  %v9700_v30 = vpop.f32.mrb[200].mxu0  ;;  %v9178_v31 = vpack.c.bf16 %v5109_v25, %v5109_v25  ;;  %v9956_v32 = vpop.f32.mrb[200].mxu1 }
 0x276   :  { %7392 = vst.msk [vmem:[%s13894_s3 + $0x31c] sm:$0xf] %vm7192_vm2, %v8924_v26  ;;  %7648 = vst.msk [vmem:[%s13894_s3 + $0x71c] sm:$0xf] %vm7192_vm2, %v9180_v27  ;;  %v3435_v33 = vadd.f32 %v13102_v29, %v9700_v30  ;;  %v3426_v34 = vpop.f32.mrb[201].mxu0  ;;  %v4459_v35 = vadd.f32 %v13102_v29, %v9956_v32  ;;  %v4450_v36 = vpop.f32.mrb[201].mxu1 }
 0x277   :  { %7390 = vst.msk [vmem:[%s13894_s3 + $0x314] sm:$0xf] %vm7192_vm2, %v8922_v28  ;;  %7646 = vst.msk [vmem:[%s13894_s3 + $0x714] sm:$0xf] %vm7192_vm2, %v9178_v31  ;;  %v3427_v37 = vadd.f32 %v13102_v29, %v3426_v34  ;;  %v9701_v38 = vpop.f32.mrb[202].mxu0  ;;  %v4451_v39 = vadd.f32 %v13102_v29, %v4450_v36  ;;  %v9957_v40 = vpop.f32.mrb[202].mxu1 }
 0x278   :  { %v4858_v41 = vmax.f32 %v3435_v33, 0.0  ;;  %v3438_v42 = vadd.f32 %v13102_v29, %v9701_v38  ;;  %v3429_v43 = vpop.f32.mrb[203].mxu0  ;;  %v5114_v44 = vmax.f32 %v4459_v35, 0.0  ;;  %v4462_v45 = vadd.f32 %v13102_v29, %v9957_v40  ;;  %v4453_v46 = vpop.f32.mrb[203].mxu1 }
 0x279   :  { %v4856_v48 = vmax.f32 %v3427_v37, 0.0  ;;  %v3430_v47 = vadd.f32 %v13102_v29, %v3429_v43  ;;  %v5112_v49 = vmax.f32 %v4451_v39, 0.0  ;;  %v4454_v50 = vadd.f32 %v13102_v29, %v4453_v46 }
 0x27a   :  { %v8927_v52 = vpack.c.bf16 %v4858_v41, %v4858_v41  ;;  %v4859_v51 = vmax.f32 %v3438_v42, 0.0  ;;  %v9183_v54 = vpack.c.bf16 %v5114_v44, %v5114_v44  ;;  %v5115_v55 = vmax.f32 %v4462_v45, 0.0 }
 0x27b   :  { %v8925_v56 = vpack.c.bf16 %v4856_v48, %v4856_v48  ;;  %v4857_v57 = vmax.f32 %v3430_v47, 0.0  ;;  %v9181_v58 = vpack.c.bf16 %v5112_v49, %v5112_v49  ;;  %v5113_v59 = vmax.f32 %v4454_v50, 0.0 }
 0x27c   :  { %7395 = vst.msk [vmem:[%s13894_s3 + $0x328] sm:$0xf] %vm7192_vm2, %v8927_v52  ;;  %v8928_v60 = vpack.c.bf16 %v4859_v51, %v4859_v51  ;;  %7651 = vst.msk [vmem:[%s13894_s3 + $0x728] sm:$0xf] %vm7192_vm2, %v9183_v54  ;;  %v9184_v61 = vpack.c.bf16 %v5115_v55, %v5115_v55 }
 0x27d   :  { %7393 = vst.msk [vmem:[%s13894_s3 + $0x320] sm:$0xf] %vm7192_vm2, %v8925_v56  ;;  %v8926_v62 = vpack.c.bf16 %v4857_v57, %v4857_v57  ;;  %7649 = vst.msk [vmem:[%s13894_s3 + $0x720] sm:$0xf] %vm7192_vm2, %v9181_v58  ;;  %v9704_v63 = vpop.f32.mrb[204].mxu0  ;;  %v9182_v0 = vpack.c.bf16 %v5113_v59, %v5113_v59  ;;  %v9960_v1 = vpop.f32.mrb[204].mxu1 }
 0x27e   :  { %7396 = vst.msk [vmem:[%s13894_s3 + $0x32c] sm:$0xf] %vm7192_vm2, %v8928_v60  ;;  %7652 = vst.msk [vmem:[%s13894_s3 + $0x72c] sm:$0xf] %vm7192_vm2, %v9184_v61  ;;  %v3451_v53 = vadd.f32 %v13102_v29, %v9704_v63  ;;  %v3442_v2 = vpop.f32.mrb[205].mxu0  ;;  %v4475_v3 = vadd.f32 %v13102_v29, %v9960_v1  ;;  %v4466_v4 = vpop.f32.mrb[205].mxu1 }
 0x27f   :  { %7394 = vst.msk [vmem:[%s13894_s3 + $0x324] sm:$0xf] %vm7192_vm2, %v8926_v62  ;;  %7650 = vst.msk [vmem:[%s13894_s3 + $0x724] sm:$0xf] %vm7192_vm2, %v9182_v0  ;;  %v3443_v5 = vadd.f32 %v13102_v29, %v3442_v2  ;;  %v9705_v6 = vpop.f32.mrb[206].mxu0  ;;  %v4467_v8 = vadd.f32 %v13102_v29, %v4466_v4  ;;  %v9961_v9 = vpop.f32.mrb[206].mxu1 }
 0x280   :  { %v4862_v10 = vmax.f32 %v3451_v53, 0.0  ;;  %v3454_v11 = vadd.f32 %v13102_v29, %v9705_v6  ;;  %v3445_v12 = vpop.f32.mrb[207].mxu0  ;;  %v5118_v13 = vmax.f32 %v4475_v3, 0.0  ;;  %v4478_v14 = vadd.f32 %v13102_v29, %v9961_v9  ;;  %v4469_v15 = vpop.f32.mrb[207].mxu1 }
 0x281   :  { %v4860_v16 = vmax.f32 %v3443_v5, 0.0  ;;  %v3446_v17 = vadd.f32 %v13102_v29, %v3445_v12  ;;  %v5116_v18 = vmax.f32 %v4467_v8, 0.0  ;;  %v4470_v19 = vadd.f32 %v13102_v29, %v4469_v15 }
 0x282   :  { %v8931_v20 = vpack.c.bf16 %v4862_v10, %v4862_v10  ;;  %v4863_v21 = vmax.f32 %v3454_v11, 0.0  ;;  %v9187_v22 = vpack.c.bf16 %v5118_v13, %v5118_v13  ;;  %v5119_v23 = vmax.f32 %v4478_v14, 0.0 }
 0x283   :  { %v8929_v24 = vpack.c.bf16 %v4860_v16, %v4860_v16  ;;  %v4861_v7 = vmax.f32 %v3446_v17, 0.0  ;;  %v9185_v25 = vpack.c.bf16 %v5116_v18, %v5116_v18  ;;  %v5117_v26 = vmax.f32 %v4470_v19, 0.0 }
 0x284   :  { %7399 = vst.msk [vmem:[%s13894_s3 + $0x338] sm:$0xf] %vm7192_vm2, %v8931_v20  ;;  %v8932_v27 = vpack.c.bf16 %v4863_v21, %v4863_v21  ;;  %7655 = vst.msk [vmem:[%s13894_s3 + $0x738] sm:$0xf] %vm7192_vm2, %v9187_v22  ;;  %v9188_v28 = vpack.c.bf16 %v5119_v23, %v5119_v23 }
 0x285   :  { %7397 = vst.msk [vmem:[%s13894_s3 + $0x330] sm:$0xf] %vm7192_vm2, %v8929_v24  ;;  %v8930_v30 = vpack.c.bf16 %v4861_v7, %v4861_v7  ;;  %7653 = vst.msk [vmem:[%s13894_s3 + $0x730] sm:$0xf] %vm7192_vm2, %v9185_v25  ;;  %v9708_v31 = vpop.f32.mrb[208].mxu0  ;;  %v9186_v32 = vpack.c.bf16 %v5117_v26, %v5117_v26  ;;  %v9964_v33 = vpop.f32.mrb[208].mxu1 }
 0x286   :  { %7400 = vst.msk [vmem:[%s13894_s3 + $0x33c] sm:$0xf] %vm7192_vm2, %v8932_v27  ;;  %7656 = vst.msk [vmem:[%s13894_s3 + $0x73c] sm:$0xf] %vm7192_vm2, %v9188_v28  ;;  %v3467_v34 = vadd.f32 %v13102_v29, %v9708_v31  ;;  %v3458_v35 = vpop.f32.mrb[209].mxu0  ;;  %v4491_v36 = vadd.f32 %v13102_v29, %v9964_v33  ;;  %v4482_v37 = vpop.f32.mrb[209].mxu1 }
 0x287   :  { %7398 = vst.msk [vmem:[%s13894_s3 + $0x334] sm:$0xf] %vm7192_vm2, %v8930_v30  ;;  %7654 = vst.msk [vmem:[%s13894_s3 + $0x734] sm:$0xf] %vm7192_vm2, %v9186_v32  ;;  %v3459_v38 = vadd.f32 %v13102_v29, %v3458_v35  ;;  %v9709_v39 = vpop.f32.mrb[210].mxu0  ;;  %v4483_v40 = vadd.f32 %v13102_v29, %v4482_v37  ;;  %v9965_v41 = vpop.f32.mrb[210].mxu1 }
 0x288   :  { %v4866_v42 = vmax.f32 %v3467_v34, 0.0  ;;  %v3470_v43 = vadd.f32 %v13102_v29, %v9709_v39  ;;  %v3461_v44 = vpop.f32.mrb[211].mxu0  ;;  %v5122_v45 = vmax.f32 %v4491_v36, 0.0  ;;  %v4494_v46 = vadd.f32 %v13102_v29, %v9965_v41  ;;  %v4485_v48 = vpop.f32.mrb[211].mxu1 }
 0x289   :  { %v4864_v47 = vmax.f32 %v3459_v38, 0.0  ;;  %v3462_v49 = vadd.f32 %v13102_v29, %v3461_v44  ;;  %v5120_v50 = vmax.f32 %v4483_v40, 0.0  ;;  %v4486_v52 = vadd.f32 %v13102_v29, %v4485_v48 }
 0x28a   :  { %v8935_v51 = vpack.c.bf16 %v4866_v42, %v4866_v42  ;;  %v4867_v54 = vmax.f32 %v3470_v43, 0.0  ;;  %v9191_v55 = vpack.c.bf16 %v5122_v45, %v5122_v45  ;;  %v5123_v56 = vmax.f32 %v4494_v46, 0.0 }
 0x28b   :  { %v8933_v57 = vpack.c.bf16 %v4864_v47, %v4864_v47  ;;  %v4865_v58 = vmax.f32 %v3462_v49, 0.0  ;;  %v9189_v59 = vpack.c.bf16 %v5120_v50, %v5120_v50  ;;  %v5121_v60 = vmax.f32 %v4486_v52, 0.0 }
 0x28c   :  { %7403 = vst.msk [vmem:[%s13894_s3 + $0x348] sm:$0xf] %vm7192_vm2, %v8935_v51  ;;  %v8936_v61 = vpack.c.bf16 %v4867_v54, %v4867_v54  ;;  %7659 = vst.msk [vmem:[%s13894_s3 + $0x748] sm:$0xf] %vm7192_vm2, %v9191_v55  ;;  %v9192_v62 = vpack.c.bf16 %v5123_v56, %v5123_v56 }
 0x28d   :  { %7401 = vst.msk [vmem:[%s13894_s3 + $0x340] sm:$0xf] %vm7192_vm2, %v8933_v57  ;;  %v8934_v63 = vpack.c.bf16 %v4865_v58, %v4865_v58  ;;  %7657 = vst.msk [vmem:[%s13894_s3 + $0x740] sm:$0xf] %vm7192_vm2, %v9189_v59  ;;  %v9712_v0 = vpop.f32.mrb[212].mxu0  ;;  %v9190_v1 = vpack.c.bf16 %v5121_v60, %v5121_v60  ;;  %v9968_v53 = vpop.f32.mrb[212].mxu1 }
 0x28e   :  { %7404 = vst.msk [vmem:[%s13894_s3 + $0x34c] sm:$0xf] %vm7192_vm2, %v8936_v61  ;;  %7660 = vst.msk [vmem:[%s13894_s3 + $0x74c] sm:$0xf] %vm7192_vm2, %v9192_v62  ;;  %v3483_v2 = vadd.f32 %v13102_v29, %v9712_v0  ;;  %v3474_v3 = vpop.f32.mrb[213].mxu0  ;;  %v4507_v4 = vadd.f32 %v13102_v29, %v9968_v53  ;;  %v4498_v5 = vpop.f32.mrb[213].mxu1 }
 0x28f   :  { %7402 = vst.msk [vmem:[%s13894_s3 + $0x344] sm:$0xf] %vm7192_vm2, %v8934_v63  ;;  %7658 = vst.msk [vmem:[%s13894_s3 + $0x744] sm:$0xf] %vm7192_vm2, %v9190_v1  ;;  %v3475_v6 = vadd.f32 %v13102_v29, %v3474_v3  ;;  %v9713_v8 = vpop.f32.mrb[214].mxu0  ;;  %v4499_v9 = vadd.f32 %v13102_v29, %v4498_v5  ;;  %v9969_v10 = vpop.f32.mrb[214].mxu1 }
 0x290   :  { %v4870_v11 = vmax.f32 %v3483_v2, 0.0  ;;  %v3486_v12 = vadd.f32 %v13102_v29, %v9713_v8  ;;  %v3477_v13 = vpop.f32.mrb[215].mxu0  ;;  %v5126_v14 = vmax.f32 %v4507_v4, 0.0  ;;  %v4510_v15 = vadd.f32 %v13102_v29, %v9969_v10  ;;  %v4501_v16 = vpop.f32.mrb[215].mxu1 }
 0x291   :  { %v4868_v17 = vmax.f32 %v3475_v6, 0.0  ;;  %v3478_v18 = vadd.f32 %v13102_v29, %v3477_v13  ;;  %v5124_v19 = vmax.f32 %v4499_v9, 0.0  ;;  %v4502_v20 = vadd.f32 %v13102_v29, %v4501_v16 }
 0x292   :  { %v8939_v21 = vpack.c.bf16 %v4870_v11, %v4870_v11  ;;  %v4871_v22 = vmax.f32 %v3486_v12, 0.0  ;;  %v9195_v23 = vpack.c.bf16 %v5126_v14, %v5126_v14  ;;  %v5127_v24 = vmax.f32 %v4510_v15, 0.0 }
 0x293   :  { %v8937_v7 = vpack.c.bf16 %v4868_v17, %v4868_v17  ;;  %v4869_v25 = vmax.f32 %v3478_v18, 0.0  ;;  %v9193_v26 = vpack.c.bf16 %v5124_v19, %v5124_v19  ;;  %v5125_v27 = vmax.f32 %v4502_v20, 0.0 }
 0x294   :  { %7407 = vst.msk [vmem:[%s13894_s3 + $0x358] sm:$0xf] %vm7192_vm2, %v8939_v21  ;;  %v8940_v28 = vpack.c.bf16 %v4871_v22, %v4871_v22  ;;  %7663 = vst.msk [vmem:[%s13894_s3 + $0x758] sm:$0xf] %vm7192_vm2, %v9195_v23  ;;  %v9196_v30 = vpack.c.bf16 %v5127_v24, %v5127_v24 }
 0x295   :  { %7405 = vst.msk [vmem:[%s13894_s3 + $0x350] sm:$0xf] %vm7192_vm2, %v8937_v7  ;;  %v8938_v31 = vpack.c.bf16 %v4869_v25, %v4869_v25  ;;  %7661 = vst.msk [vmem:[%s13894_s3 + $0x750] sm:$0xf] %vm7192_vm2, %v9193_v26  ;;  %v9716_v32 = vpop.f32.mrb[216].mxu0  ;;  %v9194_v33 = vpack.c.bf16 %v5125_v27, %v5125_v27  ;;  %v9972_v34 = vpop.f32.mrb[216].mxu1 }
 0x296   :  { %7408 = vst.msk [vmem:[%s13894_s3 + $0x35c] sm:$0xf] %vm7192_vm2, %v8940_v28  ;;  %7664 = vst.msk [vmem:[%s13894_s3 + $0x75c] sm:$0xf] %vm7192_vm2, %v9196_v30  ;;  %v3499_v35 = vadd.f32 %v13102_v29, %v9716_v32  ;;  %v3490_v36 = vpop.f32.mrb[217].mxu0  ;;  %v4523_v37 = vadd.f32 %v13102_v29, %v9972_v34  ;;  %v4514_v38 = vpop.f32.mrb[217].mxu1 }
 0x297   :  { %7406 = vst.msk [vmem:[%s13894_s3 + $0x354] sm:$0xf] %vm7192_vm2, %v8938_v31  ;;  %7662 = vst.msk [vmem:[%s13894_s3 + $0x754] sm:$0xf] %vm7192_vm2, %v9194_v33  ;;  %v3491_v39 = vadd.f32 %v13102_v29, %v3490_v36  ;;  %v9717_v40 = vpop.f32.mrb[218].mxu0  ;;  %v4515_v41 = vadd.f32 %v13102_v29, %v4514_v38  ;;  %v9973_v42 = vpop.f32.mrb[218].mxu1 }
 0x298   :  { %v4874_v43 = vmax.f32 %v3499_v35, 0.0  ;;  %v3502_v44 = vadd.f32 %v13102_v29, %v9717_v40  ;;  %v3493_v45 = vpop.f32.mrb[219].mxu0  ;;  %v5130_v46 = vmax.f32 %v4523_v37, 0.0  ;;  %v4526_v48 = vadd.f32 %v13102_v29, %v9973_v42  ;;  %v4517_v47 = vpop.f32.mrb[219].mxu1 }
 0x299   :  { %v4872_v49 = vmax.f32 %v3491_v39, 0.0  ;;  %v3494_v50 = vadd.f32 %v13102_v29, %v3493_v45  ;;  %v5128_v52 = vmax.f32 %v4515_v41, 0.0  ;;  %v4518_v51 = vadd.f32 %v13102_v29, %v4517_v47 }
 0x29a   :  { %v8943_v54 = vpack.c.bf16 %v4874_v43, %v4874_v43  ;;  %v4875_v55 = vmax.f32 %v3502_v44, 0.0  ;;  %v9199_v56 = vpack.c.bf16 %v5130_v46, %v5130_v46  ;;  %v5131_v57 = vmax.f32 %v4526_v48, 0.0 }
 0x29b   :  { %v8941_v58 = vpack.c.bf16 %v4872_v49, %v4872_v49  ;;  %v4873_v59 = vmax.f32 %v3494_v50, 0.0  ;;  %v9197_v60 = vpack.c.bf16 %v5128_v52, %v5128_v52  ;;  %v5129_v61 = vmax.f32 %v4518_v51, 0.0 }
 0x29c   :  { %7411 = vst.msk [vmem:[%s13894_s3 + $0x368] sm:$0xf] %vm7192_vm2, %v8943_v54  ;;  %v8944_v62 = vpack.c.bf16 %v4875_v55, %v4875_v55  ;;  %7667 = vst.msk [vmem:[%s13894_s3 + $0x768] sm:$0xf] %vm7192_vm2, %v9199_v56  ;;  %v9200_v63 = vpack.c.bf16 %v5131_v57, %v5131_v57 }
 0x29d   :  { %7409 = vst.msk [vmem:[%s13894_s3 + $0x360] sm:$0xf] %vm7192_vm2, %v8941_v58  ;;  %v8942_v0 = vpack.c.bf16 %v4873_v59, %v4873_v59  ;;  %7665 = vst.msk [vmem:[%s13894_s3 + $0x760] sm:$0xf] %vm7192_vm2, %v9197_v60  ;;  %v9720_v1 = vpop.f32.mrb[220].mxu0  ;;  %v9198_v53 = vpack.c.bf16 %v5129_v61, %v5129_v61  ;;  %v9976_v2 = vpop.f32.mrb[220].mxu1 }
 0x29e   :  { %7412 = vst.msk [vmem:[%s13894_s3 + $0x36c] sm:$0xf] %vm7192_vm2, %v8944_v62  ;;  %7668 = vst.msk [vmem:[%s13894_s3 + $0x76c] sm:$0xf] %vm7192_vm2, %v9200_v63  ;;  %v3515_v3 = vadd.f32 %v13102_v29, %v9720_v1  ;;  %v3506_v4 = vpop.f32.mrb[221].mxu0  ;;  %v4539_v5 = vadd.f32 %v13102_v29, %v9976_v2  ;;  %v4530_v6 = vpop.f32.mrb[221].mxu1 }
 0x29f   :  { %7410 = vst.msk [vmem:[%s13894_s3 + $0x364] sm:$0xf] %vm7192_vm2, %v8942_v0  ;;  %7666 = vst.msk [vmem:[%s13894_s3 + $0x764] sm:$0xf] %vm7192_vm2, %v9198_v53  ;;  %v3507_v8 = vadd.f32 %v13102_v29, %v3506_v4  ;;  %v9721_v9 = vpop.f32.mrb[222].mxu0  ;;  %v4531_v10 = vadd.f32 %v13102_v29, %v4530_v6  ;;  %v9977_v11 = vpop.f32.mrb[222].mxu1 }
 0x2a0   :  { %v4878_v12 = vmax.f32 %v3515_v3, 0.0  ;;  %v3518_v13 = vadd.f32 %v13102_v29, %v9721_v9  ;;  %v3509_v14 = vpop.f32.mrb[223].mxu0  ;;  %v5134_v15 = vmax.f32 %v4539_v5, 0.0  ;;  %v4542_v16 = vadd.f32 %v13102_v29, %v9977_v11  ;;  %v4533_v17 = vpop.f32.mrb[223].mxu1  ;;  %v13627_v3 = vld [vmem:[%s13893_s2] ss:$0 sm:$0xff] }
 0x2a1   :  { %v4876_v18 = vmax.f32 %v3507_v8, 0.0  ;;  %v3510_v19 = vadd.f32 %v13102_v29, %v3509_v14  ;;  %v5132_v20 = vmax.f32 %v4531_v10, 0.0  ;;  %v4534_v21 = vadd.f32 %v13102_v29, %v4533_v17 }
 0x2a2   :  { %v8947_v22 = vpack.c.bf16 %v4878_v12, %v4878_v12  ;;  %v4879_v23 = vmax.f32 %v3518_v13, 0.0  ;;  %v9203_v24 = vpack.c.bf16 %v5134_v15, %v5134_v15  ;;  %v5135_v7 = vmax.f32 %v4542_v16, 0.0 }
 0x2a3   :  { %v8945_v25 = vpack.c.bf16 %v4876_v18, %v4876_v18  ;;  %v4877_v26 = vmax.f32 %v3510_v19, 0.0  ;;  %v9201_v27 = vpack.c.bf16 %v5132_v20, %v5132_v20  ;;  %v5133_v28 = vmax.f32 %v4534_v21, 0.0 }
 0x2a4   :  { %7415 = vst.msk [vmem:[%s13894_s3 + $0x378] sm:$0xf] %vm7192_vm2, %v8947_v22  ;;  %v8948_v30 = vpack.c.bf16 %v4879_v23, %v4879_v23  ;;  %7671 = vst.msk [vmem:[%s13894_s3 + $0x778] sm:$0xf] %vm7192_vm2, %v9203_v24  ;;  %v9204_v31 = vpack.c.bf16 %v5135_v7, %v5135_v7 }
 0x2a5   :  { %7413 = vst.msk [vmem:[%s13894_s3 + $0x370] sm:$0xf] %vm7192_vm2, %v8945_v25  ;;  %v8946_v32 = vpack.c.bf16 %v4877_v26, %v4877_v26  ;;  %7669 = vst.msk [vmem:[%s13894_s3 + $0x770] sm:$0xf] %vm7192_vm2, %v9201_v27  ;;  %v9724_v33 = vpop.f32.mrb[224].mxu0  ;;  %v9202_v34 = vpack.c.bf16 %v5133_v28, %v5133_v28  ;;  %v9980_v35 = vpop.f32.mrb[224].mxu1 }
 0x2a6   :  { %7416 = vst.msk [vmem:[%s13894_s3 + $0x37c] sm:$0xf] %vm7192_vm2, %v8948_v30  ;;  %7672 = vst.msk [vmem:[%s13894_s3 + $0x77c] sm:$0xf] %vm7192_vm2, %v9204_v31  ;;  %v3531_v36 = vadd.f32 %v13102_v29, %v9724_v33  ;;  %v3522_v37 = vpop.f32.mrb[225].mxu0  ;;  %v4555_v38 = vadd.f32 %v13102_v29, %v9980_v35  ;;  %v4546_v39 = vpop.f32.mrb[225].mxu1 }
 0x2a7   :  { %7414 = vst.msk [vmem:[%s13894_s3 + $0x374] sm:$0xf] %vm7192_vm2, %v8946_v32  ;;  %7670 = vst.msk [vmem:[%s13894_s3 + $0x774] sm:$0xf] %vm7192_vm2, %v9202_v34  ;;  %v3523_v40 = vadd.f32 %v13102_v29, %v3522_v37  ;;  %v9725_v41 = vpop.f32.mrb[226].mxu0  ;;  %v4547_v42 = vadd.f32 %v13102_v29, %v4546_v39  ;;  %v9981_v43 = vpop.f32.mrb[226].mxu1 }
 0x2a8   :  { %v4882_v44 = vmax.f32 %v3531_v36, 0.0  ;;  %v3534_v45 = vadd.f32 %v13102_v29, %v9725_v41  ;;  %v3525_v46 = vpop.f32.mrb[227].mxu0  ;;  %v5138_v48 = vmax.f32 %v4555_v38, 0.0  ;;  %v4558_v47 = vadd.f32 %v13102_v29, %v9981_v43  ;;  %v4549_v49 = vpop.f32.mrb[227].mxu1 }
 0x2a9   :  { %v4880_v50 = vmax.f32 %v3523_v40, 0.0  ;;  %v3526_v52 = vadd.f32 %v13102_v29, %v3525_v46  ;;  %v5136_v51 = vmax.f32 %v4547_v42, 0.0  ;;  %v4550_v54 = vadd.f32 %v13102_v29, %v4549_v49 }
 0x2aa   :  { %v8951_v55 = vpack.c.bf16 %v4882_v44, %v4882_v44  ;;  %v4883_v56 = vmax.f32 %v3534_v45, 0.0  ;;  %v9207_v57 = vpack.c.bf16 %v5138_v48, %v5138_v48  ;;  %v5139_v58 = vmax.f32 %v4558_v47, 0.0 }
 0x2ab   :  { %v8949_v59 = vpack.c.bf16 %v4880_v50, %v4880_v50  ;;  %v4881_v60 = vmax.f32 %v3526_v52, 0.0  ;;  %v9205_v61 = vpack.c.bf16 %v5136_v51, %v5136_v51  ;;  %v5137_v62 = vmax.f32 %v4550_v54, 0.0 }
 0x2ac   :  { %7419 = vst.msk [vmem:[%s13894_s3 + $0x388] sm:$0xf] %vm7192_vm2, %v8951_v55  ;;  %v8952_v63 = vpack.c.bf16 %v4883_v56, %v4883_v56  ;;  %7675 = vst.msk [vmem:[%s13894_s3 + $0x788] sm:$0xf] %vm7192_vm2, %v9207_v57  ;;  %v9208_v29 = vpack.c.bf16 %v5139_v58, %v5139_v58 }
 0x2ad   :  { %7417 = vst.msk [vmem:[%s13894_s3 + $0x380] sm:$0xf] %vm7192_vm2, %v8949_v59  ;;  %v8950_v0 = vpack.c.bf16 %v4881_v60, %v4881_v60  ;;  %7673 = vst.msk [vmem:[%s13894_s3 + $0x780] sm:$0xf] %vm7192_vm2, %v9205_v61  ;;  %v9728_v1 = vpop.f32.mrb[228].mxu0  ;;  %v9206_v53 = vpack.c.bf16 %v5137_v62, %v5137_v62  ;;  %v9984_v2 = vpop.f32.mrb[228].mxu1 }
 0x2ae   :  { %7420 = vst.msk [vmem:[%s13894_s3 + $0x38c] sm:$0xf] %vm7192_vm2, %v8952_v63  ;;  %7676 = vst.msk [vmem:[%s13894_s3 + $0x78c] sm:$0xf] %vm7192_vm2, %v9208_v29  ;;  %v3547_v4 = vadd.f32 %v13627_v3, %v9728_v1  ;;  %v3538_v5 = vpop.f32.mrb[229].mxu0  ;;  %v4571_v6 = vadd.f32 %v13627_v3, %v9984_v2  ;;  %v4562_v8 = vpop.f32.mrb[229].mxu1 }
 0x2af   :  { %7418 = vst.msk [vmem:[%s13894_s3 + $0x384] sm:$0xf] %vm7192_vm2, %v8950_v0  ;;  %7674 = vst.msk [vmem:[%s13894_s3 + $0x784] sm:$0xf] %vm7192_vm2, %v9206_v53  ;;  %v3539_v9 = vadd.f32 %v13627_v3, %v3538_v5  ;;  %v9729_v10 = vpop.f32.mrb[230].mxu0  ;;  %v4563_v11 = vadd.f32 %v13627_v3, %v4562_v8  ;;  %v9985_v12 = vpop.f32.mrb[230].mxu1 }
 0x2b0   :  { %v4886_v13 = vmax.f32 %v3547_v4, 0.0  ;;  %v3550_v14 = vadd.f32 %v13627_v3, %v9729_v10  ;;  %v3541_v15 = vpop.f32.mrb[231].mxu0  ;;  %v5142_v16 = vmax.f32 %v4571_v6, 0.0  ;;  %v4574_v17 = vadd.f32 %v13627_v3, %v9985_v12  ;;  %v4565_v18 = vpop.f32.mrb[231].mxu1 }
 0x2b1   :  { %v4884_v19 = vmax.f32 %v3539_v9, 0.0  ;;  %v3542_v20 = vadd.f32 %v13627_v3, %v3541_v15  ;;  %v5140_v21 = vmax.f32 %v4563_v11, 0.0  ;;  %v4566_v22 = vadd.f32 %v13627_v3, %v4565_v18 }
 0x2b2   :  { %v8955_v23 = vpack.c.bf16 %v4886_v13, %v4886_v13  ;;  %v4887_v24 = vmax.f32 %v3550_v14, 0.0  ;;  %v9211_v7 = vpack.c.bf16 %v5142_v16, %v5142_v16  ;;  %v5143_v25 = vmax.f32 %v4574_v17, 0.0 }
 0x2b3   :  { %v8953_v26 = vpack.c.bf16 %v4884_v19, %v4884_v19  ;;  %v4885_v27 = vmax.f32 %v3542_v20, 0.0  ;;  %v9209_v28 = vpack.c.bf16 %v5140_v21, %v5140_v21  ;;  %v5141_v30 = vmax.f32 %v4566_v22, 0.0 }
 0x2b4   :  { %7423 = vst.msk [vmem:[%s13894_s3 + $0x398] sm:$0xf] %vm7192_vm2, %v8955_v23  ;;  %v8956_v31 = vpack.c.bf16 %v4887_v24, %v4887_v24  ;;  %7679 = vst.msk [vmem:[%s13894_s3 + $0x798] sm:$0xf] %vm7192_vm2, %v9211_v7  ;;  %v9212_v32 = vpack.c.bf16 %v5143_v25, %v5143_v25 }
 0x2b5   :  { %7421 = vst.msk [vmem:[%s13894_s3 + $0x390] sm:$0xf] %vm7192_vm2, %v8953_v26  ;;  %v8954_v33 = vpack.c.bf16 %v4885_v27, %v4885_v27  ;;  %7677 = vst.msk [vmem:[%s13894_s3 + $0x790] sm:$0xf] %vm7192_vm2, %v9209_v28  ;;  %v9732_v34 = vpop.f32.mrb[232].mxu0  ;;  %v9210_v35 = vpack.c.bf16 %v5141_v30, %v5141_v30  ;;  %v9988_v36 = vpop.f32.mrb[232].mxu1 }
 0x2b6   :  { %7424 = vst.msk [vmem:[%s13894_s3 + $0x39c] sm:$0xf] %vm7192_vm2, %v8956_v31  ;;  %7680 = vst.msk [vmem:[%s13894_s3 + $0x79c] sm:$0xf] %vm7192_vm2, %v9212_v32  ;;  %v3563_v37 = vadd.f32 %v13627_v3, %v9732_v34  ;;  %v3554_v38 = vpop.f32.mrb[233].mxu0  ;;  %v4587_v39 = vadd.f32 %v13627_v3, %v9988_v36  ;;  %v4578_v40 = vpop.f32.mrb[233].mxu1 }
 0x2b7   :  { %7422 = vst.msk [vmem:[%s13894_s3 + $0x394] sm:$0xf] %vm7192_vm2, %v8954_v33  ;;  %7678 = vst.msk [vmem:[%s13894_s3 + $0x794] sm:$0xf] %vm7192_vm2, %v9210_v35  ;;  %v3555_v41 = vadd.f32 %v13627_v3, %v3554_v38  ;;  %v9733_v42 = vpop.f32.mrb[234].mxu0  ;;  %v4579_v43 = vadd.f32 %v13627_v3, %v4578_v40  ;;  %v9989_v44 = vpop.f32.mrb[234].mxu1 }
 0x2b8   :  { %v4890_v45 = vmax.f32 %v3563_v37, 0.0  ;;  %v3566_v46 = vadd.f32 %v13627_v3, %v9733_v42  ;;  %v3557_v48 = vpop.f32.mrb[235].mxu0  ;;  %v5146_v47 = vmax.f32 %v4587_v39, 0.0  ;;  %v4590_v49 = vadd.f32 %v13627_v3, %v9989_v44  ;;  %v4581_v50 = vpop.f32.mrb[235].mxu1 }
 0x2b9   :  { %v4888_v52 = vmax.f32 %v3555_v41, 0.0  ;;  %v3558_v51 = vadd.f32 %v13627_v3, %v3557_v48  ;;  %v5144_v54 = vmax.f32 %v4579_v43, 0.0  ;;  %v4582_v55 = vadd.f32 %v13627_v3, %v4581_v50 }
 0x2ba   :  { %v8959_v56 = vpack.c.bf16 %v4890_v45, %v4890_v45  ;;  %v4891_v57 = vmax.f32 %v3566_v46, 0.0  ;;  %v9215_v58 = vpack.c.bf16 %v5146_v47, %v5146_v47  ;;  %v5147_v59 = vmax.f32 %v4590_v49, 0.0 }
 0x2bb   :  { %v8957_v60 = vpack.c.bf16 %v4888_v52, %v4888_v52  ;;  %v4889_v61 = vmax.f32 %v3558_v51, 0.0  ;;  %v9213_v62 = vpack.c.bf16 %v5144_v54, %v5144_v54  ;;  %v5145_v63 = vmax.f32 %v4582_v55, 0.0 }
 0x2bc   :  { %7427 = vst.msk [vmem:[%s13894_s3 + $0x3a8] sm:$0xf] %vm7192_vm2, %v8959_v56  ;;  %v8960_v29 = vpack.c.bf16 %v4891_v57, %v4891_v57  ;;  %7683 = vst.msk [vmem:[%s13894_s3 + $0x7a8] sm:$0xf] %vm7192_vm2, %v9215_v58  ;;  %v9216_v0 = vpack.c.bf16 %v5147_v59, %v5147_v59 }
 0x2bd   :  { %7425 = vst.msk [vmem:[%s13894_s3 + $0x3a0] sm:$0xf] %vm7192_vm2, %v8957_v60  ;;  %v8958_v1 = vpack.c.bf16 %v4889_v61, %v4889_v61  ;;  %7681 = vst.msk [vmem:[%s13894_s3 + $0x7a0] sm:$0xf] %vm7192_vm2, %v9213_v62  ;;  %v9736_v53 = vpop.f32.mrb[236].mxu0  ;;  %v9214_v2 = vpack.c.bf16 %v5145_v63, %v5145_v63  ;;  %v9992_v4 = vpop.f32.mrb[236].mxu1 }
 0x2be   :  { %7428 = vst.msk [vmem:[%s13894_s3 + $0x3ac] sm:$0xf] %vm7192_vm2, %v8960_v29  ;;  %7684 = vst.msk [vmem:[%s13894_s3 + $0x7ac] sm:$0xf] %vm7192_vm2, %v9216_v0  ;;  %v3579_v5 = vadd.f32 %v13627_v3, %v9736_v53  ;;  %v3570_v6 = vpop.f32.mrb[237].mxu0  ;;  %v4603_v8 = vadd.f32 %v13627_v3, %v9992_v4  ;;  %v4594_v9 = vpop.f32.mrb[237].mxu1 }
 0x2bf   :  { %7426 = vst.msk [vmem:[%s13894_s3 + $0x3a4] sm:$0xf] %vm7192_vm2, %v8958_v1  ;;  %7682 = vst.msk [vmem:[%s13894_s3 + $0x7a4] sm:$0xf] %vm7192_vm2, %v9214_v2  ;;  %v3571_v10 = vadd.f32 %v13627_v3, %v3570_v6  ;;  %v9737_v11 = vpop.f32.mrb[238].mxu0  ;;  %v4595_v12 = vadd.f32 %v13627_v3, %v4594_v9  ;;  %v9993_v13 = vpop.f32.mrb[238].mxu1 }
 0x2c0   :  { %v4894_v14 = vmax.f32 %v3579_v5, 0.0  ;;  %v3582_v15 = vadd.f32 %v13627_v3, %v9737_v11  ;;  %v3573_v16 = vpop.f32.mrb[239].mxu0  ;;  %v5150_v17 = vmax.f32 %v4603_v8, 0.0  ;;  %v4606_v18 = vadd.f32 %v13627_v3, %v9993_v13  ;;  %v4597_v19 = vpop.f32.mrb[239].mxu1 }
 0x2c1   :  { %v4892_v20 = vmax.f32 %v3571_v10, 0.0  ;;  %v3574_v21 = vadd.f32 %v13627_v3, %v3573_v16  ;;  %v5148_v22 = vmax.f32 %v4595_v12, 0.0  ;;  %v4598_v23 = vadd.f32 %v13627_v3, %v4597_v19 }
 0x2c2   :  { %v8963_v24 = vpack.c.bf16 %v4894_v14, %v4894_v14  ;;  %v4895_v7 = vmax.f32 %v3582_v15, 0.0  ;;  %v9219_v25 = vpack.c.bf16 %v5150_v17, %v5150_v17  ;;  %v5151_v26 = vmax.f32 %v4606_v18, 0.0 }
 0x2c3   :  { %v8961_v27 = vpack.c.bf16 %v4892_v20, %v4892_v20  ;;  %v4893_v28 = vmax.f32 %v3574_v21, 0.0  ;;  %v9217_v30 = vpack.c.bf16 %v5148_v22, %v5148_v22  ;;  %v5149_v31 = vmax.f32 %v4598_v23, 0.0 }
 0x2c4   :  { %7431 = vst.msk [vmem:[%s13894_s3 + $0x3b8] sm:$0xf] %vm7192_vm2, %v8963_v24  ;;  %v8964_v32 = vpack.c.bf16 %v4895_v7, %v4895_v7  ;;  %7687 = vst.msk [vmem:[%s13894_s3 + $0x7b8] sm:$0xf] %vm7192_vm2, %v9219_v25  ;;  %v9220_v33 = vpack.c.bf16 %v5151_v26, %v5151_v26 }
 0x2c5   :  { %7429 = vst.msk [vmem:[%s13894_s3 + $0x3b0] sm:$0xf] %vm7192_vm2, %v8961_v27  ;;  %v8962_v34 = vpack.c.bf16 %v4893_v28, %v4893_v28  ;;  %7685 = vst.msk [vmem:[%s13894_s3 + $0x7b0] sm:$0xf] %vm7192_vm2, %v9217_v30  ;;  %v9740_v35 = vpop.f32.mrb[240].mxu0  ;;  %v9218_v36 = vpack.c.bf16 %v5149_v31, %v5149_v31  ;;  %v9996_v37 = vpop.f32.mrb[240].mxu1 }
 0x2c6   :  { %7432 = vst.msk [vmem:[%s13894_s3 + $0x3bc] sm:$0xf] %vm7192_vm2, %v8964_v32  ;;  %7688 = vst.msk [vmem:[%s13894_s3 + $0x7bc] sm:$0xf] %vm7192_vm2, %v9220_v33  ;;  %v3595_v38 = vadd.f32 %v13627_v3, %v9740_v35  ;;  %v3586_v39 = vpop.f32.mrb[241].mxu0  ;;  %v4619_v40 = vadd.f32 %v13627_v3, %v9996_v37  ;;  %v4610_v41 = vpop.f32.mrb[241].mxu1 }
 0x2c7   :  { %7430 = vst.msk [vmem:[%s13894_s3 + $0x3b4] sm:$0xf] %vm7192_vm2, %v8962_v34  ;;  %7686 = vst.msk [vmem:[%s13894_s3 + $0x7b4] sm:$0xf] %vm7192_vm2, %v9218_v36  ;;  %v3587_v42 = vadd.f32 %v13627_v3, %v3586_v39  ;;  %v9741_v43 = vpop.f32.mrb[242].mxu0  ;;  %v4611_v44 = vadd.f32 %v13627_v3, %v4610_v41  ;;  %v9997_v45 = vpop.f32.mrb[242].mxu1 }
 0x2c8   :  { %v4898_v46 = vmax.f32 %v3595_v38, 0.0  ;;  %v3598_v48 = vadd.f32 %v13627_v3, %v9741_v43  ;;  %v3589_v47 = vpop.f32.mrb[243].mxu0  ;;  %v5154_v49 = vmax.f32 %v4619_v40, 0.0  ;;  %v4622_v50 = vadd.f32 %v13627_v3, %v9997_v45  ;;  %v4613_v52 = vpop.f32.mrb[243].mxu1 }
 0x2c9   :  { %v4896_v51 = vmax.f32 %v3587_v42, 0.0  ;;  %v3590_v54 = vadd.f32 %v13627_v3, %v3589_v47  ;;  %v5152_v55 = vmax.f32 %v4611_v44, 0.0  ;;  %v4614_v56 = vadd.f32 %v13627_v3, %v4613_v52 }
 0x2ca   :  { %v8967_v57 = vpack.c.bf16 %v4898_v46, %v4898_v46  ;;  %v4899_v58 = vmax.f32 %v3598_v48, 0.0  ;;  %v9223_v59 = vpack.c.bf16 %v5154_v49, %v5154_v49  ;;  %v5155_v60 = vmax.f32 %v4622_v50, 0.0 }
 0x2cb   :  { %v8965_v61 = vpack.c.bf16 %v4896_v51, %v4896_v51  ;;  %v4897_v62 = vmax.f32 %v3590_v54, 0.0  ;;  %v9221_v63 = vpack.c.bf16 %v5152_v55, %v5152_v55  ;;  %v5153_v29 = vmax.f32 %v4614_v56, 0.0 }
 0x2cc   :  { %7435 = vst.msk [vmem:[%s13894_s3 + $0x3c8] sm:$0xf] %vm7192_vm2, %v8967_v57  ;;  %v8968_v0 = vpack.c.bf16 %v4899_v58, %v4899_v58  ;;  %7691 = vst.msk [vmem:[%s13894_s3 + $0x7c8] sm:$0xf] %vm7192_vm2, %v9223_v59  ;;  %v9224_v1 = vpack.c.bf16 %v5155_v60, %v5155_v60 }
 0x2cd   :  { %7433 = vst.msk [vmem:[%s13894_s3 + $0x3c0] sm:$0xf] %vm7192_vm2, %v8965_v61  ;;  %v8966_v53 = vpack.c.bf16 %v4897_v62, %v4897_v62  ;;  %7689 = vst.msk [vmem:[%s13894_s3 + $0x7c0] sm:$0xf] %vm7192_vm2, %v9221_v63  ;;  %v9744_v2 = vpop.f32.mrb[244].mxu0  ;;  %v9222_v4 = vpack.c.bf16 %v5153_v29, %v5153_v29  ;;  %v10000_v5 = vpop.f32.mrb[244].mxu1 }
 0x2ce   :  { %7436 = vst.msk [vmem:[%s13894_s3 + $0x3cc] sm:$0xf] %vm7192_vm2, %v8968_v0  ;;  %7692 = vst.msk [vmem:[%s13894_s3 + $0x7cc] sm:$0xf] %vm7192_vm2, %v9224_v1  ;;  %v3611_v6 = vadd.f32 %v13627_v3, %v9744_v2  ;;  %v3602_v8 = vpop.f32.mrb[245].mxu0  ;;  %v4635_v9 = vadd.f32 %v13627_v3, %v10000_v5  ;;  %v4626_v10 = vpop.f32.mrb[245].mxu1 }
 0x2cf   :  { %7434 = vst.msk [vmem:[%s13894_s3 + $0x3c4] sm:$0xf] %vm7192_vm2, %v8966_v53  ;;  %7690 = vst.msk [vmem:[%s13894_s3 + $0x7c4] sm:$0xf] %vm7192_vm2, %v9222_v4  ;;  %v3603_v11 = vadd.f32 %v13627_v3, %v3602_v8  ;;  %v9745_v12 = vpop.f32.mrb[246].mxu0  ;;  %v4627_v13 = vadd.f32 %v13627_v3, %v4626_v10  ;;  %v10001_v14 = vpop.f32.mrb[246].mxu1 }
 0x2d0   :  { %v4902_v15 = vmax.f32 %v3611_v6, 0.0  ;;  %v3614_v16 = vadd.f32 %v13627_v3, %v9745_v12  ;;  %v3605_v17 = vpop.f32.mrb[247].mxu0  ;;  %v5158_v18 = vmax.f32 %v4635_v9, 0.0  ;;  %v4638_v19 = vadd.f32 %v13627_v3, %v10001_v14  ;;  %v4629_v20 = vpop.f32.mrb[247].mxu1 }
 0x2d1   :  { %v4900_v21 = vmax.f32 %v3603_v11, 0.0  ;;  %v3606_v22 = vadd.f32 %v13627_v3, %v3605_v17  ;;  %v5156_v23 = vmax.f32 %v4627_v13, 0.0  ;;  %v4630_v24 = vadd.f32 %v13627_v3, %v4629_v20 }
 0x2d2   :  { %v8971_v7 = vpack.c.bf16 %v4902_v15, %v4902_v15  ;;  %v4903_v25 = vmax.f32 %v3614_v16, 0.0  ;;  %v9227_v26 = vpack.c.bf16 %v5158_v18, %v5158_v18  ;;  %v5159_v27 = vmax.f32 %v4638_v19, 0.0 }
 0x2d3   :  { %v8969_v28 = vpack.c.bf16 %v4900_v21, %v4900_v21  ;;  %v4901_v30 = vmax.f32 %v3606_v22, 0.0  ;;  %v9225_v31 = vpack.c.bf16 %v5156_v23, %v5156_v23  ;;  %v5157_v32 = vmax.f32 %v4630_v24, 0.0 }
 0x2d4   :  { %7439 = vst.msk [vmem:[%s13894_s3 + $0x3d8] sm:$0xf] %vm7192_vm2, %v8971_v7  ;;  %v8972_v33 = vpack.c.bf16 %v4903_v25, %v4903_v25  ;;  %7695 = vst.msk [vmem:[%s13894_s3 + $0x7d8] sm:$0xf] %vm7192_vm2, %v9227_v26  ;;  %v9228_v34 = vpack.c.bf16 %v5159_v27, %v5159_v27 }
 0x2d5   :  { %7437 = vst.msk [vmem:[%s13894_s3 + $0x3d0] sm:$0xf] %vm7192_vm2, %v8969_v28  ;;  %v8970_v35 = vpack.c.bf16 %v4901_v30, %v4901_v30  ;;  %7693 = vst.msk [vmem:[%s13894_s3 + $0x7d0] sm:$0xf] %vm7192_vm2, %v9225_v31  ;;  %v9748_v36 = vpop.f32.mrb[248].mxu0  ;;  %v9226_v37 = vpack.c.bf16 %v5157_v32, %v5157_v32  ;;  %v10004_v38 = vpop.f32.mrb[248].mxu1 }
 0x2d6   :  { %7440 = vst.msk [vmem:[%s13894_s3 + $0x3dc] sm:$0xf] %vm7192_vm2, %v8972_v33  ;;  %7696 = vst.msk [vmem:[%s13894_s3 + $0x7dc] sm:$0xf] %vm7192_vm2, %v9228_v34  ;;  %v3627_v39 = vadd.f32 %v13627_v3, %v9748_v36  ;;  %v3618_v40 = vpop.f32.mrb[249].mxu0  ;;  %v4651_v41 = vadd.f32 %v13627_v3, %v10004_v38  ;;  %v4642_v42 = vpop.f32.mrb[249].mxu1 }
 0x2d7   :  { %7438 = vst.msk [vmem:[%s13894_s3 + $0x3d4] sm:$0xf] %vm7192_vm2, %v8970_v35  ;;  %7694 = vst.msk [vmem:[%s13894_s3 + $0x7d4] sm:$0xf] %vm7192_vm2, %v9226_v37  ;;  %v3619_v43 = vadd.f32 %v13627_v3, %v3618_v40  ;;  %v9749_v44 = vpop.f32.mrb[250].mxu0  ;;  %v4643_v45 = vadd.f32 %v13627_v3, %v4642_v42  ;;  %v10005_v46 = vpop.f32.mrb[250].mxu1 }
 0x2d8   :  { %v4906_v48 = vmax.f32 %v3627_v39, 0.0  ;;  %v3630_v47 = vadd.f32 %v13627_v3, %v9749_v44  ;;  %v3621_v49 = vpop.f32.mrb[251].mxu0  ;;  %v5162_v50 = vmax.f32 %v4651_v41, 0.0  ;;  %v4645_v52 = vpop.f32.mrb[251].mxu1 }
 0x2d9   :  { %v4904_v51 = vmax.f32 %v3619_v43, 0.0  ;;  %v3622_v54 = vadd.f32 %v13627_v3, %v3621_v49  ;;  %v5160_v55 = vmax.f32 %v4643_v45, 0.0  ;;  %v4646_v56 = vadd.f32 %v13627_v3, %v4645_v52 }
 0x2da   :  { %v8975_v57 = vpack.c.bf16 %v4906_v48, %v4906_v48  ;;  %v4907_v58 = vmax.f32 %v3630_v47, 0.0  ;;  %v9231_v59 = vpack.c.bf16 %v5162_v50, %v5162_v50 }
 0x2db   :  { %v8973_v60 = vpack.c.bf16 %v4904_v51, %v4904_v51  ;;  %v4905_v61 = vmax.f32 %v3622_v54, 0.0  ;;  %v9229_v62 = vpack.c.bf16 %v5160_v55, %v5160_v55  ;;  %v5161_v63 = vmax.f32 %v4646_v56, 0.0 }
 0x2dc   :  { %7443 = vst.msk [vmem:[%s13894_s3 + $0x3e8] sm:$0xf] %vm7192_vm2, %v8975_v57  ;;  %v8976_v29 = vpack.c.bf16 %v4907_v58, %v4907_v58 }
 0x2dd   :  { %7700 = vst.msk [vmem:[%s13894_s3 + $0x7e8] sm:$0x1] %vm7699_vm3, %v9231_v59  ;;  %v8974_v0 = vpack.c.bf16 %v4905_v61, %v4905_v61  ;;  %v9752_v1 = vpop.f32.mrb[252].mxu0  ;;  %v9230_v53 = vpack.c.bf16 %v5161_v63, %v5161_v63 }
 0x2de   :  { %7441 = vst.msk [vmem:[%s13894_s3 + $0x3e0] sm:$0xf] %vm7192_vm2, %v8973_v60  ;;  %7697 = vst.msk [vmem:[%s13894_s3 + $0x7e0] sm:$0xf] %vm7192_vm2, %v9229_v62  ;;  %v3643_v2 = vadd.f32 %v13627_v3, %v9752_v1  ;;  %v3634_v4 = vpop.f32.mrb[253].mxu0 }
 0x2df   :  { %7444 = vst.msk [vmem:[%s13894_s3 + $0x3ec] sm:$0xf] %vm7192_vm2, %v8976_v29  ;;  %7442 = vst.msk [vmem:[%s13894_s3 + $0x3e4] sm:$0xf] %vm7192_vm2, %v8974_v0  ;;  %v3635_v5 = vadd.f32 %v13627_v3, %v3634_v4  ;;  %v9753_v6 = vpop.f32.mrb[254].mxu0 }
 0x2e0   :  { %7698 = vst.msk [vmem:[%s13894_s3 + $0x7e4] sm:$0xf] %vm7192_vm2, %v9230_v53  ;;  %v4910_v8 = vmax.f32 %v3643_v2, 0.0  ;;  %v3646_v9 = vadd.f32 %v13627_v3, %v9753_v6  ;;  %v3637_v10 = vpop.f32.mrb[255].mxu0 }
 0x2e1   :  { %v4908_v11 = vmax.f32 %v3635_v5, 0.0  ;;  %v3638_v12 = vadd.f32 %v13627_v3, %v3637_v10 }
 0x2e2   :  { %v8979_v13 = vpack.c.bf16 %v4910_v8, %v4910_v8  ;;  %v4911_v14 = vmax.f32 %v3646_v9, 0.0 }
 0x2e3   :  { %v8977_v15 = vpack.c.bf16 %v4908_v11, %v4908_v11  ;;  %v4909_v16 = vmax.f32 %v3638_v12, 0.0 }
 0x2e4   :  { %7447 = vst.msk [vmem:[%s13894_s3 + $0x3f8] sm:$0xf] %vm7192_vm2, %v8979_v13  ;;  %v8980_v17 = vpack.c.bf16 %v4911_v14, %v4911_v14 }
 0x2e5   :  { %7445 = vst.msk [vmem:[%s13894_s3 + $0x3f0] sm:$0xf] %vm7192_vm2, %v8977_v15  ;;  %v8978_v18 = vpack.c.bf16 %v4909_v16, %v4909_v16 }
 0x2e6   :  { %7448 = vst.msk [vmem:[%s13894_s3 + $0x3fc] sm:$0xf] %vm7192_vm2, %v8980_v17 }
 0x2e7   :  { %7446 = vst.msk [vmem:[%s13894_s3 + $0x3f4] sm:$0xf] %vm7192_vm2, %v8978_v18 }

// kernel: policy_forward.4
= control target key start
LH: loop header
LB: loop body
LE: loop exit
PB: predicated region body
PF: predicated region fallthrough
CT: control target
= control target key end

     0   :  { %v4416_v0 = vmov 0   ;;  %vm1502_vm0 = vcmask 130048   ;;  %vm3187_vm1 = vcmask 257024   ;;  %vm3298_vm2 = vcmask 253952   ;;  %s5990_s1 = inlined_call_operand.vmem [shape: bf16[400,32], index: 1, kind: input, shape index: {}]   ;;  %s5991_s0 = inlined_call_operand.vmem [shape: bf16[882,400], index: 0, kind: input, shape index: {}]   ;;  %s5992_s2 = inlined_call_operand.vmem [shape: f32[1,32], index: 2, kind: input, shape index: {}]   ;;  %s5993_s3 = inlined_call_operand.vmem [shape: bf16[882,32], index: 3, kind: output, shape index: {}]  }
   0x1   :  { %1671 = vmatprep.subr.bf16.mxu1 %v4416_v0  ;;  %v4055_v1 = vld [vmem:[%s5990_s1] sm:$0xff]   ;;  %2151 = vmatprep.subr.bf16.mxu0 %v4416_v0  ;;  %v4056_v2 = vld [vmem:[%s5990_s1 + $0x8] sm:$0xff]   ;;  %v4057_v3 = vld [vmem:[%s5990_s1 + $0x10] sm:$0xff]  }
   0x2   :  { %1672 = vmatpush1.bf16.msra.mxu1 %v4055_v1  ;;  %v4062_v4 = vld [vmem:[%s5990_s1 + $0x80] sm:$0xff]   ;;  %v4064_v5 = vld [vmem:[%s5990_s1 + $0x88] sm:$0xff]   ;;  %v4058_v6 = vld [vmem:[%s5990_s1 + $0x18] sm:$0xff]  }
   0x3   :  { %1673 = vmatprep.subr.bf16.mxu1 %v4416_v0  ;;  %2152 = vmatpush1.bf16.msra.mxu0 %v4062_v4  ;;  %v4066_v7 = vld [vmem:[%s5990_s1 + $0x90] sm:$0xff]   ;;  %v4059_v8 = vld [vmem:[%s5990_s1 + $0x20] sm:$0xff]   ;;  %v4068_v9 = vld [vmem:[%s5990_s1 + $0x98] sm:$0xff]  }
   0x4   :  { %2153 = vmatprep.subr.bf16.mxu0 %v4416_v0  ;;  %v4060_v10 = vld [vmem:[%s5990_s1 + $0x28] sm:$0xff]   ;;  %v4070_v11 = vld [vmem:[%s5990_s1 + $0xa0] sm:$0xff]   ;;  %v4061_v12 = vld [vmem:[%s5990_s1 + $0x30] sm:$0xff]  }
   0x5   :  { %v4063_v13 = vld [vmem:[%s5990_s1 + $0x38] sm:$0xff]   ;;  %v4072_v14 = vld [vmem:[%s5990_s1 + $0xa8] sm:$0xff]   ;;  %v4085_v16 = vld [vmem:[%s5991_s0 + $0x4] ss:$16 sps:$4 sm:$0xff]  }
   0x6   :  { %1674 = vmatpush1.bf16.msra.mxu1 %v4056_v2  ;;  %v4082_v15 = vld [vmem:[%s5991_s0 + $0xc] ss:$16 sps:$4 sm:$0xff]   ;;  %v4074_v17 = vld [vmem:[%s5990_s1 + $0xb0] sm:$0xff]   ;;  %1703 = vmatprep.mubr.bf16.mxu1 %v4085_v16  ;;  %v4065_v18 = vld [vmem:[%s5990_s1 + $0x40] sm:$0xff]  }
   0x7   :  { %1675 = vmatprep.subr.bf16.mxu1 %v4416_v0  ;;  %2154 = vmatpush1.bf16.msra.mxu0 %v4064_v5  ;;  %v4076_v19 = vld [vmem:[%s5990_s1 + $0xb8] sm:$0xff]   ;;  %v4067_v20 = vld [vmem:[%s5990_s1 + $0x48] sm:$0xff]   ;;  %v4078_v21 = vld [vmem:[%s5990_s1 + $0xc0] sm:$0xff]  }
   0x8   :  { %2155 = vmatprep.subr.bf16.mxu0 %v4416_v0  ;;  %3554 = vmatprep.mubr.msk.bf16.mxu0 %vm1502_vm0, %v4082_v15  ;;  %v4069_v22 = vld [vmem:[%s5990_s1 + $0x50] sm:$0xff]   ;;  %v4080_v23 = vld [vmem:[%s5991_s0 + $0x8] ss:$16 sps:$4 sm:$0xff]   ;;  %v4086_v24 = vld [vmem:[%s5991_s0 + $0x2c] ss:$16 sps:$4 sm:$0xff]  }
   0x9   :  { %v4071_v25 = vld [vmem:[%s5990_s1 + $0x58] sm:$0xff]   ;;  %v4073_v26 = vld [vmem:[%s5990_s1 + $0x60] sm:$0xff]   ;;  %v4075_v29 = vld [vmem:[%s5990_s1 + $0x68] sm:$0xff]  }
   0xa   :  { %1676 = vmatpush1.bf16.msra.mxu1 %v4057_v3  ;;  %v4090_v27 = vld [vmem:[%s5991_s0 + $0x28] ss:$16 sps:$4 sm:$0xff]   ;;  %v4092_v28 = vld [vmem:[%s5991_s0 + $0x4c] ss:$16 sps:$4 sm:$0xff]   ;;  %v4077_v30 = vld [vmem:[%s5990_s1 + $0x70] sm:$0xff]  }
   0xb   :  { %1677 = vmatprep.subr.bf16.mxu1 %v4416_v0  ;;  %2156 = vmatpush1.bf16.msra.mxu0 %v4066_v7  ;;  %v4096_v31 = vld [vmem:[%s5991_s0 + $0x48] ss:$16 sps:$4 sm:$0xff]   ;;  %v4098_v32 = vld [vmem:[%s5991_s0 + $0x6c] ss:$16 sps:$4 sm:$0xff]   ;;  %v4083_v34 = vld [vmem:[%s5991_s0] ss:$16 sps:$4 sm:$0xff]  }
   0xc   :  { %2157 = vmatprep.subr.bf16.mxu0 %v4416_v0  ;;  %v4079_v33 = vld [vmem:[%s5990_s1 + $0x78] sm:$0xff]   ;;  %v4088_v35 = vld [vmem:[%s5991_s0 + $0x24] ss:$16 sps:$4 sm:$0xff]   ;;  %v4091_v38 = vld [vmem:[%s5991_s0 + $0x20] ss:$16 sps:$4 sm:$0xff]  }
   0xd   :  { %v4102_v36 = vld [vmem:[%s5991_s0 + $0x68] ss:$16 sps:$4 sm:$0xff]   ;;  %v4104_v37 = vld [vmem:[%s5991_s0 + $0x8c] ss:$16 sps:$4 sm:$0xff]   ;;  %v4094_v39 = vld [vmem:[%s5991_s0 + $0x44] ss:$16 sps:$4 sm:$0xff]  }
   0xe   :  { %1678 = vmatpush1.bf16.msra.mxu1 %v4058_v6  ;;  %v4108_v40 = vld [vmem:[%s5991_s0 + $0x88] ss:$16 sps:$4 sm:$0xff]   ;;  %v4110_v41 = vld [vmem:[%s5991_s0 + $0xac] ss:$16 sps:$4 sm:$0xff]   ;;  %v4097_v42 = vld [vmem:[%s5991_s0 + $0x40] ss:$16 sps:$4 sm:$0xff]  }
   0xf   :  { %1679 = vmatprep.subr.bf16.mxu1 %v4416_v0  ;;  %2158 = vmatpush1.bf16.msra.mxu0 %v4068_v9  ;;  %v4100_v43 = vld [vmem:[%s5991_s0 + $0x64] ss:$16 sps:$4 sm:$0xff]   ;;  %v4114_v44 = vld [vmem:[%s5991_s0 + $0xa8] ss:$16 sps:$4 sm:$0xff]   ;;  %v4116_v45 = vld [vmem:[%s5991_s0 + $0xcc] ss:$16 sps:$4 sm:$0xff]  }
  0x10   :  { %2159 = vmatprep.subr.bf16.mxu0 %v4416_v0  ;;  %v4103_v46 = vld [vmem:[%s5991_s0 + $0x60] ss:$16 sps:$4 sm:$0xff]   ;;  %v4106_v47 = vld [vmem:[%s5991_s0 + $0x84] ss:$16 sps:$4 sm:$0xff]   ;;  %v4120_v48 = vld [vmem:[%s5991_s0 + $0xc8] ss:$16 sps:$4 sm:$0xff]  }
  0x11   :  { %v4122_v49 = vld [vmem:[%s5991_s0 + $0xec] ss:$16 sps:$4 sm:$0xff]   ;;  %v4109_v50 = vld [vmem:[%s5991_s0 + $0x80] ss:$16 sps:$4 sm:$0xff]   ;;  %v4112_v51 = vld [vmem:[%s5991_s0 + $0xa4] ss:$16 sps:$4 sm:$0xff]  }
  0x12   :  { %1680 = vmatpush1.bf16.msra.mxu1 %v4059_v8  ;;  %v4126_v52 = vld [vmem:[%s5991_s0 + $0xe8] ss:$16 sps:$4 sm:$0xff]   ;;  %v4128_v53 = vld [vmem:[%s5991_s0 + $0x10c] ss:$16 sps:$4 sm:$0xff]   ;;  %v4115_v54 = vld [vmem:[%s5991_s0 + $0xa0] ss:$16 sps:$4 sm:$0xff]  }
  0x13   :  { %1681 = vmatprep.subr.bf16.mxu1 %v4416_v0  ;;  %2160 = vmatpush1.bf16.msra.mxu0 %v4070_v11  ;;  %v4118_v55 = vld [vmem:[%s5991_s0 + $0xc4] ss:$16 sps:$4 sm:$0xff]   ;;  %v4132_v56 = vld [vmem:[%s5991_s0 + $0x108] ss:$16 sps:$4 sm:$0xff]   ;;  %v4134_v57 = vld [vmem:[%s5991_s0 + $0x12c] ss:$16 sps:$4 sm:$0xff]  }
  0x14   :  { %2161 = vmatprep.subr.bf16.mxu0 %v4416_v0  ;;  %v4121_v58 = vld [vmem:[%s5991_s0 + $0xc0] ss:$16 sps:$4 sm:$0xff]   ;;  %v4124_v59 = vld [vmem:[%s5991_s0 + $0xe4] ss:$16 sps:$4 sm:$0xff]   ;;  %v4138_v60 = vld [vmem:[%s5991_s0 + $0x128] ss:$16 sps:$4 sm:$0xff]  }
  0x15   :  { %v4140_v61 = vld [vmem:[%s5991_s0 + $0x14c] ss:$16 sps:$4 sm:$0xff]   ;;  %v4127_v62 = vld [vmem:[%s5991_s0 + $0xe0] ss:$16 sps:$4 sm:$0xff]   ;;  %v4130_v63 = vld [vmem:[%s5991_s0 + $0x104] ss:$16 sps:$4 sm:$0xff]  }
  0x16   :  { %1682 = vmatpush1.bf16.msra.mxu1 %v4060_v10  ;;  %v4146_v1 = vld [vmem:[%s5991_s0 + $0x16c] ss:$16 sps:$4 sm:$0xff]   ;;  %v4133_v2 = vld [vmem:[%s5991_s0 + $0x100] ss:$16 sps:$4 sm:$0xff]   ;;  %v4136_v3 = vld [vmem:[%s5991_s0 + $0x124] ss:$16 sps:$4 sm:$0xff]  }
  0x17   :  { %1683 = vmatprep.subr.bf16.mxu1 %v4416_v0  ;;  %2162 = vmatpush1.bf16.msra.mxu0 %v4072_v14  ;;  %v4150_v4 = vld [vmem:[%s5991_s0 + $0x168] ss:$16 sps:$4 sm:$0xff]   ;;  %v4152_v5 = vld [vmem:[%s5991_s0 + $0x18c] ss:$16 sps:$4 sm:$0xff]   ;;  %v4139_v6 = vld [vmem:[%s5991_s0 + $0x120] ss:$16 sps:$4 sm:$0xff]  }
  0x18   :  { %2163 = vmatprep.subr.bf16.mxu0 %v4416_v0  ;;  %v4142_v7 = vld [vmem:[%s5991_s0 + $0x144] ss:$16 sps:$4 sm:$0xff]   ;;  %v4156_v8 = vld [vmem:[%s5991_s0 + $0x188] ss:$16 sps:$4 sm:$0xff]   ;;  %v4158_v9 = vld [vmem:[%s5991_s0 + $0x1ac] ss:$16 sps:$4 sm:$0xff]  }
  0x19   :  { %v4145_v10 = vld [vmem:[%s5991_s0 + $0x140] ss:$16 sps:$4 sm:$0xff]   ;;  %v4148_v11 = vld [vmem:[%s5991_s0 + $0x164] ss:$16 sps:$4 sm:$0xff]   ;;  %v4168_v16 = vld [vmem:[%s5991_s0 + $0x1c8] ss:$16 sps:$4 sm:$0xff]  }
  0x1a   :  { %1684 = vmatpush1.bf16.msra.mxu1 %v4061_v12  ;;  %v4162_v12 = vld [vmem:[%s5991_s0 + $0x1a8] ss:$16 sps:$4 sm:$0xff]   ;;  %v4151_v14 = vld [vmem:[%s5991_s0 + $0x160] ss:$16 sps:$4 sm:$0xff]   ;;  %v4154_v15 = vld [vmem:[%s5991_s0 + $0x184] ss:$16 sps:$4 sm:$0xff]  }
  0x1b   :  { %1685 = vmatprep.subr.bf16.mxu1 %v4416_v0  ;;  %2164 = vmatpush1.bf16.msra.mxu0 %v4074_v17  ;;  %v4170_v17 = vld [vmem:[%s5991_s0 + $0x1ec] ss:$16 sps:$4 sm:$0xff]  }
  0x1c   :  { %2165 = vmatprep.subr.bf16.mxu0 %v4416_v0 }
  0x1e   :  { %1686 = vmatpush1.bf16.msra.mxu1 %v4063_v13  ;;  %v4164_v13 = vld [vmem:[%s5991_s0 + $0x1cc] ss:$16 sps:$4 sm:$0xff]  }
  0x1f   :  { %1687 = vmatprep.subr.bf16.mxu1 %v4416_v0  ;;  %2166 = vmatpush1.bf16.msra.mxu0 %v4076_v19  ;;  %v4160_v19 = vld [vmem:[%s5991_s0 + $0x1a4] ss:$16 sps:$4 sm:$0xff]  }
  0x20   :  { %2167 = vmatprep.subr.bf16.mxu0 %v4416_v0 }
  0x22   :  { %1688 = vmatpush1.bf16.msra.mxu1 %v4065_v18  ;;  %v4157_v18 = vld [vmem:[%s5991_s0 + $0x180] ss:$16 sps:$4 sm:$0xff]  }
  0x23   :  { %1689 = vmatprep.subr.bf16.mxu1 %v4416_v0  ;;  %2168 = vmatpush1.bf16.msra.mxu0 %v4078_v21  ;;  %v4176_v21 = vld [vmem:[%s5991_s0 + $0x20c] ss:$16 sps:$4 sm:$0xff]  }
  0x26   :  { %1690 = vmatpush1.bf16.msra.mxu1 %v4067_v20  ;;  %2184 = vmatmul.mubr.bf16.vlgmr.msra.gmra.mrb[0].mxu0 %v4080_v23  ;;  %v4174_v20 = vld [vmem:[%s5991_s0 + $0x1e8] ss:$16 sps:$4 sm:$0xff]   ;;  %v4166_v23 = vld [vmem:[%s5991_s0 + $0x1c4] ss:$16 sps:$4 sm:$0xff]  }
  0x27   :  { %1691 = vmatprep.subr.bf16.mxu1 %v4416_v0  ;;  %3555 = vmatprep.mubr.msk.bf16.mxu0 %vm1502_vm0, %v4086_v24  ;;  %v4180_v24 = vld [vmem:[%s5991_s0 + $0x208] ss:$16 sps:$4 sm:$0xff]  }
  0x2a   :  { %1692 = vmatpush1.bf16.msra.mxu1 %v4069_v22  ;;  %v4163_v22 = vld [vmem:[%s5991_s0 + $0x1a0] ss:$16 sps:$4 sm:$0xff]  }
  0x2b   :  { %1693 = vmatprep.subr.bf16.mxu1 %v4416_v0 }
  0x2e   :  { %1694 = vmatpush1.bf16.msra.mxu1 %v4071_v25  ;;  %2192 = vmatmul.mubr.bf16.gmra.mrb[4].mxu0 %v4090_v27  ;;  %v4182_v25 = vld [vmem:[%s5991_s0 + $0x22c] ss:$16 sps:$4 sm:$0xff]   ;;  %v4172_v27 = vld [vmem:[%s5991_s0 + $0x1e4] ss:$16 sps:$4 sm:$0xff]  }
  0x2f   :  { %1695 = vmatprep.subr.bf16.mxu1 %v4416_v0  ;;  %3556 = vmatprep.mubr.msk.bf16.mxu0 %vm1502_vm0, %v4092_v28  ;;  %v4186_v28 = vld [vmem:[%s5991_s0 + $0x228] ss:$16 sps:$4 sm:$0xff]  }
  0x32   :  { %1696 = vmatpush1.bf16.msra.mxu1 %v4073_v26  ;;  %v4169_v26 = vld [vmem:[%s5991_s0 + $0x1c0] ss:$16 sps:$4 sm:$0xff]  }
  0x33   :  { %1697 = vmatprep.subr.bf16.mxu1 %v4416_v0 }
  0x36   :  { %1698 = vmatpush1.bf16.msra.mxu1 %v4075_v29  ;;  %2200 = vmatmul.mubr.bf16.gmra.mrb[8].mxu0 %v4096_v31  ;;  %v4188_v29 = vld [vmem:[%s5991_s0 + $0x24c] ss:$16 sps:$4 sm:$0xff]   ;;  %v4178_v31 = vld [vmem:[%s5991_s0 + $0x204] ss:$16 sps:$4 sm:$0xff]  }
  0x37   :  { %1699 = vmatprep.subr.bf16.mxu1 %v4416_v0  ;;  %3557 = vmatprep.mubr.msk.bf16.mxu0 %vm1502_vm0, %v4098_v32  ;;  %v4192_v32 = vld [vmem:[%s5991_s0 + $0x248] ss:$16 sps:$4 sm:$0xff]  }
  0x3a   :  { %1700 = vmatpush1.bf16.msra.mxu1 %v4077_v30  ;;  %v4175_v30 = vld [vmem:[%s5991_s0 + $0x1e0] ss:$16 sps:$4 sm:$0xff]  }
  0x3b   :  { %1701 = vmatprep.subr.bf16.mxu1 %v4416_v0  ;;  %v4144_v0 = vld [vmem:[%s5991_s0 + $0x148] ss:$16 sps:$4 sm:$0xff]  }
  0x3e   :  { %1702 = vmatpush1.bf16.msra.mxu1 %v4079_v33  ;;  %2208 = vmatmul.mubr.bf16.gmra.mrb[12].mxu0 %v4102_v36  ;;  %v4194_v33 = vld [vmem:[%s5991_s0 + $0x26c] ss:$16 sps:$4 sm:$0xff]   ;;  %v4198_v36 = vld [vmem:[%s5991_s0 + $0x268] ss:$16 sps:$4 sm:$0xff]  }
  0x3f   :  { %3558 = vmatprep.mubr.msk.bf16.mxu0 %vm1502_vm0, %v4104_v37  ;;  %v4200_v37 = vld [vmem:[%s5991_s0 + $0x28c] ss:$16 sps:$4 sm:$0xff]  }
  0x41   :  { %1704 = vmatmul.mubr.bf16.vlgmr.msra.gmra.mrb[0].mxu1 %v4083_v34  ;;  %v4181_v34 = vld [vmem:[%s5991_s0 + $0x200] ss:$16 sps:$4 sm:$0xff]  }
  0x42   :  { %1711 = vmatprep.mubr.bf16.mxu1 %v4088_v35  ;;  %v4184_v35 = vld [vmem:[%s5991_s0 + $0x224] ss:$16 sps:$4 sm:$0xff]  }
  0x46   :  { %2216 = vmatmul.mubr.bf16.gmra.mrb[16].mxu0 %v4108_v40  ;;  %v4204_v40 = vld [vmem:[%s5991_s0 + $0x288] ss:$16 sps:$4 sm:$0xff]  }
  0x47   :  { %3559 = vmatprep.mubr.msk.bf16.mxu0 %vm1502_vm0, %v4110_v41  ;;  %v4206_v41 = vld [vmem:[%s5991_s0 + $0x2ac] ss:$16 sps:$4 sm:$0xff]  }
  0x49   :  { %1712 = vmatmul.mubr.bf16.gmra.mrb[4].mxu1 %v4091_v38  ;;  %v4187_v38 = vld [vmem:[%s5991_s0 + $0x220] ss:$16 sps:$4 sm:$0xff]  }
  0x4a   :  { %1719 = vmatprep.mubr.bf16.mxu1 %v4094_v39  ;;  %v4190_v39 = vld [vmem:[%s5991_s0 + $0x244] ss:$16 sps:$4 sm:$0xff]  }
  0x4e   :  { %2224 = vmatmul.mubr.bf16.gmra.mrb[20].mxu0 %v4114_v44  ;;  %v4210_v44 = vld [vmem:[%s5991_s0 + $0x2a8] ss:$16 sps:$4 sm:$0xff]  }
  0x4f   :  { %3560 = vmatprep.mubr.msk.bf16.mxu0 %vm1502_vm0, %v4116_v45  ;;  %v4212_v45 = vld [vmem:[%s5991_s0 + $0x2cc] ss:$16 sps:$4 sm:$0xff]  }
  0x51   :  { %1720 = vmatmul.mubr.bf16.gmra.mrb[8].mxu1 %v4097_v42  ;;  %v4193_v42 = vld [vmem:[%s5991_s0 + $0x240] ss:$16 sps:$4 sm:$0xff]  }
  0x52   :  { %1727 = vmatprep.mubr.bf16.mxu1 %v4100_v43  ;;  %v4196_v43 = vld [vmem:[%s5991_s0 + $0x264] ss:$16 sps:$4 sm:$0xff]  }
  0x56   :  { %2232 = vmatmul.mubr.bf16.gmra.mrb[24].mxu0 %v4120_v48  ;;  %v4216_v48 = vld [vmem:[%s5991_s0 + $0x2c8] ss:$16 sps:$4 sm:$0xff]  }
  0x57   :  { %3561 = vmatprep.mubr.msk.bf16.mxu0 %vm1502_vm0, %v4122_v49  ;;  %v4218_v49 = vld [vmem:[%s5991_s0 + $0x2ec] ss:$16 sps:$4 sm:$0xff]  }
  0x59   :  { %1728 = vmatmul.mubr.bf16.gmra.mrb[12].mxu1 %v4103_v46  ;;  %v4199_v46 = vld [vmem:[%s5991_s0 + $0x260] ss:$16 sps:$4 sm:$0xff]  }
  0x5a   :  { %1735 = vmatprep.mubr.bf16.mxu1 %v4106_v47  ;;  %v4202_v47 = vld [vmem:[%s5991_s0 + $0x284] ss:$16 sps:$4 sm:$0xff]  }
  0x5e   :  { %2240 = vmatmul.mubr.bf16.gmra.mrb[28].mxu0 %v4126_v52  ;;  %v4222_v52 = vld [vmem:[%s5991_s0 + $0x2e8] ss:$16 sps:$4 sm:$0xff]  }
  0x5f   :  { %3562 = vmatprep.mubr.msk.bf16.mxu0 %vm1502_vm0, %v4128_v53  ;;  %v4224_v53 = vld [vmem:[%s5991_s0 + $0x30c] ss:$16 sps:$4 sm:$0xff]  }
  0x61   :  { %1736 = vmatmul.mubr.bf16.gmra.mrb[16].mxu1 %v4109_v50  ;;  %v4205_v50 = vld [vmem:[%s5991_s0 + $0x280] ss:$16 sps:$4 sm:$0xff]  }
  0x62   :  { %1743 = vmatprep.mubr.bf16.mxu1 %v4112_v51  ;;  %v4208_v51 = vld [vmem:[%s5991_s0 + $0x2a4] ss:$16 sps:$4 sm:$0xff]  }
  0x66   :  { %2248 = vmatmul.mubr.bf16.gmra.mrb[32].mxu0 %v4132_v56  ;;  %v4228_v56 = vld [vmem:[%s5991_s0 + $0x308] ss:$16 sps:$4 sm:$0xff]  }
  0x67   :  { %3563 = vmatprep.mubr.msk.bf16.mxu0 %vm1502_vm0, %v4134_v57  ;;  %v4230_v57 = vld [vmem:[%s5991_s0 + $0x32c] ss:$16 sps:$4 sm:$0xff]  }
  0x69   :  { %1744 = vmatmul.mubr.bf16.gmra.mrb[20].mxu1 %v4115_v54  ;;  %v4211_v54 = vld [vmem:[%s5991_s0 + $0x2a0] ss:$16 sps:$4 sm:$0xff]  }
  0x6a   :  { %1751 = vmatprep.mubr.bf16.mxu1 %v4118_v55  ;;  %v4214_v55 = vld [vmem:[%s5991_s0 + $0x2c4] ss:$16 sps:$4 sm:$0xff]  }
  0x6e   :  { %2256 = vmatmul.mubr.bf16.gmra.mrb[36].mxu0 %v4138_v60  ;;  %v4234_v60 = vld [vmem:[%s5991_s0 + $0x328] ss:$16 sps:$4 sm:$0xff]  }
  0x6f   :  { %3564 = vmatprep.mubr.msk.bf16.mxu0 %vm1502_vm0, %v4140_v61  ;;  %v4236_v61 = vld [vmem:[%s5991_s0 + $0x34c] ss:$16 sps:$4 sm:$0xff]  }
  0x71   :  { %1752 = vmatmul.mubr.bf16.gmra.mrb[24].mxu1 %v4121_v58  ;;  %v4217_v58 = vld [vmem:[%s5991_s0 + $0x2c0] ss:$16 sps:$4 sm:$0xff]  }
  0x72   :  { %1759 = vmatprep.mubr.bf16.mxu1 %v4124_v59  ;;  %v4220_v59 = vld [vmem:[%s5991_s0 + $0x2e4] ss:$16 sps:$4 sm:$0xff]  }
  0x76   :  { %2264 = vmatmul.mubr.bf16.gmra.mrb[40].mxu0 %v4144_v0  ;;  %v4240_v0 = vld [vmem:[%s5991_s0 + $0x348] ss:$16 sps:$4 sm:$0xff]  }
  0x77   :  { %3565 = vmatprep.mubr.msk.bf16.mxu0 %vm1502_vm0, %v4146_v1  ;;  %v4242_v1 = vld [vmem:[%s5991_s0 + $0x36c] ss:$16 sps:$4 sm:$0xff]  }
  0x79   :  { %1760 = vmatmul.mubr.bf16.gmra.mrb[28].mxu1 %v4127_v62  ;;  %v4223_v62 = vld [vmem:[%s5991_s0 + $0x2e0] ss:$16 sps:$4 sm:$0xff]  }
  0x7a   :  { %1767 = vmatprep.mubr.bf16.mxu1 %v4130_v63  ;;  %v4226_v63 = vld [vmem:[%s5991_s0 + $0x304] ss:$16 sps:$4 sm:$0xff]  }
  0x7e   :  { %2272 = vmatmul.mubr.bf16.gmra.mrb[44].mxu0 %v4150_v4 }
  0x7f   :  { %3566 = vmatprep.mubr.msk.bf16.mxu0 %vm1502_vm0, %v4152_v5 }
  0x81   :  { %1768 = vmatmul.mubr.bf16.gmra.mrb[32].mxu1 %v4133_v2  ;;  %v4229_v2 = vld [vmem:[%s5991_s0 + $0x300] ss:$16 sps:$4 sm:$0xff]  }
  0x82   :  { %1775 = vmatprep.mubr.bf16.mxu1 %v4136_v3  ;;  %v4232_v3 = vld [vmem:[%s5991_s0 + $0x324] ss:$16 sps:$4 sm:$0xff]  }
  0x86   :  { %2280 = vmatmul.mubr.bf16.gmra.mrb[48].mxu0 %v4156_v8  ;;  %v4248_v8 = vld [vmem:[%s5991_s0 + $0x38c] ss:$16 sps:$4 sm:$0xff]  }
  0x87   :  { %3567 = vmatprep.mubr.msk.bf16.mxu0 %vm1502_vm0, %v4158_v9 }
  0x89   :  { %1776 = vmatmul.mubr.bf16.gmra.mrb[36].mxu1 %v4139_v6  ;;  %v4246_v6 = vld [vmem:[%s5991_s0 + $0x368] ss:$16 sps:$4 sm:$0xff]  }
  0x8a   :  { %1783 = vmatprep.mubr.bf16.mxu1 %v4142_v7 }
  0x8e   :  { %2288 = vmatmul.mubr.bf16.gmra.mrb[52].mxu0 %v4162_v12 }
  0x8f   :  { %3568 = vmatprep.mubr.msk.bf16.mxu0 %vm1502_vm0, %v4164_v13 }
  0x91   :  { %1784 = vmatmul.mubr.bf16.gmra.mrb[40].mxu1 %v4145_v10  ;;  %v4235_v10 = vld [vmem:[%s5991_s0 + $0x320] ss:$16 sps:$4 sm:$0xff]  }
  0x92   :  { %1791 = vmatprep.mubr.bf16.mxu1 %v4148_v11  ;;  %v4238_v11 = vld [vmem:[%s5991_s0 + $0x344] ss:$16 sps:$4 sm:$0xff]  }
  0x96   :  { %2296 = vmatmul.mubr.bf16.gmra.mrb[56].mxu0 %v4168_v16  ;;  %v4254_v16 = vld [vmem:[%s5991_s0 + $0x3ac] ss:$16 sps:$4 sm:$0xff]  }
  0x97   :  { %3569 = vmatprep.mubr.msk.bf16.mxu0 %vm1502_vm0, %v4170_v17 }
  0x99   :  { %1792 = vmatmul.mubr.bf16.gmra.mrb[44].mxu1 %v4151_v14  ;;  %v4252_v14 = vld [vmem:[%s5991_s0 + $0x388] ss:$16 sps:$4 sm:$0xff]  }
  0x9a   :  { %1799 = vmatprep.mubr.bf16.mxu1 %v4154_v15 }
  0x9e   :  { %2304 = vmatmul.mubr.bf16.gmra.mrb[60].mxu0 %v4174_v20 }
  0x9f   :  { %3570 = vmatprep.mubr.msk.bf16.mxu0 %vm1502_vm0, %v4176_v21 }
  0xa1   :  { %1800 = vmatmul.mubr.bf16.gmra.mrb[48].mxu1 %v4157_v18  ;;  %v4241_v18 = vld [vmem:[%s5991_s0 + $0x340] ss:$16 sps:$4 sm:$0xff]  }
  0xa2   :  { %1807 = vmatprep.mubr.bf16.mxu1 %v4160_v19  ;;  %v4244_v19 = vld [vmem:[%s5991_s0 + $0x364] ss:$16 sps:$4 sm:$0xff]  }
  0xa6   :  { %2312 = vmatmul.mubr.bf16.gmra.mrb[64].mxu0 %v4180_v24  ;;  %v4260_v24 = vld [vmem:[%s5991_s0 + $0x3cc] ss:$16 sps:$4 sm:$0xff]  }
  0xa7   :  { %3571 = vmatprep.mubr.msk.bf16.mxu0 %vm1502_vm0, %v4182_v25  ;;  %v4922_v25 = vld [vmem:[%s5992_s2] ss:$0 sm:$0xff] }
  0xa9   :  { %1808 = vmatmul.mubr.bf16.gmra.mrb[52].mxu1 %v4163_v22  ;;  %v4258_v22 = vld [vmem:[%s5991_s0 + $0x3a8] ss:$16 sps:$4 sm:$0xff]  }
  0xaa   :  { %1815 = vmatprep.mubr.bf16.mxu1 %v4166_v23 }
  0xae   :  { %2320 = vmatmul.mubr.bf16.gmra.mrb[68].mxu0 %v4186_v28 }
  0xaf   :  { %3572 = vmatprep.mubr.msk.bf16.mxu0 %vm1502_vm0, %v4188_v29 }
  0xb1   :  { %1816 = vmatmul.mubr.bf16.gmra.mrb[56].mxu1 %v4169_v26 }
  0xb2   :  { %1823 = vmatprep.mubr.bf16.mxu1 %v4172_v27 }
  0xb6   :  { %2328 = vmatmul.mubr.bf16.gmra.mrb[72].mxu0 %v4192_v32  ;;  %v4250_v32 = vld [vmem:[%s5991_s0 + $0x384] ss:$16 sps:$4 sm:$0xff]  }
  0xb7   :  { %3573 = vmatprep.mubr.msk.bf16.mxu0 %vm1502_vm0, %v4194_v33 }
  0xb9   :  { %1824 = vmatmul.mubr.bf16.gmra.mrb[60].mxu1 %v4175_v30  ;;  %v4247_v30 = vld [vmem:[%s5991_s0 + $0x360] ss:$16 sps:$4 sm:$0xff]  }
  0xba   :  { %1831 = vmatprep.mubr.bf16.mxu1 %v4178_v31 }
  0xbe   :  { %2336 = vmatmul.mubr.bf16.gmra.mrb[76].mxu0 %v4198_v36 }
  0xbf   :  { %3574 = vmatprep.mubr.msk.bf16.mxu0 %vm1502_vm0, %v4200_v37 }
  0xc1   :  { %1832 = vmatmul.mubr.bf16.gmra.mrb[64].mxu1 %v4181_v34 }
  0xc2   :  { %1839 = vmatprep.mubr.bf16.mxu1 %v4184_v35 }
  0xc6   :  { %2344 = vmatmul.mubr.bf16.gmra.mrb[80].mxu0 %v4204_v40 }
  0xc7   :  { %3575 = vmatprep.mubr.msk.bf16.mxu0 %vm1502_vm0, %v4206_v41 }
  0xc9   :  { %1840 = vmatmul.mubr.bf16.gmra.mrb[68].mxu1 %v4187_v38  ;;  %v4264_v38 = vld [vmem:[%s5991_s0 + $0x3c8] ss:$16 sps:$4 sm:$0xff]  }
  0xca   :  { %1847 = vmatprep.mubr.bf16.mxu1 %v4190_v39 }
  0xce   :  { %2352 = vmatmul.mubr.bf16.gmra.mrb[84].mxu0 %v4210_v44 }
  0xcf   :  { %3576 = vmatprep.mubr.msk.bf16.mxu0 %vm1502_vm0, %v4212_v45 }
  0xd1   :  { %1848 = vmatmul.mubr.bf16.gmra.mrb[72].mxu1 %v4193_v42  ;;  %v4266_v42 = vld [vmem:[%s5991_s0 + $0x3ec] ss:$16 sps:$4 sm:$0xff]  }
  0xd2   :  { %1855 = vmatprep.mubr.bf16.mxu1 %v4196_v43 }
  0xd6   :  { %2360 = vmatmul.mubr.bf16.gmra.mrb[88].mxu0 %v4216_v48 }
  0xd7   :  { %3577 = vmatprep.mubr.msk.bf16.mxu0 %vm1502_vm0, %v4218_v49 }
  0xd9   :  { %1856 = vmatmul.mubr.bf16.gmra.mrb[76].mxu1 %v4199_v46 }
  0xda   :  { %1863 = vmatprep.mubr.bf16.mxu1 %v4202_v47 }
  0xde   :  { %2368 = vmatmul.mubr.bf16.gmra.mrb[92].mxu0 %v4222_v52  ;;  %v4256_v52 = vld [vmem:[%s5991_s0 + $0x3a4] ss:$16 sps:$4 sm:$0xff]  }
  0xdf   :  { %3578 = vmatprep.mubr.msk.bf16.mxu0 %vm1502_vm0, %v4224_v53 }
  0xe1   :  { %1864 = vmatmul.mubr.bf16.gmra.mrb[80].mxu1 %v4205_v50  ;;  %v4253_v50 = vld [vmem:[%s5991_s0 + $0x380] ss:$16 sps:$4 sm:$0xff]  }
  0xe2   :  { %1871 = vmatprep.mubr.bf16.mxu1 %v4208_v51 }
  0xe6   :  { %2376 = vmatmul.mubr.bf16.gmra.mrb[96].mxu0 %v4228_v56 }
  0xe7   :  { %3579 = vmatprep.mubr.msk.bf16.mxu0 %vm1502_vm0, %v4230_v57 }
  0xe9   :  { %1872 = vmatmul.mubr.bf16.gmra.mrb[84].mxu1 %v4211_v54 }
  0xea   :  { %1879 = vmatprep.mubr.bf16.mxu1 %v4214_v55 }
  0xee   :  { %2384 = vmatmul.mubr.bf16.gmra.mrb[100].mxu0 %v4234_v60 }
  0xef   :  { %3580 = vmatprep.mubr.msk.bf16.mxu0 %vm1502_vm0, %v4236_v61 }
  0xf1   :  { %1880 = vmatmul.mubr.bf16.gmra.mrb[88].mxu1 %v4217_v58  ;;  %v4270_v58 = vld [vmem:[%s5991_s0 + $0x3e8] ss:$16 sps:$4 sm:$0xff]  }
  0xf2   :  { %1887 = vmatprep.mubr.bf16.mxu1 %v4220_v59 }
  0xf6   :  { %2392 = vmatmul.mubr.bf16.gmra.mrb[104].mxu0 %v4240_v0 }
  0xf7   :  { %3581 = vmatprep.mubr.msk.bf16.mxu0 %vm1502_vm0, %v4242_v1 }
  0xf9   :  { %1888 = vmatmul.mubr.bf16.gmra.mrb[92].mxu1 %v4223_v62  ;;  %v2185_v4 = vpop.f32.mrb[0].mxu0  ;;  %v4272_v62 = vld [vmem:[%s5991_s0 + $0x40c] ss:$16 sps:$4 sm:$0xff]  }
  0xfa   :  { %1895 = vmatprep.mubr.bf16.mxu1 %v4226_v63  ;;  %v2187_v5 = vpop.f32.mrb[1].mxu0 }
  0xfb   :  { %v2188_v7 = vpop.f32.mrb[2].mxu0 }
  0xfc   :  { %v2190_v9 = vpop.f32.mrb[3].mxu0 }
  0xfe   :  { %2400 = vmatmul.mubr.bf16.gmra.mrb[108].mxu0 %v4246_v6  ;;  %v4259_v6 = vld [vmem:[%s5991_s0 + $0x3a0] ss:$16 sps:$4 sm:$0xff]  }
  0xff   :  { %3582 = vmatprep.mubr.msk.bf16.mxu0 %vm1502_vm0, %v4248_v8  ;;  %v4262_v8 = vld [vmem:[%s5991_s0 + $0x3c4] ss:$16 sps:$4 sm:$0xff]  }
 0x101   :  { %1896 = vmatmul.mubr.bf16.gmra.mrb[96].mxu1 %v4229_v2  ;;  %v2193_v12 = vpop.f32.mrb[4].mxu0 }
 0x102   :  { %1903 = vmatprep.mubr.bf16.mxu1 %v4232_v3  ;;  %v2195_v13 = vpop.f32.mrb[5].mxu0 }
 0x103   :  { %v2196_v15 = vpop.f32.mrb[6].mxu0 }
 0x104   :  { %v2198_v17 = vpop.f32.mrb[7].mxu0 }
 0x106   :  { %2408 = vmatmul.mubr.bf16.gmra.mrb[112].mxu0 %v4252_v14  ;;  %v4276_v14 = vld [vmem:[%s5991_s0 + $0x408] ss:$16 sps:$4 sm:$0xff]  }
 0x107   :  { %3583 = vmatprep.mubr.msk.bf16.mxu0 %vm1502_vm0, %v4254_v16 }
 0x109   :  { %1904 = vmatmul.mubr.bf16.gmra.mrb[100].mxu1 %v4235_v10  ;;  %v4909_v20 = vpop.f32.mrb[8].mxu0 }
 0x10a   :  { %1911 = vmatprep.mubr.bf16.mxu1 %v4238_v11  ;;  %v2203_v21 = vpop.f32.mrb[9].mxu0 }
 0x10b   :  { %v4914_v23 = vpop.f32.mrb[10].mxu0 }
 0x10c   :  { %v2206_v26 = vpop.f32.mrb[11].mxu0 }
 0x10e   :  { %2416 = vmatmul.mubr.bf16.gmra.mrb[116].mxu0 %v4258_v22 }
 0x10f   :  { %3584 = vmatprep.mubr.msk.bf16.mxu0 %vm1502_vm0, %v4260_v24 }
 0x111   :  { %1912 = vmatmul.mubr.bf16.gmra.mrb[104].mxu1 %v4241_v18  ;;  %v4933_v36 = vpop.f32.mrb[12].mxu0  ;;  %v4278_v18 = vld [vmem:[%s5991_s0 + $0x42c] ss:$16 sps:$4 sm:$0xff]  }
 0x112   :  { %1919 = vmatprep.mubr.bf16.mxu1 %v4244_v19  ;;  %v2211_v37 = vpop.f32.mrb[13].mxu0 }
 0x113   :  { %v4938_v41 = vpop.f32.mrb[14].mxu0 }
 0x114   :  { %v1705_v27 = vpop.f32.mrb[0].mxu1  ;;  %v2214_v43 = vpop.f32.mrb[15].mxu0 }
 0x115   :  { %v1706_v28 = vadd.f32 %v4922_v25, %v1705_v27  ;;  %v1707_v29 = vpop.f32.mrb[1].mxu1  ;;  %v4265_v27 = vld [vmem:[%s5991_s0 + $0x3c0] ss:$16 sps:$4 sm:$0xff]  }
 0x116   :  { %v1708_v31 = vpop.f32.mrb[2].mxu1  ;;  %2424 = vmatmul.mubr.bf16.gmra.mrb[120].mxu0 %v4264_v38  ;;  %v4268_v29 = vld [vmem:[%s5991_s0 + $0x3e4] ss:$16 sps:$4 sm:$0xff]  }
 0x117   :  { %v2186_v33 = vadd.f32 %v2185_v4, %v1706_v28  ;;  %v1709_v34 = vadd.f32 %v4922_v25, %v1708_v31  ;;  %v1710_v35 = vpop.f32.mrb[3].mxu1  ;;  %3585 = vmatprep.mubr.msk.bf16.mxu0 %vm1502_vm0, %v4266_v42 }
 0x118   :  { %v4282_v35 = vld [vmem:[%s5991_s0 + $0x428] ss:$16 sps:$4 sm:$0xff]  }
 0x119   :  { %v2631_v39 = vmax.f32 %v2186_v33, 0.0  ;;  %v2189_v40 = vadd.f32 %v2188_v7, %v1709_v34  ;;  %1920 = vmatmul.mubr.bf16.gmra.mrb[108].mxu1 %v4247_v30  ;;  %v4960_v56 = vpop.f32.mrb[16].mxu0 }
 0x11a   :  { %1927 = vmatprep.mubr.bf16.mxu1 %v4250_v32  ;;  %v2219_v57 = vpop.f32.mrb[17].mxu0 }
 0x11b   :  { %v3721_v44 = vpack.c.bf16 %v2631_v39, %v2631_v39  ;;  %v2632_v45 = vmax.f32 %v2189_v40, 0.0  ;;  %v4965_v61 = vpop.f32.mrb[18].mxu0 }
 0x11c   :  { %v1713_v46 = vpop.f32.mrb[4].mxu1  ;;  %v2222_v63 = vpop.f32.mrb[19].mxu0 }
 0x11d   :  { %3188 = vst.msk [vmem:[%s5993_s3] sm:$0xf] %vm3187_vm1, %v3721_v44  ;;  %v3722_v47 = vpack.c.bf16 %v2632_v45, %v2632_v45  ;;  %v1714_v48 = vadd.f32 %v4922_v25, %v1713_v46  ;;  %v1715_v49 = vpop.f32.mrb[5].mxu1 }
 0x11e   :  { %v1716_v51 = vpop.f32.mrb[6].mxu1  ;;  %2432 = vmatmul.mubr.bf16.gmra.mrb[124].mxu0 %v4270_v58  ;;  %v4274_v49 = vld [vmem:[%s5991_s0 + $0x404] ss:$16 sps:$4 sm:$0xff]  }
 0x11f   :  { %3189 = vst.msk [vmem:[%s5993_s3 + $0x4] sm:$0xf] %vm3187_vm1, %v3722_v47  ;;  %v2194_v53 = vadd.f32 %v2193_v12, %v1714_v48  ;;  %v1717_v54 = vadd.f32 %v4922_v25, %v1716_v51  ;;  %v1718_v55 = vpop.f32.mrb[7].mxu1  ;;  %3586 = vmatprep.mubr.msk.bf16.mxu0 %vm1502_vm0, %v4272_v62  ;;  %v4271_v47 = vld [vmem:[%s5991_s0 + $0x3e0] ss:$16 sps:$4 sm:$0xff]  }
 0x120   :  { %v4288_v55 = vld [vmem:[%s5991_s0 + $0x448] ss:$16 sps:$4 sm:$0xff]  }
 0x121   :  { %v2633_v59 = vmax.f32 %v2194_v53, 0.0  ;;  %v2197_v60 = vadd.f32 %v2196_v15, %v1717_v54  ;;  %1928 = vmatmul.mubr.bf16.gmra.mrb[112].mxu1 %v4253_v50  ;;  %v4988_v12 = vpop.f32.mrb[20].mxu0 }
 0x122   :  { %1935 = vmatprep.mubr.bf16.mxu1 %v4256_v52  ;;  %v2227_v13 = vpop.f32.mrb[21].mxu0 }
 0x123   :  { %v3723_v0 = vpack.c.bf16 %v2633_v59, %v2633_v59  ;;  %v2634_v1 = vmax.f32 %v2197_v60, 0.0  ;;  %v4994_v17 = vpop.f32.mrb[22].mxu0 }
 0x124   :  { %v1721_v2 = vpop.f32.mrb[8].mxu1  ;;  %v2230_v19 = vpop.f32.mrb[23].mxu0 }
 0x125   :  { %3190 = vst.msk [vmem:[%s5993_s3 + $0x8] sm:$0xf] %vm3187_vm1, %v3723_v0  ;;  %v3724_v3 = vpack.c.bf16 %v2634_v1, %v2634_v1  ;;  %v1722_v4 = vadd.f32 %v4922_v25, %v1721_v2  ;;  %v1723_v5 = vpop.f32.mrb[9].mxu1 }
 0x126   :  { %v1724_v7 = vpop.f32.mrb[10].mxu1  ;;  %2440 = vmatmul.mubr.bf16.gmra.mrb[128].mxu0 %v4276_v14  ;;  %v4280_v5 = vld [vmem:[%s5991_s0 + $0x424] ss:$16 sps:$4 sm:$0xff]  }
 0x127   :  { %3191 = vst.msk [vmem:[%s5993_s3 + $0xc] sm:$0xf] %vm3187_vm1, %v3724_v3  ;;  %v2202_v9 = vadd.f32 %v4909_v20, %v1722_v4  ;;  %v1725_v10 = vadd.f32 %v4922_v25, %v1724_v7  ;;  %v1726_v11 = vpop.f32.mrb[11].mxu1  ;;  %3587 = vmatprep.mubr.msk.bf16.mxu0 %vm1502_vm0, %v4278_v18  ;;  %v4277_v3 = vld [vmem:[%s5991_s0 + $0x400] ss:$16 sps:$4 sm:$0xff]  }
 0x128   :  { %v4294_v11 = vld [vmem:[%s5991_s0 + $0x468] ss:$16 sps:$4 sm:$0xff]  }
 0x129   :  { %v2635_v15 = vmax.f32 %v2202_v9, 0.0  ;;  %v2205_v16 = vadd.f32 %v4914_v23, %v1725_v10  ;;  %1936 = vmatmul.mubr.bf16.gmra.mrb[116].mxu1 %v4259_v6  ;;  %v5017_v33 = vpop.f32.mrb[24].mxu0 }
 0x12a   :  { %1943 = vmatprep.mubr.bf16.mxu1 %v4262_v8  ;;  %v2235_v34 = vpop.f32.mrb[25].mxu0 }
 0x12b   :  { %v3725_v20 = vpack.c.bf16 %v2635_v15, %v2635_v15  ;;  %v2636_v21 = vmax.f32 %v2205_v16, 0.0  ;;  %v5023_v39 = vpop.f32.mrb[26].mxu0 }
 0x12c   :  { %v1729_v22 = vpop.f32.mrb[12].mxu1  ;;  %v2238_v40 = vpop.f32.mrb[27].mxu0 }
 0x12d   :  { %3192 = vst.msk [vmem:[%s5993_s3 + $0x10] sm:$0xf] %vm3187_vm1, %v3725_v20  ;;  %v3726_v24 = vpack.c.bf16 %v2636_v21, %v2636_v21  ;;  %v1730_v23 = vadd.f32 %v4922_v25, %v1729_v22  ;;  %v1731_v26 = vpop.f32.mrb[13].mxu1 }
 0x12e   :  { %v1732_v28 = vpop.f32.mrb[14].mxu1  ;;  %2448 = vmatmul.mubr.bf16.gmra.mrb[132].mxu0 %v4282_v35  ;;  %v4286_v26 = vld [vmem:[%s5991_s0 + $0x444] ss:$16 sps:$4 sm:$0xff]  }
 0x12f   :  { %3193 = vst.msk [vmem:[%s5993_s3 + $0x14] sm:$0xf] %vm3187_vm1, %v3726_v24  ;;  %v2210_v30 = vadd.f32 %v4933_v36, %v1730_v23  ;;  %v1733_v31 = vadd.f32 %v4922_v25, %v1732_v28  ;;  %v1734_v32 = vpop.f32.mrb[15].mxu1  ;;  %v4284_v36 = vld [vmem:[%s5991_s0 + $0x44c] ss:$16 sps:$4 sm:$0xff]  }
 0x130   :  { %3588 = vmatprep.mubr.msk.bf16.mxu0 %vm1502_vm0, %v4284_v36  ;;  %v4283_v24 = vld [vmem:[%s5991_s0 + $0x420] ss:$16 sps:$4 sm:$0xff]   ;;  %v4300_v32 = vld [vmem:[%s5991_s0 + $0x488] ss:$16 sps:$4 sm:$0xff]  }
 0x131   :  { %v2637_v37 = vmax.f32 %v2210_v30, 0.0  ;;  %v2213_v38 = vadd.f32 %v4938_v41, %v1733_v31  ;;  %1944 = vmatmul.mubr.bf16.gmra.mrb[120].mxu1 %v4265_v27  ;;  %v5046_v53 = vpop.f32.mrb[28].mxu0 }
 0x132   :  { %1951 = vmatprep.mubr.bf16.mxu1 %v4268_v29  ;;  %v2243_v54 = vpop.f32.mrb[29].mxu0 }
 0x133   :  { %v3727_v42 = vpack.c.bf16 %v2637_v37, %v2637_v37  ;;  %v2638_v43 = vmax.f32 %v2213_v38, 0.0  ;;  %v5052_v59 = vpop.f32.mrb[30].mxu0 }
 0x134   :  { %v1737_v44 = vpop.f32.mrb[16].mxu1  ;;  %v2246_v60 = vpop.f32.mrb[31].mxu0 }
 0x135   :  { %3194 = vst.msk [vmem:[%s5993_s3 + $0x18] sm:$0xf] %vm3187_vm1, %v3727_v42  ;;  %v3728_v45 = vpack.c.bf16 %v2638_v43, %v2638_v43  ;;  %v1738_v41 = vadd.f32 %v4922_v25, %v1737_v44  ;;  %v1739_v46 = vpop.f32.mrb[17].mxu1 }
 0x136   :  { %v1740_v48 = vpop.f32.mrb[18].mxu1  ;;  %2456 = vmatmul.mubr.bf16.gmra.mrb[136].mxu0 %v4288_v55  ;;  %v4292_v46 = vld [vmem:[%s5991_s0 + $0x464] ss:$16 sps:$4 sm:$0xff]  }
 0x137   :  { %3195 = vst.msk [vmem:[%s5993_s3 + $0x1c] sm:$0xf] %vm3187_vm1, %v3728_v45  ;;  %v2218_v50 = vadd.f32 %v4960_v56, %v1738_v41  ;;  %v1741_v51 = vadd.f32 %v4922_v25, %v1740_v48  ;;  %v1742_v52 = vpop.f32.mrb[19].mxu1  ;;  %v4290_v56 = vld [vmem:[%s5991_s0 + $0x46c] ss:$16 sps:$4 sm:$0xff]  }
 0x138   :  { %3589 = vmatprep.mubr.msk.bf16.mxu0 %vm1502_vm0, %v4290_v56  ;;  %v4289_v45 = vld [vmem:[%s5991_s0 + $0x440] ss:$16 sps:$4 sm:$0xff]   ;;  %v4306_v52 = vld [vmem:[%s5991_s0 + $0x4a8] ss:$16 sps:$4 sm:$0xff]  }
 0x139   :  { %v2639_v57 = vmax.f32 %v2218_v50, 0.0  ;;  %v2221_v58 = vadd.f32 %v4965_v61, %v1741_v51  ;;  %1952 = vmatmul.mubr.bf16.gmra.mrb[124].mxu1 %v4271_v47  ;;  %v5075_v9 = vpop.f32.mrb[32].mxu0 }
 0x13a   :  { %1959 = vmatprep.mubr.bf16.mxu1 %v4274_v49  ;;  %v2251_v10 = vpop.f32.mrb[33].mxu0 }
 0x13b   :  { %v3729_v62 = vpack.c.bf16 %v2639_v57, %v2639_v57  ;;  %v2640_v63 = vmax.f32 %v2221_v58, 0.0  ;;  %v5081_v15 = vpop.f32.mrb[34].mxu0 }
 0x13c   :  { %v1745_v0 = vpop.f32.mrb[20].mxu1  ;;  %v2254_v16 = vpop.f32.mrb[35].mxu0 }
 0x13d   :  { %3196 = vst.msk [vmem:[%s5993_s3 + $0x20] sm:$0xf] %vm3187_vm1, %v3729_v62  ;;  %v3730_v1 = vpack.c.bf16 %v2640_v63, %v2640_v63  ;;  %v1746_v61 = vadd.f32 %v4922_v25, %v1745_v0  ;;  %v1747_v2 = vpop.f32.mrb[21].mxu1 }
 0x13e   :  { %v1748_v4 = vpop.f32.mrb[22].mxu1  ;;  %2464 = vmatmul.mubr.bf16.gmra.mrb[140].mxu0 %v4294_v11  ;;  %v4298_v2 = vld [vmem:[%s5991_s0 + $0x484] ss:$16 sps:$4 sm:$0xff]  }
 0x13f   :  { %3197 = vst.msk [vmem:[%s5993_s3 + $0x24] sm:$0xf] %vm3187_vm1, %v3730_v1  ;;  %v2226_v6 = vadd.f32 %v4988_v12, %v1746_v61  ;;  %v1749_v7 = vadd.f32 %v4922_v25, %v1748_v4  ;;  %v1750_v8 = vpop.f32.mrb[23].mxu1  ;;  %v4296_v12 = vld [vmem:[%s5991_s0 + $0x48c] ss:$16 sps:$4 sm:$0xff]  }
 0x140   :  { %3590 = vmatprep.mubr.msk.bf16.mxu0 %vm1502_vm0, %v4296_v12  ;;  %v4295_v1 = vld [vmem:[%s5991_s0 + $0x460] ss:$16 sps:$4 sm:$0xff]   ;;  %v4312_v8 = vld [vmem:[%s5991_s0 + $0x4c8] ss:$16 sps:$4 sm:$0xff]  }
 0x141   :  { %v2641_v13 = vmax.f32 %v2226_v6, 0.0  ;;  %v2229_v14 = vadd.f32 %v4994_v17, %v1749_v7  ;;  %1960 = vmatmul.mubr.bf16.gmra.mrb[128].mxu1 %v4277_v3  ;;  %v5104_v30 = vpop.f32.mrb[36].mxu0 }
 0x142   :  { %1967 = vmatprep.mubr.bf16.mxu1 %v4280_v5  ;;  %v2259_v31 = vpop.f32.mrb[37].mxu0 }
 0x143   :  { %v3731_v18 = vpack.c.bf16 %v2641_v13, %v2641_v13  ;;  %v2642_v19 = vmax.f32 %v2229_v14, 0.0  ;;  %v5110_v37 = vpop.f32.mrb[38].mxu0 }
 0x144   :  { %v1753_v20 = vpop.f32.mrb[24].mxu1  ;;  %v2262_v38 = vpop.f32.mrb[39].mxu0 }
 0x145   :  { %3198 = vst.msk [vmem:[%s5993_s3 + $0x28] sm:$0xf] %vm3187_vm1, %v3731_v18  ;;  %v3732_v21 = vpack.c.bf16 %v2642_v19, %v2642_v19  ;;  %v1754_v17 = vadd.f32 %v4922_v25, %v1753_v20  ;;  %v1755_v22 = vpop.f32.mrb[25].mxu1 }
 0x146   :  { %v1756_v23 = vpop.f32.mrb[26].mxu1  ;;  %2472 = vmatmul.mubr.bf16.gmra.mrb[144].mxu0 %v4300_v32  ;;  %v4304_v22 = vld [vmem:[%s5991_s0 + $0x4a4] ss:$16 sps:$4 sm:$0xff]  }
 0x147   :  { %3199 = vst.msk [vmem:[%s5993_s3 + $0x2c] sm:$0xf] %vm3187_vm1, %v3732_v21  ;;  %v2234_v27 = vadd.f32 %v5017_v33, %v1754_v17  ;;  %v1757_v28 = vadd.f32 %v4922_v25, %v1756_v23  ;;  %v1758_v29 = vpop.f32.mrb[27].mxu1  ;;  %v4302_v33 = vld [vmem:[%s5991_s0 + $0x4ac] ss:$16 sps:$4 sm:$0xff]  }
 0x148   :  { %3591 = vmatprep.mubr.msk.bf16.mxu0 %vm1502_vm0, %v4302_v33  ;;  %v4301_v21 = vld [vmem:[%s5991_s0 + $0x480] ss:$16 sps:$4 sm:$0xff]   ;;  %v4318_v29 = vld [vmem:[%s5991_s0 + $0x4e8] ss:$16 sps:$4 sm:$0xff]  }
 0x149   :  { %v2643_v34 = vmax.f32 %v2234_v27, 0.0  ;;  %v2237_v35 = vadd.f32 %v5023_v39, %v1757_v28  ;;  %1968 = vmatmul.mubr.bf16.gmra.mrb[132].mxu1 %v4283_v24  ;;  %v5133_v50 = vpop.f32.mrb[40].mxu0 }
 0x14a   :  { %1975 = vmatprep.mubr.bf16.mxu1 %v4286_v26  ;;  %v2267_v51 = vpop.f32.mrb[41].mxu0 }
 0x14b   :  { %v3733_v36 = vpack.c.bf16 %v2643_v34, %v2643_v34  ;;  %v2644_v40 = vmax.f32 %v2237_v35, 0.0  ;;  %v5139_v57 = vpop.f32.mrb[42].mxu0 }
 0x14c   :  { %v1761_v42 = vpop.f32.mrb[28].mxu1  ;;  %v2270_v58 = vpop.f32.mrb[43].mxu0 }
 0x14d   :  { %3200 = vst.msk [vmem:[%s5993_s3 + $0x30] sm:$0xf] %vm3187_vm1, %v3733_v36  ;;  %v3734_v43 = vpack.c.bf16 %v2644_v40, %v2644_v40  ;;  %v1762_v39 = vadd.f32 %v4922_v25, %v1761_v42  ;;  %v1763_v44 = vpop.f32.mrb[29].mxu1 }
 0x14e   :  { %v1764_v41 = vpop.f32.mrb[30].mxu1  ;;  %2480 = vmatmul.mubr.bf16.gmra.mrb[148].mxu0 %v4306_v52  ;;  %v4310_v44 = vld [vmem:[%s5991_s0 + $0x4c4] ss:$16 sps:$4 sm:$0xff]  }
 0x14f   :  { %3201 = vst.msk [vmem:[%s5993_s3 + $0x34] sm:$0xf] %vm3187_vm1, %v3734_v43  ;;  %v2242_v47 = vadd.f32 %v5046_v53, %v1762_v39  ;;  %v1765_v48 = vadd.f32 %v4922_v25, %v1764_v41  ;;  %v1766_v49 = vpop.f32.mrb[31].mxu1  ;;  %v4308_v53 = vld [vmem:[%s5991_s0 + $0x4cc] ss:$16 sps:$4 sm:$0xff]  }
 0x150   :  { %3592 = vmatprep.mubr.msk.bf16.mxu0 %vm1502_vm0, %v4308_v53  ;;  %v4307_v43 = vld [vmem:[%s5991_s0 + $0x4a0] ss:$16 sps:$4 sm:$0xff]   ;;  %v4324_v49 = vld [vmem:[%s5991_s0 + $0x508] ss:$16 sps:$4 sm:$0xff]  }
 0x151   :  { %v2645_v54 = vmax.f32 %v2242_v47, 0.0  ;;  %v2245_v55 = vadd.f32 %v5052_v59, %v1765_v48  ;;  %1976 = vmatmul.mubr.bf16.gmra.mrb[136].mxu1 %v4289_v45  ;;  %v5162_v6 = vpop.f32.mrb[44].mxu0 }
 0x152   :  { %1983 = vmatprep.mubr.bf16.mxu1 %v4292_v46  ;;  %v2275_v7 = vpop.f32.mrb[45].mxu0 }
 0x153   :  { %v3735_v56 = vpack.c.bf16 %v2645_v54, %v2645_v54  ;;  %v2646_v60 = vmax.f32 %v2245_v55, 0.0  ;;  %v5168_v13 = vpop.f32.mrb[46].mxu0 }
 0x154   :  { %v1769_v62 = vpop.f32.mrb[32].mxu1  ;;  %v2278_v14 = vpop.f32.mrb[47].mxu0 }
 0x155   :  { %3202 = vst.msk [vmem:[%s5993_s3 + $0x38] sm:$0xf] %vm3187_vm1, %v3735_v56  ;;  %v3736_v63 = vpack.c.bf16 %v2646_v60, %v2646_v60  ;;  %v1770_v59 = vadd.f32 %v4922_v25, %v1769_v62  ;;  %v1771_v0 = vpop.f32.mrb[33].mxu1 }
 0x156   :  { %v1772_v61 = vpop.f32.mrb[34].mxu1  ;;  %2488 = vmatmul.mubr.bf16.gmra.mrb[152].mxu0 %v4312_v8  ;;  %v4316_v0 = vld [vmem:[%s5991_s0 + $0x4e4] ss:$16 sps:$4 sm:$0xff]  }
 0x157   :  { %3203 = vst.msk [vmem:[%s5993_s3 + $0x3c] sm:$0xf] %vm3187_vm1, %v3736_v63  ;;  %v2250_v3 = vadd.f32 %v5075_v9, %v1770_v59  ;;  %v1773_v4 = vadd.f32 %v4922_v25, %v1772_v61  ;;  %v1774_v5 = vpop.f32.mrb[35].mxu1  ;;  %v4314_v9 = vld [vmem:[%s5991_s0 + $0x4ec] ss:$16 sps:$4 sm:$0xff]  }
 0x158   :  { %3593 = vmatprep.mubr.msk.bf16.mxu0 %vm1502_vm0, %v4314_v9  ;;  %v4313_v63 = vld [vmem:[%s5991_s0 + $0x4c0] ss:$16 sps:$4 sm:$0xff]   ;;  %v4330_v5 = vld [vmem:[%s5991_s0 + $0x528] ss:$16 sps:$4 sm:$0xff]  }
 0x159   :  { %v2647_v10 = vmax.f32 %v2250_v3, 0.0  ;;  %v2253_v11 = vadd.f32 %v5081_v15, %v1773_v4  ;;  %1984 = vmatmul.mubr.bf16.gmra.mrb[140].mxu1 %v4295_v1  ;;  %v5191_v27 = vpop.f32.mrb[48].mxu0 }
 0x15a   :  { %1991 = vmatprep.mubr.bf16.mxu1 %v4298_v2  ;;  %v2283_v28 = vpop.f32.mrb[49].mxu0 }
 0x15b   :  { %v3737_v12 = vpack.c.bf16 %v2647_v10, %v2647_v10  ;;  %v2648_v16 = vmax.f32 %v2253_v11, 0.0  ;;  %v5197_v34 = vpop.f32.mrb[50].mxu0 }
 0x15c   :  { %v1777_v18 = vpop.f32.mrb[36].mxu1  ;;  %v2286_v35 = vpop.f32.mrb[51].mxu0 }
 0x15d   :  { %3204 = vst.msk [vmem:[%s5993_s3 + $0x40] sm:$0xf] %vm3187_vm1, %v3737_v12  ;;  %v3738_v19 = vpack.c.bf16 %v2648_v16, %v2648_v16  ;;  %v1778_v15 = vadd.f32 %v4922_v25, %v1777_v18  ;;  %v1779_v20 = vpop.f32.mrb[37].mxu1 }
 0x15e   :  { %v1780_v17 = vpop.f32.mrb[38].mxu1  ;;  %2496 = vmatmul.mubr.bf16.gmra.mrb[156].mxu0 %v4318_v29  ;;  %v4322_v20 = vld [vmem:[%s5991_s0 + $0x504] ss:$16 sps:$4 sm:$0xff]  }
 0x15f   :  { %3205 = vst.msk [vmem:[%s5993_s3 + $0x44] sm:$0xf] %vm3187_vm1, %v3738_v19  ;;  %v2258_v24 = vadd.f32 %v5104_v30, %v1778_v15  ;;  %v1781_v23 = vadd.f32 %v4922_v25, %v1780_v17  ;;  %v1782_v26 = vpop.f32.mrb[39].mxu1  ;;  %v4320_v30 = vld [vmem:[%s5991_s0 + $0x50c] ss:$16 sps:$4 sm:$0xff]  }
 0x160   :  { %3594 = vmatprep.mubr.msk.bf16.mxu0 %vm1502_vm0, %v4320_v30  ;;  %v4319_v19 = vld [vmem:[%s5991_s0 + $0x4e0] ss:$16 sps:$4 sm:$0xff]   ;;  %v4336_v26 = vld [vmem:[%s5991_s0 + $0x548] ss:$16 sps:$4 sm:$0xff]  }
 0x161   :  { %v2649_v31 = vmax.f32 %v2258_v24, 0.0  ;;  %v2261_v32 = vadd.f32 %v5110_v37, %v1781_v23  ;;  %1992 = vmatmul.mubr.bf16.gmra.mrb[144].mxu1 %v4301_v21  ;;  %v5220_v47 = vpop.f32.mrb[52].mxu0 }
 0x162   :  { %1999 = vmatprep.mubr.bf16.mxu1 %v4304_v22  ;;  %v2291_v48 = vpop.f32.mrb[53].mxu0 }
 0x163   :  { %v3739_v33 = vpack.c.bf16 %v2649_v31, %v2649_v31  ;;  %v2650_v38 = vmax.f32 %v2261_v32, 0.0  ;;  %v5226_v54 = vpop.f32.mrb[54].mxu0 }
 0x164   :  { %v1785_v36 = vpop.f32.mrb[40].mxu1  ;;  %v2294_v55 = vpop.f32.mrb[55].mxu0 }
 0x165   :  { %3206 = vst.msk [vmem:[%s5993_s3 + $0x48] sm:$0xf] %vm3187_vm1, %v3739_v33  ;;  %v3740_v40 = vpack.c.bf16 %v2650_v38, %v2650_v38  ;;  %v1786_v37 = vadd.f32 %v4922_v25, %v1785_v36  ;;  %v1787_v42 = vpop.f32.mrb[41].mxu1 }
 0x166   :  { %v1788_v39 = vpop.f32.mrb[42].mxu1  ;;  %2504 = vmatmul.mubr.bf16.gmra.mrb[160].mxu0 %v4324_v49  ;;  %v4328_v42 = vld [vmem:[%s5991_s0 + $0x524] ss:$16 sps:$4 sm:$0xff]  }
 0x167   :  { %3207 = vst.msk [vmem:[%s5993_s3 + $0x4c] sm:$0xf] %vm3187_vm1, %v3740_v40  ;;  %v2266_v45 = vadd.f32 %v5133_v50, %v1786_v37  ;;  %v1789_v41 = vadd.f32 %v4922_v25, %v1788_v39  ;;  %v1790_v46 = vpop.f32.mrb[43].mxu1  ;;  %v4326_v50 = vld [vmem:[%s5991_s0 + $0x52c] ss:$16 sps:$4 sm:$0xff]  }
 0x168   :  { %3595 = vmatprep.mubr.msk.bf16.mxu0 %vm1502_vm0, %v4326_v50  ;;  %v4325_v40 = vld [vmem:[%s5991_s0 + $0x500] ss:$16 sps:$4 sm:$0xff]   ;;  %v4342_v46 = vld [vmem:[%s5991_s0 + $0x568] ss:$16 sps:$4 sm:$0xff]  }
 0x169   :  { %v2651_v51 = vmax.f32 %v2266_v45, 0.0  ;;  %v2269_v52 = vadd.f32 %v5139_v57, %v1789_v41  ;;  %2000 = vmatmul.mubr.bf16.gmra.mrb[148].mxu1 %v4307_v43  ;;  %v5249_v3 = vpop.f32.mrb[56].mxu0 }
 0x16a   :  { %2007 = vmatprep.mubr.bf16.mxu1 %v4310_v44  ;;  %v2299_v4 = vpop.f32.mrb[57].mxu0 }
 0x16b   :  { %v3741_v53 = vpack.c.bf16 %v2651_v51, %v2651_v51  ;;  %v2652_v58 = vmax.f32 %v2269_v52, 0.0  ;;  %v5255_v10 = vpop.f32.mrb[58].mxu0 }
 0x16c   :  { %v1793_v56 = vpop.f32.mrb[44].mxu1  ;;  %v2302_v11 = vpop.f32.mrb[59].mxu0 }
 0x16d   :  { %3208 = vst.msk [vmem:[%s5993_s3 + $0x50] sm:$0xf] %vm3187_vm1, %v3741_v53  ;;  %v3742_v60 = vpack.c.bf16 %v2652_v58, %v2652_v58  ;;  %v1794_v57 = vadd.f32 %v4922_v25, %v1793_v56  ;;  %v1795_v62 = vpop.f32.mrb[45].mxu1 }
 0x16e   :  { %v1796_v59 = vpop.f32.mrb[46].mxu1  ;;  %2512 = vmatmul.mubr.bf16.gmra.mrb[164].mxu0 %v4330_v5  ;;  %v4334_v62 = vld [vmem:[%s5991_s0 + $0x544] ss:$16 sps:$4 sm:$0xff]  }
 0x16f   :  { %3209 = vst.msk [vmem:[%s5993_s3 + $0x54] sm:$0xf] %vm3187_vm1, %v3742_v60  ;;  %v2274_v1 = vadd.f32 %v5162_v6, %v1794_v57  ;;  %v1797_v61 = vadd.f32 %v4922_v25, %v1796_v59  ;;  %v1798_v2 = vpop.f32.mrb[47].mxu1  ;;  %v4332_v6 = vld [vmem:[%s5991_s0 + $0x54c] ss:$16 sps:$4 sm:$0xff]  }
 0x170   :  { %3596 = vmatprep.mubr.msk.bf16.mxu0 %vm1502_vm0, %v4332_v6  ;;  %v4331_v60 = vld [vmem:[%s5991_s0 + $0x520] ss:$16 sps:$4 sm:$0xff]   ;;  %v4348_v2 = vld [vmem:[%s5991_s0 + $0x588] ss:$16 sps:$4 sm:$0xff]  }
 0x171   :  { %v2653_v7 = vmax.f32 %v2274_v1, 0.0  ;;  %v2277_v8 = vadd.f32 %v5168_v13, %v1797_v61  ;;  %2008 = vmatmul.mubr.bf16.gmra.mrb[152].mxu1 %v4313_v63  ;;  %v5278_v24 = vpop.f32.mrb[60].mxu0 }
 0x172   :  { %2015 = vmatprep.mubr.bf16.mxu1 %v4316_v0  ;;  %v2307_v23 = vpop.f32.mrb[61].mxu0 }
 0x173   :  { %v3743_v9 = vpack.c.bf16 %v2653_v7, %v2653_v7  ;;  %v2654_v14 = vmax.f32 %v2277_v8, 0.0  ;;  %v5284_v31 = vpop.f32.mrb[62].mxu0 }
 0x174   :  { %v1801_v12 = vpop.f32.mrb[48].mxu1  ;;  %v2310_v32 = vpop.f32.mrb[63].mxu0 }
 0x175   :  { %3210 = vst.msk [vmem:[%s5993_s3 + $0x58] sm:$0xf] %vm3187_vm1, %v3743_v9  ;;  %v3744_v16 = vpack.c.bf16 %v2654_v14, %v2654_v14  ;;  %v1802_v13 = vadd.f32 %v4922_v25, %v1801_v12  ;;  %v1803_v18 = vpop.f32.mrb[49].mxu1 }
 0x176   :  { %v1804_v15 = vpop.f32.mrb[50].mxu1  ;;  %2520 = vmatmul.mubr.bf16.gmra.mrb[168].mxu0 %v4336_v26  ;;  %v4340_v18 = vld [vmem:[%s5991_s0 + $0x564] ss:$16 sps:$4 sm:$0xff]  }
 0x177   :  { %3211 = vst.msk [vmem:[%s5993_s3 + $0x5c] sm:$0xf] %vm3187_vm1, %v3744_v16  ;;  %v2282_v21 = vadd.f32 %v5191_v27, %v1802_v13  ;;  %v1805_v17 = vadd.f32 %v4922_v25, %v1804_v15  ;;  %v1806_v22 = vpop.f32.mrb[51].mxu1  ;;  %v4338_v27 = vld [vmem:[%s5991_s0 + $0x56c] ss:$16 sps:$4 sm:$0xff]  }
 0x178   :  { %3597 = vmatprep.mubr.msk.bf16.mxu0 %vm1502_vm0, %v4338_v27  ;;  %v4337_v16 = vld [vmem:[%s5991_s0 + $0x540] ss:$16 sps:$4 sm:$0xff]   ;;  %v4354_v22 = vld [vmem:[%s5991_s0 + $0x5a8] ss:$16 sps:$4 sm:$0xff]  }
 0x179   :  { %v2655_v28 = vmax.f32 %v2282_v21, 0.0  ;;  %v2285_v29 = vadd.f32 %v5197_v34, %v1805_v17  ;;  %2016 = vmatmul.mubr.bf16.gmra.mrb[156].mxu1 %v4319_v19  ;;  %v5307_v45 = vpop.f32.mrb[64].mxu0 }
 0x17a   :  { %2023 = vmatprep.mubr.bf16.mxu1 %v4322_v20  ;;  %v2315_v41 = vpop.f32.mrb[65].mxu0 }
 0x17b   :  { %v3745_v30 = vpack.c.bf16 %v2655_v28, %v2655_v28  ;;  %v2656_v35 = vmax.f32 %v2285_v29, 0.0  ;;  %v5313_v51 = vpop.f32.mrb[66].mxu0 }
 0x17c   :  { %v1809_v33 = vpop.f32.mrb[52].mxu1  ;;  %v2318_v52 = vpop.f32.mrb[67].mxu0 }
 0x17d   :  { %3212 = vst.msk [vmem:[%s5993_s3 + $0x60] sm:$0xf] %vm3187_vm1, %v3745_v30  ;;  %v3746_v38 = vpack.c.bf16 %v2656_v35, %v2656_v35  ;;  %v1810_v34 = vadd.f32 %v4922_v25, %v1809_v33  ;;  %v1811_v36 = vpop.f32.mrb[53].mxu1 }
 0x17e   :  { %v1812_v37 = vpop.f32.mrb[54].mxu1  ;;  %2528 = vmatmul.mubr.bf16.gmra.mrb[172].mxu0 %v4342_v46  ;;  %v4346_v36 = vld [vmem:[%s5991_s0 + $0x584] ss:$16 sps:$4 sm:$0xff]  }
 0x17f   :  { %3213 = vst.msk [vmem:[%s5993_s3 + $0x64] sm:$0xf] %vm3187_vm1, %v3746_v38  ;;  %v2290_v43 = vadd.f32 %v5220_v47, %v1810_v34  ;;  %v1813_v39 = vadd.f32 %v4922_v25, %v1812_v37  ;;  %v1814_v44 = vpop.f32.mrb[55].mxu1  ;;  %v4344_v47 = vld [vmem:[%s5991_s0 + $0x58c] ss:$16 sps:$4 sm:$0xff]  }
 0x180   :  { %3598 = vmatprep.mubr.msk.bf16.mxu0 %vm1502_vm0, %v4344_v47  ;;  %v4343_v38 = vld [vmem:[%s5991_s0 + $0x560] ss:$16 sps:$4 sm:$0xff]   ;;  %v4360_v44 = vld [vmem:[%s5991_s0 + $0x5c8] ss:$16 sps:$4 sm:$0xff]  }
 0x181   :  { %v2657_v48 = vmax.f32 %v2290_v43, 0.0  ;;  %v2293_v49 = vadd.f32 %v5226_v54, %v1813_v39  ;;  %2024 = vmatmul.mubr.bf16.gmra.mrb[160].mxu1 %v4325_v40  ;;  %v5336_v1 = vpop.f32.mrb[68].mxu0 }
 0x182   :  { %2031 = vmatprep.mubr.bf16.mxu1 %v4328_v42  ;;  %v2323_v61 = vpop.f32.mrb[69].mxu0 }
 0x183   :  { %v3747_v50 = vpack.c.bf16 %v2657_v48, %v2657_v48  ;;  %v2658_v55 = vmax.f32 %v2293_v49, 0.0  ;;  %v5342_v7 = vpop.f32.mrb[70].mxu0 }
 0x184   :  { %v1817_v53 = vpop.f32.mrb[56].mxu1  ;;  %v2326_v8 = vpop.f32.mrb[71].mxu0 }
 0x185   :  { %3214 = vst.msk [vmem:[%s5993_s3 + $0x68] sm:$0xf] %vm3187_vm1, %v3747_v50  ;;  %v3748_v58 = vpack.c.bf16 %v2658_v55, %v2658_v55  ;;  %v1818_v54 = vadd.f32 %v4922_v25, %v1817_v53  ;;  %v1819_v56 = vpop.f32.mrb[57].mxu1 }
 0x186   :  { %v1820_v57 = vpop.f32.mrb[58].mxu1  ;;  %2536 = vmatmul.mubr.bf16.gmra.mrb[176].mxu0 %v4348_v2  ;;  %v4352_v56 = vld [vmem:[%s5991_s0 + $0x5a4] ss:$16 sps:$4 sm:$0xff]  }
 0x187   :  { %3215 = vst.msk [vmem:[%s5993_s3 + $0x6c] sm:$0xf] %vm3187_vm1, %v3748_v58  ;;  %v2298_v63 = vadd.f32 %v5249_v3, %v1818_v54  ;;  %v1821_v59 = vadd.f32 %v4922_v25, %v1820_v57  ;;  %v1822_v0 = vpop.f32.mrb[59].mxu1  ;;  %v4350_v3 = vld [vmem:[%s5991_s0 + $0x5ac] ss:$16 sps:$4 sm:$0xff]  }
 0x188   :  { %3599 = vmatprep.mubr.msk.bf16.mxu0 %vm1502_vm0, %v4350_v3  ;;  %v4349_v58 = vld [vmem:[%s5991_s0 + $0x580] ss:$16 sps:$4 sm:$0xff]   ;;  %v4366_v0 = vld [vmem:[%s5991_s0 + $0x5e8] ss:$16 sps:$4 sm:$0xff]  }
 0x189   :  { %v2659_v4 = vmax.f32 %v2298_v63, 0.0  ;;  %v2301_v5 = vadd.f32 %v5255_v10, %v1821_v59  ;;  %2032 = vmatmul.mubr.bf16.gmra.mrb[164].mxu1 %v4331_v60  ;;  %v5365_v21 = vpop.f32.mrb[72].mxu0 }
 0x18a   :  { %2039 = vmatprep.mubr.bf16.mxu1 %v4334_v62  ;;  %v2331_v17 = vpop.f32.mrb[73].mxu0 }
 0x18b   :  { %v3749_v6 = vpack.c.bf16 %v2659_v4, %v2659_v4  ;;  %v2660_v11 = vmax.f32 %v2301_v5, 0.0  ;;  %v5371_v28 = vpop.f32.mrb[74].mxu0 }
 0x18c   :  { %v1825_v9 = vpop.f32.mrb[60].mxu1  ;;  %v2334_v29 = vpop.f32.mrb[75].mxu0 }
 0x18d   :  { %3216 = vst.msk [vmem:[%s5993_s3 + $0x70] sm:$0xf] %vm3187_vm1, %v3749_v6  ;;  %v3750_v14 = vpack.c.bf16 %v2660_v11, %v2660_v11  ;;  %v1826_v10 = vadd.f32 %v4922_v25, %v1825_v9  ;;  %v1827_v12 = vpop.f32.mrb[61].mxu1 }
 0x18e   :  { %v1828_v13 = vpop.f32.mrb[62].mxu1  ;;  %2544 = vmatmul.mubr.bf16.gmra.mrb[180].mxu0 %v4354_v22  ;;  %v4358_v12 = vld [vmem:[%s5991_s0 + $0x5c4] ss:$16 sps:$4 sm:$0xff]  }
 0x18f   :  { %3217 = vst.msk [vmem:[%s5993_s3 + $0x74] sm:$0xf] %vm3187_vm1, %v3750_v14  ;;  %v2306_v19 = vadd.f32 %v5278_v24, %v1826_v10  ;;  %v1829_v15 = vadd.f32 %v4922_v25, %v1828_v13  ;;  %v1830_v20 = vpop.f32.mrb[63].mxu1  ;;  %v4356_v24 = vld [vmem:[%s5991_s0 + $0x5cc] ss:$16 sps:$4 sm:$0xff]  }
 0x190   :  { %3600 = vmatprep.mubr.msk.bf16.mxu0 %vm1502_vm0, %v4356_v24  ;;  %v4355_v14 = vld [vmem:[%s5991_s0 + $0x5a0] ss:$16 sps:$4 sm:$0xff]   ;;  %v4372_v20 = vld [vmem:[%s5991_s0 + $0x608] ss:$16 sps:$4 sm:$0xff]  }
 0x191   :  { %v2661_v23 = vmax.f32 %v2306_v19, 0.0  ;;  %v2309_v26 = vadd.f32 %v5284_v31, %v1829_v15  ;;  %2040 = vmatmul.mubr.bf16.gmra.mrb[168].mxu1 %v4337_v16  ;;  %v5394_v43 = vpop.f32.mrb[76].mxu0 }
 0x192   :  { %2047 = vmatprep.mubr.bf16.mxu1 %v4340_v18  ;;  %v2339_v39 = vpop.f32.mrb[77].mxu0 }
 0x193   :  { %v3751_v27 = vpack.c.bf16 %v2661_v23, %v2661_v23  ;;  %v2662_v32 = vmax.f32 %v2309_v26, 0.0  ;;  %v5400_v48 = vpop.f32.mrb[78].mxu0 }
 0x194   :  { %v1833_v30 = vpop.f32.mrb[64].mxu1  ;;  %v2342_v49 = vpop.f32.mrb[79].mxu0 }
 0x195   :  { %3218 = vst.msk [vmem:[%s5993_s3 + $0x78] sm:$0xf] %vm3187_vm1, %v3751_v27  ;;  %v3752_v35 = vpack.c.bf16 %v2662_v32, %v2662_v32  ;;  %v1834_v31 = vadd.f32 %v4922_v25, %v1833_v30  ;;  %v1835_v33 = vpop.f32.mrb[65].mxu1 }
 0x196   :  { %v1836_v34 = vpop.f32.mrb[66].mxu1  ;;  %2552 = vmatmul.mubr.bf16.gmra.mrb[184].mxu0 %v4360_v44  ;;  %v4364_v33 = vld [vmem:[%s5991_s0 + $0x5e4] ss:$16 sps:$4 sm:$0xff]  }
 0x197   :  { %3219 = vst.msk [vmem:[%s5993_s3 + $0x7c] sm:$0xf] %vm3187_vm1, %v3752_v35  ;;  %v2314_v40 = vadd.f32 %v5307_v45, %v1834_v31  ;;  %v1837_v37 = vadd.f32 %v4922_v25, %v1836_v34  ;;  %v1838_v42 = vpop.f32.mrb[67].mxu1  ;;  %v4362_v45 = vld [vmem:[%s5991_s0 + $0x5ec] ss:$16 sps:$4 sm:$0xff]  }
 0x198   :  { %3601 = vmatprep.mubr.msk.bf16.mxu0 %vm1502_vm0, %v4362_v45  ;;  %v4361_v35 = vld [vmem:[%s5991_s0 + $0x5c0] ss:$16 sps:$4 sm:$0xff]   ;;  %v4378_v42 = vld [vmem:[%s5991_s0 + $0x628] ss:$16 sps:$4 sm:$0xff]  }
 0x199   :  { %v2663_v41 = vmax.f32 %v2314_v40, 0.0  ;;  %v2317_v46 = vadd.f32 %v5313_v51, %v1837_v37  ;;  %2048 = vmatmul.mubr.bf16.gmra.mrb[172].mxu1 %v4343_v38  ;;  %v5423_v63 = vpop.f32.mrb[80].mxu0 }
 0x19a   :  { %2055 = vmatprep.mubr.bf16.mxu1 %v4346_v36  ;;  %v2347_v59 = vpop.f32.mrb[81].mxu0 }
 0x19b   :  { %v3753_v47 = vpack.c.bf16 %v2663_v41, %v2663_v41  ;;  %v2664_v52 = vmax.f32 %v2317_v46, 0.0  ;;  %v5429_v4 = vpop.f32.mrb[82].mxu0 }
 0x19c   :  { %v1841_v50 = vpop.f32.mrb[68].mxu1  ;;  %v2350_v5 = vpop.f32.mrb[83].mxu0 }
 0x19d   :  { %3220 = vst.msk [vmem:[%s5993_s3 + $0x80] sm:$0xf] %vm3187_vm1, %v3753_v47  ;;  %v3754_v55 = vpack.c.bf16 %v2664_v52, %v2664_v52  ;;  %v1842_v51 = vadd.f32 %v4922_v25, %v1841_v50  ;;  %v1843_v53 = vpop.f32.mrb[69].mxu1 }
 0x19e   :  { %v1844_v54 = vpop.f32.mrb[70].mxu1  ;;  %2560 = vmatmul.mubr.bf16.gmra.mrb[188].mxu0 %v4366_v0  ;;  %v4370_v53 = vld [vmem:[%s5991_s0 + $0x604] ss:$16 sps:$4 sm:$0xff]  }
 0x19f   :  { %3221 = vst.msk [vmem:[%s5993_s3 + $0x84] sm:$0xf] %vm3187_vm1, %v3754_v55  ;;  %v2322_v60 = vadd.f32 %v5336_v1, %v1842_v51  ;;  %v1845_v57 = vadd.f32 %v4922_v25, %v1844_v54  ;;  %v1846_v62 = vpop.f32.mrb[71].mxu1  ;;  %v4368_v1 = vld [vmem:[%s5991_s0 + $0x60c] ss:$16 sps:$4 sm:$0xff]  }
 0x1a0   :  { %3602 = vmatprep.mubr.msk.bf16.mxu0 %vm1502_vm0, %v4368_v1  ;;  %v4367_v55 = vld [vmem:[%s5991_s0 + $0x5e0] ss:$16 sps:$4 sm:$0xff]   ;;  %v4384_v62 = vld [vmem:[%s5991_s0 + $0x648] ss:$16 sps:$4 sm:$0xff]  }
 0x1a1   :  { %v2665_v61 = vmax.f32 %v2322_v60, 0.0  ;;  %v2325_v2 = vadd.f32 %v5342_v7, %v1845_v57  ;;  %2056 = vmatmul.mubr.bf16.gmra.mrb[176].mxu1 %v4349_v58  ;;  %v5452_v19 = vpop.f32.mrb[84].mxu0 }
 0x1a2   :  { %2063 = vmatprep.mubr.bf16.mxu1 %v4352_v56  ;;  %v2355_v15 = vpop.f32.mrb[85].mxu0 }
 0x1a3   :  { %v3755_v3 = vpack.c.bf16 %v2665_v61, %v2665_v61  ;;  %v2666_v8 = vmax.f32 %v2325_v2, 0.0  ;;  %v5458_v23 = vpop.f32.mrb[86].mxu0 }
 0x1a4   :  { %v1849_v6 = vpop.f32.mrb[72].mxu1  ;;  %v2358_v26 = vpop.f32.mrb[87].mxu0 }
 0x1a5   :  { %3222 = vst.msk [vmem:[%s5993_s3 + $0x88] sm:$0xf] %vm3187_vm1, %v3755_v3  ;;  %v3756_v11 = vpack.c.bf16 %v2666_v8, %v2666_v8  ;;  %v1850_v7 = vadd.f32 %v4922_v25, %v1849_v6  ;;  %v1851_v9 = vpop.f32.mrb[73].mxu1 }
 0x1a6   :  { %v1852_v10 = vpop.f32.mrb[74].mxu1  ;;  %2568 = vmatmul.mubr.bf16.gmra.mrb[192].mxu0 %v4372_v20  ;;  %v4376_v9 = vld [vmem:[%s5991_s0 + $0x624] ss:$16 sps:$4 sm:$0xff]  }
 0x1a7   :  { %3223 = vst.msk [vmem:[%s5993_s3 + $0x8c] sm:$0xf] %vm3187_vm1, %v3756_v11  ;;  %v2330_v16 = vadd.f32 %v5365_v21, %v1850_v7  ;;  %v1853_v13 = vadd.f32 %v4922_v25, %v1852_v10  ;;  %v1854_v18 = vpop.f32.mrb[75].mxu1  ;;  %v4374_v21 = vld [vmem:[%s5991_s0 + $0x62c] ss:$16 sps:$4 sm:$0xff]  }
 0x1a8   :  { %3603 = vmatprep.mubr.msk.bf16.mxu0 %vm1502_vm0, %v4374_v21  ;;  %v4373_v11 = vld [vmem:[%s5991_s0 + $0x600] ss:$16 sps:$4 sm:$0xff]   ;;  %v4390_v18 = vld [vmem:[%s5991_s0 + $0x668] ss:$16 sps:$4 sm:$0xff]  }
 0x1a9   :  { %v2667_v17 = vmax.f32 %v2330_v16, 0.0  ;;  %v2333_v22 = vadd.f32 %v5371_v28, %v1853_v13  ;;  %2064 = vmatmul.mubr.bf16.gmra.mrb[180].mxu1 %v4355_v14  ;;  %v5481_v40 = vpop.f32.mrb[88].mxu0 }
 0x1aa   :  { %2071 = vmatprep.mubr.bf16.mxu1 %v4358_v12  ;;  %v2363_v37 = vpop.f32.mrb[89].mxu0 }
 0x1ab   :  { %v3757_v24 = vpack.c.bf16 %v2667_v17, %v2667_v17  ;;  %v2668_v29 = vmax.f32 %v2333_v22, 0.0  ;;  %v5487_v41 = vpop.f32.mrb[90].mxu0 }
 0x1ac   :  { %v1857_v27 = vpop.f32.mrb[76].mxu1 }
 0x1ad   :  { %3224 = vst.msk [vmem:[%s5993_s3 + $0x90] sm:$0xf] %vm3187_vm1, %v3757_v24  ;;  %v3758_v32 = vpack.c.bf16 %v2668_v29, %v2668_v29  ;;  %v1858_v28 = vadd.f32 %v4922_v25, %v1857_v27  ;;  %v1859_v30 = vpop.f32.mrb[77].mxu1 }
 0x1ae   :  { %v1860_v31 = vpop.f32.mrb[78].mxu1  ;;  %2576 = vmatmul.mubr.bf16.gmra.mrb[196].mxu0 %v4378_v42  ;;  %v4382_v30 = vld [vmem:[%s5991_s0 + $0x644] ss:$16 sps:$4 sm:$0xff]  }
 0x1af   :  { %3225 = vst.msk [vmem:[%s5993_s3 + $0x94] sm:$0xf] %vm3187_vm1, %v3758_v32  ;;  %v2338_v38 = vadd.f32 %v5394_v43, %v1858_v28  ;;  %v1861_v34 = vadd.f32 %v4922_v25, %v1860_v31  ;;  %v1862_v36 = vpop.f32.mrb[79].mxu1  ;;  %v4380_v43 = vld [vmem:[%s5991_s0 + $0x64c] ss:$16 sps:$4 sm:$0xff]   ;;  %v2366_v25 = vpop.f32.mrb[91].mxu0 }
 0x1b0   :  { %3604 = vmatprep.mubr.msk.bf16.mxu0 %vm1502_vm0, %v4380_v43  ;;  %v4379_v32 = vld [vmem:[%s5991_s0 + $0x620] ss:$16 sps:$4 sm:$0xff]   ;;  %v4396_v36 = vld [vmem:[%s5991_s0 + $0x688] ss:$16 sps:$4 sm:$0xff]  }
 0x1b1   :  { %v2669_v39 = vmax.f32 %v2338_v38, 0.0  ;;  %v2341_v44 = vadd.f32 %v5400_v48, %v1861_v34  ;;  %2072 = vmatmul.mubr.bf16.gmra.mrb[184].mxu1 %v4361_v35  ;;  %v5499_v48 = vld [vmem:[%s5992_s2] ss:$0 sm:$0xff]  ;;  %v5515_v60 = vpop.f32.mrb[92].mxu0 }
 0x1b2   :  { %2079 = vmatprep.mubr.bf16.mxu1 %v4364_v33  ;;  %v2371_v57 = vpop.f32.mrb[93].mxu0 }
 0x1b3   :  { %v3759_v46 = vpack.c.bf16 %v2669_v39, %v2669_v39  ;;  %v2670_v45 = vmax.f32 %v2341_v44, 0.0  ;;  %v5521_v61 = vpop.f32.mrb[94].mxu0 }
 0x1b4   :  { %v1865_v49 = vpop.f32.mrb[80].mxu1  ;;  %v2374_v2 = vpop.f32.mrb[95].mxu0 }
 0x1b5   :  { %3226 = vst.msk [vmem:[%s5993_s3 + $0x98] sm:$0xf] %vm3187_vm1, %v3759_v46  ;;  %v3760_v47 = vpack.c.bf16 %v2670_v45, %v2670_v45  ;;  %v1866_v52 = vadd.f32 %v5499_v48, %v1865_v49  ;;  %v1867_v50 = vpop.f32.mrb[81].mxu1 }
 0x1b6   :  { %v1868_v51 = vpop.f32.mrb[82].mxu1  ;;  %2584 = vmatmul.mubr.bf16.gmra.mrb[200].mxu0 %v4384_v62  ;;  %v4388_v50 = vld [vmem:[%s5991_s0 + $0x664] ss:$16 sps:$4 sm:$0xff]  }
 0x1b7   :  { %3227 = vst.msk [vmem:[%s5993_s3 + $0x9c] sm:$0xf] %vm3187_vm1, %v3760_v47  ;;  %v2346_v58 = vadd.f32 %v5423_v63, %v1866_v52  ;;  %v1869_v54 = vadd.f32 %v5499_v48, %v1868_v51  ;;  %v1870_v56 = vpop.f32.mrb[83].mxu1  ;;  %v4386_v63 = vld [vmem:[%s5991_s0 + $0x66c] ss:$16 sps:$4 sm:$0xff]  }
 0x1b8   :  { %3605 = vmatprep.mubr.msk.bf16.mxu0 %vm1502_vm0, %v4386_v63  ;;  %v4385_v47 = vld [vmem:[%s5991_s0 + $0x640] ss:$16 sps:$4 sm:$0xff]   ;;  %v4402_v56 = vld [vmem:[%s5991_s0 + $0x6a8] ss:$16 sps:$4 sm:$0xff]  }
 0x1b9   :  { %v2671_v59 = vmax.f32 %v2346_v58, 0.0  ;;  %v2349_v0 = vadd.f32 %v5429_v4, %v1869_v54  ;;  %2080 = vmatmul.mubr.bf16.gmra.mrb[188].mxu1 %v4367_v55  ;;  %v5544_v16 = vpop.f32.mrb[96].mxu0 }
 0x1ba   :  { %2087 = vmatprep.mubr.bf16.mxu1 %v4370_v53  ;;  %v2379_v13 = vpop.f32.mrb[97].mxu0 }
 0x1bb   :  { %v3761_v1 = vpack.c.bf16 %v2671_v59, %v2671_v59  ;;  %v2672_v5 = vmax.f32 %v2349_v0, 0.0  ;;  %v5550_v17 = vpop.f32.mrb[98].mxu0  ;;  %v4408_v13 = vld [vmem:[%s5991_s0 + $0x6c8] ss:$16 sps:$4 sm:$0xff]  }
 0x1bc   :  { %v1873_v3 = vpop.f32.mrb[84].mxu1  ;;  %v2382_v22 = vpop.f32.mrb[99].mxu0 }
 0x1bd   :  { %3228 = vst.msk [vmem:[%s5993_s3 + $0xa0] sm:$0xf] %vm3187_vm1, %v3761_v1  ;;  %v3762_v8 = vpack.c.bf16 %v2672_v5, %v2672_v5  ;;  %v1874_v4 = vadd.f32 %v5499_v48, %v1873_v3  ;;  %v1875_v6 = vpop.f32.mrb[85].mxu1 }
 0x1be   :  { %v1876_v7 = vpop.f32.mrb[86].mxu1  ;;  %2592 = vmatmul.mubr.bf16.gmra.mrb[204].mxu0 %v4390_v18  ;;  %v4394_v6 = vld [vmem:[%s5991_s0 + $0x684] ss:$16 sps:$4 sm:$0xff]  }
 0x1bf   :  { %3229 = vst.msk [vmem:[%s5993_s3 + $0xa4] sm:$0xf] %vm3187_vm1, %v3762_v8  ;;  %v2354_v14 = vadd.f32 %v5452_v19, %v1874_v4  ;;  %v1877_v10 = vadd.f32 %v5499_v48, %v1876_v7  ;;  %v1878_v12 = vpop.f32.mrb[87].mxu1  ;;  %v4392_v19 = vld [vmem:[%s5991_s0 + $0x68c] ss:$16 sps:$4 sm:$0xff]  }
 0x1c0   :  { %3606 = vmatprep.mubr.msk.bf16.mxu0 %vm1502_vm0, %v4392_v19  ;;  %v4391_v8 = vld [vmem:[%s5991_s0 + $0x660] ss:$16 sps:$4 sm:$0xff]  }
 0x1c1   :  { %v2673_v15 = vmax.f32 %v2354_v14, 0.0  ;;  %v2357_v20 = vadd.f32 %v5458_v23, %v1877_v10  ;;  %2088 = vmatmul.mubr.bf16.gmra.mrb[192].mxu1 %v4373_v11  ;;  %v5573_v38 = vpop.f32.mrb[100].mxu0  ;;  %v236_v11 = vld [vmem:[%s5991_s0 + $0x6e8] sm:$0x11] }
 0x1c2   :  { %2095 = vmatprep.mubr.bf16.mxu1 %v4376_v9  ;;  %v2387_v34 = vpop.f32.mrb[101].mxu0  ;;  %v3528_v19 = vcombine.high %v236_v11, %v236_v11 }
 0x1c3   :  { %v3763_v21 = vpack.c.bf16 %v2673_v15, %v2673_v15  ;;  %v2674_v26 = vmax.f32 %v2357_v20, 0.0  ;;  %v5579_v39 = vpop.f32.mrb[102].mxu0  ;;  %v3527_v34 = vcombine.low %v236_v11, %v236_v11 }
 0x1c4   :  { %v1881_v24 = vpop.f32.mrb[88].mxu1  ;;  %v2390_v44 = vpop.f32.mrb[103].mxu0 }
 0x1c5   :  { %3230 = vst.msk [vmem:[%s5993_s3 + $0xa8] sm:$0xf] %vm3187_vm1, %v3763_v21  ;;  %v3764_v29 = vpack.c.bf16 %v2674_v26, %v2674_v26  ;;  %v1882_v23 = vadd.f32 %v5499_v48, %v1881_v24  ;;  %v1883_v27 = vpop.f32.mrb[89].mxu1 }
 0x1c6   :  { %v1884_v28 = vpop.f32.mrb[90].mxu1  ;;  %2600 = vmatmul.mubr.bf16.gmra.mrb[208].mxu0 %v4396_v36 }
 0x1c7   :  { %3231 = vst.msk [vmem:[%s5993_s3 + $0xac] sm:$0xf] %vm3187_vm1, %v3764_v29  ;;  %v2362_v35 = vadd.f32 %v5481_v40, %v1882_v23  ;;  %v1885_v31 = vadd.f32 %v5499_v48, %v1884_v28  ;;  %v1886_v33 = vpop.f32.mrb[91].mxu1  ;;  %v4398_v40 = vld [vmem:[%s5991_s0 + $0x6ac] ss:$16 sps:$4 sm:$0xff]  }
 0x1c8   :  { %3607 = vmatprep.mubr.msk.bf16.mxu0 %vm1502_vm0, %v4398_v40 }
 0x1c9   :  { %v2675_v37 = vmax.f32 %v2362_v35, 0.0  ;;  %v2365_v42 = vadd.f32 %v5487_v41, %v1885_v31  ;;  %2096 = vmatmul.mubr.bf16.gmra.mrb[196].mxu1 %v4379_v32  ;;  %v5602_v58 = vpop.f32.mrb[104].mxu0  ;;  %v4400_v32 = vld [vmem:[%s5991_s0 + $0x6a4] ss:$16 sps:$4 sm:$0xff]  }
 0x1ca   :  { %2103 = vmatprep.mubr.bf16.mxu1 %v4382_v30  ;;  %v2395_v54 = vpop.f32.mrb[105].mxu0 }
 0x1cb   :  { %v3765_v43 = vpack.c.bf16 %v2675_v37, %v2675_v37  ;;  %v2676_v25 = vmax.f32 %v2365_v42, 0.0  ;;  %v5608_v59 = vpop.f32.mrb[106].mxu0 }
 0x1cc   :  { %v1889_v46 = vpop.f32.mrb[92].mxu1  ;;  %v2398_v0 = vpop.f32.mrb[107].mxu0 }
 0x1cd   :  { %3232 = vst.msk [vmem:[%s5993_s3 + $0xb0] sm:$0xf] %vm3187_vm1, %v3765_v43  ;;  %v3766_v45 = vpack.c.bf16 %v2676_v25, %v2676_v25  ;;  %v1890_v41 = vadd.f32 %v5499_v48, %v1889_v46  ;;  %v1891_v49 = vpop.f32.mrb[93].mxu1  ;;  %v235_v0 = vld [vmem:[%s5991_s0 + $0x6e0] sm:$0x11] }
 0x1ce   :  { %v1892_v52 = vpop.f32.mrb[94].mxu1  ;;  %2608 = vmatmul.mubr.bf16.gmra.mrb[212].mxu0 %v4402_v56  ;;  %v4406_v49 = vld [vmem:[%s5991_s0 + $0x6c4] ss:$16 sps:$4 sm:$0xff]  }
 0x1cf   :  { %3233 = vst.msk [vmem:[%s5993_s3 + $0xb4] sm:$0xf] %vm3187_vm1, %v3766_v45  ;;  %v2370_v55 = vadd.f32 %v5515_v60, %v1890_v41  ;;  %v1893_v51 = vadd.f32 %v5499_v48, %v1892_v52  ;;  %v1894_v53 = vpop.f32.mrb[95].mxu1  ;;  %v4404_v60 = vld [vmem:[%s5991_s0 + $0x6cc] ss:$16 sps:$4 sm:$0xff]  }
 0x1d0   :  { %3608 = vmatprep.mubr.msk.bf16.mxu0 %vm1502_vm0, %v4404_v60 }
 0x1d1   :  { %v2677_v57 = vmax.f32 %v2370_v55, 0.0  ;;  %v2373_v62 = vadd.f32 %v5521_v61, %v1893_v51  ;;  %2104 = vmatmul.mubr.bf16.gmra.mrb[200].mxu1 %v4385_v47  ;;  %v5634_v10 = vpop.f32.mrb[108].mxu0 }
 0x1d2   :  { %2111 = vmatprep.mubr.bf16.mxu1 %v4388_v50  ;;  %v2403_v12 = vpop.f32.mrb[109].mxu0 }
 0x1d3   :  { %v3767_v63 = vpack.c.bf16 %v2677_v57, %v2677_v57  ;;  %v2678_v2 = vmax.f32 %v2373_v62, 0.0  ;;  %v5640_v20 = vpop.f32.mrb[110].mxu0 }
 0x1d4   :  { %v1897_v1 = vpop.f32.mrb[96].mxu1  ;;  %v2406_v22 = vpop.f32.mrb[111].mxu0 }
 0x1d5   :  { %3234 = vst.msk [vmem:[%s5993_s3 + $0xb8] sm:$0xf] %vm3187_vm1, %v3767_v63  ;;  %v3768_v5 = vpack.c.bf16 %v2678_v2, %v2678_v2  ;;  %v1898_v61 = vadd.f32 %v5499_v48, %v1897_v1  ;;  %v1899_v3 = vpop.f32.mrb[97].mxu1  ;;  %v4409_v1 = vld [vmem:[%s5991_s0 + $0x6c0] ss:$16 sps:$4 sm:$0xff]  }
 0x1d6   :  { %v1900_v4 = vpop.f32.mrb[98].mxu1  ;;  %2616 = vmatmul.mubr.bf16.gmra.mrb[216].mxu0 %v4408_v13 }
 0x1d7   :  { %3235 = vst.msk [vmem:[%s5993_s3 + $0xbc] sm:$0xf] %vm3187_vm1, %v3768_v5  ;;  %v2378_v7 = vadd.f32 %v5544_v16, %v1898_v61  ;;  %v1901_v9 = vadd.f32 %v5499_v48, %v1900_v4  ;;  %v1902_v14 = vpop.f32.mrb[99].mxu1  ;;  %3609 = vmatprep.mubr.msk.bf16.mxu0 %vm1502_vm0, %v3528_v19  ;;  %v3526_v61 = vcombine.high %v235_v0, %v235_v0 }
 0x1d9   :  { %v2679_v18 = vmax.f32 %v2378_v7, 0.0  ;;  %v2381_v15 = vadd.f32 %v5550_v17, %v1901_v9  ;;  %2112 = vmatmul.mubr.bf16.gmra.mrb[204].mxu1 %v4391_v8  ;;  %v4397_v17 = vld [vmem:[%s5991_s0 + $0x680] ss:$16 sps:$4 sm:$0xff]   ;;  %v5660_v31 = vpop.f32.mrb[112].mxu0 }
 0x1da   :  { %2119 = vmatprep.mubr.bf16.mxu1 %v4394_v6  ;;  %v2411_v33 = vpop.f32.mrb[113].mxu0 }
 0x1db   :  { %v3769_v16 = vpack.c.bf16 %v2679_v18, %v2679_v18  ;;  %v2680_v21 = vmax.f32 %v2381_v15, 0.0  ;;  %v5663_v42 = vpop.f32.mrb[114].mxu0 }
 0x1dc   :  { %v1905_v26 = vpop.f32.mrb[100].mxu1  ;;  %v2414_v40 = vpop.f32.mrb[115].mxu0 }
 0x1dd   :  { %3236 = vst.msk [vmem:[%s5993_s3 + $0xc0] sm:$0xf] %vm3187_vm1, %v3769_v16  ;;  %v3770_v24 = vpack.c.bf16 %v2680_v21, %v2680_v21  ;;  %v1906_v29 = vadd.f32 %v5499_v48, %v1905_v26  ;;  %v1907_v23 = vpop.f32.mrb[101].mxu1  ;;  %v3525_v16 = vcombine.low %v235_v0, %v235_v0 }
 0x1de   :  { %v1908_v27 = vpop.f32.mrb[102].mxu1  ;;  %2624 = vmatmul.mubr.bf16.gmra.mrb[220].mxu0 %v3527_v34 }
 0x1df   :  { %3237 = vst.msk [vmem:[%s5993_s3 + $0xc4] sm:$0xf] %vm3187_vm1, %v3770_v24  ;;  %v2386_v28 = vadd.f32 %v5573_v38, %v1906_v29  ;;  %v1909_v30 = vadd.f32 %v5499_v48, %v1908_v27  ;;  %v1910_v35 = vpop.f32.mrb[103].mxu1 }
 0x1e1   :  { %v2681_v36 = vmax.f32 %v2386_v28, 0.0  ;;  %v2389_v37 = vadd.f32 %v5579_v39, %v1909_v30  ;;  %2120 = vmatmul.mubr.bf16.gmra.mrb[208].mxu1 %v4397_v17  ;;  %v4403_v39 = vld [vmem:[%s5991_s0 + $0x6a0] ss:$16 sps:$4 sm:$0xff]   ;;  %v2417_v55 = vpop.f32.mrb[116].mxu0 }
 0x1e2   :  { %2127 = vmatprep.mubr.bf16.mxu1 %v4400_v32  ;;  %v2419_v51 = vpop.f32.mrb[117].mxu0 }
 0x1e3   :  { %v3771_v44 = vpack.c.bf16 %v2681_v36, %v2681_v36  ;;  %v2682_v43 = vmax.f32 %v2389_v37, 0.0  ;;  %v2420_v56 = vpop.f32.mrb[118].mxu0 }
 0x1e4   :  { %v1913_v25 = vpop.f32.mrb[104].mxu1  ;;  %v2422_v57 = vpop.f32.mrb[119].mxu0 }
 0x1e5   :  { %3238 = vst.msk [vmem:[%s5993_s3 + $0xc8] sm:$0xf] %vm3187_vm1, %v3771_v44  ;;  %v3772_v38 = vpack.c.bf16 %v2682_v43, %v2682_v43  ;;  %v1914_v46 = vadd.f32 %v5499_v48, %v1913_v25  ;;  %v1915_v45 = vpop.f32.mrb[105].mxu1 }
 0x1e6   :  { %v1916_v41 = vpop.f32.mrb[106].mxu1 }
 0x1e7   :  { %3239 = vst.msk [vmem:[%s5993_s3 + $0xcc] sm:$0xf] %vm3187_vm1, %v3772_v38  ;;  %v2394_v47 = vadd.f32 %v5602_v58, %v1914_v46  ;;  %v1917_v52 = vadd.f32 %v5499_v48, %v1916_v41  ;;  %v1918_v50 = vpop.f32.mrb[107].mxu1 }
 0x1e9   :  { %v2683_v53 = vmax.f32 %v2394_v47, 0.0  ;;  %v2397_v54 = vadd.f32 %v5608_v59, %v1917_v52  ;;  %2128 = vmatmul.mubr.bf16.gmra.mrb[212].mxu1 %v4403_v39  ;;  %v2425_v6 = vpop.f32.mrb[120].mxu0 }
 0x1ea   :  { %2135 = vmatprep.mubr.bf16.mxu1 %v4406_v49  ;;  %v2427_v11 = vpop.f32.mrb[121].mxu0 }
 0x1eb   :  { %v3773_v62 = vpack.c.bf16 %v2683_v53, %v2683_v53  ;;  %v2684_v60 = vmax.f32 %v2397_v54, 0.0  ;;  %v2428_v14 = vpop.f32.mrb[122].mxu0 }
 0x1ec   :  { %v1921_v63 = vpop.f32.mrb[108].mxu1  ;;  %v2430_v12 = vpop.f32.mrb[123].mxu0 }
 0x1ed   :  { %3240 = vst.msk [vmem:[%s5993_s3 + $0xd0] sm:$0xf] %vm3187_vm1, %v3773_v62  ;;  %v3774_v58 = vpack.c.bf16 %v2684_v60, %v2684_v60  ;;  %v1922_v2 = vadd.f32 %v5499_v48, %v1921_v63  ;;  %v1923_v59 = vpop.f32.mrb[109].mxu1 }
 0x1ee   :  { %v1924_v5 = vpop.f32.mrb[110].mxu1 }
 0x1ef   :  { %3241 = vst.msk [vmem:[%s5993_s3 + $0xd4] sm:$0xf] %vm3187_vm1, %v3774_v58  ;;  %v2402_v3 = vadd.f32 %v5634_v10, %v1922_v2  ;;  %v1925_v8 = vadd.f32 %v5499_v48, %v1924_v5  ;;  %v1926_v4 = vpop.f32.mrb[111].mxu1 }
 0x1f1   :  { %v2685_v7 = vmax.f32 %v2402_v3, 0.0  ;;  %v2405_v9 = vadd.f32 %v5640_v20, %v1925_v8  ;;  %2136 = vmatmul.mubr.bf16.gmra.mrb[216].mxu1 %v4409_v1  ;;  %v2433_v29 = vpop.f32.mrb[124].mxu0 }
 0x1f2   :  { %2143 = vmatprep.mubr.bf16.mxu1 %v3526_v61  ;;  %v2435_v23 = vpop.f32.mrb[125].mxu0 }
 0x1f3   :  { %v3775_v13 = vpack.c.bf16 %v2685_v7, %v2685_v7  ;;  %v2686_v18 = vmax.f32 %v2405_v9, 0.0  ;;  %v2436_v32 = vpop.f32.mrb[126].mxu0 }
 0x1f4   :  { %v1929_v15 = vpop.f32.mrb[112].mxu1  ;;  %v2438_v28 = vpop.f32.mrb[127].mxu0 }
 0x1f5   :  { %3242 = vst.msk [vmem:[%s5993_s3 + $0xd8] sm:$0xf] %vm3187_vm1, %v3775_v13  ;;  %v3776_v10 = vpack.c.bf16 %v2686_v18, %v2686_v18  ;;  %v1930_v19 = vadd.f32 %v5499_v48, %v1929_v15  ;;  %v1931_v22 = vpop.f32.mrb[113].mxu1 }
 0x1f6   :  { %v1932_v21 = vpop.f32.mrb[114].mxu1 }
 0x1f7   :  { %3243 = vst.msk [vmem:[%s5993_s3 + $0xdc] sm:$0xf] %vm3187_vm1, %v3776_v10  ;;  %v2410_v20 = vadd.f32 %v5660_v31, %v1930_v19  ;;  %v1933_v26 = vadd.f32 %v5499_v48, %v1932_v21  ;;  %v1934_v24 = vpop.f32.mrb[115].mxu1 }
 0x1f9   :  { %v2687_v17 = vmax.f32 %v2410_v20, 0.0  ;;  %v2413_v27 = vadd.f32 %v5663_v42, %v1933_v26  ;;  %2144 = vmatmul.mubr.bf16.gmra.mrb[220].mxu1 %v3525_v16  ;;  %v2441_v43 = vpop.f32.mrb[128].mxu0 }
 0x1fa   :  { %v2443_v25 = vpop.f32.mrb[129].mxu0 }
 0x1fb   :  { %v3777_v30 = vpack.c.bf16 %v2687_v17, %v2687_v17  ;;  %v2688_v35 = vmax.f32 %v2413_v27, 0.0  ;;  %v2444_v45 = vpop.f32.mrb[130].mxu0 }
 0x1fc   :  { %v1937_v33 = vpop.f32.mrb[116].mxu1  ;;  %v2446_v39 = vpop.f32.mrb[131].mxu0 }
 0x1fd   :  { %3244 = vst.msk [vmem:[%s5993_s3 + $0xe0] sm:$0xf] %vm3187_vm1, %v3777_v30  ;;  %v3778_v31 = vpack.c.bf16 %v2688_v35, %v2688_v35  ;;  %v1938_v34 = vadd.f32 %v5499_v48, %v1937_v33  ;;  %v1939_v36 = vpop.f32.mrb[117].mxu1 }
 0x1fe   :  { %v1940_v37 = vpop.f32.mrb[118].mxu1 }
 0x1ff   :  { %3245 = vst.msk [vmem:[%s5993_s3 + $0xe4] sm:$0xf] %vm3187_vm1, %v3778_v31  ;;  %v2418_v42 = vadd.f32 %v2417_v55, %v1938_v34  ;;  %v1941_v40 = vadd.f32 %v5499_v48, %v1940_v37  ;;  %v1942_v44 = vpop.f32.mrb[119].mxu1 }
 0x201   :  { %v2689_v38 = vmax.f32 %v2418_v42, 0.0  ;;  %v2421_v46 = vadd.f32 %v2420_v56, %v1941_v40  ;;  %v2449_v57 = vpop.f32.mrb[132].mxu0 }
 0x202   :  { %v2451_v62 = vpop.f32.mrb[133].mxu0 }
 0x203   :  { %v3779_v41 = vpack.c.bf16 %v2689_v38, %v2689_v38  ;;  %v2690_v49 = vmax.f32 %v2421_v46, 0.0  ;;  %v2452_v63 = vpop.f32.mrb[134].mxu0 }
 0x204   :  { %v1945_v47 = vpop.f32.mrb[120].mxu1  ;;  %v2454_v58 = vpop.f32.mrb[135].mxu0 }
 0x205   :  { %3246 = vst.msk [vmem:[%s5993_s3 + $0xe8] sm:$0xf] %vm3187_vm1, %v3779_v41  ;;  %v3780_v52 = vpack.c.bf16 %v2690_v49, %v2690_v49  ;;  %v1946_v50 = vadd.f32 %v5499_v48, %v1945_v47  ;;  %v1947_v55 = vpop.f32.mrb[121].mxu1 }
 0x206   :  { %v1948_v51 = vpop.f32.mrb[122].mxu1 }
 0x207   :  { %3247 = vst.msk [vmem:[%s5993_s3 + $0xec] sm:$0xf] %vm3187_vm1, %v3780_v52  ;;  %v2426_v53 = vadd.f32 %v2425_v6, %v1946_v50  ;;  %v1949_v54 = vadd.f32 %v5499_v48, %v1948_v51  ;;  %v1950_v56 = vpop.f32.mrb[123].mxu1 }
 0x209   :  { %v2691_v60 = vmax.f32 %v2426_v53, 0.0  ;;  %v2429_v0 = vadd.f32 %v2428_v14, %v1949_v54  ;;  %v2457_v7 = vpop.f32.mrb[136].mxu0 }
 0x20a   :  { %v2459_v9 = vpop.f32.mrb[137].mxu0 }
 0x20b   :  { %v3781_v2 = vpack.c.bf16 %v2691_v60, %v2691_v60  ;;  %v2692_v59 = vmax.f32 %v2429_v0, 0.0  ;;  %v2460_v13 = vpop.f32.mrb[138].mxu0 }
 0x20c   :  { %v1953_v1 = vpop.f32.mrb[124].mxu1  ;;  %v2462_v18 = vpop.f32.mrb[139].mxu0 }
 0x20d   :  { %3248 = vst.msk [vmem:[%s5993_s3 + $0xf0] sm:$0xf] %vm3187_vm1, %v3781_v2  ;;  %v3782_v5 = vpack.c.bf16 %v2692_v59, %v2692_v59  ;;  %v1954_v61 = vadd.f32 %v5499_v48, %v1953_v1  ;;  %v1955_v3 = vpop.f32.mrb[125].mxu1 }
 0x20e   :  { %v1956_v8 = vpop.f32.mrb[126].mxu1 }
 0x20f   :  { %3249 = vst.msk [vmem:[%s5993_s3 + $0xf4] sm:$0xf] %vm3187_vm1, %v3782_v5  ;;  %v2434_v4 = vadd.f32 %v2433_v29, %v1954_v61  ;;  %v1957_v6 = vadd.f32 %v5499_v48, %v1956_v8  ;;  %v1958_v11 = vpop.f32.mrb[127].mxu1 }
 0x211   :  { %v2693_v14 = vmax.f32 %v2434_v4, 0.0  ;;  %v2437_v12 = vadd.f32 %v2436_v32, %v1957_v6  ;;  %v2465_v23 = vpop.f32.mrb[140].mxu0 }
 0x212   :  { %v2467_v17 = vpop.f32.mrb[141].mxu0 }
 0x213   :  { %v3783_v15 = vpack.c.bf16 %v2693_v14, %v2693_v14  ;;  %v2694_v10 = vmax.f32 %v2437_v12, 0.0  ;;  %v2468_v28 = vpop.f32.mrb[142].mxu0 }
 0x214   :  { %v1961_v19 = vpop.f32.mrb[128].mxu1  ;;  %v2470_v30 = vpop.f32.mrb[143].mxu0 }
 0x215   :  { %3250 = vst.msk [vmem:[%s5993_s3 + $0xf8] sm:$0xf] %vm3187_vm1, %v3783_v15  ;;  %v3784_v22 = vpack.c.bf16 %v2694_v10, %v2694_v10  ;;  %v1962_v16 = vadd.f32 %v5499_v48, %v1961_v19  ;;  %v1963_v21 = vpop.f32.mrb[129].mxu1 }
 0x216   :  { %v1964_v20 = vpop.f32.mrb[130].mxu1 }
 0x217   :  { %3251 = vst.msk [vmem:[%s5993_s3 + $0xfc] sm:$0xf] %vm3187_vm1, %v3784_v22  ;;  %v2442_v26 = vadd.f32 %v2441_v43, %v1962_v16  ;;  %v1965_v24 = vadd.f32 %v5499_v48, %v1964_v20  ;;  %v1966_v29 = vpop.f32.mrb[131].mxu1 }
 0x219   :  { %v2695_v27 = vmax.f32 %v2442_v26, 0.0  ;;  %v2445_v32 = vadd.f32 %v2444_v45, %v1965_v24  ;;  %v2473_v25 = vpop.f32.mrb[144].mxu0 }
 0x21a   :  { %v2475_v38 = vpop.f32.mrb[145].mxu0 }
 0x21b   :  { %v3785_v35 = vpack.c.bf16 %v2695_v27, %v2695_v27  ;;  %v2696_v33 = vmax.f32 %v2445_v32, 0.0  ;;  %v2476_v39 = vpop.f32.mrb[146].mxu0 }
 0x21c   :  { %v1969_v31 = vpop.f32.mrb[132].mxu1  ;;  %v2478_v41 = vpop.f32.mrb[147].mxu0 }
 0x21d   :  { %3252 = vst.msk [vmem:[%s5993_s3 + $0x100] sm:$0xf] %vm3187_vm1, %v3785_v35  ;;  %v3786_v34 = vpack.c.bf16 %v2696_v33, %v2696_v33  ;;  %v1970_v36 = vadd.f32 %v5499_v48, %v1969_v31  ;;  %v1971_v37 = vpop.f32.mrb[133].mxu1 }
 0x21e   :  { %v1972_v42 = vpop.f32.mrb[134].mxu1 }
 0x21f   :  { %3253 = vst.msk [vmem:[%s5993_s3 + $0x104] sm:$0xf] %vm3187_vm1, %v3786_v34  ;;  %v2450_v40 = vadd.f32 %v2449_v57, %v1970_v36  ;;  %v1973_v44 = vadd.f32 %v5499_v48, %v1972_v42  ;;  %v1974_v43 = vpop.f32.mrb[135].mxu1 }
 0x221   :  { %v2697_v46 = vmax.f32 %v2450_v40, 0.0  ;;  %v2453_v45 = vadd.f32 %v2452_v63, %v1973_v44  ;;  %v2481_v62 = vpop.f32.mrb[148].mxu0 }
 0x222   :  { %v2483_v60 = vpop.f32.mrb[149].mxu0 }
 0x223   :  { %v3787_v49 = vpack.c.bf16 %v2697_v46, %v2697_v46  ;;  %v2698_v47 = vmax.f32 %v2453_v45, 0.0  ;;  %v2484_v58 = vpop.f32.mrb[150].mxu0 }
 0x224   :  { %v1977_v52 = vpop.f32.mrb[136].mxu1  ;;  %v2486_v2 = vpop.f32.mrb[151].mxu0 }
 0x225   :  { %3254 = vst.msk [vmem:[%s5993_s3 + $0x108] sm:$0xf] %vm3187_vm1, %v3787_v49  ;;  %v3788_v50 = vpack.c.bf16 %v2698_v47, %v2698_v47  ;;  %v1978_v55 = vadd.f32 %v5499_v48, %v1977_v52  ;;  %v1979_v51 = vpop.f32.mrb[137].mxu1 }
 0x226   :  { %v1980_v53 = vpop.f32.mrb[138].mxu1 }
 0x227   :  { %3255 = vst.msk [vmem:[%s5993_s3 + $0x10c] sm:$0xf] %vm3187_vm1, %v3788_v50  ;;  %v2458_v54 = vadd.f32 %v2457_v7, %v1978_v55  ;;  %v1981_v56 = vadd.f32 %v5499_v48, %v1980_v53  ;;  %v1982_v57 = vpop.f32.mrb[139].mxu1 }
 0x229   :  { %v2699_v0 = vmax.f32 %v2458_v54, 0.0  ;;  %v2461_v63 = vadd.f32 %v2460_v13, %v1981_v56  ;;  %v2489_v9 = vpop.f32.mrb[152].mxu0 }
 0x22a   :  { %v2491_v14 = vpop.f32.mrb[153].mxu0 }
 0x22b   :  { %v3789_v59 = vpack.c.bf16 %v2699_v0, %v2699_v0  ;;  %v2700_v1 = vmax.f32 %v2461_v63, 0.0  ;;  %v2492_v18 = vpop.f32.mrb[154].mxu0 }
 0x22c   :  { %v1985_v5 = vpop.f32.mrb[140].mxu1  ;;  %v2494_v15 = vpop.f32.mrb[155].mxu0 }
 0x22d   :  { %3256 = vst.msk [vmem:[%s5993_s3 + $0x110] sm:$0xf] %vm3187_vm1, %v3789_v59  ;;  %v3790_v61 = vpack.c.bf16 %v2700_v1, %v2700_v1  ;;  %v1986_v3 = vadd.f32 %v5499_v48, %v1985_v5  ;;  %v1987_v8 = vpop.f32.mrb[141].mxu1 }
 0x22e   :  { %v1988_v4 = vpop.f32.mrb[142].mxu1 }
 0x22f   :  { %3257 = vst.msk [vmem:[%s5993_s3 + $0x114] sm:$0xf] %vm3187_vm1, %v3790_v61  ;;  %v2466_v6 = vadd.f32 %v2465_v23, %v1986_v3  ;;  %v1989_v11 = vadd.f32 %v5499_v48, %v1988_v4  ;;  %v1990_v7 = vpop.f32.mrb[143].mxu1 }
 0x231   :  { %v2701_v12 = vmax.f32 %v2466_v6, 0.0  ;;  %v2469_v13 = vadd.f32 %v2468_v28, %v1989_v11  ;;  %v2497_v17 = vpop.f32.mrb[156].mxu0 }
 0x232   :  { %v2499_v27 = vpop.f32.mrb[157].mxu0 }
 0x233   :  { %v3791_v10 = vpack.c.bf16 %v2701_v12, %v2701_v12  ;;  %v2702_v19 = vmax.f32 %v2469_v13, 0.0  ;;  %v2500_v30 = vpop.f32.mrb[158].mxu0 }
 0x234   :  { %v1993_v22 = vpop.f32.mrb[144].mxu1  ;;  %v2502_v35 = vpop.f32.mrb[159].mxu0 }
 0x235   :  { %3258 = vst.msk [vmem:[%s5993_s3 + $0x118] sm:$0xf] %vm3187_vm1, %v3791_v10  ;;  %v3792_v16 = vpack.c.bf16 %v2702_v19, %v2702_v19  ;;  %v1994_v21 = vadd.f32 %v5499_v48, %v1993_v22  ;;  %v1995_v20 = vpop.f32.mrb[145].mxu1 }
 0x236   :  { %v1996_v26 = vpop.f32.mrb[146].mxu1 }
 0x237   :  { %3259 = vst.msk [vmem:[%s5993_s3 + $0x11c] sm:$0xf] %vm3187_vm1, %v3792_v16  ;;  %v2474_v24 = vadd.f32 %v2473_v25, %v1994_v21  ;;  %v1997_v29 = vadd.f32 %v5499_v48, %v1996_v26  ;;  %v1998_v23 = vpop.f32.mrb[147].mxu1 }
 0x239   :  { %v2703_v32 = vmax.f32 %v2474_v24, 0.0  ;;  %v2477_v28 = vadd.f32 %v2476_v39, %v1997_v29  ;;  %v2505_v38 = vpop.f32.mrb[160].mxu0 }
 0x23a   :  { %v2507_v46 = vpop.f32.mrb[161].mxu0 }
 0x23b   :  { %v3793_v33 = vpack.c.bf16 %v2703_v32, %v2703_v32  ;;  %v2704_v31 = vmax.f32 %v2477_v28, 0.0  ;;  %v2508_v41 = vpop.f32.mrb[162].mxu0 }
 0x23c   :  { %v2001_v34 = vpop.f32.mrb[148].mxu1  ;;  %v2510_v49 = vpop.f32.mrb[163].mxu0 }
 0x23d   :  { %3260 = vst.msk [vmem:[%s5993_s3 + $0x120] sm:$0xf] %vm3187_vm1, %v3793_v33  ;;  %v3794_v36 = vpack.c.bf16 %v2704_v31, %v2704_v31  ;;  %v2002_v37 = vadd.f32 %v5499_v48, %v2001_v34  ;;  %v2003_v42 = vpop.f32.mrb[149].mxu1 }
 0x23e   :  { %v2004_v40 = vpop.f32.mrb[150].mxu1 }
 0x23f   :  { %3261 = vst.msk [vmem:[%s5993_s3 + $0x124] sm:$0xf] %vm3187_vm1, %v3794_v36  ;;  %v2482_v44 = vadd.f32 %v2481_v62, %v2002_v37  ;;  %v2005_v43 = vadd.f32 %v5499_v48, %v2004_v40  ;;  %v2006_v25 = vpop.f32.mrb[151].mxu1 }
 0x241   :  { %v2705_v45 = vmax.f32 %v2482_v44, 0.0  ;;  %v2485_v39 = vadd.f32 %v2484_v58, %v2005_v43  ;;  %v2513_v60 = vpop.f32.mrb[164].mxu0 }
 0x242   :  { %v2515_v0 = vpop.f32.mrb[165].mxu0 }
 0x243   :  { %v3795_v47 = vpack.c.bf16 %v2705_v45, %v2705_v45  ;;  %v2706_v52 = vmax.f32 %v2485_v39, 0.0  ;;  %v2516_v2 = vpop.f32.mrb[166].mxu0 }
 0x244   :  { %v2009_v50 = vpop.f32.mrb[152].mxu1  ;;  %v2518_v59 = vpop.f32.mrb[167].mxu0 }
 0x245   :  { %3262 = vst.msk [vmem:[%s5993_s3 + $0x128] sm:$0xf] %vm3187_vm1, %v3795_v47  ;;  %v3796_v55 = vpack.c.bf16 %v2706_v52, %v2706_v52  ;;  %v2010_v51 = vadd.f32 %v5499_v48, %v2009_v50  ;;  %v2011_v53 = vpop.f32.mrb[153].mxu1 }
 0x246   :  { %v2012_v54 = vpop.f32.mrb[154].mxu1 }
 0x247   :  { %3263 = vst.msk [vmem:[%s5993_s3 + $0x12c] sm:$0xf] %vm3187_vm1, %v3796_v55  ;;  %v2490_v56 = vadd.f32 %v2489_v9, %v2010_v51  ;;  %v2013_v57 = vadd.f32 %v5499_v48, %v2012_v54  ;;  %v2014_v62 = vpop.f32.mrb[155].mxu1 }
 0x249   :  { %v2707_v63 = vmax.f32 %v2490_v56, 0.0  ;;  %v2493_v58 = vadd.f32 %v2492_v18, %v2013_v57  ;;  %v2521_v14 = vpop.f32.mrb[168].mxu0 }
 0x24a   :  { %v2523_v12 = vpop.f32.mrb[169].mxu0 }
 0x24b   :  { %v3797_v1 = vpack.c.bf16 %v2707_v63, %v2707_v63  ;;  %v2708_v5 = vmax.f32 %v2493_v58, 0.0  ;;  %v2524_v15 = vpop.f32.mrb[170].mxu0 }
 0x24c   :  { %v2017_v61 = vpop.f32.mrb[156].mxu1  ;;  %v2526_v10 = vpop.f32.mrb[171].mxu0 }
 0x24d   :  { %3264 = vst.msk [vmem:[%s5993_s3 + $0x130] sm:$0xf] %vm3187_vm1, %v3797_v1  ;;  %v3798_v3 = vpack.c.bf16 %v2708_v5, %v2708_v5  ;;  %v2018_v8 = vadd.f32 %v5499_v48, %v2017_v61  ;;  %v2019_v4 = vpop.f32.mrb[157].mxu1 }
 0x24e   :  { %v2020_v6 = vpop.f32.mrb[158].mxu1 }
 0x24f   :  { %3265 = vst.msk [vmem:[%s5993_s3 + $0x134] sm:$0xf] %vm3187_vm1, %v3798_v3  ;;  %v2498_v11 = vadd.f32 %v2497_v17, %v2018_v8  ;;  %v2021_v7 = vadd.f32 %v5499_v48, %v2020_v6  ;;  %v2022_v9 = vpop.f32.mrb[159].mxu1 }
 0x251   :  { %v2709_v13 = vmax.f32 %v2498_v11, 0.0  ;;  %v2501_v18 = vadd.f32 %v2500_v30, %v2021_v7  ;;  %v2529_v27 = vpop.f32.mrb[172].mxu0 }
 0x252   :  { %v2531_v32 = vpop.f32.mrb[173].mxu0 }
 0x253   :  { %v3799_v19 = vpack.c.bf16 %v2709_v13, %v2709_v13  ;;  %v2710_v22 = vmax.f32 %v2501_v18, 0.0  ;;  %v2532_v35 = vpop.f32.mrb[174].mxu0 }
 0x254   :  { %v2025_v16 = vpop.f32.mrb[160].mxu1  ;;  %v2534_v33 = vpop.f32.mrb[175].mxu0 }
 0x255   :  { %3266 = vst.msk [vmem:[%s5993_s3 + $0x138] sm:$0xf] %vm3187_vm1, %v3799_v19  ;;  %v3800_v21 = vpack.c.bf16 %v2710_v22, %v2710_v22  ;;  %v2026_v20 = vadd.f32 %v5499_v48, %v2025_v16  ;;  %v2027_v26 = vpop.f32.mrb[161].mxu1 }
 0x256   :  { %v2028_v24 = vpop.f32.mrb[162].mxu1 }
 0x257   :  { %3267 = vst.msk [vmem:[%s5993_s3 + $0x13c] sm:$0xf] %vm3187_vm1, %v3800_v21  ;;  %v2506_v29 = vadd.f32 %v2505_v38, %v2026_v20  ;;  %v2029_v23 = vadd.f32 %v5499_v48, %v2028_v24  ;;  %v2030_v17 = vpop.f32.mrb[163].mxu1 }
 0x259   :  { %v2711_v28 = vmax.f32 %v2506_v29, 0.0  ;;  %v2509_v30 = vadd.f32 %v2508_v41, %v2029_v23  ;;  %v2537_v46 = vpop.f32.mrb[176].mxu0 }
 0x25a   :  { %v2539_v45 = vpop.f32.mrb[177].mxu0 }
 0x25b   :  { %v3801_v31 = vpack.c.bf16 %v2711_v28, %v2711_v28  ;;  %v2712_v34 = vmax.f32 %v2509_v30, 0.0  ;;  %v2540_v49 = vpop.f32.mrb[178].mxu0 }
 0x25c   :  { %v2033_v36 = vpop.f32.mrb[164].mxu1  ;;  %v2542_v47 = vpop.f32.mrb[179].mxu0 }
 0x25d   :  { %3268 = vst.msk [vmem:[%s5993_s3 + $0x140] sm:$0xf] %vm3187_vm1, %v3801_v31  ;;  %v3802_v37 = vpack.c.bf16 %v2712_v34, %v2712_v34  ;;  %v2034_v42 = vadd.f32 %v5499_v48, %v2033_v36  ;;  %v2035_v40 = vpop.f32.mrb[165].mxu1 }
 0x25e   :  { %v2036_v44 = vpop.f32.mrb[166].mxu1 }
 0x25f   :  { %3269 = vst.msk [vmem:[%s5993_s3 + $0x144] sm:$0xf] %vm3187_vm1, %v3802_v37  ;;  %v2514_v43 = vadd.f32 %v2513_v60, %v2034_v42  ;;  %v2037_v25 = vadd.f32 %v5499_v48, %v2036_v44  ;;  %v2038_v38 = vpop.f32.mrb[167].mxu1 }
 0x260   :  { %v5885_v38 = vld [vmem:[%s5992_s2] ss:$0 sm:$0xff] }
 0x261   :  { %v2713_v39 = vmax.f32 %v2514_v43, 0.0  ;;  %v2517_v41 = vadd.f32 %v2516_v2, %v2037_v25  ;;  %v2545_v0 = vpop.f32.mrb[180].mxu0 }
 0x262   :  { %v2547_v63 = vpop.f32.mrb[181].mxu0 }
 0x263   :  { %v3803_v52 = vpack.c.bf16 %v2713_v39, %v2713_v39  ;;  %v2714_v50 = vmax.f32 %v2517_v41, 0.0  ;;  %v2548_v59 = vpop.f32.mrb[182].mxu0 }
 0x264   :  { %v2041_v55 = vpop.f32.mrb[168].mxu1  ;;  %v2550_v1 = vpop.f32.mrb[183].mxu0 }
 0x265   :  { %3270 = vst.msk [vmem:[%s5993_s3 + $0x148] sm:$0xf] %vm3187_vm1, %v3803_v52  ;;  %v3804_v51 = vpack.c.bf16 %v2714_v50, %v2714_v50  ;;  %v2042_v53 = vadd.f32 %v5499_v48, %v2041_v55  ;;  %v2043_v54 = vpop.f32.mrb[169].mxu1 }
 0x266   :  { %v2044_v56 = vpop.f32.mrb[170].mxu1 }
 0x267   :  { %3271 = vst.msk [vmem:[%s5993_s3 + $0x14c] sm:$0xf] %vm3187_vm1, %v3804_v51  ;;  %v2522_v57 = vadd.f32 %v2521_v14, %v2042_v53  ;;  %v2045_v62 = vadd.f32 %v5499_v48, %v2044_v56  ;;  %v2046_v60 = vpop.f32.mrb[171].mxu1 }
 0x269   :  { %v2715_v58 = vmax.f32 %v2522_v57, 0.0  ;;  %v2525_v2 = vadd.f32 %v2524_v15, %v2045_v62  ;;  %v2553_v12 = vpop.f32.mrb[184].mxu0 }
 0x26a   :  { %v2555_v13 = vpop.f32.mrb[185].mxu0 }
 0x26b   :  { %v3805_v5 = vpack.c.bf16 %v2715_v58, %v2715_v58  ;;  %v2716_v61 = vmax.f32 %v2525_v2, 0.0  ;;  %v2556_v10 = vpop.f32.mrb[186].mxu0 }
 0x26c   :  { %v2049_v3 = vpop.f32.mrb[172].mxu1  ;;  %v2558_v19 = vpop.f32.mrb[187].mxu0 }
 0x26d   :  { %3272 = vst.msk [vmem:[%s5993_s3 + $0x150] sm:$0xf] %vm3187_vm1, %v3805_v5  ;;  %v3806_v8 = vpack.c.bf16 %v2716_v61, %v2716_v61  ;;  %v2050_v4 = vadd.f32 %v5499_v48, %v2049_v3  ;;  %v2051_v6 = vpop.f32.mrb[173].mxu1 }
 0x26e   :  { %v2052_v11 = vpop.f32.mrb[174].mxu1 }
 0x26f   :  { %3273 = vst.msk [vmem:[%s5993_s3 + $0x154] sm:$0xf] %vm3187_vm1, %v3806_v8  ;;  %v2530_v7 = vadd.f32 %v2529_v27, %v2050_v4  ;;  %v2053_v9 = vadd.f32 %v5499_v48, %v2052_v11  ;;  %v2054_v14 = vpop.f32.mrb[175].mxu1 }
 0x271   :  { %v2717_v18 = vmax.f32 %v2530_v7, 0.0  ;;  %v2533_v15 = vadd.f32 %v2532_v35, %v2053_v9  ;;  %v2561_v32 = vpop.f32.mrb[188].mxu0 }
 0x272   :  { %v2563_v28 = vpop.f32.mrb[189].mxu0 }
 0x273   :  { %v3807_v22 = vpack.c.bf16 %v2717_v18, %v2717_v18  ;;  %v2718_v16 = vmax.f32 %v2533_v15, 0.0  ;;  %v2564_v33 = vpop.f32.mrb[190].mxu0 }
 0x274   :  { %v2057_v21 = vpop.f32.mrb[176].mxu1  ;;  %v2566_v31 = vpop.f32.mrb[191].mxu0 }
 0x275   :  { %3274 = vst.msk [vmem:[%s5993_s3 + $0x158] sm:$0xf] %vm3187_vm1, %v3807_v22  ;;  %v3808_v20 = vpack.c.bf16 %v2718_v16, %v2718_v16  ;;  %v2058_v26 = vadd.f32 %v5499_v48, %v2057_v21  ;;  %v2059_v24 = vpop.f32.mrb[177].mxu1 }
 0x276   :  { %v2060_v29 = vpop.f32.mrb[178].mxu1 }
 0x277   :  { %3275 = vst.msk [vmem:[%s5993_s3 + $0x15c] sm:$0xf] %vm3187_vm1, %v3808_v20  ;;  %v2538_v23 = vadd.f32 %v2537_v46, %v2058_v26  ;;  %v2061_v17 = vadd.f32 %v5499_v48, %v2060_v29  ;;  %v2062_v27 = vpop.f32.mrb[179].mxu1 }
 0x279   :  { %v2719_v30 = vmax.f32 %v2538_v23, 0.0  ;;  %v2541_v35 = vadd.f32 %v2540_v49, %v2061_v17  ;;  %v2569_v39 = vpop.f32.mrb[192].mxu0 }
 0x27a   :  { %v2571_v41 = vpop.f32.mrb[193].mxu0 }
 0x27b   :  { %v3809_v34 = vpack.c.bf16 %v2719_v30, %v2719_v30  ;;  %v2720_v36 = vmax.f32 %v2541_v35, 0.0  ;;  %v2572_v47 = vpop.f32.mrb[194].mxu0 }
 0x27c   :  { %v2065_v37 = vpop.f32.mrb[180].mxu1  ;;  %v2574_v52 = vpop.f32.mrb[195].mxu0 }
 0x27d   :  { %3276 = vst.msk [vmem:[%s5993_s3 + $0x160] sm:$0xf] %vm3187_vm1, %v3809_v34  ;;  %v3810_v42 = vpack.c.bf16 %v2720_v36, %v2720_v36  ;;  %v2066_v40 = vadd.f32 %v5499_v48, %v2065_v37  ;;  %v2067_v44 = vpop.f32.mrb[181].mxu1 }
 0x27e   :  { %v2068_v43 = vpop.f32.mrb[182].mxu1 }
 0x27f   :  { %3277 = vst.msk [vmem:[%s5993_s3 + $0x164] sm:$0xf] %vm3187_vm1, %v3810_v42  ;;  %v2546_v25 = vadd.f32 %v2545_v0, %v2066_v40  ;;  %v2069_v46 = vadd.f32 %v5885_v38, %v2068_v43  ;;  %v2070_v45 = vpop.f32.mrb[183].mxu1 }
 0x281   :  { %v2721_v49 = vmax.f32 %v2546_v25, 0.0  ;;  %v2549_v48 = vadd.f32 %v2548_v59, %v2069_v46  ;;  %v2577_v63 = vpop.f32.mrb[196].mxu0 }
 0x282   :  { %v2579_v58 = vpop.f32.mrb[197].mxu0 }
 0x283   :  { %v3811_v50 = vpack.c.bf16 %v2721_v49, %v2721_v49  ;;  %v2722_v55 = vmax.f32 %v2549_v48, 0.0  ;;  %v2580_v1 = vpop.f32.mrb[198].mxu0 }
 0x284   :  { %v2073_v51 = vpop.f32.mrb[184].mxu1  ;;  %v2582_v5 = vpop.f32.mrb[199].mxu0 }
 0x285   :  { %3278 = vst.msk [vmem:[%s5993_s3 + $0x168] sm:$0xf] %vm3187_vm1, %v3811_v50  ;;  %v3812_v53 = vpack.c.bf16 %v2722_v55, %v2722_v55  ;;  %v2074_v54 = vadd.f32 %v5885_v38, %v2073_v51  ;;  %v2075_v56 = vpop.f32.mrb[185].mxu1 }
 0x286   :  { %v2076_v57 = vpop.f32.mrb[186].mxu1 }
 0x287   :  { %3279 = vst.msk [vmem:[%s5993_s3 + $0x16c] sm:$0xf] %vm3187_vm1, %v3812_v53  ;;  %v2554_v62 = vadd.f32 %v2553_v12, %v2074_v54  ;;  %v2077_v60 = vadd.f32 %v5885_v38, %v2076_v57  ;;  %v2078_v0 = vpop.f32.mrb[187].mxu1 }
 0x289   :  { %v2723_v2 = vmax.f32 %v2554_v62, 0.0  ;;  %v2557_v59 = vadd.f32 %v2556_v10, %v2077_v60  ;;  %v2585_v13 = vpop.f32.mrb[200].mxu0 }
 0x28a   :  { %v2587_v18 = vpop.f32.mrb[201].mxu0 }
 0x28b   :  { %v3813_v61 = vpack.c.bf16 %v2723_v2, %v2723_v2  ;;  %v2724_v3 = vmax.f32 %v2557_v59, 0.0  ;;  %v2588_v19 = vpop.f32.mrb[202].mxu0 }
 0x28c   :  { %v2081_v8 = vpop.f32.mrb[188].mxu1  ;;  %v2590_v22 = vpop.f32.mrb[203].mxu0 }
 0x28d   :  { %3280 = vst.msk [vmem:[%s5993_s3 + $0x170] sm:$0xf] %vm3187_vm1, %v3813_v61  ;;  %v3814_v4 = vpack.c.bf16 %v2724_v3, %v2724_v3  ;;  %v2082_v6 = vadd.f32 %v5885_v38, %v2081_v8  ;;  %v2083_v11 = vpop.f32.mrb[189].mxu1 }
 0x28e   :  { %v2084_v7 = vpop.f32.mrb[190].mxu1 }
 0x28f   :  { %3281 = vst.msk [vmem:[%s5993_s3 + $0x174] sm:$0xf] %vm3187_vm1, %v3814_v4  ;;  %v2562_v9 = vadd.f32 %v2561_v32, %v2082_v6  ;;  %v2085_v14 = vadd.f32 %v5885_v38, %v2084_v7  ;;  %v2086_v12 = vpop.f32.mrb[191].mxu1 }
 0x291   :  { %v2725_v15 = vmax.f32 %v2562_v9, 0.0  ;;  %v2565_v10 = vadd.f32 %v2564_v33, %v2085_v14  ;;  %v2593_v28 = vpop.f32.mrb[204].mxu0 }
 0x292   :  { %v2595_v30 = vpop.f32.mrb[205].mxu0 }
 0x293   :  { %v3815_v16 = vpack.c.bf16 %v2725_v15, %v2725_v15  ;;  %v2726_v21 = vmax.f32 %v2565_v10, 0.0  ;;  %v2596_v31 = vpop.f32.mrb[206].mxu0 }
 0x294   :  { %v2089_v20 = vpop.f32.mrb[192].mxu1  ;;  %v2598_v34 = vpop.f32.mrb[207].mxu0 }
 0x295   :  { %3282 = vst.msk [vmem:[%s5993_s3 + $0x178] sm:$0xf] %vm3187_vm1, %v3815_v16  ;;  %v3816_v26 = vpack.c.bf16 %v2726_v21, %v2726_v21  ;;  %v2090_v24 = vadd.f32 %v5885_v38, %v2089_v20  ;;  %v2091_v29 = vpop.f32.mrb[193].mxu1 }
 0x296   :  { %v2092_v23 = vpop.f32.mrb[194].mxu1 }
 0x297   :  { %3283 = vst.msk [vmem:[%s5993_s3 + $0x17c] sm:$0xf] %vm3187_vm1, %v3816_v26  ;;  %v2570_v17 = vadd.f32 %v2569_v39, %v2090_v24  ;;  %v2093_v27 = vadd.f32 %v5885_v38, %v2092_v23  ;;  %v2094_v32 = vpop.f32.mrb[195].mxu1 }
 0x299   :  { %v2727_v35 = vmax.f32 %v2570_v17, 0.0  ;;  %v2573_v33 = vadd.f32 %v2572_v47, %v2093_v27  ;;  %v2601_v41 = vpop.f32.mrb[208].mxu0 }
 0x29a   :  { %v2603_v49 = vpop.f32.mrb[209].mxu0 }
 0x29b   :  { %v3817_v36 = vpack.c.bf16 %v2727_v35, %v2727_v35  ;;  %v2728_v37 = vmax.f32 %v2573_v33, 0.0  ;;  %v2604_v52 = vpop.f32.mrb[210].mxu0 }
 0x29c   :  { %v2097_v42 = vpop.f32.mrb[196].mxu1  ;;  %v2606_v50 = vpop.f32.mrb[211].mxu0 }
 0x29d   :  { %3284 = vst.msk [vmem:[%s5993_s3 + $0x180] sm:$0xf] %vm3187_vm1, %v3817_v36  ;;  %v3818_v40 = vpack.c.bf16 %v2728_v37, %v2728_v37  ;;  %v2098_v44 = vadd.f32 %v5885_v38, %v2097_v42  ;;  %v2099_v43 = vpop.f32.mrb[197].mxu1 }
 0x29e   :  { %v2100_v25 = vpop.f32.mrb[198].mxu1 }
 0x29f   :  { %3285 = vst.msk [vmem:[%s5993_s3 + $0x184] sm:$0xf] %vm3187_vm1, %v3818_v40  ;;  %v2578_v46 = vadd.f32 %v2577_v63, %v2098_v44  ;;  %v2101_v45 = vadd.f32 %v5885_v38, %v2100_v25  ;;  %v2102_v39 = vpop.f32.mrb[199].mxu1 }
 0x2a1   :  { %v2729_v48 = vmax.f32 %v2578_v46, 0.0  ;;  %v2581_v47 = vadd.f32 %v2580_v1, %v2101_v45  ;;  %v2609_v58 = vpop.f32.mrb[212].mxu0 }
 0x2a2   :  { %v2611_v2 = vpop.f32.mrb[213].mxu0 }
 0x2a3   :  { %v3819_v55 = vpack.c.bf16 %v2729_v48, %v2729_v48  ;;  %v2730_v51 = vmax.f32 %v2581_v47, 0.0  ;;  %v2612_v5 = vpop.f32.mrb[214].mxu0 }
 0x2a4   :  { %v2105_v53 = vpop.f32.mrb[200].mxu1  ;;  %v2614_v61 = vpop.f32.mrb[215].mxu0 }
 0x2a5   :  { %3286 = vst.msk [vmem:[%s5993_s3 + $0x188] sm:$0xf] %vm3187_vm1, %v3819_v55  ;;  %v3820_v54 = vpack.c.bf16 %v2730_v51, %v2730_v51  ;;  %v2106_v56 = vadd.f32 %v5885_v38, %v2105_v53  ;;  %v2107_v57 = vpop.f32.mrb[201].mxu1 }
 0x2a6   :  { %v2108_v62 = vpop.f32.mrb[202].mxu1 }
 0x2a7   :  { %3287 = vst.msk [vmem:[%s5993_s3 + $0x18c] sm:$0xf] %vm3187_vm1, %v3820_v54  ;;  %v2586_v60 = vadd.f32 %v2585_v13, %v2106_v56  ;;  %v2109_v0 = vadd.f32 %v5885_v38, %v2108_v62  ;;  %v2110_v63 = vpop.f32.mrb[203].mxu1 }
 0x2a9   :  { %v2731_v59 = vmax.f32 %v2586_v60, 0.0  ;;  %v2589_v1 = vadd.f32 %v2588_v19, %v2109_v0  ;;  %v2617_v18 = vpop.f32.mrb[216].mxu0 }
 0x2aa   :  { %v2619_v15 = vpop.f32.mrb[217].mxu0 }
 0x2ab   :  { %v3821_v3 = vpack.c.bf16 %v2731_v59, %v2731_v59  ;;  %v2732_v8 = vmax.f32 %v2589_v1, 0.0  ;;  %v2620_v22 = vpop.f32.mrb[218].mxu0 }
 0x2ac   :  { %v2113_v4 = vpop.f32.mrb[204].mxu1  ;;  %v2622_v16 = vpop.f32.mrb[219].mxu0 }
 0x2ad   :  { %3288 = vst.msk [vmem:[%s5993_s3 + $0x190] sm:$0xf] %vm3187_vm1, %v3821_v3  ;;  %v3822_v6 = vpack.c.bf16 %v2732_v8, %v2732_v8  ;;  %v2114_v11 = vadd.f32 %v5885_v38, %v2113_v4  ;;  %v2115_v7 = vpop.f32.mrb[205].mxu1 }
 0x2ae   :  { %v2116_v9 = vpop.f32.mrb[206].mxu1 }
 0x2af   :  { %3289 = vst.msk [vmem:[%s5993_s3 + $0x194] sm:$0xf] %vm3187_vm1, %v3822_v6  ;;  %v2594_v14 = vadd.f32 %v2593_v28, %v2114_v11  ;;  %v2117_v12 = vadd.f32 %v5885_v38, %v2116_v9  ;;  %v2118_v13 = vpop.f32.mrb[207].mxu1 }
 0x2b1   :  { %v2733_v10 = vmax.f32 %v2594_v14, 0.0  ;;  %v2597_v19 = vadd.f32 %v2596_v31, %v2117_v12  ;;  %v2625_v30 = vpop.f32.mrb[220].mxu0 }
 0x2b2   :  { %v2627_v35 = vpop.f32.mrb[221].mxu0 }
 0x2b3   :  { %v3823_v21 = vpack.c.bf16 %v2733_v10, %v2733_v10  ;;  %v2734_v20 = vmax.f32 %v2597_v19, 0.0  ;;  %v2628_v34 = vpop.f32.mrb[222].mxu0 }
 0x2b4   :  { %v2121_v26 = vpop.f32.mrb[208].mxu1  ;;  %v2629_v36 = vpop.f32.mrb[223].mxu0 }
 0x2b5   :  { %3290 = vst.msk [vmem:[%s5993_s3 + $0x198] sm:$0xf] %vm3187_vm1, %v3823_v21  ;;  %v3824_v24 = vpack.c.bf16 %v2734_v20, %v2734_v20  ;;  %v2122_v29 = vadd.f32 %v5885_v38, %v2121_v26  ;;  %v2123_v23 = vpop.f32.mrb[209].mxu1 }
 0x2b6   :  { %v2124_v17 = vpop.f32.mrb[210].mxu1 }
 0x2b7   :  { %3291 = vst.msk [vmem:[%s5993_s3 + $0x19c] sm:$0xf] %vm3187_vm1, %v3824_v24  ;;  %v2602_v27 = vadd.f32 %v2601_v41, %v2122_v29  ;;  %v2125_v32 = vadd.f32 %v5885_v38, %v2124_v17  ;;  %v2126_v28 = vpop.f32.mrb[211].mxu1 }
 0x2b9   :  { %v2735_v33 = vmax.f32 %v2602_v27, 0.0  ;;  %v2605_v31 = vadd.f32 %v2604_v52, %v2125_v32 }
 0x2bb   :  { %v3825_v37 = vpack.c.bf16 %v2735_v33, %v2735_v33  ;;  %v2736_v42 = vmax.f32 %v2605_v31, 0.0 }
 0x2bc   :  { %v2129_v40 = vpop.f32.mrb[212].mxu1 }
 0x2bd   :  { %3292 = vst.msk [vmem:[%s5993_s3 + $0x1a0] sm:$0xf] %vm3187_vm1, %v3825_v37  ;;  %v3826_v44 = vpack.c.bf16 %v2736_v42, %v2736_v42  ;;  %v2130_v43 = vadd.f32 %v5885_v38, %v2129_v40  ;;  %v2131_v25 = vpop.f32.mrb[213].mxu1 }
 0x2be   :  { %v2132_v46 = vpop.f32.mrb[214].mxu1 }
 0x2bf   :  { %3293 = vst.msk [vmem:[%s5993_s3 + $0x1a4] sm:$0xf] %vm3187_vm1, %v3826_v44  ;;  %v2610_v45 = vadd.f32 %v2609_v58, %v2130_v43  ;;  %v2133_v39 = vadd.f32 %v5885_v38, %v2132_v46  ;;  %v2134_v41 = vpop.f32.mrb[215].mxu1 }
 0x2c1   :  { %v2737_v49 = vmax.f32 %v2610_v45, 0.0  ;;  %v2613_v48 = vadd.f32 %v2612_v5, %v2133_v39 }
 0x2c3   :  { %v3827_v47 = vpack.c.bf16 %v2737_v49, %v2737_v49  ;;  %v2738_v52 = vmax.f32 %v2613_v48, 0.0 }
 0x2c4   :  { %v2137_v50 = vpop.f32.mrb[216].mxu1 }
 0x2c5   :  { %3294 = vst.msk [vmem:[%s5993_s3 + $0x1a8] sm:$0xf] %vm3187_vm1, %v3827_v47  ;;  %v3828_v55 = vpack.c.bf16 %v2738_v52, %v2738_v52  ;;  %v2138_v51 = vadd.f32 %v5885_v38, %v2137_v50  ;;  %v2139_v53 = vpop.f32.mrb[217].mxu1 }
 0x2c6   :  { %v2140_v54 = vpop.f32.mrb[218].mxu1 }
 0x2c7   :  { %3295 = vst.msk [vmem:[%s5993_s3 + $0x1ac] sm:$0xf] %vm3187_vm1, %v3828_v55  ;;  %v2618_v56 = vadd.f32 %v2617_v18, %v2138_v51  ;;  %v2141_v57 = vadd.f32 %v5885_v38, %v2140_v54  ;;  %v2142_v62 = vpop.f32.mrb[219].mxu1 }
 0x2c9   :  { %v2739_v60 = vmax.f32 %v2618_v56, 0.0  ;;  %v2621_v0 = vadd.f32 %v2620_v22, %v2141_v57 }
 0x2cb   :  { %v3829_v63 = vpack.c.bf16 %v2739_v60, %v2739_v60  ;;  %v2740_v58 = vmax.f32 %v2621_v0, 0.0 }
 0x2cc   :  { %v2145_v2 = vpop.f32.mrb[220].mxu1 }
 0x2cd   :  { %3296 = vst.msk [vmem:[%s5993_s3 + $0x1b0] sm:$0xf] %vm3187_vm1, %v3829_v63  ;;  %v3830_v59 = vpack.c.bf16 %v2740_v58, %v2740_v58  ;;  %v2146_v1 = vadd.f32 %v5885_v38, %v2145_v2  ;;  %v2147_v5 = vpop.f32.mrb[221].mxu1 }
 0x2ce   :  { %v2148_v61 = vpop.f32.mrb[222].mxu1 }
 0x2cf   :  { %3297 = vst.msk [vmem:[%s5993_s3 + $0x1b4] sm:$0xf] %vm3187_vm1, %v3830_v59  ;;  %v2626_v3 = vadd.f32 %v2625_v30, %v2146_v1  ;;  %v2149_v8 = vpop.f32.mrb[223].mxu1 }
 0x2d1   :  { %v2741_v4 = vmax.f32 %v2626_v3, 0.0 }
 0x2d3   :  { %v3831_v6 = vpack.c.bf16 %v2741_v4, %v2741_v4 }
 0x2d5   :  { %3299 = vst.msk [vmem:[%s5993_s3 + $0x1b8] sm:$0x1] %vm3298_vm2, %v3831_v6 }

// kernel: policy_forward.5
= control target key start
LH: loop header
LB: loop body
LE: loop exit
PB: predicated region body
PF: predicated region fallthrough
CT: control target
= control target key end

     0   :  { %10 = vsyncpa [#allocation3], 0  ;;  %s2599_s0 = inlined_call_operand.vmem [shape: bf16[2,81,800], index: 0, kind: input, shape index: {}]   ;;  %s2600_s1 = inlined_call_operand.vmem [shape: bf16[800,32], index: 1, kind: input, shape index: {}]   ;;  %s2601_s2 = inlined_call_operand.vmem [shape: f32[1,32], index: 2, kind: input, shape index: {}]   ;;  %s2602_s3 = inlined_call_operand.vmem [shape: f32[3,81,32], index: 3, kind: input, shape index: {}]   ;;  %s2603_s4 = inlined_call_operand.vmem [shape: f32[1,3], index: 4, kind: input, shape index: {}]   ;;  %s2604_s5 = inlined_call_operand.hbm [shape: f32[2,1,3], index: 5, kind: output, shape index: {}]  }
   0x1   :  { %12 = vsyncpa [#allocation3 + $0x1], 0  ;;  %s2107_s18 = smov 0   ;;  %s2109_s19 = smov 0  }
   0x2   :  { %s2111_s20 = smov 0   ;;  %s2113_s21 = smov 0  }
   0x3 LB: > { %s2128_s22 = sadd.s32 4294967295, %s2074_s21   ;;  %s1536_s23 = sadd.s32 4294967294, %s2074_s21   ;;  %s2074_s21 = sphi %s2113_s21, %s2610_s21   ;;  %s2070_s20 = sphi %s2111_s20, %s2609_s20   ;;  %s2066_s19 = sphi %s2109_s19, %s2608_s19   ;;  %s2062_s18 = sphi %s2107_s18, %s2607_s18  }
   0x4   : > { %s2132_s24 = sadd.s32 1, %s2074_s21   ;;  %s135_s25 = sadd.s32 1, %s2070_s20 }
   0x5   : > { %s132_s26 = ssub.s32 %s2074_s21, %s2132_s24  ;;  %p145_p0 = scmp.ne.s32.totalorder %s2070_s20, %s2066_s19 }
   0x6   : > { %p133_p1 = scmp.eq.s32.totalorder %s132_s26, 0  ;;  %p146_p2 = scmp.eq.s32.totalorder %s2128_s22, 1 }
   0x7   : > { %p151_p3 = scmp.ne.s32.totalorder %s2066_s19, %s2062_s18  ;;  %p152_p4 = scmp.eq.s32.totalorder %s1536_s23, 1 }
   0x8   : > { %s2143_s27 = scalar_select %p133_p1, %s2070_s20, %s135_s25  }
   0x9   : > { %p2145_p5 = por %p146_p2, %p145_p0  ;;  %p2149_p6 = por %p152_p4, %p151_p3 }
   0xa   : > { %p1539_p7 = scmp.ge.s32.totalorder %s2074_s21, 1  ;;  %p190_p8 = scmp.lt.s32.totalorder %s2074_s21, 3 }
   0xc   : > { %p191_p9 = pnand %p1539_p7, %p190_p8 }
   0xd   : > { %v1901_v0 = vld [vmem:[%s2600_s1 + $0x40] sm:$0xff] (!%p191_p9)   ;;  %v1905_v4 = vld [vmem:[%s2600_s1 + $0x48] sm:$0xff] (!%p191_p9)   ;;  %v1909_v8 = vld [vmem:[%s2600_s1 + $0x50] sm:$0xff] (!%p191_p9)   ;;  %p217_p10 = scmp.lt.s32.totalorder (!%p191_p9), %s2128_s22, 1  ;;  %vm873_vm0 = vcmask (!%p191_p9), 261120   ;;  %vm1278_vm1 = vcmask (!%p191_p9), 253952  }
   0xe   : > { %194 = sbr.rel (%p191_p9) target bundleno = 876 (0x36c), region = 40  ;;  %v1902_v1 = vld [vmem:[%s2600_s1 + $0xc0] sm:$0xff] (!%p191_p9)   ;;  %1665 = vmatprep.subr.bf16.mxu0 (!%p191_p9), %v1901_v0  ;;  %v1906_v5 = vld [vmem:[%s2600_s1 + $0xc8] sm:$0xff] (!%p191_p9)   ;;  %v1910_v9 = vld [vmem:[%s2600_s1 + $0xd0] sm:$0xff] (!%p191_p9)   ;;  %vm1291_vm2 = vcmask (!%p191_p9), 1040384   ;;  %vm1455_vm6 = vcmask (!%p191_p9), 16384  }
   0xf   : > { %v1903_v2 = vld [vmem:[%s2600_s1] sm:$0xff] (!%p191_p9)   ;;  %1717 = vmatprep.subr.bf16.mxu1 (!%p191_p9), %v1902_v1  ;;  %v1907_v6 = vld [vmem:[%s2600_s1 + $0x8] sm:$0xff] (!%p191_p9)   ;;  %v1911_v10 = vld [vmem:[%s2600_s1 + $0x10] sm:$0xff] (!%p191_p9)   ;;  %s215_s6 = sand.u32 (!%p191_p9), 1, %s2066_s19   ;;  %s1662_s7 = sshll.u32 (!%p191_p9), %s2128_s22, 4 }
  0x10   : > { %v1904_v3 = vld [vmem:[%s2600_s1 + $0x80] sm:$0xff] (!%p191_p9)   ;;  %1666 = vmatpush3.bf16.msra.mxu0 (!%p191_p9), %v1903_v2  ;;  %v1908_v7 = vld [vmem:[%s2600_s1 + $0x88] sm:$0xff] (!%p191_p9)   ;;  %v1912_v11 = vld [vmem:[%s2600_s1 + $0x90] sm:$0xff] (!%p191_p9)   ;;  %s216_s8 = scalar_lea.vmem (!%p191_p9), [#allocation2], %s215_s6  ;;  %s2556_s12 = scalar_lea.hbm (!%p191_p9), %s2604_s5, %s1662_s7 }
  0x11   : > { %1718 = vmatpush3.bf16.msra.mxu1 (!%p191_p9), %v1904_v3  ;;  %1667 = vmatprep.subr.bf16.mxu0 (!%p191_p9), %v1905_v4  ;;  %v1913_v12 = vld [vmem:[%s2600_s1 + $0x58] sm:$0xff] (!%p191_p9)   ;;  %v1917_v16 = vld [vmem:[%s2600_s1 + $0x60] sm:$0xff] (!%p191_p9)   ;;  %v1921_v20 = vld [vmem:[%s2600_s1 + $0x68] sm:$0xff] (!%p191_p9)   ;;  %s1481_s9 = sshll.u32 (!%p191_p9), %s216_s8, 4  ;;  %s1469_s13 = scalar_lea.sflag (!%p191_p9), [#allocation3], %s215_s6  ;;  %s2558_s9 = int_to_ptr.vmem [resolvable:$true] %s1481_s9 }
  0x12   : > { %1719 = vmatprep.subr.bf16.mxu1 (!%p191_p9), %v1906_v5  ;;  %v1914_v13 = vld [vmem:[%s2600_s1 + $0xd8] sm:$0xff] (!%p191_p9)   ;;  %v1918_v17 = vld [vmem:[%s2600_s1 + $0xe0] sm:$0xff] (!%p191_p9)   ;;  %v1922_v21 = vld [vmem:[%s2600_s1 + $0xe8] sm:$0xff] (!%p191_p9)   ;;  %s2012_s14 = scalar_lea.vmem (!%p191_p9), %s2558_s9, 16 }
  0x13   : > { %v1915_v14 = vld [vmem:[%s2600_s1 + $0x18] sm:$0xff] (!%p191_p9)   ;;  %v1919_v18 = vld [vmem:[%s2600_s1 + $0x20] sm:$0xff] (!%p191_p9)   ;;  %v1923_v22 = vld [vmem:[%s2600_s1 + $0x28] sm:$0xff] (!%p191_p9)   ;;  %p2013_p11 = scmp.ne.s32.totalorder (!%p191_p9), %s2558_s9, %s2012_s14 }
  0x14   : > { %1668 = vmatpush3.bf16.msra.mxu0 (!%p191_p9), %v1907_v6  ;;  %v1916_v15 = vld [vmem:[%s2600_s1 + $0x98] sm:$0xff] (!%p191_p9)   ;;  %v1920_v19 = vld [vmem:[%s2600_s1 + $0xa0] sm:$0xff] (!%p191_p9)   ;;  %v1924_v23 = vld [vmem:[%s2600_s1 + $0xa8] sm:$0xff] (!%p191_p9)  }
  0x15   : > { %1720 = vmatpush3.bf16.msra.mxu1 %v1908_v7  ;;  %1669 = vmatprep.subr.bf16.mxu0 %v1909_v8  ;;  %s218_s17 = scalar_select %p217_p10, %s2128_s22, 1  ;;  %v1925_v24 = vld [vmem:[%s2600_s1 + $0x70] sm:$0xff]   ;;  %v1929_v28 = vld [vmem:[%s2600_s1 + $0x78] sm:$0xff]   ;;  %v1939_v36 = vld [vmem:[%s2600_s1 + $0x140] sm:$0xff]  }
  0x16   : > { %1721 = vmatprep.subr.bf16.mxu1 %v1910_v9  ;;  %v1926_v25 = vld [vmem:[%s2600_s1 + $0xf0] sm:$0xff]   ;;  %v1930_v29 = vld [vmem:[%s2600_s1 + $0xf8] sm:$0xff]   ;;  %v1940_v37 = vld [vmem:[%s2600_s1 + $0x100] sm:$0xff]   ;;  %p2014_p12 = pnand %p2013_p11, %p2145_p5  ;;  %s2076_s22 = smov [#allocation2]  }
  0x17   : > { %s1861_s10 = smul.u32 308, %s218_s17  ;;  %v1927_v26 = vld [vmem:[%s2600_s1 + $0x30] sm:$0xff]   ;;  %v1931_v30 = vld [vmem:[%s2600_s1 + $0x38] sm:$0xff]   ;;  %v1941_v38 = vld [vmem:[%s2600_s1 + $0x148] sm:$0xff]   ;;  %s2016_s15 = sshll.u32 %s2076_s22, 4  ;;  %s2017_s15 = int_to_ptr.vmem [resolvable:$false] %s2016_s15 }
  0x18   : > { %1670 = vmatpush3.bf16.msra.mxu0 %v1911_v10  ;;  %v1928_v27 = vld [vmem:[%s2600_s1 + $0xb0] sm:$0xff]   ;;  %v1932_v31 = vld [vmem:[%s2600_s1 + $0xb8] sm:$0xff]   ;;  %v1946_v41 = vld [vmem:[%s2600_s1 + $0x108] sm:$0xff]   ;;  %p2015_p13 = pneg %p2014_p12  ;;  %s2018_s16 = scalar_lea.vmem %s2017_s15, 32 }
  0x19   : > { %1722 = vmatpush3.bf16.msra.mxu1 %v1912_v11  ;;  %1671 = vmatprep.subr.bf16.mxu0 %v1913_v12  ;;  %s2250_s30 = scalar_lea.vmem %s2599_s0, %s1861_s10  ;;  %v1949_v44 = vld [vmem:[%s2600_s1 + $0x150] sm:$0xff]   ;;  %v1957_v49 = vld [vmem:[%s2600_s1 + $0x158] sm:$0xff]   ;;  %v1965_v54 = vld [vmem:[%s2600_s1 + $0x160] sm:$0xff]   ;;  %p2019_p0 = scmp.lt.s32.totalorder %s2558_s9, %s2017_s15 }
  0x1a   : > { %1723 = vmatprep.subr.bf16.mxu1 %v1914_v13  ;;  %v1933_v32 = vld [vmem:[%s2250_s30] ss:$28 sps:$4 sm:$0xff]   ;;  %v1936_v34 = vld [vmem:[%s2250_s30 + $0x8] ss:$28 sps:$4 sm:$0xff]   ;;  %v1947_v42 = vld [vmem:[%s2250_s30 + $0x38] ss:$28 sps:$4 sm:$0xff]   ;;  %p2020_p1 = scmp.lt.s32.totalorder %s2018_s16, %s2012_s14 }
  0x1b   : > { %v1935_v33 = vld [vmem:[%s2250_s30 + $0x4] ss:$28 sps:$4 sm:$0xff]   ;;  %v1938_v35 = vld [vmem:[%s2250_s30 + $0xc] ss:$28 sps:$4 sm:$0xff]   ;;  %v1942_v39 = vld [vmem:[%s2250_s30 + $0x3c] ss:$28 sps:$4 sm:$0xff]  }
  0x1c   : > { %1672 = vmatpush3.bf16.msra.mxu0 %v1915_v14  ;;  %924 = vmatprep.mubr.bf16.mxu0 %v1935_v33  ;;  %v1944_v40 = vld [vmem:[%s2250_s30 + $0x44] ss:$28 sps:$4 sm:$0xff]   ;;  %v1950_v45 = vld [vmem:[%s2600_s1 + $0x110] sm:$0xff]   ;;  %v1953_v47 = vld [vmem:[%s2250_s30 + $0x7c] ss:$28 sps:$4 sm:$0xff]   ;;  %p2021_p2 = por %p2020_p1, %p2019_p0 }
  0x1d   : > { %1724 = vmatpush3.bf16.msra.mxu1 %v1916_v15  ;;  %1673 = vmatprep.subr.bf16.mxu0 %v1917_v16  ;;  %v1948_v43 = vld [vmem:[%s2250_s30 + $0x40] ss:$28 sps:$4 sm:$0xff]   ;;  %v1951_v46 = vld [vmem:[%s2250_s30 + $0x74] ss:$28 sps:$4 sm:$0xff]   ;;  %v1959_v52 = vld [vmem:[%s2250_s30 + $0xac] ss:$28 sps:$4 sm:$0xff]  }
  0x1e   : > { %1725 = vmatprep.subr.bf16.mxu1 %v1918_v17  ;;  %1004 = vmatprep.mubr.bf16.mxu1 %v1938_v35  ;;  %v1955_v48 = vld [vmem:[%s2250_s30 + $0x70] ss:$28 sps:$4 sm:$0xff]   ;;  %v1958_v50 = vld [vmem:[%s2600_s1 + $0x118] sm:$0xff]   ;;  %v1966_v55 = vld [vmem:[%s2600_s1 + $0x120] sm:$0xff]   ;;  %p2022_p3 = pnand %p2021_p2, %p2015_p13 }
  0x1f   : > { %v1956_v51 = vld [vmem:[%s2250_s30 + $0x78] ss:$28 sps:$4 sm:$0xff]   ;;  %v1967_v56 = vld [vmem:[%s2600_s1 + $0x168] sm:$0xff]   ;;  %v1968_v59 = vld [vmem:[%s2250_s30 + $0xe4] ss:$28 sps:$4 sm:$0xff]  }
  0x20   : > { %1674 = vmatpush3.bf16.msra.mxu0 %v1919_v18  ;;  %v1961_v53 = vld [vmem:[%s2250_s30 + $0xb4] ss:$28 sps:$4 sm:$0xff]   ;;  %v1963_v57 = vld [vmem:[%s2250_s30 + $0xa8] ss:$28 sps:$4 sm:$0xff]   ;;  %v1981_v0 = vld [vmem:[%s2600_s1 + $0x178] sm:$0xff]  }
  0x21   : > { %1726 = vmatpush3.bf16.msra.mxu1 %v1920_v19  ;;  %1675 = vmatprep.subr.bf16.mxu0 %v1921_v20  ;;  %v1964_v58 = vld [vmem:[%s2250_s30 + $0xb0] ss:$28 sps:$4 sm:$0xff]   ;;  %v1973_v1 = vld [vmem:[%s2250_s30 + $0xe0] ss:$28 sps:$4 sm:$0xff]   ;;  %v1974_v6 = vld [vmem:[%s2250_s30 + $0xe8] ss:$28 sps:$4 sm:$0xff]  }
  0x22   : > { %1727 = vmatprep.subr.bf16.mxu1 %v1922_v21  ;;  %v1972_v60 = vld [vmem:[%s2600_s1 + $0x128] sm:$0xff]   ;;  %v1975_v62 = vld [vmem:[%s2600_s1 + $0x170] sm:$0xff]   ;;  %v263_v2 = vld [vmem:[%s2250_s30 + $0x118] sm:$0x11] }
  0x23   : > { %v1970_v61 = vld [vmem:[%s2250_s30 + $0xec] ss:$28 sps:$4 sm:$0xff]   ;;  %v1976_v63 = vld [vmem:[%s2600_s1 + $0x130] sm:$0xff]   ;;  %v264_v3 = vld [vmem:[%s2250_s30 + $0x120] sm:$0x11]  ;;  %v1578_v7 = vcombine.high %v263_v2, %v263_v2  ;;  %v1577_v10 = vcombine.low %v263_v2, %v263_v2 }
  0x24   : > { %1676 = vmatpush3.bf16.msra.mxu0 %v1923_v22  ;;  %v1982_v4 = vld [vmem:[%s2600_s1 + $0x138] sm:$0xff]   ;;  %v1988_v5 = vld [vmem:[%s2600_s1 + $0x180] sm:$0xff]   ;;  %v1580_v8 = vcombine.high %v264_v3, %v264_v3  ;;  %v265_v9 = vld [vmem:[%s2250_s30 + $0x128] sm:$0x11]  ;;  %v1579_v11 = vcombine.low %v264_v3, %v264_v3 }
  0x25   : > { %1728 = vmatpush3.bf16.msra.mxu1 %v1924_v23  ;;  %1677 = vmatprep.subr.bf16.mxu0 %v1925_v24  ;;  %v1985_v12 = vld [vmem:[%s2250_s30 + $0x14] ss:$28 sps:$4 sm:$0xff]   ;;  %v1582_v13 = vcombine.high %v265_v9, %v265_v9  ;;  %v1581_v15 = vcombine.low %v265_v9, %v265_v9  ;;  %v1990_v16 = vld [vmem:[%s2250_s30 + $0x4c] ss:$28 sps:$4 sm:$0xff]   ;;  %v1995_v21 = vld [vmem:[%s2250_s30 + $0x84] ss:$28 sps:$4 sm:$0xff]  }
  0x26   : > { %1729 = vmatprep.subr.bf16.mxu1 %v1926_v25  ;;  %v1983_v14 = vld [vmem:[%s2250_s30 + $0x10] ss:$28 sps:$4 sm:$0xff]   ;;  %v1992_v17 = vld [vmem:[%s2250_s30 + $0x18] ss:$28 sps:$4 sm:$0xff]   ;;  %v1993_v19 = vld [vmem:[%s2250_s30 + $0x48] ss:$28 sps:$4 sm:$0xff]  }
  0x27   : > { %v1989_v18 = vld [vmem:[%s2600_s1 + $0x188] sm:$0xff]   ;;  %v1998_v23 = vld [vmem:[%s2250_s30 + $0x80] ss:$28 sps:$4 sm:$0xff]  }
  0x28   : > { %1678 = vmatpush3.bf16.msra.mxu0 %v1927_v26  ;;  %v1994_v20 = vld [vmem:[%s2250_s30 + $0x50] ss:$28 sps:$4 sm:$0xff]   ;;  %v1997_v22 = vld [vmem:[%s2250_s30 + $0x88] ss:$28 sps:$4 sm:$0xff]   ;;  %v1999_v24 = vld [vmem:[%s2250_s30 + $0xc0] ss:$28 sps:$4 sm:$0xff]  }
  0x29   : > { %1730 = vmatpush3.bf16.msra.mxu1 %v1928_v27  ;;  %1679 = vmatprep.subr.bf16.mxu0 %v1929_v28  ;;  %v2000_v25 = vld [vmem:[%s2250_s30 + $0xbc] ss:$28 sps:$4 sm:$0xff]   ;;  %v2004_v28 = vld [vmem:[%s2250_s30 + $0x130] ss:$0 sps:$4 sm:$0x11]  }
  0x2a   : > { %1731 = vmatprep.subr.bf16.mxu1 %v1930_v29  ;;  %v2002_v26 = vld [vmem:[%s2250_s30 + $0xf8] ss:$28 sps:$4 sm:$0xff]   ;;  %v2360_v33 = vld [vmem:[%s2601_s2] ss:$0 sm:$0xff] }
  0x2b   : > { %v2003_v27 = vld [vmem:[%s2250_s30 + $0xb8] ss:$28 sps:$4 sm:$0xff]  }
  0x2c   : > { %1680 = vmatpush3.bf16.msra.mxu0 %v1931_v30  ;;  %v2005_v29 = vld [vmem:[%s2250_s30 + $0xf4] ss:$28 sps:$4 sm:$0xff]  }
  0x2d   : > { %1732 = vmatpush3.bf16.msra.mxu1 %v1932_v31  ;;  %1769 = vmatprep.subr.bf16.mxu0 %v1939_v36  ;;  %v2007_v30 = vld [vmem:[%s2250_s30 + $0xf0] ss:$28 sps:$4 sm:$0xff]  }
  0x2e   : > { %1845 = vmatprep.subr.bf16.mxu1 %v1939_v36 }
  0x2f   : > { %925 = vmatmul.mubr.bf16.vlgmr.msra.gmra.mrb[0].mxu0 %v1933_v32 }
  0x30   : > { %1005 = vmatmul.mubr.bf16.vlgmr.msra.gmra.mrb[0].mxu1 %v1936_v34  ;;  %1770 = vmatpush3.bf16.msra.mxu0 %v1940_v37 }
  0x31   : > { %1853 = vmatpush3.bf16.msra.mxu1 %v1940_v37  ;;  %932 = vmatprep.mubr.bf16.mxu0 %v1942_v39 }
  0x32   : > { %1846 = vmatprep.subr.bf16.mxu1 %v1941_v38  ;;  %1771 = vmatprep.subr.bf16.mxu0 %v1941_v38 }
  0x33   : > { %1012 = vmatprep.mubr.bf16.mxu1 %v1944_v40 }
  0x34   : > { %1772 = vmatpush3.bf16.msra.mxu0 %v1946_v41 }
  0x35   : > { %1854 = vmatpush3.bf16.msra.mxu1 %v1946_v41  ;;  %1773 = vmatprep.subr.bf16.mxu0 %v1949_v44 }
  0x36   : > { %1847 = vmatprep.subr.bf16.mxu1 %v1949_v44 }
  0x37   : > { %933 = vmatmul.mubr.bf16.gmra.mrb[4].mxu0 %v1947_v42 }
  0x38   : > { %1013 = vmatmul.mubr.bf16.gmra.mrb[4].mxu1 %v1948_v43  ;;  %940 = vmatprep.mubr.bf16.mxu0 %v1951_v46 }
  0x39   : > { %1855 = vmatpush3.bf16.msra.mxu1 %v1950_v45  ;;  %1020 = vmatprep.mubr.bf16.mxu1 %v1953_v47 }
  0x3a   : > { %1774 = vmatpush3.bf16.msra.mxu0 %v1950_v45  ;;  %1848 = vmatprep.subr.bf16.mxu1 %v1957_v49 }
  0x3b   : > { %1775 = vmatprep.subr.bf16.mxu0 %v1957_v49 }
  0x3d   : > { %1856 = vmatpush3.bf16.msra.mxu1 %v1958_v50 }
  0x3e   : > { %1776 = vmatpush3.bf16.msra.mxu0 %v1958_v50  ;;  %1849 = vmatprep.subr.bf16.mxu1 %v1965_v54 }
  0x3f   : > { %941 = vmatmul.mubr.bf16.gmra.mrb[8].mxu0 %v1955_v48  ;;  %1777 = vmatprep.subr.bf16.mxu0 %v1965_v54 }
  0x40   : > { %1021 = vmatmul.mubr.bf16.gmra.mrb[8].mxu1 %v1956_v51  ;;  %948 = vmatprep.mubr.bf16.mxu0 %v1959_v52 }
  0x41   : > { %1028 = vmatprep.mubr.bf16.mxu1 %v1961_v53  ;;  %1857 = vmatpush3.bf16.msra.mxu1 %v1966_v55 }
  0x42   : > { %1778 = vmatpush3.bf16.msra.mxu0 %v1966_v55  ;;  %1850 = vmatprep.subr.bf16.mxu1 %v1967_v56 }
  0x43   : > { %1779 = vmatprep.subr.bf16.mxu0 %v1967_v56 }
  0x45   : > { %1858 = vmatpush3.bf16.msra.mxu1 %v1972_v60 }
  0x46   : > { %1851 = vmatprep.subr.bf16.mxu1 %v1975_v62  ;;  %1780 = vmatpush3.bf16.msra.mxu0 %v1972_v60 }
  0x47   : > { %949 = vmatmul.mubr.bf16.gmra.mrb[12].mxu0 %v1963_v57  ;;  %1781 = vmatprep.subr.bf16.mxu0 %v1975_v62 }
  0x48   : > { %1029 = vmatmul.mubr.bf16.gmra.mrb[12].mxu1 %v1964_v58  ;;  %956 = vmatprep.mubr.bf16.mxu0 %v1968_v59 }
  0x49   : > { %1036 = vmatprep.mubr.bf16.mxu1 %v1970_v61  ;;  %1859 = vmatpush3.bf16.msra.mxu1 %v1976_v63 }
  0x4a   : > { %1852 = vmatprep.subr.bf16.mxu1 %v1981_v0  ;;  %1782 = vmatpush3.bf16.msra.mxu0 %v1976_v63 }
  0x4b   : > { %1783 = vmatprep.subr.bf16.mxu0 %v1981_v0 }
  0x4d   : > { %1860 = vmatpush3.bf16.msra.mxu1 %v1982_v4 }
  0x4e   : > { %1829 = vmatprep.subr.bf16.mxu1 %v1988_v5  ;;  %1784 = vmatpush3.bf16.msra.mxu0 %v1982_v4 }
  0x4f   : > { %957 = vmatmul.mubr.bf16.gmra.mrb[16].mxu0 %v1973_v1 }
  0x50   : > { %1037 = vmatmul.mubr.bf16.gmra.mrb[16].mxu1 %v1974_v6  ;;  %964 = vmatprep.mubr.bf16.mxu0 %v1578_v7 }
  0x51   : > { %1044 = vmatprep.mubr.bf16.mxu1 %v1580_v8 }
  0x57   : > { %965 = vmatmul.mubr.bf16.gmra.mrb[20].mxu0 %v1577_v10 }
  0x58   : > { %1045 = vmatmul.mubr.bf16.gmra.mrb[20].mxu1 %v1579_v11  ;;  %1084 = vmatprep.mubr.bf16.mxu0 %v1985_v12 }
  0x59   : > { %1124 = vmatprep.mubr.bf16.mxu1 %v1582_v13 }
  0x5f   : > { %1085 = vmatmul.mubr.bf16.vlgmr.msra.gmra.mrb[24].mxu0 %v1983_v14 }
  0x60   : > { %1125 = vmatmul.mubr.bf16.vlgmr.msra.gmra.mrb[24].mxu1 %v1581_v15  ;;  %1092 = vmatprep.mubr.bf16.mxu0 %v1990_v16 }
  0x61   : > { %1830 = vmatpush3.bf16.msra.mxu1 %v1988_v5  ;;  %1833 = vmatprep.mubr.msk.bf16.mxu1 %vm873_vm0, %v1992_v17 }
  0x62   : > { %1831 = vmatprep.subr.bf16.mxu1 %v1989_v18 }
  0x65   : > { %1832 = vmatpush3.bf16.msra.mxu1 %v1989_v18 }
  0x67   : > { %1093 = vmatmul.mubr.bf16.gmra.mrb[28].mxu0 %v1993_v19 }
  0x68   : > { %1834 = vmatmul.mubr.msk.bf16.vlgmr.msra.gmra.mrb[28].mxu1 %vm873_vm0, %v1994_v20  ;;  %1100 = vmatprep.mubr.bf16.mxu0 %v1995_v21 }
  0x69   : > { %1837 = vmatprep.mubr.msk.bf16.mxu1 %vm873_vm0, %v1997_v22 }
  0x6f   : > { %1101 = vmatmul.mubr.bf16.gmra.mrb[32].mxu0 %v1998_v23 }
  0x70   : > { %1838 = vmatmul.mubr.msk.bf16.gmra.mrb[32].mxu1 %vm873_vm0, %v1999_v24  ;;  %1108 = vmatprep.mubr.bf16.mxu0 %v2000_v25 }
  0x71   : > { %1841 = vmatprep.mubr.msk.bf16.mxu1 %vm873_vm0, %v2002_v26 }
  0x77   : > { %1109 = vmatmul.mubr.bf16.gmra.mrb[36].mxu0 %v2003_v27 }
  0x78   : > { %1842 = vmatmul.mubr.msk.bf16.gmra.mrb[36].mxu1 %vm873_vm0, %v2004_v28  ;;  %1116 = vmatprep.mubr.bf16.mxu0 %v2005_v29 }
  0x7f   : > { %1117 = vmatmul.mubr.bf16.gmra.mrb[40].mxu0 %v2007_v30 }
 0x102   : > { %v1681_v31 = vpop.f32.mrb[0].mxu0 }
 0x103   : > { %v1733_v32 = vpop.f32.mrb[0].mxu1  ;;  %v1682_v34 = vpop.f32.mrb[1].mxu0 }
 0x104   : > { %v1683_v35 = vadd.f32 %v1682_v34, %v1681_v31  ;;  %v1734_v36 = vpop.f32.mrb[1].mxu1  ;;  %v1684_v37 = vpop.f32.mrb[2].mxu0 }
 0x105   : > { %v1735_v38 = vadd.f32 %v1734_v36, %v1733_v32  ;;  %v1736_v39 = vpop.f32.mrb[2].mxu1  ;;  %v1685_v40 = vpop.f32.mrb[3].mxu0 }
 0x106   : > { %v927_v41 = vadd.f32 %v1683_v35, %v2360_v33  ;;  %v1686_v42 = vadd.f32 %v1685_v40, %v1684_v37  ;;  %v1737_v43 = vpop.f32.mrb[3].mxu1 }
 0x107   : > { %v1738_v44 = vadd.f32 %v1737_v43, %v1736_v39 }
 0x108   : > { %v2363_v45 = vadd.f32 %v1735_v38, %v927_v41  ;;  %v930_v46 = vadd.f32 %v1686_v42, %v2360_v33 }
 0x10a   : > { %v2366_v47 = vadd.f32 %v1738_v44, %v930_v46  ;;  %v1687_v48 = vpop.f32.mrb[4].mxu0 }
 0x10b   : > { %v1739_v49 = vpop.f32.mrb[4].mxu1  ;;  %v1688_v50 = vpop.f32.mrb[5].mxu0 }
 0x10c   : > { %v1689_v51 = vadd.f32 %v1688_v50, %v1687_v48  ;;  %v1740_v52 = vpop.f32.mrb[5].mxu1  ;;  %v1690_v53 = vpop.f32.mrb[6].mxu0 }
 0x10d   : > { %v1741_v54 = vadd.f32 %v1740_v52, %v1739_v49  ;;  %v1742_v55 = vpop.f32.mrb[6].mxu1  ;;  %v1691_v56 = vpop.f32.mrb[7].mxu0 }
 0x10e   : > { %v935_v57 = vadd.f32 %v1689_v51, %v2360_v33  ;;  %v1692_v58 = vadd.f32 %v1691_v56, %v1690_v53  ;;  %v1743_v59 = vpop.f32.mrb[7].mxu1 }
 0x10f   : > { %v1744_v60 = vadd.f32 %v1743_v59, %v1742_v55 }
 0x110   : > { %v2369_v61 = vadd.f32 %v1741_v54, %v935_v57  ;;  %v938_v62 = vadd.f32 %v1692_v58, %v2360_v33 }
 0x112   : > { %v2372_v63 = vadd.f32 %v1744_v60, %v938_v62  ;;  %v1693_v0 = vpop.f32.mrb[8].mxu0 }
 0x113   : > { %v1745_v1 = vpop.f32.mrb[8].mxu1  ;;  %v1694_v2 = vpop.f32.mrb[9].mxu0 }
 0x114   : > { %v1695_v3 = vadd.f32 %v1694_v2, %v1693_v0  ;;  %v1746_v4 = vpop.f32.mrb[9].mxu1  ;;  %v1696_v5 = vpop.f32.mrb[10].mxu0 }
 0x115   : > { %v1747_v6 = vadd.f32 %v1746_v4, %v1745_v1  ;;  %v1748_v7 = vpop.f32.mrb[10].mxu1  ;;  %v1697_v8 = vpop.f32.mrb[11].mxu0 }
 0x116   : > { %v943_v9 = vadd.f32 %v1695_v3, %v2360_v33  ;;  %v1698_v10 = vadd.f32 %v1697_v8, %v1696_v5  ;;  %v1749_v11 = vpop.f32.mrb[11].mxu1 }
 0x117   : > { %v1750_v12 = vadd.f32 %v1749_v11, %v1748_v7 }
 0x118   : > { %v2375_v13 = vadd.f32 %v1747_v6, %v943_v9  ;;  %v946_v14 = vadd.f32 %v1698_v10, %v2360_v33 }
 0x11a   : > { %v2378_v15 = vadd.f32 %v1750_v12, %v946_v14  ;;  %v1699_v16 = vpop.f32.mrb[12].mxu0 }
 0x11b   : > { %v1751_v17 = vpop.f32.mrb[12].mxu1  ;;  %v1700_v18 = vpop.f32.mrb[13].mxu0 }
 0x11c   : > { %v1701_v19 = vadd.f32 %v1700_v18, %v1699_v16  ;;  %v1752_v20 = vpop.f32.mrb[13].mxu1  ;;  %v1702_v21 = vpop.f32.mrb[14].mxu0 }
 0x11d   : > { %v1753_v22 = vadd.f32 %v1752_v20, %v1751_v17  ;;  %v1754_v23 = vpop.f32.mrb[14].mxu1  ;;  %v1703_v24 = vpop.f32.mrb[15].mxu0 }
 0x11e   : > { %v951_v25 = vadd.f32 %v1701_v19, %v2360_v33  ;;  %v1704_v26 = vadd.f32 %v1703_v24, %v1702_v21  ;;  %v1755_v27 = vpop.f32.mrb[15].mxu1 }
 0x11f   : > { %v1756_v28 = vadd.f32 %v1755_v27, %v1754_v23 }
 0x120   : > { %v2381_v29 = vadd.f32 %v1753_v22, %v951_v25  ;;  %v954_v30 = vadd.f32 %v1704_v26, %v2360_v33 }
 0x122   : > { %v2384_v31 = vadd.f32 %v1756_v28, %v954_v30  ;;  %v1705_v32 = vpop.f32.mrb[16].mxu0 }
 0x123   : > { %v1757_v34 = vpop.f32.mrb[16].mxu1  ;;  %v1706_v35 = vpop.f32.mrb[17].mxu0 }
 0x124   : > { %v1707_v36 = vadd.f32 %v1706_v35, %v1705_v32  ;;  %v1758_v37 = vpop.f32.mrb[17].mxu1  ;;  %v1708_v38 = vpop.f32.mrb[18].mxu0  ;;  %v1651_v32 = vld [vmem:[%s2602_s3 + $0xb0] sm:$0xff] }
 0x125   : > { %v1759_v39 = vadd.f32 %v1758_v37, %v1757_v34  ;;  %v1760_v40 = vpop.f32.mrb[18].mxu1  ;;  %v1709_v41 = vpop.f32.mrb[19].mxu0 }
 0x126   : > { %v959_v42 = vadd.f32 %v1707_v36, %v2360_v33  ;;  %v1710_v43 = vadd.f32 %v1709_v41, %v1708_v38  ;;  %v1761_v44 = vpop.f32.mrb[19].mxu1 }
 0x127   : > { %v1762_v46 = vadd.f32 %v1761_v44, %v1760_v40 }
 0x128   : > { %v2387_v48 = vadd.f32 %v1759_v39, %v959_v42  ;;  %v962_v49 = vadd.f32 %v1710_v43, %v2360_v33 }
 0x12a   : > { %v2390_v50 = vadd.f32 %v1762_v46, %v962_v49  ;;  %v1711_v51 = vpop.f32.mrb[20].mxu0 }
 0x12b   : > { %v1763_v52 = vpop.f32.mrb[20].mxu1  ;;  %v1712_v53 = vpop.f32.mrb[21].mxu0 }
 0x12c   : > { %v1713_v54 = vadd.f32 %v1712_v53, %v1711_v51  ;;  %v1764_v55 = vpop.f32.mrb[21].mxu1  ;;  %v1714_v56 = vpop.f32.mrb[22].mxu0 }
 0x12d   : > { %v1765_v57 = vadd.f32 %v1764_v55, %v1763_v52  ;;  %v1766_v58 = vpop.f32.mrb[22].mxu1  ;;  %v1715_v59 = vpop.f32.mrb[23].mxu0  ;;  %v1641_v55 = vld [vmem:[%s2602_s3 + $0x60] sm:$0xff] }
 0x12e   : > { %v967_v60 = vadd.f32 %v1713_v54, %v2360_v33  ;;  %v1767_v62 = vpop.f32.mrb[23].mxu1  ;;  %v1228_v54 = vld [vmem:[%s2602_s3 + $0x10] sm:$0xff] }
 0x130   : > { %v1047_v0 = vadd.f32 %v1765_v57, %v967_v60 }
 0x132   : > { %v1785_v1 = vpop.f32.mrb[24].mxu0 }
 0x133   : > { %v1815_v2 = vpop.f32.mrb[24].mxu1  ;;  %v1786_v3 = vpop.f32.mrb[25].mxu0 }
 0x134   : > { %v1787_v4 = vadd.f32 %v1786_v3, %v1785_v1  ;;  %v1816_v5 = vpop.f32.mrb[25].mxu1  ;;  %v1788_v6 = vpop.f32.mrb[26].mxu0 }
 0x135   : > { %v1817_v7 = vadd.f32 %v1816_v5, %v1815_v2  ;;  %v1818_v8 = vpop.f32.mrb[26].mxu1  ;;  %v1789_v9 = vpop.f32.mrb[27].mxu0  ;;  %v1653_v5 = vld [vmem:[%s2602_s3 + $0xc0] sm:$0xff] }
 0x136   : > { %v1790_v10 = vadd.f32 %v1789_v9, %v1788_v6  ;;  %v1819_v11 = vpop.f32.mrb[27].mxu1  ;;  %v1087_v12 = vadd.f32 %v1787_v4, %v2363_v45  ;;  %v1640_v45 = vld [vmem:[%s2602_s3 + $0x58] sm:$0xff] }
 0x137   : > { %v2394_v14 = vadd.f32 %v1817_v7, %v1047_v0 }
 0x138   : > { %v1090_v16 = vadd.f32 %v1790_v10, %v2366_v47  ;;  %v1226_v47 = vld [vmem:[%s2602_s3] sm:$0xff] }
 0x13a   : > { %v1791_v33 = vpop.f32.mrb[28].mxu0 }
 0x13b   : > { %v1835_v17 = vpop.f32.mrb[28].mxu1  ;;  %v1792_v18 = vpop.f32.mrb[29].mxu0 }
 0x13c   : > { %v1793_v19 = vadd.f32 %v1792_v18, %v1791_v33  ;;  %v1166_v20 = vpop.f32.mrb[29].mxu1  ;;  %v1794_v21 = vpop.f32.mrb[30].mxu0 }
 0x13d   : > { %v1167_v22 = vadd.f32 %v1166_v20, %v1087_v12  ;;  %v1836_v23 = vpop.f32.mrb[30].mxu1  ;;  %v1795_v24 = vpop.f32.mrb[31].mxu0  ;;  %v1229_v20 = vld [vmem:[%s2602_s3 + $0x18] sm:$0xff] }
 0x13e   : > { %v1095_v25 = vadd.f32 %v1793_v19, %v2369_v61  ;;  %v1796_v26 = vadd.f32 %v1795_v24, %v1794_v21  ;;  %v1169_v27 = vpop.f32.mrb[31].mxu1  ;;  %v1227_v61 = vld [vmem:[%s2602_s3 + $0x8] sm:$0xff] }
 0x13f   : > { %v1212_v28 = vmax.f32 %v1167_v22, 0.0  ;;  %v1170_v30 = vadd.f32 %v1169_v27, %v1090_v16 }
 0x140   : > { %v1175_v34 = vadd.f32 %v1835_v17, %v1095_v25  ;;  %v1098_v35 = vadd.f32 %v1796_v26, %v2372_v63 }
 0x141   : > { %v1213_v36 = vmax.f32 %v1170_v30, 0.0  ;;  %v1315_v37 = vmul.f32 %v1640_v45, %v1212_v28  ;;  %v1237_v38 = vmul.f32 %v1226_v47, %v1212_v28  ;;  %v1391_v41 = vmul.f32 %v1651_v32, %v1212_v28 }
 0x142   : > { %v1178_v39 = vadd.f32 %v1836_v23, %v1098_v35  ;;  %v1797_v40 = vpop.f32.mrb[32].mxu0  ;;  %v1214_v42 = vmax.f32 %v1175_v34, 0.0  ;;  %v1230_v34 = vld [vmem:[%s2602_s3 + $0x20] sm:$0xff] }
 0x143   : > { %v1798_v43 = vpop.f32.mrb[33].mxu0  ;;  %v1326_v44 = vsel %vm873_vm0, %v1315_v37, 0.0  ;;  %v1248_v46 = vsel %vm873_vm0, %v1237_v38, 0.0  ;;  %v1839_v49 = vpop.f32.mrb[32].mxu1  ;;  %v1238_v51 = vmul.f32 %v1227_v61, %v1213_v36  ;;  %v1402_v62 = vsel %vm873_vm0, %v1391_v41, 0.0 }
 0x144   : > { %v1799_v52 = vadd.f32 %v1798_v43, %v1797_v40  ;;  %1327 = vadd.xlane.f32.xlu1 %v1326_v44  ;;  %1249 = vadd.xlane.f32.xlu0 %v1248_v46  ;;  %v1800_v63 = vpop.f32.mrb[34].mxu0  ;;  %v1182_v53 = vpop.f32.mrb[33].mxu1  ;;  %v1239_v1 = vmul.f32 %v1228_v54, %v1214_v42  ;;  %v1316_v2 = vmul.f32 %v1641_v55, %v1213_v36  ;;  %v1215_v6 = vmax.f32 %v1178_v39, 0.0  ;;  %v1644_v43 = vld [vmem:[%s2602_s3 + $0x78] sm:$0xff]  ;;  %v1655_v55 = vld [vmem:[%s2602_s3 + $0xd0] sm:$0xff] }
 0x145   : > { %v1801_v56 = vpop.f32.mrb[35].mxu0  ;;  %v1840_v57 = vpop.f32.mrb[34].mxu1  ;;  %v1251_v0 = vsel %vm873_vm0, %v1238_v51, 0.0  ;;  %v1393_v16 = vmul.f32 %v1653_v5, %v1214_v42 }
 0x146   : > { %v1802_v58 = vadd.f32 %v1801_v56, %v1800_v63  ;;  %v1103_v59 = vadd.f32 %v1799_v52, %v2375_v13  ;;  %v1185_v60 = vpop.f32.mrb[35].mxu1  ;;  %v1652_v13 = vld [vmem:[%s2602_s3 + $0xb8] sm:$0xff]  ;;  %v1254_v11 = vsel %vm873_vm0, %v1239_v1, 0.0  ;;  %v1329_v12 = vsel %vm873_vm0, %v1316_v2, 0.0  ;;  %v1236_v2 = vld [vmem:[%s2602_s3 + $0x50] sm:$0x1] }
 0x147   : > { %v1392_v33 = vmul.f32 %v1652_v13, %v1213_v36  ;;  %v1408_v47 = vsel %vm873_vm0, %v1393_v16, 0.0  ;;  %v1240_v28 = vmul.f32 %v1229_v20, %v1215_v6  ;;  %v1650_v16 = vld [vmem:[%s2602_s3 + $0xa8] sm:$0x1] }
 0x148   : > { %v1183_v3 = vadd.f32 %v1182_v53, %v1103_v59  ;;  %1403 = vadd.xlane.f32.xlu1 %v1402_v62  ;;  %1252 = vadd.xlane.f32.xlu0 %v1251_v0  ;;  %v1106_v4 = vadd.f32 %v1802_v58, %v2378_v15  ;;  %v1642_v15 = vld [vmem:[%s2602_s3 + $0x68] sm:$0xff] }
 0x149   : > { %v1317_v26 = vmul.f32 %v1642_v15, %v1214_v42  ;;  %v1257_v37 = vsel %vm873_vm0, %v1240_v28, 0.0 }
 0x14a   : > { %v1186_v7 = vadd.f32 %v1185_v60, %v1106_v4  ;;  %v1803_v8 = vpop.f32.mrb[36].mxu0  ;;  %v1216_v45 = vmax.f32 %v1183_v3, 0.0 }
 0x14b   : > { %v1843_v9 = vpop.f32.mrb[36].mxu1  ;;  %v1804_v10 = vpop.f32.mrb[37].mxu0  ;;  %v1332_v38 = vsel %vm873_vm0, %v1317_v26, 0.0 }
 0x14c   : > { %v1207_v17 = vadd.f32 %v1843_v9, %v2394_v14  ;;  %v1805_v18 = vadd.f32 %v1804_v10, %v1803_v8  ;;  %1255 = vadd.xlane.f32.xlu1 %v1254_v11  ;;  %1330 = vadd.xlane.f32.xlu0 %v1329_v12  ;;  %v1806_v19 = vpop.f32.mrb[38].mxu0  ;;  %v1198_v21 = vpop.f32.mrb[37].mxu1  ;;  %v1405_v14 = vsel %vm873_vm0, %v1392_v33, 0.0  ;;  %v1241_v39 = vmul.f32 %v1230_v34, %v1216_v45  ;;  %v1656_v8 = vld [vmem:[%s2602_s3 + $0xd8] sm:$0xff]  ;;  %v1646_v33 = vld [vmem:[%s2602_s3 + $0x88] sm:$0xff] }
 0x14d   : > { %v1807_v22 = vpop.f32.mrb[39].mxu0  ;;  %v1844_v23 = vpop.f32.mrb[38].mxu1  ;;  %v1217_v52 = vmax.f32 %v1186_v7, 0.0  ;;  %v1319_v54 = vmul.f32 %v1644_v43, %v1216_v45  ;;  %v1395_v59 = vmul.f32 %v1655_v55, %v1216_v45  ;;  %v1232_v7 = vld [vmem:[%s2602_s3 + $0x30] sm:$0xff]  ;;  %v1234_v45 = vld [vmem:[%s2602_s3 + $0x40] sm:$0xff]  ;;  %v1658_v34 = vld [vmem:[%s2602_s3 + $0xe8] sm:$0xff] }
 0x14e   : > { %v1111_v24 = vadd.f32 %v1805_v18, %v2381_v29  ;;  %v1808_v25 = vadd.f32 %v1807_v22, %v1806_v19  ;;  %v1201_v27 = vpop.f32.mrb[39].mxu1  ;;  %v1643_v29 = vld [vmem:[%s2602_s3 + $0x70] sm:$0xff]  ;;  %v1260_v63 = vsel %vm873_vm0, %v1241_v39, 0.0  ;;  %v2466_v60 = vmax.f32 %v1207_v17, 0.0  ;;  %v1233_v22 = vld [vmem:[%s2602_s3 + $0x38] sm:$0xff] }
 0x14f   : > { %v1318_v40 = vmul.f32 %v1643_v29, %v1215_v6  ;;  %v1338_v62 = vsel %vm873_vm0, %v1319_v54, 0.0  ;;  %v1414_v3 = vsel %vm873_vm0, %v1395_v59, 0.0  ;;  %v1396_v12 = vmul.f32 %v1656_v8, %v1217_v52  ;;  %v1648_v29 = vld [vmem:[%s2602_s3 + $0x98] sm:$0xff]  ;;  %v1659_v39 = vld [vmem:[%s2602_s3 + $0xf0] sm:$0xff] }
 0x150   : > { %v1191_v30 = vadd.f32 %v1839_v49, %v1111_v24  ;;  %v1114_v32 = vadd.f32 %v1808_v25, %v2384_v31  ;;  %1409 = vadd.xlane.f32.xlu1 %v1408_v47  ;;  %1406 = vadd.xlane.f32.xlu0 %v1405_v14  ;;  %v1654_v31 = vld [vmem:[%s2602_s3 + $0xc8] sm:$0xff]  ;;  %v1247_v13 = vmul.f32 %v1236_v2, %v2466_v60  ;;  %v1647_v47 = vld [vmem:[%s2602_s3 + $0x90] sm:$0xff] }
 0x151   : > { %v1394_v51 = vmul.f32 %v1654_v31, %v1215_v6  ;;  %v1335_v53 = vsel %vm873_vm0, %v1318_v40, 0.0  ;;  %v1325_v15 = vmul.f32 %v1650_v16, %v2466_v60  ;;  %v1417_v19 = vsel %vm873_vm0, %v1396_v12, 0.0  ;;  %v1235_v40 = vld [vmem:[%s2602_s3 + $0x48] sm:$0xff] }
 0x152   : > { %v1194_v35 = vadd.f32 %v1840_v57, %v1114_v32  ;;  %v1809_v61 = vpop.f32.mrb[40].mxu0  ;;  %v1218_v4 = vmax.f32 %v1191_v30, 0.0  ;;  %v1279_v9 = vsel %vm1278_vm1, %v1247_v13, 0.0 }
 0x153   : > { %v1810_v36 = vpop.f32.mrb[41].mxu0  ;;  %v1411_v0 = vsel %vm873_vm0, %v1394_v51, 0.0  ;;  %v1356_v23 = vsel %vm1278_vm1, %v1325_v15, 0.0 }
 0x154   : > { %v1811_v41 = vadd.f32 %v1810_v36, %v1809_v61  ;;  %1258 = vadd.xlane.f32.xlu1 %v1257_v37  ;;  %1333 = vadd.xlane.f32.xlu0 %v1332_v38  ;;  %v1812_v42 = vpop.f32.mrb[42].mxu0  ;;  %v1243_v11 = vmul.f32 %v1232_v7, %v1218_v4  ;;  %v1219_v17 = vmax.f32 %v1194_v35, 0.0  ;;  %v1321_v20 = vmul.f32 %v1646_v33, %v1218_v4 }
 0x155   : > { %v1813_v44 = vpop.f32.mrb[43].mxu0 }
 0x156   : > { %v1814_v46 = vadd.f32 %v1813_v44, %v1812_v42  ;;  %v1119_v49 = vadd.f32 %v1811_v41, %v2387_v48  ;;  %v1231_v48 = vld [vmem:[%s2602_s3 + $0x28] sm:$0xff]  ;;  %v1266_v18 = vsel %vm873_vm0, %v1243_v11, 0.0  ;;  %v1344_v25 = vsel %vm873_vm0, %v1321_v20, 0.0  ;;  %v1660_v44 = vld [vmem:[%s2602_s3 + $0xf8] sm:$0xff] }
 0x157   : > { %v1242_v1 = vmul.f32 %v1231_v48, %v1217_v52  ;;  %v1322_v32 = vmul.f32 %v1647_v47, %v1219_v17  ;;  %v1398_v35 = vmul.f32 %v1658_v34, %v1219_v17 }
 0x158   : > { %v1199_v56 = vadd.f32 %v1198_v21, %v1119_v49  ;;  %1261 = vadd.xlane.f32.xlu1 %v1260_v63  ;;  %1336 = vadd.xlane.f32.xlu0 %v1335_v53  ;;  %v1122_v57 = vadd.f32 %v1814_v46, %v2390_v50  ;;  %v1645_v50 = vld [vmem:[%s2602_s3 + $0x80] sm:$0xff] }
 0x159   : > { %v1263_v5 = vsel %vm873_vm0, %v1242_v1, 0.0  ;;  %v1320_v6 = vmul.f32 %v1645_v50, %v1217_v52  ;;  %v1657_v21 = vld [vmem:[%s2602_s3 + $0xe0] sm:$0xff]  ;;  %v1347_v37 = vsel %vm873_vm0, %v1322_v32, 0.0  ;;  %v1423_v41 = vsel %vm873_vm0, %v1398_v35, 0.0 }
 0x15a   : > { %v1202_v58 = vadd.f32 %v1201_v27, %v1122_v57  ;;  %v1220_v24 = vmax.f32 %v1199_v56, 0.0  ;;  %v1397_v26 = vmul.f32 %v1657_v21, %v1218_v4  ;;  %v1244_v27 = vmul.f32 %v1233_v22, %v1219_v17  ;;  %v1649_v46 = vld [vmem:[%s2602_s3 + $0xa0] sm:$0xff] }
 0x15b   : > { %v1341_v10 = vsel %vm873_vm0, %v1320_v6, 0.0  ;;  %v1661_v53 = vld [vmem:[%s2602_s3 + $0x100] sm:$0x1] }
 0x15c   : > { %1339 = vadd.xlane.f32.xlu1 %v1338_v62  ;;  %1412 = vadd.xlane.f32.xlu0 %v1411_v0  ;;  %v1420_v14 = vsel %vm873_vm0, %v1397_v26, 0.0  ;;  %v1269_v28 = vsel %vm873_vm0, %v1244_v27, 0.0  ;;  %v1245_v30 = vmul.f32 %v1234_v45, %v1220_v24  ;;  %v1221_v61 = vmax.f32 %v1202_v58, 0.0 }
 0x15d   : > { %v1323_v38 = vmul.f32 %v1648_v29, %v1220_v24  ;;  %v1399_v42 = vmul.f32 %v1659_v39, %v1220_v24  ;;  %v1401_v56 = vmul.f32 %v1661_v53, %v2466_v60 }
 0x15e   : > { %v1272_v36 = vsel %vm873_vm0, %v1245_v30, 0.0  ;;  %v1246_v43 = vmul.f32 %v1235_v40, %v1221_v61  ;;  %v1400_v52 = vmul.f32 %v1660_v44, %v1221_v61  ;;  %v1324_v63 = vmul.f32 %v1649_v46, %v1221_v61 }
 0x15f   : > { %v1350_v31 = vsel %vm873_vm0, %v1323_v38, 0.0  ;;  %v1426_v49 = vsel %vm873_vm0, %v1399_v42, 0.0  ;;  %v1432_v57 = vsel %vm1278_vm1, %v1401_v56, 0.0  ;;  %v1223_v56 = vlaneseq }
 0x160   : > { %1415 = vadd.xlane.f32.xlu1 %v1414_v3  ;;  %1264 = vadd.xlane.f32.xlu0 %v1263_v5  ;;  %v1275_v51 = vsel %vm873_vm0, %v1246_v43, 0.0  ;;  %v1429_v54 = vsel %vm873_vm0, %v1400_v52, 0.0  ;;  %v1353_v55 = vsel %vm873_vm0, %v1324_v63, 0.0 }
 0x164   : > { %1280 = vadd.xlane.f32.xlu1 %v1279_v9  ;;  %1342 = vadd.xlane.f32.xlu0 %v1341_v10 }
 0x168   : > { %1267 = vadd.xlane.f32.xlu1 %v1266_v18  ;;  %1418 = vadd.xlane.f32.xlu0 %v1417_v19 }
 0x16c   : > { %1345 = vadd.xlane.f32.xlu1 %v1344_v25  ;;  %1357 = vadd.xlane.f32.xlu0 %v1356_v23 }
 0x170   : > { %1421 = vadd.xlane.f32.xlu1 %v1420_v14  ;;  %1270 = vadd.xlane.f32.xlu0 %v1269_v28 }
 0x174   : > { %1273 = vadd.xlane.f32.xlu1 %v1272_v36  ;;  %1348 = vadd.xlane.f32.xlu0 %v1347_v37 }
 0x178   : > { %1351 = vadd.xlane.f32.xlu1 %v1350_v31  ;;  %1424 = vadd.xlane.f32.xlu0 %v1423_v41 }
 0x17c   : > { %1427 = vadd.xlane.f32.xlu1 %v1426_v49  ;;  %1276 = vadd.xlane.f32.xlu0 %v1275_v51 }
 0x180   : > { %1430 = vadd.xlane.f32.xlu1 %v1429_v54  ;;  %1354 = vadd.xlane.f32.xlu0 %v1353_v55 }
 0x184   : > { %1433 = vadd.xlane.f32.xlu0 %v1432_v57 }
 0x1d1   : > { %v1328_v48 = vpop.xlane.xlu1 %1327  ;;  %v1250_v58 = vpop.xlane.xlu0 %1249 }
 0x1d5   : > { %v1404_v59 = vpop.xlane.xlu1 %1403  ;;  %v1253_v62 = vpop.xlane.xlu0 %1252 }
 0x1d6   : > { %v1282_v15 = vadd.f32 %v1253_v62, %v1250_v58 }
 0x1d9   : > { %v1256_v0 = vpop.xlane.xlu1 %1255  ;;  %v1331_v1 = vpop.xlane.xlu0 %1330 }
 0x1da   : > { %v1283_v17 = vadd.f32 %v1282_v15, %v1256_v0  ;;  %v1359_v20 = vadd.f32 %v1331_v1, %v1328_v48 }
 0x1dd   : > { %v1410_v2 = vpop.xlane.xlu1 %1409  ;;  %v1407_v50 = vpop.xlane.xlu0 %1406 }
 0x1de   : > { %v1435_v22 = vadd.f32 %v1407_v50, %v1404_v59  ;;  %v1224_v50 = vand.u32 127, %v1223_v56 }
 0x1e0   : > { %v1436_v47 = vadd.f32 %v1435_v22, %v1410_v2  ;;  %vm1300_vm3 = vcmp.eq.s32.totalorder %v1224_v50, 0  ;;  %vm1376_vm4 = vcmp.eq.s32.totalorder %v1224_v50, 1  ;;  %vm1452_vm5 = vcmp.eq.s32.totalorder %v1224_v50, 2 }
 0x1e1   : > { %v1259_v3 = vpop.xlane.xlu1 %1258  ;;  %v1334_v4 = vpop.xlane.xlu0 %1333 }
 0x1e2   : > { %v1284_v21 = vadd.f32 %v1283_v17, %v1259_v3  ;;  %v1360_v23 = vadd.f32 %v1359_v20, %v1334_v4 }
 0x1e5   : > { %v1262_v5 = vpop.xlane.xlu1 %1261  ;;  %v1337_v13 = vpop.xlane.xlu0 %1336 }
 0x1e6   : > { %v1285_v24 = vadd.f32 %v1284_v21, %v1262_v5  ;;  %v1361_v27 = vadd.f32 %v1360_v23, %v1337_v13 }
 0x1e9   : > { %v1340_v6 = vpop.xlane.xlu1 %1339  ;;  %v1413_v7 = vpop.xlane.xlu0 %1412 }
 0x1ea   : > { %v1362_v14 = vadd.f32 %v1361_v27, %v1340_v6  ;;  %v1437_v30 = vadd.f32 %v1436_v47, %v1413_v7 }
 0x1ed   : > { %v1416_v60 = vpop.xlane.xlu1 %1415  ;;  %v1265_v8 = vpop.xlane.xlu0 %1264 }
 0x1ee   : > { %v1286_v45 = vadd.f32 %v1285_v24, %v1265_v8  ;;  %v1438_v61 = vadd.f32 %v1437_v30, %v1416_v60 }
 0x1f1   : > { %v1281_v9 = vpop.xlane.xlu1 %1280  ;;  %v1343_v10 = vpop.xlane.xlu0 %1342 }
 0x1f2   : > { %v1363_v29 = vadd.f32 %v1362_v14, %v1343_v10  ;;  %v1292_v42 = vsel %vm1291_vm2, %v1281_v9, 0.0 }
 0x1f5   : > { %v1268_v11 = vpop.xlane.xlu1 %1267  ;;  %v1419_v12 = vpop.xlane.xlu0 %1418 }
 0x1f6   : > { %v1287_v28 = vadd.f32 %v1286_v45, %v1268_v11  ;;  %v1439_v38 = vadd.f32 %v1438_v61, %v1419_v12  ;;  %v1225_v11 = vld [vmem:[%s2603_s4] sm:$0x1] }
 0x1f9   : > { %v1346_v16 = vpop.xlane.xlu1 %1345  ;;  %v1358_v33 = vpop.xlane.xlu0 %1357 }
 0x1fa   : > { %v1364_v36 = vadd.f32 %v1363_v29, %v1346_v16  ;;  %v1368_v54 = vsel %vm1291_vm2, %v1358_v33, 0.0 }
 0x1fd   : > { %v1422_v18 = vpop.xlane.xlu1 %1421  ;;  %v1271_v19 = vpop.xlane.xlu0 %1270 }
 0x1fe   : > { %v1288_v35 = vadd.f32 %v1287_v28, %v1271_v19  ;;  %v1440_v43 = vadd.f32 %v1439_v38, %v1422_v18 }
 0x201   : > { %v1274_v25 = vpop.xlane.xlu1 %1273  ;;  %v1349_v26 = vpop.xlane.xlu0 %1348 }
 0x202   : > { %v1289_v37 = vadd.f32 %v1288_v35, %v1274_v25  ;;  %v1365_v31 = vadd.f32 %v1364_v36, %v1349_v26 }
 0x205   : > { %v1352_v32 = vpop.xlane.xlu1 %1351  ;;  %v1425_v34 = vpop.xlane.xlu0 %1424 }
 0x206   : > { %v1366_v44 = vadd.f32 %v1365_v31, %v1352_v32  ;;  %v1441_v49 = vadd.f32 %v1440_v43, %v1425_v34 }
 0x209   : > { %v1428_v39 = vpop.xlane.xlu1 %1427  ;;  %v1277_v40 = vpop.xlane.xlu0 %1276 }
 0x20a   : > { %v1290_v41 = vadd.f32 %v1289_v37, %v1277_v40  ;;  %v1442_v55 = vadd.f32 %v1441_v49, %v1428_v39 }
 0x20c   : > { %v1293_v46 = vadd.f32 %v1292_v42, %v1290_v41 }
 0x20d   : > { %v1355_v51 = vpop.xlane.xlu0 %1354  ;;  %v1431_v63 = vpop.xlane.xlu1 %1430 }
 0x20e   : > { %v1294_v52 = vrot.slane %v1293_v46, 4  ;;  %v1367_v53 = vadd.f32 %v1366_v44, %v1355_v51  ;;  %v1443_v58 = vadd.f32 %v1442_v55, %v1431_v63 }
 0x210   : > { %v1295_v57 = vadd.f32 %v1294_v52, %v1293_v46  ;;  %v1369_v48 = vadd.f32 %v1368_v54, %v1367_v53 }
 0x211   : > { %v1434_v59 = vpop.xlane.xlu0 %1433 }
 0x212   : > { %v1296_v62 = vrot.slane %v1295_v57, 2  ;;  %v1370_v0 = vrot.slane %v1369_v48, 4  ;;  %v1444_v1 = vsel %vm1291_vm2, %v1434_v59, 0.0 }
 0x213   : > { %v1445_v2 = vadd.f32 %v1444_v1, %v1443_v58 }
 0x214   : > { %v1297_v3 = vadd.f32 %v1296_v62, %v1295_v57  ;;  %v1371_v4 = vadd.f32 %v1370_v0, %v1369_v48 }
 0x215   : > { %v1446_v5 = vrot.slane %v1445_v2, 4 }
 0x216   : > { %v1298_v13 = vrot.slane %v1297_v3, 1  ;;  %v1372_v6 = vrot.slane %v1371_v4, 2 }
 0x217   : > { %v1447_v7 = vadd.f32 %v1446_v5, %v1445_v2 }
 0x218   : > { %v1299_v60 = vadd.f32 %v1298_v13, %v1297_v3  ;;  %v1373_v8 = vadd.f32 %v1372_v6, %v1371_v4 }
 0x219   : > { %v1448_v9 = vrot.slane %v1447_v7, 2 }
 0x21a   : > { %v1374_v10 = vrot.slane %v1373_v8, 1  ;;  %v1301_v12 = vsel %vm1300_vm3, %v1299_v60, 0.0 }
 0x21b   : > { %v1449_v16 = vadd.f32 %v1448_v9, %v1447_v7  ;;  %v1302_v15 = vadd.f32 %v1301_v12, %v1225_v11 }
 0x21c   : > { %v1375_v33 = vadd.f32 %v1374_v10, %v1373_v8 }
 0x21d   : > { %v1450_v17 = vrot.slane %v1449_v16, 1 }
 0x21e   : > { %v1377_v18 = vsel %vm1376_vm4, %v1375_v33, 0.0 }
 0x21f   : > { %v1378_v19 = vadd.f32 %v1377_v18, %v1302_v15  ;;  %v1451_v20 = vadd.f32 %v1450_v17, %v1449_v16 }
 0x221   : > { %v1453_v21 = vsel %vm1452_vm5, %v1451_v20, 0.0 }
 0x222   : > { %v1454_v22 = vadd.f32 %v1453_v21, %v1378_v19 }
 0x224   : > { %v1456_v23 = vsel %vm1455_vm6, %v1454_v22, -inf }
 0x225   : > { %1457 = vmax.xlane.f32.xlu1 %v1456_v23 }
 0x2b2   : > { %v1458_v24 = vpop.xlane.xlu1 %1457 }
 0x2b3   : > { %v1459_v25 = vsub.f32 %v1454_v22, %v1458_v24 }
 0x2b5   : > { %v1460_v26 = vmul.f32 1.442695, %v1459_v25 }
 0x2b7   : > { %2008 = vpow2.f32 %v1460_v26 }
 0x2c1   : > { %v2009_v27 = vpop.eup %2008 }
 0x2c2   : > { %v1462_v45 = vsel %vm1455_vm6, %v2009_v27, 0.0 }
 0x2c3   : > { %1463 = vadd.xlane.f32.xlu0 %v1462_v45 }
 0x350   : > { %v1464_v47 = vpop.xlane.xlu0 %1463 }
 0x351   : > { %2010 = vrcp.f32 %v1464_v47 }
 0x35b   : > { %v2011_v14 = vpop.eup %2010 }
 0x35c   : > { %v1466_v28 = vmul.f32 %v2011_v14, %v2009_v27 }
 0x35e   : > { %1467 = vst.msk [vmem:[%s216_s8] sm:$0x1] %vm1455_vm6, %v1466_v28 }
 0x35f   : > { %2025 = shalt.err (!%p2022_p3)
}
 0x360   : > { %s2026_s23 = scalar_lea.hbm %s2556_s12, 16  ;;  %s2030_s17 = scalar_lea.hbm %s2604_s5, 32 }
 0x361   : > { %p2027_p4 = scmp.ne.s32.totalorder %s2556_s12, %s2026_s23  ;;  %p2031_p9 = scmp.lt.u32.totalorder %s2556_s12, %s2604_s5 }
 0x362   : > { %p2032_p10 = scmp.lt.u32.totalorder %s2030_s17, %s2026_s23  ;;  %p2034_p12 = scmp.lt.u32.totalorder %s2026_s23, %s2556_s12 }
 0x363   : > { %p2028_p7 = pnand %p2027_p4, %p2145_p5 }
 0x364   : > { %p2033_p11 = por %p2032_p10, %p2031_p9 }
 0x365   : > { %p2029_p8 = pneg %p2028_p7 }
 0x366   : > { %p2035_p13 = por %p2034_p12, %p2033_p11 }
 0x368   : > { %p2036_p0 = pnand %p2035_p13, %p2029_p8 }
 0x36a   : > { %2039 = shalt.err (!%p2036_p0)
}
 0x36b   : > { %1862 = dma.vmem_to_hbm [thread:$0]  (%p2145_p5), %s2558_s9, 16, %s2556_s12, %s1469_s13  }
 0x36c PF: > { %p1868_p1 = scmp.ge.s32.totalorder %s2074_s21, 2  ;;  %s1493_s7 = sand.u32 1, %s2062_s18  }
 0x36d   : > { %s1494_s8 = scalar_lea.sflag [#allocation3], %s1493_s7 }
 0x36e   : > { %p1865_p2 = pnand %p1868_p1, %p2149_p6 }
 0x370   : > { %2057 = dma.done.wait (!%p1865_p2), %s1494_s8, 16  }
 0x371   : > { %2059 = vsyncadd (!%p1865_p2), %s1494_s8, 4294967280  ;;  %p15_p3 = scmp.ge.s32.totalorder %s2132_s24, 4   ;;  %s2607_s18 = smov %s2066_s19 }
 0x372   : > { %s2608_s19 = smov %s2070_s20  ;;  %s2609_s20 = smov %s2143_s27 }
 0x373   : > { %s2610_s21 = smov %s2132_s24  ;;  %17 = sbr.rel (!%p15_p3) target bundleno = 3 (0x3), region = 77 }
 0x37a   :  { %1498 = vsyncpa [#allocation3], 1 }
 0x37b   :  { %1500 = vsyncpa [#allocation3 + $0x1], 1 }

</bundles_post_ra>
